<compile_context>
chip_gen: v6e
topology: v6e:2x2x1
jax: 0.10.0
libtpu: 0.0.40
codegen_flags: <defaults>
</compile_context>

<pallas_src>
import math
from functools import partial

import jax
import jax.numpy as jnp
from jax import lax
from jax.experimental import pallas as pl
from jax.experimental.pallas import tpu as pltpu


def _round_up(x: int, m: int) -> int:
    return -(-x // m) * m


def _largest_divisor_leq(n: int, limit: int) -> int:
    limit = max(1, min(n, limit))
    for d in range(limit, 0, -1):
        if n % d == 0:
            return d
    return 1


def _choose_rows(H: int, W: int, tile_elems: int):
    """Pick R output rows per tile: R | H, (R*W) % 128 == 0, R*W <= tile_elems."""
    if H * W <= tile_elems:
        return H, 1
    best = 0
    for r in range(1, H + 1):
        if H % r == 0 and (r * W) % 128 == 0 and r * W <= tile_elems:
            best = r
    if best == 0:
        return H, 1          # fallback: whole image per tile (see TODO above)
    return best, H // best


# ----------------------------------------------------------------------------
# Kernel: in-VMEM im2col from a haloed row slab + one deep MXU dot per image.
# ----------------------------------------------------------------------------
def _patch_embed_kernel(*refs, ksize, rows, width, kdim_pad, has_bias):
    """refs (no bias): x_ref (IB, Cin, rows+2p, width+2p) bf16  haloed slab
                       w_ref (Cout, kdim_pad)             bf16  folded conv weight
                       o_ref (IB, Cout, rows*width)       out_dtype
       with bias:      ..., b_ref (Cout, 1) f32 inserted before o_ref."""
    if has_bias:
        x_ref, w_ref, b_ref, o_ref = refs
    else:
        x_ref, w_ref, o_ref = refs

    ib = x_ref.shape[0]
    cin = x_ref.shape[1]
    tm = rows * width
    kk = ksize * ksize * cin
    w = w_ref[...]                                     # resident (Cout, Kp)

    for b in range(ib):                                # static unroll, IB small
        xin = x_ref[b]                                 # (Cin, rows+2p, width+2p)
        # 9 taps formed in VMEM (static slices); lane-dense cols (Kp, TILE_M).
        taps = [xin[:, ky:ky + rows, kx:kx + width].reshape(cin, tm)
                for ky in range(ksize) for kx in range(ksize)]
        if kdim_pad > kk:
            taps.append(jnp.zeros((kdim_pad - kk, tm), xin.dtype))
        cols = jnp.concatenate(taps, axis=0)           # (Kp, TILE_M)
        acc = jnp.dot(w, cols, preferred_element_type=jnp.float32)
        if has_bias:
            acc = acc + b_ref[...]
        o_ref[b] = acc.astype(o_ref.dtype)


# ----------------------------------------------------------------------------
# OverlapPatchEmbed.forward
# ----------------------------------------------------------------------------
def overlap_patch_embed(x, weight, bias=None, *, tile_elems=8192,
                        compute_dtype=jnp.bfloat16, out_dtype=None):
    """x: (T, N, Cin, H, W) (step_mode='m') or (B, Cin, H, W).
    weight: (Cout, Cin, K, K) PyTorch layout (K=3, stride 1, padding K//2).
    Compute is bf16 with f32 accumulation by default (set compute_dtype=float32
    for exact f32 conv); output dtype defaults to compute_dtype."""
    if out_dtype is None:
        out_dtype = compute_dtype

    multi_step = (x.ndim == 5)
    if multi_step:
        T, N, Cin, H, W = x.shape
        xb = x.reshape(T * N, Cin, H, W)        # step_mode 'm': conv per time step
    else:
        xb = x
    B, Cin, H, W = xb.shape
    Cout, Cin_w, K, K2 = weight.shape
    assert Cin_w == Cin and K == K2 and K % 2 == 1
    p = K // 2
    M = H * W
    Win = W + 2 * p
    kk = K * K * Cin
    kp = _round_up(kk, 8)                       # 8-granular contraction depth

    # ---- tiling: whole output rows per tile, several images per block --------
    R, nrt = _choose_rows(H, W, tile_elems)
    tm = R * W
    if nrt == 1:
        ib = _largest_divisor_leq(B, max(1, tile_elems // max(tm, 1)))
    else:
        ib = 1
    if (B // ib) * nrt < 2 and B > 1:           # >=2 blocks -> both v7x TCs busy
        ib = _largest_divisor_leq(B, max(1, B // 2))
    grid = (B // ib, nrt)

    # ---- cheap host prep: single cast + pad + haloed row slabs (no tap dup) ---
    xp = jnp.pad(xb.astype(compute_dtype), ((0, 0), (0, 0), (p, p), (p, p)))
    if nrt == 1:
        slabs = xp                                          # (B, Cin, H+2p, Win)
    else:
        slabs = jnp.stack(
            [xp[:, :, t * R: t * R + R + 2 * p, :] for t in range(nrt)],
            axis=1).reshape(B * nrt, Cin, R + 2 * p, Win)   # (B*nrt, Cin, R+2p, Win)

    # weight -> (Cout, (ky, kx, cin)), zero-padded to Kp rows of contraction
    w2 = jnp.transpose(weight.astype(jnp.float32), (0, 2, 3, 1)).reshape(Cout, kk)
    w2 = jnp.pad(w2, ((0, 0), (0, kp - kk))).astype(compute_dtype)

    kern = partial(_patch_embed_kernel, ksize=K, rows=R, width=W,
                   kdim_pad=kp, has_bias=bias is not None)

    in_specs = [
        # haloed input slab for (ib images) x (one row tile)
        pl.BlockSpec((ib, Cin, R + 2 * p, Win),
                     lambda bb, t: (bb * nrt + t, 0, 0, 0)),
        # resident folded weight
        pl.BlockSpec((Cout, kp), lambda bb, t: (0, 0)),
    ]
    args = [slabs, w2]
    if bias is not None:
        in_specs.append(pl.BlockSpec((Cout, 1), lambda bb, t: (0, 0)))
        args.append(bias.astype(jnp.float32).reshape(Cout, 1))

    out = pl.pallas_call(
        kern,
        out_shape=jax.ShapeDtypeStruct((B, Cout, M), out_dtype),
        grid=grid,
        in_specs=in_specs,
        out_specs=pl.BlockSpec((ib, Cout, tm), lambda bb, t: (bb, 0, t)),
        compiler_params=pltpu.CompilerParams(
            dimension_semantics=("parallel", "parallel"),
            vmem_limit_bytes=32 * 1024 * 1024,
        ),
    )(*args)

    y = out.reshape(B, Cout, H, W)              # split M -> (H, W): free reshape
    if multi_step:
        y = y.reshape(T, N, Cout, H, W)
    return y


# ----------------------------------------------------------------------------
if __name__ == "__main__":
    key = jax.random.PRNGKey(0)
    kx_, kw_ = jax.random.split(key)

    T, N, Cin, H, W = 4, 2, 3, 16, 16
    embed_dim = 32
    x = jax.random.uniform(kx_, (T, N, Cin, H, W), jnp.float32)
    bound = 1.0 / math.sqrt(Cin * 3 * 3)        # PyTorch conv default init range
    w = jax.random.uniform(kw_, (embed_dim, Cin, 3, 3), jnp.float32, -bound, bound)

    # Reference: XLA conv on the same bf16-rounded operands, f32 accumulation.
    xr = x.astype(jnp.bfloat16).astype(jnp.float32).reshape(T * N, Cin, H, W)
    wr = w.astype(jnp.bfloat16).astype(jnp.float32)
    ref = lax.conv_general_dilated(
        xr, wr, window_strides=(1, 1), padding=((1, 1), (1, 1)),
        dimension_numbers=("NCHW", "OIHW", "NCHW"),
        precision=lax.Precision.HIGHEST,
    ).reshape(T, N, embed_dim, H, W)

    # Strict numeric check with f32 output (bf16 compute, f32 accumulation).
    y32 = jax.jit(partial(overlap_patch_embed, out_dtype=jnp.float32))(x, w)
    y32 = jax.block_until_ready(y32)
    assert y32.shape == (T, N, embed_dim, H, W)
    assert y32.dtype == jnp.float32
    assert bool(jnp.all(jnp.isfinite(y32)))
    max_err = float(jnp.max(jnp.abs(y32 - ref)))
    assert max_err < 1e-2, f"max abs error (f32 out) vs reference: {max_err}"

    # Default perf path: bf16 output (halves output HBM traffic).
    y16 = jax.block_until_ready(jax.jit(overlap_patch_embed)(x, w))
    assert y16.shape == (T, N, embed_dim, H, W)
    assert y16.dtype == jnp.bfloat16
    assert bool(jnp.all(jnp.isfinite(y16)))
    max_err16 = float(jnp.max(jnp.abs(y16.astype(jnp.float32) - ref)))
    assert max_err16 < 5e-2, f"max abs error (bf16 out) vs reference: {max_err16}"

    print("KERNEL_OK")
</pallas_src>

<mosaic_0001>
module attributes {stable_mosaic.version = 11 : i64} {
  func.func @_patch_embed_kernel(%arg0: i32, %arg1: i32, %arg2: memref<4x3x18x18xbf16, #tpu.memory_space<vmem>>, %arg3: memref<32x32xbf16, #tpu.memory_space<vmem>>, %arg4: memref<4x32x256xf32, #tpu.memory_space<vmem>>) attributes {dimension_semantics = [#tpu.dimension_semantics<parallel>, #tpu.dimension_semantics<parallel>], iteration_bounds = array<i64: 2, 1>, scalar_prefetch = 0 : i64, scratch_operands = 0 : i64, tpu.core_type = #tpu.core_type<tc>, window_params = [{transform_indices = @transform_0, window_bounds = array<i64: 4, 3, 18, 18>}, {pipeline_mode = #tpu.pipeline_mode<synchronous>, transform_indices = @transform_1, window_bounds = array<i64: 32, 32>}, {transform_indices = @transform_2, window_bounds = array<i64: 4, 32, 256>}]} {
    %c0 = arith.constant 0 : index
    %c0_0 = arith.constant 0 : index
    %0 = vector.load %arg3[%c0, %c0_0] : memref<32x32xbf16, #tpu.memory_space<vmem>>, vector<32x32xbf16>
    %c0_1 = arith.constant 0 : index
    %c0_2 = arith.constant 0 : index
    %c0_3 = arith.constant 0 : index
    %c0_4 = arith.constant 0 : index
    %1 = vector.load %arg2[%c0_1, %c0_2, %c0_3, %c0_4] : memref<4x3x18x18xbf16, #tpu.memory_space<vmem>>, vector<1x3x18x18xbf16>
    %2 = vector.shape_cast %1 : vector<1x3x18x18xbf16> to vector<3x18x18xbf16>
    %3 = vector.extract_strided_slice %2 {offsets = [0, 0, 0], sizes = [3, 16, 16], strides = [1, 1, 1]} : vector<3x18x18xbf16> to vector<3x16x16xbf16>
    %4 = vector.shape_cast %3 : vector<3x16x16xbf16> to vector<3x256xbf16>
    %5 = vector.extract_strided_slice %2 {offsets = [0, 0, 1], sizes = [3, 16, 16], strides = [1, 1, 1]} : vector<3x18x18xbf16> to vector<3x16x16xbf16>
    %6 = vector.shape_cast %5 : vector<3x16x16xbf16> to vector<3x256xbf16>
    %7 = vector.extract_strided_slice %2 {offsets = [0, 0, 2], sizes = [3, 16, 16], strides = [1, 1, 1]} : vector<3x18x18xbf16> to vector<3x16x16xbf16>
    %8 = vector.shape_cast %7 : vector<3x16x16xbf16> to vector<3x256xbf16>
    %9 = vector.extract_strided_slice %2 {offsets = [0, 1, 0], sizes = [3, 16, 16], strides = [1, 1, 1]} : vector<3x18x18xbf16> to vector<3x16x16xbf16>
    %10 = vector.shape_cast %9 : vector<3x16x16xbf16> to vector<3x256xbf16>
    %11 = vector.extract_strided_slice %2 {offsets = [0, 1, 1], sizes = [3, 16, 16], strides = [1, 1, 1]} : vector<3x18x18xbf16> to vector<3x16x16xbf16>
    %12 = vector.shape_cast %11 : vector<3x16x16xbf16> to vector<3x256xbf16>
    %13 = vector.extract_strided_slice %2 {offsets = [0, 1, 2], sizes = [3, 16, 16], strides = [1, 1, 1]} : vector<3x18x18xbf16> to vector<3x16x16xbf16>
    %14 = vector.shape_cast %13 : vector<3x16x16xbf16> to vector<3x256xbf16>
    %15 = vector.extract_strided_slice %2 {offsets = [0, 2, 0], sizes = [3, 16, 16], strides = [1, 1, 1]} : vector<3x18x18xbf16> to vector<3x16x16xbf16>
    %16 = vector.shape_cast %15 : vector<3x16x16xbf16> to vector<3x256xbf16>
    %17 = vector.extract_strided_slice %2 {offsets = [0, 2, 1], sizes = [3, 16, 16], strides = [1, 1, 1]} : vector<3x18x18xbf16> to vector<3x16x16xbf16>
    %18 = vector.shape_cast %17 : vector<3x16x16xbf16> to vector<3x256xbf16>
    %19 = vector.extract_strided_slice %2 {offsets = [0, 2, 2], sizes = [3, 16, 16], strides = [1, 1, 1]} : vector<3x18x18xbf16> to vector<3x16x16xbf16>
    %20 = vector.shape_cast %19 : vector<3x16x16xbf16> to vector<3x256xbf16>
    %cst = arith.constant 0.000000e+00 : bf16
    %21 = vector.broadcast %cst : bf16 to vector<5x256xbf16>
    %22 = tpu.concatenate %4, %6, %8, %10, %12, %14, %16, %18, %20, %21 in 0 : vector<3x256xbf16>, vector<3x256xbf16>, vector<3x256xbf16>, vector<3x256xbf16>, vector<3x256xbf16>, vector<3x256xbf16>, vector<3x256xbf16>, vector<3x256xbf16>, vector<3x256xbf16>, vector<5x256xbf16> -> vector<32x256xbf16>
    %cst_5 = arith.constant dense<0.000000e+00> : vector<32x256xf32>
    %23 = tpu.matmul %0, %22, %cst_5 {dimension_numbers = #tpu.dot_dimension_numbers<[1], [0], [0], [1], [0, 0, 1, 1], [], []>} : vector<32x32xbf16>, vector<32x256xbf16>, vector<32x256xf32> -> vector<32x256xf32>
    %c0_6 = arith.constant 0 : index
    %c0_7 = arith.constant 0 : index
    %c0_8 = arith.constant 0 : index
    %24 = vector.load %arg4[%c0_6, %c0_7, %c0_8] : memref<4x32x256xf32, #tpu.memory_space<vmem>>, vector<1x32x256xf32>
    %25 = vector.shape_cast %24 : vector<1x32x256xf32> to vector<32x256xf32>
    %26 = vector.shape_cast %23 : vector<32x256xf32> to vector<1x32x256xf32>
    tpu.vector_store %arg4[%c0_6, %c0_7, %c0_8], %26 {strides = array<i32>} : memref<4x32x256xf32, #tpu.memory_space<vmem>>, vector<1x32x256xf32>,
    %c1 = arith.constant 1 : index
    %c0_9 = arith.constant 0 : index
    %c0_10 = arith.constant 0 : index
    %c0_11 = arith.constant 0 : index
    %27 = vector.load %arg2[%c1, %c0_9, %c0_10, %c0_11] : memref<4x3x18x18xbf16, #tpu.memory_space<vmem>>, vector<1x3x18x18xbf16>
    %28 = vector.shape_cast %27 : vector<1x3x18x18xbf16> to vector<3x18x18xbf16>
    %29 = vector.extract_strided_slice %28 {offsets = [0, 0, 0], sizes = [3, 16, 16], strides = [1, 1, 1]} : vector<3x18x18xbf16> to vector<3x16x16xbf16>
    %30 = vector.shape_cast %29 : vector<3x16x16xbf16> to vector<3x256xbf16>
    %31 = vector.extract_strided_slice %28 {offsets = [0, 0, 1], sizes = [3, 16, 16], strides = [1, 1, 1]} : vector<3x18x18xbf16> to vector<3x16x16xbf16>
    %32 = vector.shape_cast %31 : vector<3x16x16xbf16> to vector<3x256xbf16>
    %33 = vector.extract_strided_slice %28 {offsets = [0, 0, 2], sizes = [3, 16, 16], strides = [1, 1, 1]} : vector<3x18x18xbf16> to vector<3x16x16xbf16>
    %34 = vector.shape_cast %33 : vector<3x16x16xbf16> to vector<3x256xbf16>
    %35 = vector.extract_strided_slice %28 {offsets = [0, 1, 0], sizes = [3, 16, 16], strides = [1, 1, 1]} : vector<3x18x18xbf16> to vector<3x16x16xbf16>
    %36 = vector.shape_cast %35 : vector<3x16x16xbf16> to vector<3x256xbf16>
    %37 = vector.extract_strided_slice %28 {offsets = [0, 1, 1], sizes = [3, 16, 16], strides = [1, 1, 1]} : vector<3x18x18xbf16> to vector<3x16x16xbf16>
    %38 = vector.shape_cast %37 : vector<3x16x16xbf16> to vector<3x256xbf16>
    %39 = vector.extract_strided_slice %28 {offsets = [0, 1, 2], sizes = [3, 16, 16], strides = [1, 1, 1]} : vector<3x18x18xbf16> to vector<3x16x16xbf16>
    %40 = vector.shape_cast %39 : vector<3x16x16xbf16> to vector<3x256xbf16>
    %41 = vector.extract_strided_slice %28 {offsets = [0, 2, 0], sizes = [3, 16, 16], strides = [1, 1, 1]} : vector<3x18x18xbf16> to vector<3x16x16xbf16>
    %42 = vector.shape_cast %41 : vector<3x16x16xbf16> to vector<3x256xbf16>
    %43 = vector.extract_strided_slice %28 {offsets = [0, 2, 1], sizes = [3, 16, 16], strides = [1, 1, 1]} : vector<3x18x18xbf16> to vector<3x16x16xbf16>
    %44 = vector.shape_cast %43 : vector<3x16x16xbf16> to vector<3x256xbf16>
    %45 = vector.extract_strided_slice %28 {offsets = [0, 2, 2], sizes = [3, 16, 16], strides = [1, 1, 1]} : vector<3x18x18xbf16> to vector<3x16x16xbf16>
    %46 = vector.shape_cast %45 : vector<3x16x16xbf16> to vector<3x256xbf16>
    %cst_12 = arith.constant 0.000000e+00 : bf16
    %47 = vector.broadcast %cst_12 : bf16 to vector<5x256xbf16>
    %48 = tpu.concatenate %30, %32, %34, %36, %38, %40, %42, %44, %46, %47 in 0 : vector<3x256xbf16>, vector<3x256xbf16>, vector<3x256xbf16>, vector<3x256xbf16>, vector<3x256xbf16>, vector<3x256xbf16>, vector<3x256xbf16>, vector<3x256xbf16>, vector<3x256xbf16>, vector<5x256xbf16> -> vector<32x256xbf16>
    %cst_13 = arith.constant dense<0.000000e+00> : vector<32x256xf32>
    %49 = tpu.matmul %0, %48, %cst_13 {dimension_numbers = #tpu.dot_dimension_numbers<[1], [0], [0], [1], [0, 0, 1, 1], [], []>} : vector<32x32xbf16>, vector<32x256xbf16>, vector<32x256xf32> -> vector<32x256xf32>
    %c1_14 = arith.constant 1 : index
    %c0_15 = arith.constant 0 : index
    %c0_16 = arith.constant 0 : index
    %50 = vector.load %arg4[%c1_14, %c0_15, %c0_16] : memref<4x32x256xf32, #tpu.memory_space<vmem>>, vector<1x32x256xf32>
    %51 = vector.shape_cast %50 : vector<1x32x256xf32> to vector<32x256xf32>
    %52 = vector.shape_cast %49 : vector<32x256xf32> to vector<1x32x256xf32>
    tpu.vector_store %arg4[%c1_14, %c0_15, %c0_16], %52 {strides = array<i32>} : memref<4x32x256xf32, #tpu.memory_space<vmem>>, vector<1x32x256xf32>,
    %c2 = arith.constant 2 : index
    %c0_17 = arith.constant 0 : index
    %c0_18 = arith.constant 0 : index
    %c0_19 = arith.constant 0 : index
    %53 = vector.load %arg2[%c2, %c0_17, %c0_18, %c0_19] : memref<4x3x18x18xbf16, #tpu.memory_space<vmem>>, vector<1x3x18x18xbf16>
    %54 = vector.shape_cast %53 : vector<1x3x18x18xbf16> to vector<3x18x18xbf16>
    %55 = vector.extract_strided_slice %54 {offsets = [0, 0, 0], sizes = [3, 16, 16], strides = [1, 1, 1]} : vector<3x18x18xbf16> to vector<3x16x16xbf16>
    %56 = vector.shape_cast %55 : vector<3x16x16xbf16> to vector<3x256xbf16>
    %57 = vector.extract_strided_slice %54 {offsets = [0, 0, 1], sizes = [3, 16, 16], strides = [1, 1, 1]} : vector<3x18x18xbf16> to vector<3x16x16xbf16>
    %58 = vector.shape_cast %57 : vector<3x16x16xbf16> to vector<3x256xbf16>
    %59 = vector.extract_strided_slice %54 {offsets = [0, 0, 2], sizes = [3, 16, 16], strides = [1, 1, 1]} : vector<3x18x18xbf16> to vector<3x16x16xbf16>
    %60 = vector.shape_cast %59 : vector<3x16x16xbf16> to vector<3x256xbf16>
    %61 = vector.extract_strided_slice %54 {offsets = [0, 1, 0], sizes = [3, 16, 16], strides = [1, 1, 1]} : vector<3x18x18xbf16> to vector<3x16x16xbf16>
    %62 = vector.shape_cast %61 : vector<3x16x16xbf16> to vector<3x256xbf16>
    %63 = vector.extract_strided_slice %54 {offsets = [0, 1, 1], sizes = [3, 16, 16], strides = [1, 1, 1]} : vector<3x18x18xbf16> to vector<3x16x16xbf16>
    %64 = vector.shape_cast %63 : vector<3x16x16xbf16> to vector<3x256xbf16>
    %65 = vector.extract_strided_slice %54 {offsets = [0, 1, 2], sizes = [3, 16, 16], strides = [1, 1, 1]} : vector<3x18x18xbf16> to vector<3x16x16xbf16>
    %66 = vector.shape_cast %65 : vector<3x16x16xbf16> to vector<3x256xbf16>
    %67 = vector.extract_strided_slice %54 {offsets = [0, 2, 0], sizes = [3, 16, 16], strides = [1, 1, 1]} : vector<3x18x18xbf16> to vector<3x16x16xbf16>
    %68 = vector.shape_cast %67 : vector<3x16x16xbf16> to vector<3x256xbf16>
    %69 = vector.extract_strided_slice %54 {offsets = [0, 2, 1], sizes = [3, 16, 16], strides = [1, 1, 1]} : vector<3x18x18xbf16> to vector<3x16x16xbf16>
    %70 = vector.shape_cast %69 : vector<3x16x16xbf16> to vector<3x256xbf16>
    %71 = vector.extract_strided_slice %54 {offsets = [0, 2, 2], sizes = [3, 16, 16], strides = [1, 1, 1]} : vector<3x18x18xbf16> to vector<3x16x16xbf16>
    %72 = vector.shape_cast %71 : vector<3x16x16xbf16> to vector<3x256xbf16>
    %cst_20 = arith.constant 0.000000e+00 : bf16
    %73 = vector.broadcast %cst_20 : bf16 to vector<5x256xbf16>
    %74 = tpu.concatenate %56, %58, %60, %62, %64, %66, %68, %70, %72, %73 in 0 : vector<3x256xbf16>, vector<3x256xbf16>, vector<3x256xbf16>, vector<3x256xbf16>, vector<3x256xbf16>, vector<3x256xbf16>, vector<3x256xbf16>, vector<3x256xbf16>, vector<3x256xbf16>, vector<5x256xbf16> -> vector<32x256xbf16>
    %cst_21 = arith.constant dense<0.000000e+00> : vector<32x256xf32>
    %75 = tpu.matmul %0, %74, %cst_21 {dimension_numbers = #tpu.dot_dimension_numbers<[1], [0], [0], [1], [0, 0, 1, 1], [], []>} : vector<32x32xbf16>, vector<32x256xbf16>, vector<32x256xf32> -> vector<32x256xf32>
    %c2_22 = arith.constant 2 : index
    %c0_23 = arith.constant 0 : index
    %c0_24 = arith.constant 0 : index
    %76 = vector.load %arg4[%c2_22, %c0_23, %c0_24] : memref<4x32x256xf32, #tpu.memory_space<vmem>>, vector<1x32x256xf32>
    %77 = vector.shape_cast %76 : vector<1x32x256xf32> to vector<32x256xf32>
    %78 = vector.shape_cast %75 : vector<32x256xf32> to vector<1x32x256xf32>
    tpu.vector_store %arg4[%c2_22, %c0_23, %c0_24], %78 {strides = array<i32>} : memref<4x32x256xf32, #tpu.memory_space<vmem>>, vector<1x32x256xf32>,
    %c3 = arith.constant 3 : index
    %c0_25 = arith.constant 0 : index
    %c0_26 = arith.constant 0 : index
    %c0_27 = arith.constant 0 : index
    %79 = vector.load %arg2[%c3, %c0_25, %c0_26, %c0_27] : memref<4x3x18x18xbf16, #tpu.memory_space<vmem>>, vector<1x3x18x18xbf16>
    %80 = vector.shape_cast %79 : vector<1x3x18x18xbf16> to vector<3x18x18xbf16>
    %81 = vector.extract_strided_slice %80 {offsets = [0, 0, 0], sizes = [3, 16, 16], strides = [1, 1, 1]} : vector<3x18x18xbf16> to vector<3x16x16xbf16>
    %82 = vector.shape_cast %81 : vector<3x16x16xbf16> to vector<3x256xbf16>
    %83 = vector.extract_strided_slice %80 {offsets = [0, 0, 1], sizes = [3, 16, 16], strides = [1, 1, 1]} : vector<3x18x18xbf16> to vector<3x16x16xbf16>
    %84 = vector.shape_cast %83 : vector<3x16x16xbf16> to vector<3x256xbf16>
    %85 = vector.extract_strided_slice %80 {offsets = [0, 0, 2], sizes = [3, 16, 16], strides = [1, 1, 1]} : vector<3x18x18xbf16> to vector<3x16x16xbf16>
    %86 = vector.shape_cast %85 : vector<3x16x16xbf16> to vector<3x256xbf16>
    %87 = vector.extract_strided_slice %80 {offsets = [0, 1, 0], sizes = [3, 16, 16], strides = [1, 1, 1]} : vector<3x18x18xbf16> to vector<3x16x16xbf16>
    %88 = vector.shape_cast %87 : vector<3x16x16xbf16> to vector<3x256xbf16>
    %89 = vector.extract_strided_slice %80 {offsets = [0, 1, 1], sizes = [3, 16, 16], strides = [1, 1, 1]} : vector<3x18x18xbf16> to vector<3x16x16xbf16>
    %90 = vector.shape_cast %89 : vector<3x16x16xbf16> to vector<3x256xbf16>
    %91 = vector.extract_strided_slice %80 {offsets = [0, 1, 2], sizes = [3, 16, 16], strides = [1, 1, 1]} : vector<3x18x18xbf16> to vector<3x16x16xbf16>
    %92 = vector.shape_cast %91 : vector<3x16x16xbf16> to vector<3x256xbf16>
    %93 = vector.extract_strided_slice %80 {offsets = [0, 2, 0], sizes = [3, 16, 16], strides = [1, 1, 1]} : vector<3x18x18xbf16> to vector<3x16x16xbf16>
    %94 = vector.shape_cast %93 : vector<3x16x16xbf16> to vector<3x256xbf16>
    %95 = vector.extract_strided_slice %80 {offsets = [0, 2, 1], sizes = [3, 16, 16], strides = [1, 1, 1]} : vector<3x18x18xbf16> to vector<3x16x16xbf16>
    %96 = vector.shape_cast %95 : vector<3x16x16xbf16> to vector<3x256xbf16>
    %97 = vector.extract_strided_slice %80 {offsets = [0, 2, 2], sizes = [3, 16, 16], strides = [1, 1, 1]} : vector<3x18x18xbf16> to vector<3x16x16xbf16>
    %98 = vector.shape_cast %97 : vector<3x16x16xbf16> to vector<3x256xbf16>
    %cst_28 = arith.constant 0.000000e+00 : bf16
    %99 = vector.broadcast %cst_28 : bf16 to vector<5x256xbf16>
    %100 = tpu.concatenate %82, %84, %86, %88, %90, %92, %94, %96, %98, %99 in 0 : vector<3x256xbf16>, vector<3x256xbf16>, vector<3x256xbf16>, vector<3x256xbf16>, vector<3x256xbf16>, vector<3x256xbf16>, vector<3x256xbf16>, vector<3x256xbf16>, vector<3x256xbf16>, vector<5x256xbf16> -> vector<32x256xbf16>
    %cst_29 = arith.constant dense<0.000000e+00> : vector<32x256xf32>
    %101 = tpu.matmul %0, %100, %cst_29 {dimension_numbers = #tpu.dot_dimension_numbers<[1], [0], [0], [1], [0, 0, 1, 1], [], []>} : vector<32x32xbf16>, vector<32x256xbf16>, vector<32x256xf32> -> vector<32x256xf32>
    %c3_30 = arith.constant 3 : index
    %c0_31 = arith.constant 0 : index
    %c0_32 = arith.constant 0 : index
    %102 = vector.load %arg4[%c3_30, %c0_31, %c0_32] : memref<4x32x256xf32, #tpu.memory_space<vmem>>, vector<1x32x256xf32>
    %103 = vector.shape_cast %102 : vector<1x32x256xf32> to vector<32x256xf32>
    %104 = vector.shape_cast %101 : vector<32x256xf32> to vector<1x32x256xf32>
    tpu.vector_store %arg4[%c3_30, %c0_31, %c0_32], %104 {strides = array<i32>} : memref<4x32x256xf32, #tpu.memory_space<vmem>>, vector<1x32x256xf32>,
    return
  }
  func.func @transform_0(%arg0: i32, %arg1: i32) -> (i32, i32, i32, i32) {
    %c1_i32 = arith.constant 1 : i32
    %0 = arith.muli %arg0, %c1_i32 : i32
    %1 = arith.addi %0, %arg1 : i32
    %c0_i32 = arith.constant 0 : i32
    %c0_i32_0 = arith.constant 0 : i32
    %c0_i32_1 = arith.constant 0 : i32
    %c0_i32_2 = arith.constant 0 : i32
    return %1, %c0_i32, %c0_i32_0, %c0_i32_1 : i32, i32, i32, i32
  }
  func.func @transform_1(%arg0: i32, %arg1: i32) -> (i32, i32) {
    %c0_i32 = arith.constant 0 : i32
    %c0_i32_0 = arith.constant 0 : i32
    %c0_i32_1 = arith.constant 0 : i32
    return %c0_i32, %c0_i32_0 : i32, i32
  }
  func.func @transform_2(%arg0: i32, %arg1: i32) -> (i32, i32, i32) {
    %c0_i32 = arith.constant 0 : i32
    %c0_i32_0 = arith.constant 0 : i32
    return %arg0, %c0_i32, %arg1 : i32, i32, i32
  }
}

</mosaic_0001>

<bundles_post_ra>
// kernel: overlap_patch_embed.1
= control target key start
LH: loop header
LB: loop body
LE: loop exit
PB: predicated region body
PF: predicated region fallthrough
CT: control target
= control target key end

     0   :  { %s11951_s9 = smov 0   ;;  %s11953_s10 = smov 0   ;;  %s17596_s0 = inlined_call_operand.vmem [shape: bf16[8,3,18,18], index: 0, kind: input, shape index: {}]   ;;  %s17597_s1 = inlined_call_operand.vmem [shape: bf16[32,32], index: 1, kind: input, shape index: {}]   ;;  %s17598_s2 = inlined_call_operand.vmem [shape: f32[8,32,256], index: 2, kind: output, shape index: {}]  }
   0x1   :  { %s11955_s11 = smov 0  }
   0x2 LB: > { %s24_s12 = sadd.s32 1, %s11918_s10  ;;  %p10962_p0 = scmp.ge.s32.totalorder %s11922_s11, 1  ;;  %s11922_s11 = sphi %s11955_s11, %s12_s11   ;;  %s11918_s10 = sphi %s11953_s10, %s18883_s10   ;;  %s11914_s9 = sphi %s11951_s9, %s18882_s9  }
   0x3   : > { %p26_p1 = scmp.ge.s32.totalorder %s24_s12, 2  ;;  %p132_p2 = scmp.lt.s32.totalorder %s11922_s11, 3 }
   0x5   : > { %s18885_s12 = smov (%p26_p1, %s24_s12), 0  ;;  %p133_p3 = pnand %p10962_p0, %p132_p2 }
   0x7   : > { %136 = sbr.rel (%p133_p3) target bundleno = 3645 (0xe3d), region = 28 }
   0xc   : > { %s10963_s13 = sshll.u32 %s11914_s9, 2  ;;  %v222_v0 = vlaneseq  ;;  %v11924_v1 = vmov 1983009808   ;;  %v17601_v3 = vmov 0   ;;  %v11926_v6 = vmov 1934713408  }
   0xd   : > { %p163_p4 = scmp.lt.s32.totalorder %s10963_s13, 7  ;;  %v220_v2 = vunpack.c.l.s4 %v11924_v1  ;;  %2865 = vmatprep.mubr.bf16.mxu0 %v17601_v3  ;;  %5524 = vmatprep.mubr.bf16.mxu1 %v17601_v3  ;;  %v237_v7 = vunpack.c.l.s4 %v11926_v6  ;;  %s11927_s18 = smov 64   ;;  %vm1005_vm0 = vsmask.f32 3328  ;;  %vm1006_vm1 = vsmask.f32 7440 }
   0xe   : > { %v223_v5 = vshrl.u32 %v222_v0, 7  ;;  %s11928_s19 = smov 32   ;;  %s11929_s20 = smov 96   ;;  %vm12063_vm2 = vmor %vm1005_vm0, %vm1006_vm1  ;;  %vm17653_vm3 = vcmask 1042432   ;;  %vm1864_vm4 = vcmask 1046532   ;;  %vm424_vm6 = vcmask 130048  }
   0xf   : > { %s18887_s13 = smov (!%p163_p4, %s10963_s13), 7  ;;  %v221_v4 = vunpack.c.0.s8 %v220_v2  ;;  %v238_v9 = vunpack.c.0.s8 %v237_v7  ;;  %s11930_s21 = smov 48   ;;  %vm12529_vm5 = vmor %vm17653_vm3, %vm1864_vm4  ;;  %vm428_vm7 = vcmask 261120   ;;  %vm17621_vm8 = vcmask 392192  }
  0x10   : > { %s11836_s14 = smul.u32 36, %s18887_s13  ;;  %s11931_s22 = smov 16   ;;  %vm17620_vm9 = vcmask 523264   ;;  %vm17622_vm10 = vcmask 654336   ;;  %vm17625_vm11 = vcmask 785408   ;;  %vm17623_vm12 = vcmask 916480  }
  0x11   : > { %v11979_v8 = vsub.s32 %v221_v4, %v223_v5  ;;  %v12011_v24 = vsub.s32 %v238_v9, %v223_v5  ;;  %s11932_s23 = smov 80   ;;  %s11933_s24 = smov 112   ;;  %vm2757_vm13 = vcmask 1041408   ;;  %vm2758_vm14 = vsmask.f32 1280 }
  0x12   : > { %s11977_s17 = scalar_lea.vmem %s17596_s0, %s11836_s14  ;;  %s11934_s25 = smov 127   ;;  %vm13077_vm15 = vmand %vm2757_vm13, %vm2758_vm14  ;;  %vm2771_vm0 = vcmask 1044480   ;;  %vm2772_vm1 = vsmask.f32 4352  ;;  %vm2799_vm4 = vsmask.f32 2304 }
  0x13   : > { %v11982_v10 = vld [vmem:[%s11977_s17] sm:$0xf]  ;;  %v11985_v11 = vld [vmem:[%s11977_s17 + $0xc] sm:$0xf]  ;;  %v11988_v12 = vld [vmem:[%s11977_s17 + $0x18] sm:$0xf] }
  0x14   : > { %v198_v13 = vpack.i.b16 %v11985_v11, %v11982_v10  ;;  %v204_v14 = vpack.i.b16 %v17601_v3, %v11988_v12  ;;  %v11995_v15 = vld [vmem:[%s11977_s17 + $0x4] sm:$0xf]  ;;  %v11998_v16 = vld [vmem:[%s11977_s17 + $0x10] sm:$0xf]  ;;  %v12001_v17 = vld [vmem:[%s11977_s17 + $0x1c] sm:$0xf] }
  0x15   : > { %v210_v18 = vpack.i.b16 %v11998_v16, %v11995_v15  ;;  %v215_v19 = vpack.i.b16 %v17601_v3, %v12001_v17  ;;  %v199_v20 = vshrl.u32 %v11982_v10, 16  ;;  %v200_v21 = vshrl.u32 %v11985_v11, 16  ;;  %s11935_s26 = smov 126   ;;  %vm13229_vm14 = vmand %vm17653_vm3, %vm2799_vm4  ;;  %s11547_s3 = sshll.u32 %s18887_s13, 6 }
  0x16   : > { %v225_v22 = vrot.slane %v198_v13, %v11979_v8  ;;  %v233_v23 = vrot.slane %v204_v14, %v11979_v8  ;;  %v205_v25 = vshrl.u32 %v11988_v12, 16  ;;  %v211_v45 = vshrl.u32 %v11995_v15, 16  ;;  %vm13245_vm4 = vmand %vm2771_vm0, %vm2772_vm1  ;;  %s17546_s6 = scalar_lea.vmem %s17598_s2, %s11547_s3 }
  0x17   : > { %v293_v26 = vrot.slane %v210_v18, %v11979_v8  ;;  %v301_v27 = vrot.slane %v215_v19, %v11979_v8  ;;  %v201_v28 = vpack.i.b16 %v200_v21, %v199_v20  ;;  %v212_v46 = vshrl.u32 %v11998_v16, 16 }
  0x18   : > { %v235_v29 = vcombine.high %v225_v22, %v233_v23  ;;  %v234_v30 = vcombine.low %v225_v22, %v233_v23  ;;  %v207_v31 = vpack.i.b16 %v17601_v3, %v205_v25  ;;  %v216_v47 = vshrl.u32 %v12001_v17, 16 }
  0x19   : > { %v302_v32 = vcombine.low %v293_v26, %v301_v27  ;;  %v259_v33 = vrot.slane %v201_v28, %v11979_v8  ;;  %v303_v44 = vcombine.high %v293_v26, %v301_v27  ;;  %v213_v49 = vpack.i.b16 %v212_v46, %v211_v45 }
  0x1a   : > { %v249_v34 = vrot.slane %v235_v29, %v12011_v24  ;;  %v12020_v35 = vrot.slane %v234_v30, %v12011_v24  ;;  %v267_v36 = vrot.slane %v207_v31, %v11979_v8  ;;  %v217_v50 = vpack.i.b16 %v17601_v3, %v216_v47 }
  0x1b   : > { %v12024_v37 = vrot.slane %v302_v32, %v12011_v24  ;;  %v317_v48 = vrot.slane %v303_v44, %v12011_v24  ;;  %v327_v53 = vrot.slane %v213_v49, %v11979_v8  ;;  %v1010_v56 = vshll.u32 %v11982_v10, 16  ;;  %v12086_v44 = vld [vmem:[%s11977_s17 + $0x8] sm:$0x1] }
  0x1c   : > { %v10971_v38 = vcombine.low %v249_v34, %v249_v34  ;;  %v11548_v39 = vcombine.high %v12020_v35, %v12020_v35  ;;  %v268_v40 = vcombine.low %v259_v33, %v267_v36  ;;  %v11550_v41 = vcombine.high %v249_v34, %v249_v34 }
  0x1d   : > { %v11552_v42 = vcombine.high %v12024_v37, %v12024_v37  ;;  %v10978_v52 = vcombine.low %v317_v48, %v317_v48  ;;  %v335_v54 = vrot.slane %v217_v50, %v11979_v8  ;;  %v269_v55 = vcombine.high %v259_v33, %v267_v36 }
  0x1e   : > { %372 = vrot.lane.b32.xlu1 %v10971_v38, %s11927_s18  ;;  %362 = vrot.lane.b32.xlu0 %v11548_v39, %s11928_s19  ;;  %v276_v43 = vrot.slane %v268_v40, %v12011_v24  ;;  %v1030_v58 = vshll.u32 %v11985_v11, 16  ;;  %v1050_v59 = vshll.u32 %v11988_v12, 16  ;;  %v1009_v0 = vrot.slane %v199_v20, 4 }
  0x1f   : > { %v336_v57 = vcombine.low %v327_v53, %v335_v54  ;;  %v283_v61 = vrot.slane %v269_v55, %v12011_v24  ;;  %v337_v63 = vcombine.high %v327_v53, %v335_v54  ;;  %v1012_v1 = vrot.slane %v1010_v56, 5 }
  0x20   : > { %v11549_v51 = vcombine.high %v276_v43, %v276_v43  ;;  %v10968_v60 = vcombine.low %v276_v43, %v276_v43  ;;  %v1029_v2 = vrot.slane %v200_v21, 4  ;;  %v1032_v5 = vrot.slane %v1030_v58, 5 }
  0x21   : > { %v344_v62 = vrot.slane %v336_v57, %v12011_v24  ;;  %v1049_v6 = vrot.slane %v205_v25, 4  ;;  %v1052_v7 = vrot.slane %v1050_v59, 5  ;;  %v10972_v9 = vcombine.low %v283_v61, %v283_v61 }
  0x22   : > { %382 = vrot.lane.b32.xlu1 %v11550_v41, %s11929_s20  ;;  %397 = vrot.lane.b32.xlu0 %v11552_v42, %s11928_s19  ;;  %v351_v14 = vrot.slane %v337_v63, %v12011_v24  ;;  %v1013_v18 = vor.u32 %v1012_v1, %v1009_v0  ;;  %v1033_v19 = vor.u32 %v1032_v5, %v1029_v2  ;;  %v1015_v21 = vshll.u32 %v11995_v15, 16 }
  0x23   : > { %v10975_v4 = vcombine.low %v344_v62, %v344_v62  ;;  %v11553_v13 = vcombine.high %v344_v62, %v344_v62  ;;  %v1053_v22 = vor.u32 %v1052_v7, %v1049_v6  ;;  %v11551_v20 = vcombine.high %v283_v61, %v283_v61 }
  0x24   : > { %v1035_v23 = vshll.u32 %v11998_v16, 16  ;;  %v1055_v25 = vshll.u32 %v12001_v17, 16  ;;  %v10979_v26 = vcombine.low %v351_v14, %v351_v14  ;;  %v1014_v27 = vrot.slane %v1013_v18, 4 }
  0x25   : > { %v1034_v28 = vrot.slane %v1033_v19, 4  ;;  %v1054_v29 = vrot.slane %v1053_v22, 4  ;;  %v11554_v30 = vcombine.high %v317_v48, %v317_v48  ;;  %v1017_v31 = vrot.slane %v1015_v21, 5 }
  0x26   : > { %367 = vrot.lane.b32.xlu1 %v11549_v51, %s11930_s21  ;;  %407 = vrot.lane.b32.xlu0 %v10978_v52, %s11927_s18  ;;  %v1037_v32 = vrot.slane %v1035_v23, 5  ;;  %v1057_v33 = vrot.slane %v1055_v25, 5  ;;  %v11555_v34 = vcombine.high %v351_v14, %v351_v14  ;;  %v17735_v36 = vmov 0 }
  0x27   : > { %v17736_v36 = vsel %vm12063_vm2, 4294967295, %v17735_v36  ;;  %v1020_v38 = vrot.slane %v211_v45, 4  ;;  %v1040_v39 = vrot.slane %v212_v46, 4  ;;  %v12073_v40 = vsel %vm12063_vm2, %v1014_v27, %v1017_v31  ;;  %v12089_v45 = vld [vmem:[%s11977_s17 + $0x14] sm:$0x1] }
  0x28   : > { %17737 = vst [vmem:[#allocation2_spill] sm:$0xff] %v17736_v36  ;;  %v12077_v41 = vsel %vm12063_vm2, %v1034_v28, %v1037_v32  ;;  %v12081_v42 = vsel %vm12063_vm2, %v1054_v29, %v1057_v33  ;;  %v1060_v43 = vrot.slane %v216_v47, 4  ;;  %v12092_v46 = vld [vmem:[%s11977_s17 + $0x20] sm:$0x1]  ;;  %v1071_v48 = vshrl.u32 %v12073_v40, 16 }
  0x29   : > { %v1072_v49 = vshrl.u32 %v12077_v41, 16  ;;  %v1076_v50 = vshrl.u32 %v12081_v42, 16  ;;  %v1021_v51 = vor.u32 %v1020_v38, %v1017_v31  ;;  %v1041_v52 = vor.u32 %v1040_v39, %v1037_v32 }
  0x2a   : > { %357 = vrot.lane.b32.xlu0 %v10968_v60, %s11931_s22  ;;  %392 = vrot.lane.b32.xlu1 %v10975_v4, %s11931_s22  ;;  %v1061_v47 = vor.u32 %v1060_v43, %v1057_v33  ;;  %v1024_v53 = vshll.u32 %v12086_v44, 16  ;;  %v1044_v54 = vshll.u32 %v12089_v45, 16  ;;  %v1064_v55 = vshll.u32 %v12092_v46, 16 }
  0x2b   : > { %v1073_v56 = vpack.i.b16 %v1072_v49, %v1071_v48  ;;  %v1077_v57 = vpack.i.b16 %v17601_v3, %v1076_v50  ;;  %v1022_v58 = vrot.slane %v1021_v51, 4  ;;  %v1042_v59 = vrot.slane %v1041_v52, 4 }
  0x2c   : > { %v1070_v60 = vpack.i.b16 %v12077_v41, %v12073_v40  ;;  %v1075_v61 = vpack.i.b16 %v17601_v3, %v12081_v42  ;;  %v1062_v62 = vrot.slane %v1061_v47, 4  ;;  %v1026_v63 = vrot.slane %v1024_v53, 5 }
  0x2d   : > { %v1046_v0 = vrot.slane %v1044_v54, 5  ;;  %v1066_v1 = vrot.slane %v1064_v55, 5  ;;  %v1129_v2 = vrot.slane %v1073_v56, %v11979_v8  ;;  %v1137_v4 = vrot.slane %v1077_v57, %v11979_v8 }
  0x2e   : > { %377 = vrot.lane.b32.xlu0 %v10972_v9, %s11932_s23  ;;  %402 = vrot.lane.b32.xlu1 %v11553_v13, %s11930_s21  ;;  %v1095_v5 = vrot.slane %v1070_v60, %v11979_v8  ;;  %v1103_v6 = vrot.slane %v1075_v61, %v11979_v8  ;;  %v12123_v7 = vsel %vm12063_vm2, %v1022_v58, %v1026_v63  ;;  %vm17624_vm13 = vcmask 1040384  }
  0x2f   : > { %v12127_v9 = vsel %vm12063_vm2, %v1042_v59, %v1046_v0  ;;  %v12131_v13 = vsel %vm12063_vm2, %v1062_v62, %v1066_v1  ;;  %v1138_v14 = vcombine.low %v1129_v2, %v1137_v4  ;;  %v1081_v19 = vshrl.u32 %v12123_v7, 16 }
  0x30   : > { %v1104_v18 = vcombine.low %v1095_v5, %v1103_v6  ;;  %v1082_v22 = vshrl.u32 %v12127_v9, 16  ;;  %v1105_v23 = vcombine.high %v1095_v5, %v1103_v6  ;;  %v1139_v27 = vcombine.high %v1129_v2, %v1137_v4 }
  0x31   : > { %v1146_v21 = vrot.slane %v1138_v14, %v12011_v24  ;;  %v1085_v28 = vpack.i.b16 %v17601_v3, %v12131_v13  ;;  %vm18053_vm1 = vcmask 523264  }
  0x32   : > { %387 = vrot.lane.b32.xlu0 %v11551_v20, %s11933_s24  ;;  %412 = vrot.lane.b32.xlu1 %v10979_v26, %s11932_s23  ;;  %v1086_v20 = vshrl.u32 %v12131_v13, 16  ;;  %v1119_v29 = vrot.slane %v1105_v23, %v12011_v24  ;;  %v1153_v32 = vrot.slane %v1139_v27, %v12011_v24 }
  0x33   : > { %v11010_v26 = vcombine.low %v1146_v21, %v1146_v21  ;;  %v11573_v31 = vcombine.high %v1146_v21, %v1146_v21 }
  0x34   : > { %v1087_v25 = vpack.i.b16 %v17601_v3, %v1086_v20  ;;  %v11014_v39 = vcombine.low %v1153_v32, %v1153_v32  ;;  %v11574_v48 = vcombine.high %v1119_v29, %v1119_v29  ;;  %v11575_v50 = vcombine.high %v1153_v32, %v1153_v32 }
  0x36   : > { %417 = vrot.lane.b32.xlu0 %v11554_v30, %s11929_s20  ;;  %422 = vrot.lane.b32.xlu1 %v11555_v34, %s11933_s24  ;;  %v1171_v34 = vrot.slane %v1085_v28, %v11979_v8 }
  0x3a   : > { %469 = vrot.lane.b32.xlu0 %v11982_v10, %s11934_s25  ;;  %471 = vrot.lane.b32.xlu1 %v11995_v15, %s11934_s25 }
  0x3e   : > { %473 = vrot.lane.b32.xlu0 %v11985_v11, %s11934_s25  ;;  %475 = vrot.lane.b32.xlu1 %v11998_v16, %s11934_s25 }
  0x42   : > { %477 = vrot.lane.b32.xlu0 %v11988_v12, %s11934_s25  ;;  %479 = vrot.lane.b32.xlu1 %v12001_v17, %s11934_s25 }
  0x46   : > { %737 = vrot.lane.b32.xlu0 %v11982_v10, %s11935_s26  ;;  %739 = vrot.lane.b32.xlu1 %v11995_v15, %s11935_s26  ;;  %v12146_v10 = vrot.slane %v1104_v18, %v12011_v24  ;;  %v1083_v15 = vpack.i.b16 %v1082_v22, %v1081_v19 }
  0x48   : > { %v1197_v30 = vrot.slane %v1083_v15, %v11979_v8 }
  0x4a   : > { %741 = vrot.lane.b32.xlu0 %v11985_v11, %s11935_s26  ;;  %743 = vrot.lane.b32.xlu1 %v11998_v16, %s11935_s26  ;;  %v1080_v11 = vpack.i.b16 %v12127_v9, %v12123_v7  ;;  %v11572_v16 = vcombine.high %v12146_v10, %v12146_v10 }
  0x4c   : > { %v1163_v33 = vrot.slane %v1080_v11, %v11979_v8 }
  0x4e   : > { %745 = vrot.lane.b32.xlu0 %v11988_v12, %s11935_s26  ;;  %747 = vrot.lane.b32.xlu1 %v12001_v17, %s11935_s26  ;;  %v1205_v12 = vrot.slane %v1087_v25, %v11979_v8  ;;  %v11013_v17 = vcombine.low %v1119_v29, %v1119_v29  ;;  %v1172_v43 = vcombine.low %v1163_v33, %v1171_v34 }
  0x4f   : > { %v1173_v52 = vcombine.high %v1163_v33, %v1171_v34 }
  0x50   : > { %v1206_v38 = vcombine.low %v1197_v30, %v1205_v12  ;;  %v12172_v51 = vrot.slane %v1172_v43, %v12011_v24  ;;  %v1207_v53 = vcombine.high %v1197_v30, %v1205_v12 }
  0x51   : > { %v1187_v55 = vrot.slane %v1173_v52, %v12011_v24 }
  0x52   : > { %1227 = vrot.lane.b32.xlu0 %v11010_v26, %s11931_s22  ;;  %1232 = vrot.lane.b32.xlu1 %v11572_v16, %s11928_s19  ;;  %v1214_v49 = vrot.slane %v1206_v38, %v12011_v24  ;;  %v11576_v54 = vcombine.high %v12172_v51, %v12172_v51  ;;  %v1221_v57 = vrot.slane %v1207_v53, %v12011_v24 }
  0x53   : > { %v11020_v58 = vcombine.low %v1187_v55, %v1187_v55  ;;  %v11578_v60 = vcombine.high %v1187_v55, %v1187_v55 }
  0x54   : > { %v11017_v47 = vcombine.low %v1214_v49, %v1214_v49  ;;  %v11577_v56 = vcombine.high %v1214_v49, %v1214_v49  ;;  %v11021_v59 = vcombine.low %v1221_v57, %v1221_v57  ;;  %v11579_v61 = vcombine.high %v1221_v57, %v1221_v57 }
  0x56   : > { %1237 = vrot.lane.b32.xlu0 %v11573_v31, %s11930_s21  ;;  %1242 = vrot.lane.b32.xlu1 %v11013_v17, %s11927_s18 }
  0x5a   : > { %1247 = vrot.lane.b32.xlu0 %v11014_v39, %s11932_s23  ;;  %1252 = vrot.lane.b32.xlu1 %v11574_v48, %s11929_s20 }
  0x5e   : > { %1257 = vrot.lane.b32.xlu0 %v11575_v50, %s11933_s24  ;;  %1262 = vrot.lane.b32.xlu1 %v11017_v47, %s11931_s22 }
  0x62   : > { %1267 = vrot.lane.b32.xlu0 %v11576_v54, %s11928_s19  ;;  %1272 = vrot.lane.b32.xlu1 %v11577_v56, %s11930_s21 }
  0x66   : > { %1277 = vrot.lane.b32.xlu0 %v11020_v58, %s11927_s18  ;;  %1282 = vrot.lane.b32.xlu1 %v11021_v59, %s11932_s23 }
  0x6a   : > { %1287 = vrot.lane.b32.xlu0 %v11578_v60, %s11929_s20  ;;  %1292 = vrot.lane.b32.xlu1 %v11579_v61, %s11933_s24 }
  0x6e   : > { %1324 = vrot.lane.b32.xlu0 %v12073_v40, %s11934_s25  ;;  %1326 = vrot.lane.b32.xlu1 %v12123_v7, %s11934_s25 }
  0x90   : > { %v12191_v62 = vpop.permute.xlu1 %372  ;;  %v12193_v63 = vpop.permute.xlu0 %362 }
  0x91   : > { %17738 = vst [vmem:[#allocation3_spill] sm:$0xff] %v12191_v62 }
  0x94   : > { %v12195_v0 = vpop.permute.xlu1 %382  ;;  %v12197_v1 = vpop.permute.xlu0 %397 }
  0x95   : > { %17739 = vst [vmem:[#allocation4_spill] sm:$0xff] %v12195_v0 }
  0x98   : > { %v12199_v2 = vpop.permute.xlu1 %367  ;;  %v12201_v4 = vpop.permute.xlu0 %407 }
  0x99   : > { %17740 = vst [vmem:[#allocation5_spill] sm:$0xff] %v12199_v2  ;;  %17741 = vst [vmem:[#allocation6_spill] sm:$0xff] %v12201_v4 }
  0x9c   : > { %v12203_v5 = vpop.permute.xlu0 %357  ;;  %v12205_v6 = vpop.permute.xlu1 %392 }
  0xa0   : > { %v12207_v14 = vpop.permute.xlu0 %377  ;;  %v12209_v18 = vpop.permute.xlu1 %402 }
  0xa1   : > { %17742 = vst [vmem:[#allocation7_spill] sm:$0xff] %v12207_v14  ;;  %17743 = vst [vmem:[#allocation8_spill] sm:$0xff] %v12209_v18 }
  0xa4   : > { %v12211_v19 = vpop.permute.xlu0 %387  ;;  %v12213_v22 = vpop.permute.xlu1 %412 }
  0xa5   : > { %17744 = vst [vmem:[#allocation9_spill] sm:$0xff] %v12211_v19  ;;  %17745 = vst [vmem:[#allocation10_spill] sm:$0xff] %v12213_v22 }
  0xa8   : > { %v12215_v20 = vpop.permute.xlu0 %417  ;;  %v12217_v21 = vpop.permute.xlu1 %422 }
  0xa9   : > { %17746 = vst [vmem:[#allocation11_spill] sm:$0xff] %v12215_v20  ;;  %17747 = vst [vmem:[#allocation12_spill] sm:$0xff] %v12217_v21 }
  0xac   : > { %v470_v23 = vpop.permute.xlu0 %469  ;;  %v472_v15 = vpop.permute.xlu1 %471 }
  0xad   : > { %v484_v59 = vshrl.u32 %v470_v23, 16 }
  0xb0   : > { %v474_v25 = vpop.permute.xlu0 %473  ;;  %v476_v26 = vpop.permute.xlu1 %475 }
  0xb1   : > { %v483_v27 = vpack.i.b16 %v474_v25, %v470_v23  ;;  %v493_v11 = vpack.i.b16 %v476_v26, %v472_v15  ;;  %v495_v23 = vshrl.u32 %v476_v26, 16 }
  0xb3   : > { %v508_v16 = vrot.slane %v483_v27, %v11979_v8  ;;  %v576_v32 = vrot.slane %v493_v11, %v11979_v8  ;;  %v485_v27 = vshrl.u32 %v474_v25, 16 }
  0xb4   : > { %v478_v28 = vpop.permute.xlu0 %477  ;;  %v480_v29 = vpop.permute.xlu1 %479 }
  0xb5   : > { %v488_v30 = vpack.i.b16 %v17601_v3, %v478_v28  ;;  %v498_v12 = vpack.i.b16 %v17601_v3, %v480_v29  ;;  %v499_v11 = vshrl.u32 %v480_v29, 16 }
  0xb7   : > { %v516_v31 = vrot.slane %v488_v30, %v11979_v8  ;;  %v584_v33 = vrot.slane %v498_v12, %v11979_v8 }
  0xb8   : > { %v12225_v34 = vpop.permute.xlu0 %737  ;;  %v12227_v39 = vpop.permute.xlu1 %739 }
  0xb9   : > { %v517_v17 = vcombine.low %v508_v16, %v516_v31  ;;  %v518_v38 = vcombine.high %v508_v16, %v516_v31  ;;  %v585_v43 = vcombine.low %v576_v32, %v584_v33  ;;  %v586_v48 = vcombine.high %v576_v32, %v584_v33 }
  0xba   : > { %v489_v31 = vshrl.u32 %v478_v28, 16 }
  0xbb   : > { %v12230_v49 = vrot.slane %v517_v17, %v12011_v24  ;;  %v532_v50 = vrot.slane %v518_v38, %v12011_v24  ;;  %v12236_v47 = vrot.slane %v585_v43, %v12011_v24  ;;  %v600_v57 = vrot.slane %v586_v48, %v12011_v24 }
  0xbc   : > { %v12233_v52 = vpop.permute.xlu0 %741  ;;  %v12238_v53 = vpop.permute.xlu1 %743  ;;  %v494_v43 = vshrl.u32 %v472_v15, 16  ;;  %v486_v48 = vpack.i.b16 %v485_v27, %v484_v59 }
  0xbd   : > { %v751_v54 = vpack.i.b16 %v12233_v52, %v12225_v34  ;;  %v11556_v55 = vcombine.high %v12230_v49, %v12230_v49  ;;  %v11560_v56 = vcombine.high %v12236_v47, %v12236_v47  ;;  %v10985_v58 = vcombine.low %v532_v50, %v532_v50 }
  0xbe   : > { %v761_v60 = vpack.i.b16 %v12238_v53, %v12227_v39  ;;  %v10992_v33 = vcombine.low %v600_v57, %v600_v57  ;;  %v11558_v38 = vcombine.high %v532_v50, %v532_v50  ;;  %v496_v21 = vpack.i.b16 %v495_v23, %v494_v43 }
  0xbf   : > { %645 = vrot.lane.b32.xlu1 %v11556_v55, %s11928_s19  ;;  %680 = vrot.lane.b32.xlu0 %v11560_v56, %s11928_s19  ;;  %v776_v16 = vrot.slane %v751_v54, %v11979_v8  ;;  %v500_v54 = vpack.i.b16 %v17601_v3, %v499_v11  ;;  %v490_v56 = vpack.i.b16 %v17601_v3, %v489_v31  ;;  %v752_v43 = vshrl.u32 %v12225_v34, 16 }
  0xc0   : > { %v12251_v61 = vpop.permute.xlu0 %745  ;;  %v748_v30 = vpop.permute.xlu1 %747  ;;  %v844_v25 = vrot.slane %v761_v60, %v11979_v8  ;;  %v610_v31 = vrot.slane %v496_v21, %v11979_v8  ;;  %v753_v21 = vshrl.u32 %v12233_v52, 16 }
  0xc1   : > { %v756_v12 = vpack.i.b16 %v17601_v3, %v12251_v61  ;;  %v766_v32 = vpack.i.b16 %v17601_v3, %v748_v30  ;;  %v618_v59 = vrot.slane %v500_v54, %v11979_v8  ;;  %v550_v27 = vrot.slane %v490_v56, %v11979_v8 }
  0xc3   : > { %v784_v17 = vrot.slane %v756_v12, %v11979_v8  ;;  %655 = vrot.lane.b32.xlu1 %v10985_v58, %s11927_s18  ;;  %v852_v29 = vrot.slane %v766_v32, %v11979_v8  ;;  %690 = vrot.lane.b32.xlu0 %v10992_v33, %s11927_s18  ;;  %v11562_v12 = vcombine.high %v600_v57, %v600_v57 }
  0xc4   : > { %v542_v57 = vrot.slane %v486_v48, %v11979_v8  ;;  %v619_v33 = vcombine.low %v610_v31, %v618_v59  ;;  %v620_v56 = vcombine.high %v610_v31, %v618_v59 }
  0xc5   : > { %v785_v28 = vcombine.low %v776_v16, %v784_v17  ;;  %v786_v55 = vcombine.high %v776_v16, %v784_v17  ;;  %v853_v26 = vcombine.low %v844_v25, %v852_v29  ;;  %v854_v36 = vcombine.high %v844_v25, %v852_v29 }
  0xc6   : > { %v551_v17 = vcombine.low %v542_v57, %v550_v27  ;;  %v767_v25 = vshrl.u32 %v748_v30, 16  ;;  %v757_v29 = vshrl.u32 %v12251_v61, 16  ;;  %v552_v61 = vcombine.high %v542_v57, %v550_v27 }
  0xc7   : > { %665 = vrot.lane.b32.xlu1 %v11558_v38, %s11929_s20  ;;  %v12266_v15 = vrot.slane %v785_v28, %v12011_v24  ;;  %v800_v50 = vrot.slane %v786_v55, %v12011_v24  ;;  %700 = vrot.lane.b32.xlu0 %v11562_v12, %s11929_s20  ;;  %v12271_v58 = vrot.slane %v853_v26, %v12011_v24  ;;  %v763_v28 = vshrl.u32 %v12238_v53, 16 }
  0xc8   : > { %v868_v16 = vrot.slane %v854_v36, %v12011_v24  ;;  %v627_v36 = vrot.slane %v619_v33, %v12011_v24  ;;  %v559_v54 = vrot.slane %v551_v17, %v12011_v24  ;;  %v762_v55 = vshrl.u32 %v12227_v39, 16 }
  0xc9   : > { %17748 = vst [vmem:[#allocation13_spill] sm:$0xff] %v12266_v15  ;;  %17749 = vst [vmem:[#allocation14_spill] sm:$0xff] %v12271_v58  ;;  %v11564_v60 = vcombine.high %v12266_v15, %v12266_v15  ;;  %v11568_v11 = vcombine.high %v12271_v58, %v12271_v58  ;;  %v10999_v32 = vcombine.low %v800_v50, %v800_v50 }
  0xca   : > { %v11006_v23 = vcombine.low %v868_v16, %v868_v16  ;;  %v11566_v38 = vcombine.high %v800_v50, %v800_v50  ;;  %v11570_v48 = vcombine.high %v868_v16, %v868_v16  ;;  %v768_v34 = vpack.i.b16 %v17601_v3, %v767_v25 }
  0xcb   : > { %913 = vrot.lane.b32.xlu1 %v11564_v60, %s11928_s19  ;;  %948 = vrot.lane.b32.xlu0 %v11568_v11, %s11928_s19  ;;  %v10989_v30 = vcombine.low %v627_v36, %v627_v36  ;;  %v754_v26 = vpack.i.b16 %v753_v21, %v752_v43  ;;  %v758_v52 = vpack.i.b16 %v17601_v3, %v757_v29 }
  0xcc   : > { %v10982_v12 = vcombine.low %v559_v54, %v559_v54  ;;  %v764_v50 = vpack.i.b16 %v763_v28, %v762_v55  ;;  %v886_v53 = vrot.slane %v768_v34, %v11979_v8  ;;  %v11561_v60 = vcombine.high %v627_v36, %v627_v36 }
  0xcd   : > { %v634_v11 = vrot.slane %v620_v56, %v12011_v24  ;;  %v810_v39 = vrot.slane %v754_v26, %v11979_v8  ;;  %v818_v16 = vrot.slane %v758_v52, %v11979_v8  ;;  %v11557_v59 = vcombine.high %v559_v54, %v559_v54 }
  0xce   : > { %v566_v31 = vrot.slane %v552_v61, %v12011_v24  ;;  %v12333_v61 = vpop.permute.xlu0 %1227 }
  0xcf   : > { %923 = vrot.lane.b32.xlu1 %v10999_v32, %s11927_s18  ;;  %958 = vrot.lane.b32.xlu0 %v11006_v23, %s11927_s18  ;;  %v878_v32 = vrot.slane %v764_v50, %v11979_v8  ;;  %v10993_v57 = vcombine.low %v634_v11, %v634_v11  ;;  %v819_v23 = vcombine.low %v810_v39, %v818_v16 }
  0xd0   : > { %v10986_v33 = vcombine.low %v566_v31, %v566_v31  ;;  %v11563_v17 = vcombine.high %v634_v11, %v634_v11  ;;  %v11559_v43 = vcombine.high %v566_v31, %v566_v31 }
  0xd1   : > { %v887_v27 = vcombine.low %v878_v32, %v886_v53  ;;  %v827_v25 = vrot.slane %v819_v23, %v12011_v24  ;;  %v888_v21 = vcombine.high %v878_v32, %v886_v53 }
  0xd2   : > { %v12337_v53 = vpop.permute.xlu0 %1237 }
  0xd3   : > { %933 = vrot.lane.b32.xlu1 %v11566_v38, %s11929_s20  ;;  %968 = vrot.lane.b32.xlu0 %v11570_v48, %s11929_s20  ;;  %v895_v38 = vrot.slane %v887_v27, %v12011_v24  ;;  %v10996_v29 = vcombine.low %v827_v25, %v827_v25  ;;  %v820_v48 = vcombine.high %v810_v39, %v818_v16 }
  0xd4   : > { %v902_v28 = vrot.slane %v888_v21, %v12011_v24  ;;  %v11565_v55 = vcombine.high %v827_v25, %v827_v25 }
  0xd5   : > { %v11003_v36 = vcombine.low %v895_v38, %v895_v38  ;;  %v11569_v54 = vcombine.high %v895_v38, %v895_v38  ;;  %v834_v34 = vrot.slane %v820_v48, %v12011_v24 }
  0xd6   : > { %v11571_v26 = vcombine.high %v902_v28, %v902_v28  ;;  %v12341_v11 = vpop.permute.xlu0 %1247 }
  0xd7   : > { %675 = vrot.lane.b32.xlu1 %v10989_v30, %s11931_s22  ;;  %640 = vrot.lane.b32.xlu0 %v10982_v12, %s11931_s22  ;;  %v11007_v30 = vcombine.low %v902_v28, %v902_v28  ;;  %v11000_v56 = vcombine.low %v834_v34, %v834_v34  ;;  %v11567_v52 = vcombine.high %v834_v34, %v834_v34  ;;  %v12331_v12 = vpop.permute.xlu1 %1232 }
  0xda   : > { %v12345_v16 = vpop.permute.xlu0 %1257 }
  0xdb   : > { %685 = vrot.lane.b32.xlu1 %v11561_v60, %s11930_s21  ;;  %650 = vrot.lane.b32.xlu0 %v11557_v59, %s11930_s21  ;;  %v12335_v50 = vpop.permute.xlu1 %1242  ;;  %17751 = vst [vmem:[#allocation16_spill] sm:$0xff] %v12345_v16 }
  0xde   : > { %v12349_v31 = vpop.permute.xlu0 %1267 }
  0xdf   : > { %695 = vrot.lane.b32.xlu1 %v10993_v57, %s11932_s23  ;;  %660 = vrot.lane.b32.xlu0 %v10986_v33, %s11932_s23  ;;  %v12339_v60 = vpop.permute.xlu1 %1252 }
  0xe0   : > { %17750 = vst [vmem:[#allocation15_spill] sm:$0xff] %v12339_v60 }
  0xe2   : > { %v12353_v57 = vpop.permute.xlu0 %1277 }
  0xe3   : > { %705 = vrot.lane.b32.xlu1 %v11563_v17, %s11933_s24  ;;  %670 = vrot.lane.b32.xlu0 %v11559_v43, %s11933_s24  ;;  %v12343_v39 = vpop.permute.xlu1 %1262 }
  0xe6   : > { %v12357_v33 = vpop.permute.xlu0 %1287 }
  0xe7   : > { %943 = vrot.lane.b32.xlu1 %v11003_v36, %s11931_s22  ;;  %908 = vrot.lane.b32.xlu0 %v10996_v29, %s11931_s22  ;;  %v12347_v59 = vpop.permute.xlu1 %1272 }
  0xea   : > { %v1325_v17 = vpop.permute.xlu0 %1324 }
  0xeb   : > { %953 = vrot.lane.b32.xlu1 %v11569_v54, %s11930_s21  ;;  %918 = vrot.lane.b32.xlu0 %v11565_v55, %s11930_s21  ;;  %v12351_v32 = vpop.permute.xlu1 %1282 }
  0xef   : > { %963 = vrot.lane.b32.xlu1 %v11007_v30, %s11932_s23  ;;  %928 = vrot.lane.b32.xlu0 %v11000_v56, %s11932_s23  ;;  %v12355_v27 = vpop.permute.xlu1 %1292 }
  0xf0   : > { %17752 = vst [vmem:[#allocation17_spill] sm:$0xff] %v12355_v27 }
  0xf3   : > { %973 = vrot.lane.b32.xlu1 %v11571_v26, %s11933_s24  ;;  %938 = vrot.lane.b32.xlu0 %v11567_v52, %s11933_s24  ;;  %v12359_v23 = vpop.permute.xlu1 %1326 }
  0xf7   : > { %1330 = vrot.lane.b32.xlu1 %v12127_v9, %s11934_s25  ;;  %1328 = vrot.lane.b32.xlu0 %v12077_v41, %s11934_s25 }
  0xfb   : > { %1334 = vrot.lane.b32.xlu1 %v12131_v13, %s11934_s25  ;;  %1332 = vrot.lane.b32.xlu0 %v12081_v42, %s11934_s25 }
 0x131   : > { %v12361_v38 = vpop.permute.xlu1 %645  ;;  %v12363_v43 = vpop.permute.xlu0 %680 }
 0x135   : > { %v12365_v25 = vpop.permute.xlu1 %655  ;;  %v12367_v36 = vpop.permute.xlu0 %690 }
 0x136   : > { %17753 = vst [vmem:[#allocation18_spill] sm:$0xff] %v12365_v25  ;;  %17754 = vst [vmem:[#allocation19_spill] sm:$0xff] %v12367_v36 }
 0x139   : > { %v12369_v21 = vpop.permute.xlu1 %665  ;;  %v12371_v29 = vpop.permute.xlu0 %700 }
 0x13a   : > { %17755 = vst [vmem:[#allocation20_spill] sm:$0xff] %v12369_v21  ;;  %17756 = vst [vmem:[#allocation21_spill] sm:$0xff] %v12371_v29 }
 0x13d   : > { %v12373_v48 = vpop.permute.xlu1 %913  ;;  %v12375_v54 = vpop.permute.xlu0 %948 }
 0x13e   : > { %17757 = vst [vmem:[#allocation22_spill] sm:$0xff] %v12373_v48  ;;  %17758 = vst [vmem:[#allocation23_spill] sm:$0xff] %v12375_v54 }
 0x141   : > { %v12377_v28 = vpop.permute.xlu1 %923  ;;  %v12379_v55 = vpop.permute.xlu0 %958 }
 0x142   : > { %17759 = vst [vmem:[#allocation24_spill] sm:$0xff] %v12377_v28  ;;  %17760 = vst [vmem:[#allocation25_spill] sm:$0xff] %v12379_v55 }
 0x145   : > { %v12381_v34 = vpop.permute.xlu1 %933  ;;  %v12383_v30 = vpop.permute.xlu0 %968 }
 0x146   : > { %17761 = vst [vmem:[#allocation26_spill] sm:$0xff] %v12381_v34  ;;  %17762 = vst [vmem:[#allocation27_spill] sm:$0xff] %v12383_v30 }
 0x149   : > { %v12385_v56 = vpop.permute.xlu1 %675  ;;  %v12387_v26 = vpop.permute.xlu0 %640 }
 0x14d   : > { %v12389_v52 = vpop.permute.xlu1 %685  ;;  %v12391_v3 = vpop.permute.xlu0 %650 }
 0x14e   : > { %17763 = vst [vmem:[#allocation28_spill] sm:$0xff] %v12391_v3 }
 0x151   : > { %v12393_v19 = vpop.permute.xlu1 %695  ;;  %v12395_v0 = vpop.permute.xlu0 %660 }
 0x152   : > { %17764 = vst [vmem:[#allocation29_spill] sm:$0xff] %v12393_v19  ;;  %17765 = vst [vmem:[#allocation30_spill] sm:$0xff] %v12395_v0 }
 0x155   : > { %v12397_v48 = vpop.permute.xlu1 %705  ;;  %v12399_v28 = vpop.permute.xlu0 %670 }
 0x156   : > { %17766 = vst [vmem:[#allocation31_spill] sm:$0xff] %v12397_v48  ;;  %17767 = vst [vmem:[#allocation32_spill] sm:$0xff] %v12399_v28  ;;  %v1339_v28 = vshrl.u32 %v1325_v17, 16 }
 0x159   : > { %v12401_v55 = vpop.permute.xlu1 %943  ;;  %v12403_v34 = vpop.permute.xlu0 %908 }
 0x15a   : > { %17768 = vst [vmem:[#allocation33_spill] sm:$0xff] %v12401_v55  ;;  %17769 = vst [vmem:[#allocation34_spill] sm:$0xff] %v12403_v34 }
 0x15d   : > { %v12405_v30 = vpop.permute.xlu1 %953  ;;  %v12407_v54 = vpop.permute.xlu0 %918 }
 0x15e   : > { %17770 = vst [vmem:[#allocation35_spill] sm:$0xff] %v12405_v30  ;;  %17771 = vst [vmem:[#allocation36_spill] sm:$0xff] %v12407_v54  ;;  %v17776_v30 = vmov 0  }
 0x161   : > { %v12409_v21 = vpop.permute.xlu1 %963  ;;  %v12411_v20 = vpop.permute.xlu0 %928 }
 0x162   : > { %17772 = vst [vmem:[#allocation37_spill] sm:$0xff] %v12409_v21  ;;  %17773 = vst [vmem:[#allocation38_spill] sm:$0xff] %v12411_v20 }
 0x165   : > { %v12413_v14 = vpop.permute.xlu1 %973  ;;  %v12415_v15 = vpop.permute.xlu0 %938 }
 0x166   : > { %17774 = vst [vmem:[#allocation39_spill] sm:$0xff] %v12413_v14  ;;  %17775 = vst [vmem:[#allocation40_spill] sm:$0xff] %v12415_v15  ;;  %v1349_v15 = vshrl.u32 %v12359_v23, 16 }
 0x169   : > { %v1331_v16 = vpop.permute.xlu1 %1330  ;;  %v1329_v58 = vpop.permute.xlu0 %1328 }
 0x16a   : > { %v1340_v48 = vshrl.u32 %v1329_v58, 16  ;;  %v1338_v22 = vpack.i.b16 %v1329_v58, %v1325_v17  ;;  %v1350_v62 = vshrl.u32 %v1331_v16, 16 }
 0x16c   : > { %v1341_v29 = vpack.i.b16 %v1340_v48, %v1339_v28  ;;  %v1363_v21 = vrot.slane %v1338_v22, %v11979_v8  ;;  %v1351_v27 = vpack.i.b16 %v1350_v62, %v1349_v15  ;;  %v1348_v15 = vpack.i.b16 %v1331_v16, %v12359_v23 }
 0x16d   : > { %v1335_v55 = vpop.permute.xlu1 %1334  ;;  %v1333_v34 = vpop.permute.xlu0 %1332 }
 0x16e   : > { %v1354_v0 = vshrl.u32 %v1335_v55, 16  ;;  %v1343_v4 = vpack.i.b16 %v17776_v30, %v1333_v34  ;;  %v1344_v54 = vshrl.u32 %v1333_v34, 16  ;;  %v1397_v25 = vrot.slane %v1341_v29, %v11979_v8 }
 0x170   : > { %v1345_v20 = vpack.i.b16 %v17776_v30, %v1344_v54  ;;  %v1371_v14 = vrot.slane %v1343_v4, %v11979_v8  ;;  %v1355_v58 = vpack.i.b16 %v17776_v30, %v1354_v0  ;;  %v1465_v0 = vrot.slane %v1351_v27, %v11979_v8 }
 0x171   : > { %v1431_v27 = vrot.slane %v1348_v15, %v11979_v8 }
 0x172   : > { %v1372_v17 = vcombine.low %v1363_v21, %v1371_v14  ;;  %v1373_v48 = vcombine.high %v1363_v21, %v1371_v14  ;;  %v1405_v28 = vrot.slane %v1345_v20, %v11979_v8  ;;  %v1473_v22 = vrot.slane %v1355_v58, %v11979_v8 }
 0x173   : > { %v1353_v14 = vpack.i.b16 %v17776_v30, %v1335_v55 }
 0x174   : > { %v12426_v34 = vrot.slane %v1372_v17, %v12011_v24  ;;  %v1406_v60 = vcombine.low %v1397_v25, %v1405_v28  ;;  %v1387_v29 = vrot.slane %v1373_v48, %v12011_v24  ;;  %v1407_v20 = vcombine.high %v1397_v25, %v1405_v28 }
 0x175   : > { %v1474_v58 = vcombine.low %v1465_v0, %v1473_v22  ;;  %v1439_v17 = vrot.slane %v1353_v14, %v11979_v8 }
 0x176   : > { %17777 = vst [vmem:[#allocation41_spill] sm:$0xff] %v12426_v34  ;;  %v11580_v4 = vcombine.high %v12426_v34, %v12426_v34  ;;  %v1414_v54 = vrot.slane %v1406_v60, %v12011_v24  ;;  %v11027_v21 = vcombine.low %v1387_v29, %v1387_v29  ;;  %v1421_v48 = vrot.slane %v1407_v20, %v12011_v24 }
 0x177   : > { %v11582_v55 = vcombine.high %v1387_v29, %v1387_v29  ;;  %v1482_v25 = vrot.slane %v1474_v58, %v12011_v24  ;;  %v1440_v28 = vcombine.low %v1431_v27, %v1439_v17  ;;  %v1441_v14 = vcombine.high %v1431_v27, %v1439_v17 }
 0x178   : > { %1500 = vrot.lane.b32.xlu1 %v11580_v4, %s11928_s19  ;;  %v11024_v62 = vcombine.low %v1414_v54, %v1414_v54  ;;  %v11581_v60 = vcombine.high %v1414_v54, %v1414_v54  ;;  %v11028_v16 = vcombine.low %v1421_v48, %v1421_v48  ;;  %v1475_v4 = vcombine.high %v1465_v0, %v1473_v22 }
 0x179   : > { %v11031_v23 = vcombine.low %v1482_v25, %v1482_v25  ;;  %v11583_v54 = vcombine.high %v1421_v48, %v1421_v48  ;;  %v11585_v29 = vcombine.high %v1482_v25, %v1482_v25 }
 0x17a   : > { %1495 = vrot.lane.b32.xlu0 %v11024_v62, %s11931_s22  ;;  %v12448_v62 = vrot.slane %v1440_v28, %v12011_v24  ;;  %v1489_v20 = vrot.slane %v1475_v4, %v12011_v24 }
 0x17c   : > { %1510 = vrot.lane.b32.xlu1 %v11027_v21, %s11927_s18  ;;  %17778 = vst [vmem:[#allocation42_spill] sm:$0xff] %v12448_v62  ;;  %v11584_v15 = vcombine.high %v12448_v62, %v12448_v62  ;;  %v1455_v21 = vrot.slane %v1441_v14, %v12011_v24  ;;  %v11035_v22 = vcombine.low %v1489_v20, %v1489_v20 }
 0x17d   : > { %v11587_v58 = vcombine.high %v1489_v20, %v1489_v20 }
 0x17e   : > { %1505 = vrot.lane.b32.xlu0 %v11581_v60, %s11930_s21  ;;  %v11034_v0 = vcombine.low %v1455_v21, %v1455_v21  ;;  %v11586_v17 = vcombine.high %v1455_v21, %v1455_v21 }
 0x180   : > { %1520 = vrot.lane.b32.xlu1 %v11582_v55, %s11929_s20 }
 0x182   : > { %1515 = vrot.lane.b32.xlu0 %v11028_v16, %s11932_s23 }
 0x184   : > { %1530 = vrot.lane.b32.xlu1 %v11031_v23, %s11931_s22 }
 0x186   : > { %1525 = vrot.lane.b32.xlu0 %v11583_v54, %s11933_s24 }
 0x188   : > { %1540 = vrot.lane.b32.xlu1 %v11585_v29, %s11930_s21 }
 0x18a   : > { %1535 = vrot.lane.b32.xlu0 %v11584_v15, %s11928_s19 }
 0x18c   : > { %1550 = vrot.lane.b32.xlu1 %v11035_v22, %s11932_s23 }
 0x18e   : > { %1545 = vrot.lane.b32.xlu0 %v11034_v0, %s11927_s18 }
 0x190   : > { %1560 = vrot.lane.b32.xlu1 %v11587_v58, %s11933_s24 }
 0x192   : > { %1555 = vrot.lane.b32.xlu0 %v11586_v17, %s11929_s20 }
 0x194   : > { %1594 = vrot.lane.b32.xlu1 %v12123_v7, %s11935_s26 }
 0x196   : > { %1592 = vrot.lane.b32.xlu0 %v12073_v40, %s11935_s26 }
 0x198   : > { %1598 = vrot.lane.b32.xlu1 %v12127_v9, %s11935_s26 }
 0x19a   : > { %1596 = vrot.lane.b32.xlu0 %v12077_v41, %s11935_s26 }
 0x19c   : > { %1602 = vrot.lane.b32.xlu1 %v12131_v13, %s11935_s26 }
 0x19e   : > { %1600 = vrot.lane.b32.xlu0 %v12081_v42, %s11935_s26 }
 0x1ea   : > { %v12473_v60 = vpop.permute.xlu1 %1500 }
 0x1eb   : > { %17779 = vst [vmem:[#allocation43_spill] sm:$0xff] %v12473_v60  ;;  %v11880_v60 = vld [vmem:[%s11977_s17 + $0x1c] sm:$0xf] }
 0x1ec   : > { %v12475_v48 = vpop.permute.xlu0 %1495  ;;  %v1882_v34 = vrot.slane %v11880_v60, 5 }
 0x1ed   : > { %17780 = vst [vmem:[#allocation44_spill] sm:$0xff] %v12475_v48  ;;  %v1885_v48 = vrot.slane %v12092_v46, 5 }
 0x1ee   : > { %v12477_v7 = vpop.permute.xlu1 %1510  ;;  %v1884_v19 = vrot.slane %v1882_v34, 4 }
 0x1ef   : > { %17781 = vst [vmem:[#allocation45_spill] sm:$0xff] %v12477_v7 }
 0x1f0   : > { %v12479_v27 = vpop.permute.xlu0 %1505 }
 0x1f1   : > { %17782 = vst [vmem:[#allocation46_spill] sm:$0xff] %v12479_v27 }
 0x1f2   : > { %v12481_v40 = vpop.permute.xlu1 %1520 }
 0x1f3   : > { %17783 = vst [vmem:[#allocation47_spill] sm:$0xff] %v12481_v40 }
 0x1f4   : > { %v12483_v9 = vpop.permute.xlu0 %1515 }
 0x1f5   : > { %17784 = vst [vmem:[#allocation48_spill] sm:$0xff] %v12483_v9 }
 0x1f6   : > { %v12485_v55 = vpop.permute.xlu1 %1530 }
 0x1f7   : > { %17785 = vst [vmem:[#allocation49_spill] sm:$0xff] %v12485_v55  ;;  %v11879_v55 = vld [vmem:[%s11977_s17 + $0x18] sm:$0xf] }
 0x1f8   : > { %v12487_v41 = vpop.permute.xlu0 %1525  ;;  %v11054_v27 = vrot.slane %v11879_v55, 9 }
 0x1f9   : > { %17786 = vst [vmem:[#allocation50_spill] sm:$0xff] %v12487_v41 }
 0x1fa   : > { %v12489_v13 = vpop.permute.xlu1 %1540 }
 0x1fb   : > { %17787 = vst [vmem:[#allocation51_spill] sm:$0xff] %v12489_v13 }
 0x1fc   : > { %v12491_v25 = vpop.permute.xlu0 %1535 }
 0x1fd   : > { %17788 = vst [vmem:[#allocation52_spill] sm:$0xff] %v12491_v25 }
 0x1fe   : > { %v12493_v42 = vpop.permute.xlu1 %1550 }
 0x1ff   : > { %17789 = vst [vmem:[#allocation53_spill] sm:$0xff] %v12493_v42 }
 0x200   : > { %v12495_v28 = vpop.permute.xlu0 %1545 }
 0x201   : > { %17790 = vst [vmem:[#allocation54_spill] sm:$0xff] %v12495_v28 }
 0x202   : > { %v12497_v16 = vpop.permute.xlu1 %1560 }
 0x203   : > { %17791 = vst [vmem:[#allocation55_spill] sm:$0xff] %v12497_v16 }
 0x204   : > { %v12499_v23 = vpop.permute.xlu0 %1555 }
 0x205   : > { %17792 = vst [vmem:[#allocation56_spill] sm:$0xff] %v12499_v23 }
 0x206   : > { %v1595_v4 = vpop.permute.xlu1 %1594 }
 0x207   : > { %v1617_v15 = vshrl.u32 %v1595_v4, 16 }
 0x208   : > { %v1593_v14 = vpop.permute.xlu0 %1592 }
 0x209   : > { %v1607_v0 = vshrl.u32 %v1593_v14, 16 }
 0x20a   : > { %v1599_v54 = vpop.permute.xlu1 %1598 }
 0x20b   : > { %v1618_v21 = vshrl.u32 %v1599_v54, 16 }
 0x20c   : > { %v1597_v29 = vpop.permute.xlu0 %1596 }
 0x20d   : > { %v1608_v20 = vshrl.u32 %v1597_v29, 16  ;;  %v1606_v58 = vpack.i.b16 %v1597_v29, %v1593_v14  ;;  %v1619_v16 = vpack.i.b16 %v1618_v21, %v1617_v15  ;;  %v11877_v21 = vld [vmem:[%s11977_s17 + $0xc] sm:$0xf] }
 0x20e   : > { %v1603_v22 = vpop.permute.xlu1 %1602 }
 0x20f   : > { %v1622_v41 = vshrl.u32 %v1603_v22, 16  ;;  %v1609_v40 = vpack.i.b16 %v1608_v20, %v1607_v0  ;;  %v1631_v23 = vrot.slane %v1606_v58, %v11979_v8  ;;  %v12509_v0 = vrot.slane %v1619_v16, %v11979_v8 }
 0x210   : > { %v1601_v17 = vpop.permute.xlu0 %1600  ;;  %v11053_v58 = vrot.slane %v11877_v21, 9 }
 0x211   : > { %v1611_v9 = vpack.i.b16 %v17776_v30, %v1601_v17  ;;  %v1612_v42 = vshrl.u32 %v1601_v17, 16  ;;  %v1623_v13 = vpack.i.b16 %v17776_v30, %v1622_v41  ;;  %v1665_v25 = vrot.slane %v1609_v40, %v11979_v8  ;;  %v11875_v40 = vld [vmem:[%s11977_s17] sm:$0xf] }
 0x212   : > { %v11052_v41 = vrot.slane %v11875_v40, 9  ;;  %v1616_v17 = vpack.i.b16 %v1599_v54, %v1595_v4  ;;  %v17794_v40 = vmov 0 }
 0x213   : > { %v1613_v28 = vpack.i.b16 %v17776_v30, %v1612_v42  ;;  %v1639_v7 = vrot.slane %v1611_v9, %v11979_v8  ;;  %v12512_v15 = vrot.slane %v1623_v13, %v11979_v8  ;;  %v17795_v40 = vsel %vm12529_vm5, 4294967295, %v17794_v40 }
 0x214   : > { %17796 = vst [vmem:[#allocation58_spill] sm:$0xff] %v17795_v40  ;;  %v1699_v60 = vrot.slane %v1616_v17, %v11979_v8 }
 0x215   : > { %v1640_v14 = vcombine.low %v1631_v23, %v1639_v7  ;;  %v1641_v29 = vcombine.high %v1631_v23, %v1639_v7  ;;  %v1673_v20 = vrot.slane %v1613_v28, %v11979_v8  ;;  %v11876_v7 = vld [vmem:[%s11977_s17 + $0x4] sm:$0xf] }
 0x216   : > { %v1868_v23 = vrot.slane %v11876_v7, 5 }
 0x217   : > { %v12515_v42 = vrot.slane %v1640_v14, %v12011_v24  ;;  %v1674_v9 = vcombine.low %v1665_v25, %v1673_v20  ;;  %v1655_v13 = vrot.slane %v1641_v29, %v12011_v24  ;;  %v11878_v14 = vld [vmem:[%s11977_s17 + $0x10] sm:$0xf]  ;;  %v1675_v7 = vcombine.high %v1665_v25, %v1673_v20 }
 0x218   : > { %v1875_v62 = vrot.slane %v11878_v14, 5  ;;  %v1742_v29 = vcombine.low %v12509_v0, %v12512_v15  ;;  %v12541_v54 = vsel %vm12529_vm5, %v11052_v41, %v1868_v23 }
 0x219   : > { %17793 = vst [vmem:[#allocation57_spill] sm:$0xff] %v12515_v42  ;;  %v11588_v28 = vcombine.high %v12515_v42, %v12515_v42  ;;  %v1682_v16 = vrot.slane %v1674_v9, %v12011_v24  ;;  %v1621_v9 = vpack.i.b16 %v17776_v30, %v1603_v22  ;;  %v11041_v55 = vcombine.low %v1655_v13, %v1655_v13 }
 0x21a   : > { %v12545_v25 = vsel %vm12529_vm5, %v11053_v58, %v1875_v62  ;;  %v12549_v22 = vsel %vm12529_vm5, %v11054_v27, %v1882_v34  ;;  %v1689_v21 = vrot.slane %v1675_v7, %v12011_v24  ;;  %v1750_v17 = vrot.slane %v1742_v29, %v12011_v24 }
 0x21b   : > { %1768 = vrot.lane.b32.xlu1 %v11588_v28, %s11928_s19  ;;  %v11038_v4 = vcombine.low %v1682_v16, %v1682_v16  ;;  %v1707_v20 = vrot.slane %v1621_v9, %v11979_v8  ;;  %v11589_v28 = vcombine.high %v1682_v16, %v1682_v16  ;;  %v11590_v41 = vcombine.high %v1655_v13, %v1655_v13 }
 0x21c   : > { %v1890_v14 = vshrl.u32 %v12541_v54, 16  ;;  %v1891_v58 = vshrl.u32 %v12545_v25, 16  ;;  %v1871_v27 = vrot.slane %v12086_v44, 5  ;;  %v1889_v9 = vpack.i.b16 %v12545_v25, %v12541_v54 }
 0x21d   : > { %1763 = vrot.lane.b32.xlu0 %v11038_v4, %s11931_s22  ;;  %v1895_v4 = vshrl.u32 %v12549_v22, 16  ;;  %v1894_v16 = vpack.i.b16 %v17776_v30, %v12549_v22  ;;  %v1708_v7 = vcombine.low %v1699_v60, %v1707_v20  ;;  %v11042_v29 = vcombine.low %v1689_v21, %v1689_v21 }
 0x21e   : > { %v1870_v13 = vrot.slane %v1868_v23, 4  ;;  %v1877_v42 = vrot.slane %v1875_v62, 4  ;;  %v1743_v44 = vcombine.high %v12509_v0, %v12512_v15  ;;  %v1892_v2 = vpack.i.b16 %v1891_v58, %v1890_v14 }
 0x21f   : > { %1778 = vrot.lane.b32.xlu1 %v11041_v55, %s11927_s18  ;;  %v11045_v55 = vcombine.low %v1750_v17, %v1750_v17  ;;  %v1896_v18 = vpack.i.b16 %v17776_v30, %v1895_v4  ;;  %v1914_v36 = vrot.slane %v1889_v9, %v11979_v8  ;;  %v1709_v3 = vcombine.high %v1699_v60, %v1707_v20 }
 0x220   : > { %v12575_v46 = vrot.slane %v1708_v7, %v12011_v24  ;;  %v12579_v34 = vsel %vm12529_vm5, %v1870_v13, %v1871_v27  ;;  %v12587_v0 = vsel %vm12529_vm5, %v1884_v19, %v1885_v48  ;;  %v11593_v15 = vcombine.high %v1750_v17, %v1750_v17 }
 0x221   : > { %1773 = vrot.lane.b32.xlu0 %v11589_v28, %s11930_s21  ;;  %v1878_v28 = vrot.slane %v12089_v45, 5  ;;  %v11591_v45 = vcombine.high %v1689_v21, %v1689_v21  ;;  %v1757_v23 = vrot.slane %v1743_v44, %v12011_v24  ;;  %v1948_v60 = vrot.slane %v1892_v2, %v11979_v8 }
 0x222   : > { %v1956_v20 = vrot.slane %v1896_v18, %v11979_v8  ;;  %v1900_v14 = vshrl.u32 %v12579_v34, 16  ;;  %v1723_v19 = vrot.slane %v1709_v3, %v12011_v24  ;;  %v1905_v17 = vshrl.u32 %v12587_v0, 16 }
 0x223   : > { %1788 = vrot.lane.b32.xlu1 %v11590_v41, %s11929_s20  ;;  %v1922_v41 = vrot.slane %v1894_v16, %v11979_v8  ;;  %v12583_v62 = vsel %vm12529_vm5, %v1877_v42, %v1878_v28  ;;  %v11592_v42 = vcombine.high %v12575_v46, %v12575_v46  ;;  %v11049_v58 = vcombine.low %v1757_v23, %v1757_v23 }
 0x224   : > { %v1901_v48 = vshrl.u32 %v12583_v62, 16  ;;  %v1957_v2 = vcombine.low %v1948_v60, %v1956_v20  ;;  %v11048_v4 = vcombine.low %v1723_v19, %v1723_v19  ;;  %v1906_v16 = vpack.i.b16 %v17776_v30, %v1905_v17 }
 0x225   : > { %1783 = vrot.lane.b32.xlu0 %v11042_v29, %s11932_s23  ;;  %v1923_v21 = vcombine.low %v1914_v36, %v1922_v41  ;;  %v1924_v27 = vcombine.high %v1914_v36, %v1922_v41  ;;  %v11595_v3 = vcombine.high %v1757_v23, %v1757_v23  ;;  %v1958_v41 = vcombine.high %v1948_v60, %v1956_v20 }
 0x226   : > { %v1902_v9 = vpack.i.b16 %v1901_v48, %v1900_v14  ;;  %v1965_v7 = vrot.slane %v1957_v2, %v12011_v24  ;;  %v2024_v36 = vrot.slane %v1906_v16, %v11979_v8 }
 0x227   : > { %1798 = vrot.lane.b32.xlu1 %v11045_v55, %s11931_s22  ;;  %v12602_v18 = vrot.slane %v1923_v21, %v12011_v24  ;;  %v11594_v55 = vcombine.high %v1723_v19, %v1723_v19  ;;  %v1938_v13 = vrot.slane %v1924_v27, %v12011_v24 }
 0x228   : > { %v2016_v28 = vrot.slane %v1902_v9, %v11979_v8  ;;  %v11055_v44 = vcombine.low %v1965_v7, %v1965_v7  ;;  %v11597_v14 = vcombine.high %v1965_v7, %v1965_v7 }
 0x229   : > { %1793 = vrot.lane.b32.xlu0 %v11591_v45, %s11933_s24  ;;  %17797 = vst [vmem:[#allocation59_spill] sm:$0xff] %v12602_v18  ;;  %v11596_v29 = vcombine.high %v12602_v18, %v12602_v18  ;;  %v1899_v45 = vpack.i.b16 %v12583_v62, %v12579_v34  ;;  %v11058_v23 = vcombine.low %v1938_v13, %v1938_v13 }
 0x22a   : > { %v2025_v21 = vcombine.low %v2016_v28, %v2024_v36  ;;  %v11598_v60 = vcombine.high %v1938_v13, %v1938_v13 }
 0x22b   : > { %1808 = vrot.lane.b32.xlu1 %v11593_v15, %s11930_s21  ;;  %v1904_v15 = vpack.i.b16 %v17776_v30, %v12587_v0  ;;  %v1982_v19 = vrot.slane %v1899_v45, %v11979_v8 }
 0x22c   : > { %v2033_v20 = vrot.slane %v2025_v21, %v12011_v24 }
 0x22d   : > { %1803 = vrot.lane.b32.xlu0 %v11592_v42, %s11928_s19  ;;  %v1972_v42 = vrot.slane %v1958_v41, %v12011_v24  ;;  %v1990_v48 = vrot.slane %v1904_v15, %v11979_v8 }
 0x22e   : > { %v11062_v2 = vcombine.low %v2033_v20, %v2033_v20 }
 0x22f   : > { %1818 = vrot.lane.b32.xlu1 %v11049_v58, %s11932_s23  ;;  %v11059_v17 = vcombine.low %v1972_v42, %v1972_v42  ;;  %v1991_v58 = vcombine.low %v1982_v19, %v1990_v48  ;;  %v11599_v27 = vcombine.high %v1972_v42, %v1972_v42  ;;  %v1992_v16 = vcombine.high %v1982_v19, %v1990_v48 }
 0x231   : > { %1813 = vrot.lane.b32.xlu0 %v11048_v4, %s11927_s18  ;;  %v2026_v4 = vcombine.high %v2016_v28, %v2024_v36  ;;  %v12630_v9 = vrot.slane %v1991_v58, %v12011_v24 }
 0x233   : > { %1828 = vrot.lane.b32.xlu1 %v11595_v3, %s11933_s24  ;;  %17798 = vst [vmem:[#allocation60_spill] sm:$0xff] %v12630_v9  ;;  %v11601_v3 = vcombine.high %v2033_v20, %v2033_v20  ;;  %v2040_v7 = vrot.slane %v2026_v4, %v12011_v24 }
 0x235   : > { %1823 = vrot.lane.b32.xlu0 %v11594_v55, %s11929_s20  ;;  %v2006_v55 = vrot.slane %v1992_v16, %v12011_v24  ;;  %v11066_v13 = vcombine.low %v2040_v7, %v2040_v7  ;;  %v11603_v36 = vcombine.high %v2040_v7, %v2040_v7 }
 0x237   : > { %2051 = vrot.lane.b32.xlu1 %v11596_v29, %s11928_s19  ;;  %v11600_v29 = vcombine.high %v12630_v9, %v12630_v9  ;;  %v11065_v28 = vcombine.low %v2006_v55, %v2006_v55 }
 0x239   : > { %2046 = vrot.lane.b32.xlu0 %v11055_v44, %s11931_s22  ;;  %v11602_v44 = vcombine.high %v2006_v55, %v2006_v55 }
 0x23b   : > { %2061 = vrot.lane.b32.xlu1 %v11058_v23, %s11927_s18 }
 0x23d   : > { %2056 = vrot.lane.b32.xlu0 %v11597_v14, %s11930_s21 }
 0x23f   : > { %2071 = vrot.lane.b32.xlu1 %v11598_v60, %s11929_s20 }
 0x241   : > { %2066 = vrot.lane.b32.xlu0 %v11059_v17, %s11932_s23 }
 0x243   : > { %2081 = vrot.lane.b32.xlu1 %v11062_v2, %s11931_s22 }
 0x245   : > { %2076 = vrot.lane.b32.xlu0 %v11599_v27, %s11933_s24 }
 0x247   : > { %2091 = vrot.lane.b32.xlu1 %v11601_v3, %s11930_s21 }
 0x249   : > { %2086 = vrot.lane.b32.xlu0 %v11600_v29, %s11928_s19 }
 0x24b   : > { %2101 = vrot.lane.b32.xlu1 %v11066_v13, %s11932_s23 }
 0x24d   : > { %2096 = vrot.lane.b32.xlu0 %v11065_v28, %s11927_s18 }
 0x24f   : > { %2111 = vrot.lane.b32.xlu1 %v11603_v36, %s11933_s24 }
 0x251   : > { %2106 = vrot.lane.b32.xlu0 %v11602_v44, %s11929_s20 }
 0x253   : > { %2145 = vrot.lane.b32.xlu1 %v12579_v34, %s11934_s25 }
 0x255   : > { %2143 = vrot.lane.b32.xlu0 %v12541_v54, %s11934_s25 }
 0x257   : > { %2149 = vrot.lane.b32.xlu1 %v12583_v62, %s11934_s25 }
 0x259   : > { %2147 = vrot.lane.b32.xlu0 %v12545_v25, %s11934_s25 }
 0x25b   : > { %2153 = vrot.lane.b32.xlu1 %v12587_v0, %s11934_s25 }
 0x25d   : > { %2151 = vrot.lane.b32.xlu0 %v12549_v22, %s11934_s25 }
 0x28d   : > { %v12656_v41 = vpop.permute.xlu1 %1768 }
 0x28f   : > { %v12658_v45 = vpop.permute.xlu0 %1763 }
 0x291   : > { %v12660_v15 = vpop.permute.xlu1 %1778 }
 0x292   : > { %17799 = vst [vmem:[#allocation61_spill] sm:$0xff] %v12660_v15 }
 0x293   : > { %v12662_v23 = vpop.permute.xlu0 %1773 }
 0x295   : > { %v12664_v21 = vpop.permute.xlu1 %1788 }
 0x296   : > { %17800 = vst [vmem:[#allocation62_spill] sm:$0xff] %v12664_v21 }
 0x297   : > { %v12666_v14 = vpop.permute.xlu0 %1783 }
 0x298   : > { %17801 = vst [vmem:[#allocation63_spill] sm:$0xff] %v12666_v14 }
 0x299   : > { %v12668_v42 = vpop.permute.xlu1 %1798 }
 0x29b   : > { %v12670_v19 = vpop.permute.xlu0 %1793 }
 0x29c   : > { %17802 = vst [vmem:[#allocation64_spill] sm:$0xff] %v12670_v19 }
 0x29d   : > { %v12672_v48 = vpop.permute.xlu1 %1808 }
 0x29e   : > { %17803 = vst [vmem:[#allocation65_spill] sm:$0xff] %v12672_v48 }
 0x29f   : > { %v12674_v60 = vpop.permute.xlu0 %1803 }
 0x2a0   : > { %17804 = vst [vmem:[#allocation66_spill] sm:$0xff] %v12674_v60 }
 0x2a1   : > { %v12676_v20 = vpop.permute.xlu1 %1818 }
 0x2a2   : > { %17805 = vst [vmem:[#allocation67_spill] sm:$0xff] %v12676_v20 }
 0x2a3   : > { %v12678_v17 = vpop.permute.xlu0 %1813 }
 0x2a4   : > { %17806 = vst [vmem:[#allocation68_spill] sm:$0xff] %v12678_v17 }
 0x2a5   : > { %v12680_v58 = vpop.permute.xlu1 %1828 }
 0x2a6   : > { %17807 = vst [vmem:[#allocation69_spill] sm:$0xff] %v12680_v58 }
 0x2a7   : > { %v12682_v2 = vpop.permute.xlu0 %1823 }
 0x2a8   : > { %17808 = vst [vmem:[#allocation70_spill] sm:$0xff] %v12682_v2 }
 0x2a9   : > { %v12684_v4 = vpop.permute.xlu1 %2051 }
 0x2aa   : > { %17809 = vst [vmem:[#allocation71_spill] sm:$0xff] %v12684_v4 }
 0x2ab   : > { %v12686_v27 = vpop.permute.xlu0 %2046 }
 0x2ac   : > { %17810 = vst [vmem:[#allocation72_spill] sm:$0xff] %v12686_v27 }
 0x2ad   : > { %v12688_v16 = vpop.permute.xlu1 %2061 }
 0x2ae   : > { %17811 = vst [vmem:[#allocation73_spill] sm:$0xff] %v12688_v16 }
 0x2af   : > { %v12690_v3 = vpop.permute.xlu0 %2056 }
 0x2b0   : > { %17812 = vst [vmem:[#allocation74_spill] sm:$0xff] %v12690_v3 }
 0x2b1   : > { %v12692_v7 = vpop.permute.xlu1 %2071 }
 0x2b2   : > { %17813 = vst [vmem:[#allocation75_spill] sm:$0xff] %v12692_v7 }
 0x2b3   : > { %v12694_v29 = vpop.permute.xlu0 %2066 }
 0x2b4   : > { %17814 = vst [vmem:[#allocation76_spill] sm:$0xff] %v12694_v29 }
 0x2b5   : > { %v12696_v55 = vpop.permute.xlu1 %2081 }
 0x2b6   : > { %17815 = vst [vmem:[#allocation77_spill] sm:$0xff] %v12696_v55 }
 0x2b7   : > { %v12698_v13 = vpop.permute.xlu0 %2076 }
 0x2b8   : > { %17816 = vst [vmem:[#allocation78_spill] sm:$0xff] %v12698_v13 }
 0x2b9   : > { %v12700_v28 = vpop.permute.xlu1 %2091 }
 0x2ba   : > { %17817 = vst [vmem:[#allocation79_spill] sm:$0xff] %v12700_v28 }
 0x2bb   : > { %v12702_v36 = vpop.permute.xlu0 %2086 }
 0x2bc   : > { %17818 = vst [vmem:[#allocation80_spill] sm:$0xff] %v12702_v36 }
 0x2bd   : > { %v12704_v44 = vpop.permute.xlu1 %2101 }
 0x2be   : > { %17819 = vst [vmem:[#allocation81_spill] sm:$0xff] %v12704_v44 }
 0x2bf   : > { %v12706_v40 = vpop.permute.xlu0 %2096 }
 0x2c0   : > { %17820 = vst [vmem:[#allocation82_spill] sm:$0xff] %v12706_v40 }
 0x2c1   : > { %v12708_v58 = vpop.permute.xlu1 %2111 }
 0x2c2   : > { %17821 = vst [vmem:[#allocation83_spill] sm:$0xff] %v12708_v58 }
 0x2c3   : > { %v12710_v16 = vpop.permute.xlu0 %2106 }
 0x2c4   : > { %17822 = vst [vmem:[#allocation84_spill] sm:$0xff] %v12710_v16 }
 0x2c5   : > { %v2146_v3 = vpop.permute.xlu1 %2145 }
 0x2c6   : > { %v2168_v20 = vshrl.u32 %v2146_v3, 16 }
 0x2c7   : > { %v2144_v7 = vpop.permute.xlu0 %2143 }
 0x2c8   : > { %v2158_v21 = vshrl.u32 %v2144_v7, 16 }
 0x2c9   : > { %v2150_v2 = vpop.permute.xlu1 %2149 }
 0x2ca   : > { %v2169_v19 = vshrl.u32 %v2150_v2, 16 }
 0x2cb   : > { %v2148_v29 = vpop.permute.xlu0 %2147 }
 0x2cc   : > { %v2159_v4 = vshrl.u32 %v2148_v29, 16  ;;  %v2157_v28 = vpack.i.b16 %v2148_v29, %v2144_v7  ;;  %v2170_v17 = vpack.i.b16 %v2169_v19, %v2168_v20 }
 0x2cd   : > { %v2154_v13 = vpop.permute.xlu1 %2153 }
 0x2ce   : > { %v2173_v36 = vshrl.u32 %v2154_v13, 16  ;;  %v2160_v27 = vpack.i.b16 %v2159_v4, %v2158_v21  ;;  %v2182_v58 = vrot.slane %v2157_v28, %v11979_v8  ;;  %v2284_v21 = vrot.slane %v2170_v17, %v11979_v8 }
 0x2cf   : > { %v2152_v18 = vpop.permute.xlu0 %2151 }
 0x2d0   : > { %v2162_v44 = vpack.i.b16 %v17776_v30, %v2152_v18  ;;  %v2163_v40 = vshrl.u32 %v2152_v18, 16  ;;  %v2174_v14 = vpack.i.b16 %v17776_v30, %v2173_v36  ;;  %v2216_v9 = vrot.slane %v2160_v27, %v11979_v8 }
 0x2d1   : > { %v2167_v27 = vpack.i.b16 %v2150_v2, %v2146_v3 }
 0x2d2   : > { %v2164_v16 = vpack.i.b16 %v17776_v30, %v2163_v40  ;;  %v2190_v48 = vrot.slane %v2162_v44, %v11979_v8  ;;  %v2292_v18 = vrot.slane %v2174_v14, %v11979_v8 }
 0x2d4   : > { %v2191_v55 = vcombine.low %v2182_v58, %v2190_v48  ;;  %v2192_v15 = vcombine.high %v2182_v58, %v2190_v48  ;;  %v2224_v7 = vrot.slane %v2164_v16, %v11979_v8  ;;  %v2172_v48 = vpack.i.b16 %v17776_v30, %v2154_v13 }
 0x2d5   : > { %v2293_v58 = vcombine.low %v2284_v21, %v2292_v18  ;;  %v2250_v16 = vrot.slane %v2167_v27, %v11979_v8 }
 0x2d6   : > { %v2225_v29 = vcombine.low %v2216_v9, %v2224_v7  ;;  %v12722_v19 = vrot.slane %v2191_v55, %v12011_v24  ;;  %v2206_v4 = vrot.slane %v2192_v15, %v12011_v24  ;;  %v2226_v28 = vcombine.high %v2216_v9, %v2224_v7 }
 0x2d7   : > { %v2258_v55 = vrot.slane %v2172_v48, %v11979_v8  ;;  %v2301_v9 = vrot.slane %v2293_v58, %v12011_v24  ;;  %v2294_v7 = vcombine.high %v2284_v21, %v2292_v18 }
 0x2d8   : > { %v11604_v40 = vcombine.high %v12722_v19, %v12722_v19  ;;  %v2233_v20 = vrot.slane %v2225_v29, %v12011_v24  ;;  %v11072_v14 = vcombine.low %v2206_v4, %v2206_v4  ;;  %v2240_v15 = vrot.slane %v2226_v28, %v12011_v24 }
 0x2d9   : > { %v11606_v2 = vcombine.high %v2206_v4, %v2206_v4  ;;  %v2259_v3 = vcombine.low %v2250_v16, %v2258_v55  ;;  %v11076_v44 = vcombine.low %v2301_v9, %v2301_v9  ;;  %v2260_v29 = vcombine.high %v2250_v16, %v2258_v55 }
 0x2da   : > { %2319 = vrot.lane.b32.xlu1 %v11604_v40, %s11928_s19  ;;  %v11069_v17 = vcombine.low %v2233_v20, %v2233_v20  ;;  %v11605_v36 = vcombine.high %v2233_v20, %v2233_v20  ;;  %v11073_v13 = vcombine.low %v2240_v15, %v2240_v15  ;;  %v11607_v40 = vcombine.high %v2240_v15, %v2240_v15 }
 0x2db   : > { %v12741_v20 = vrot.slane %v2259_v3, %v12011_v24  ;;  %v11609_v27 = vcombine.high %v2301_v9, %v2301_v9  ;;  %v2308_v4 = vrot.slane %v2294_v7, %v12011_v24  ;;  %v2274_v21 = vrot.slane %v2260_v29, %v12011_v24 }
 0x2dc   : > { %2314 = vrot.lane.b32.xlu0 %v11069_v17, %s11931_s22 }
 0x2dd   : > { %v11608_v28 = vcombine.high %v12741_v20, %v12741_v20  ;;  %v11080_v18 = vcombine.low %v2308_v4, %v2308_v4  ;;  %v11079_v48 = vcombine.low %v2274_v21, %v2274_v21  ;;  %v11611_v58 = vcombine.high %v2308_v4, %v2308_v4 }
 0x2de   : > { %2329 = vrot.lane.b32.xlu1 %v11072_v14, %s11927_s18  ;;  %v11610_v17 = vcombine.high %v2274_v21, %v2274_v21 }
 0x2e0   : > { %2324 = vrot.lane.b32.xlu0 %v11605_v36, %s11930_s21 }
 0x2e2   : > { %2339 = vrot.lane.b32.xlu1 %v11606_v2, %s11929_s20 }
 0x2e4   : > { %2334 = vrot.lane.b32.xlu0 %v11073_v13, %s11932_s23 }
 0x2e6   : > { %2349 = vrot.lane.b32.xlu1 %v11076_v44, %s11931_s22 }
 0x2e8   : > { %2344 = vrot.lane.b32.xlu0 %v11607_v40, %s11933_s24 }
 0x2ea   : > { %2359 = vrot.lane.b32.xlu1 %v11609_v27, %s11930_s21 }
 0x2ec   : > { %2354 = vrot.lane.b32.xlu0 %v11608_v28, %s11928_s19 }
 0x2ee   : > { %2369 = vrot.lane.b32.xlu1 %v11080_v18, %s11932_s23 }
 0x2f0   : > { %2364 = vrot.lane.b32.xlu0 %v11079_v48, %s11927_s18 }
 0x2f2   : > { %2379 = vrot.lane.b32.xlu1 %v11611_v58, %s11933_s24 }
 0x2f4   : > { %2374 = vrot.lane.b32.xlu0 %v11610_v17, %s11929_s20 }
 0x2f6   : > { %2413 = vrot.lane.b32.xlu1 %v12579_v34, %s11935_s26 }
 0x2f8   : > { %2411 = vrot.lane.b32.xlu0 %v12541_v54, %s11935_s26 }
 0x2fa   : > { %2417 = vrot.lane.b32.xlu1 %v12583_v62, %s11935_s26 }
 0x2fc   : > { %2415 = vrot.lane.b32.xlu0 %v12545_v25, %s11935_s26 }
 0x2fe   : > { %2421 = vrot.lane.b32.xlu1 %v12587_v0, %s11935_s26 }
 0x300   : > { %2419 = vrot.lane.b32.xlu0 %v12549_v22, %s11935_s26 }
 0x34c   : > { %v12766_v14 = vpop.permute.xlu1 %2319 }
 0x34d   : > { %17823 = vst [vmem:[#allocation85_spill] sm:$0xff] %v12766_v14 }
 0x34e   : > { %v12768_v16 = vpop.permute.xlu0 %2314 }
 0x350   : > { %v12770_v34 = vpop.permute.xlu1 %2329 }
 0x351   : > { %17824 = vst [vmem:[#allocation86_spill] sm:$0xff] %v12770_v34 }
 0x352   : > { %v12772_v55 = vpop.permute.xlu0 %2324 }
 0x353   : > { %17825 = vst [vmem:[#allocation87_spill] sm:$0xff] %v12772_v55 }
 0x354   : > { %v12774_v54 = vpop.permute.xlu1 %2339 }
 0x355   : > { %17826 = vst [vmem:[#allocation88_spill] sm:$0xff] %v12774_v54 }
 0x356   : > { %v12776_v62 = vpop.permute.xlu0 %2334 }
 0x357   : > { %17827 = vst [vmem:[#allocation89_spill] sm:$0xff] %v12776_v62 }
 0x358   : > { %v12778_v36 = vpop.permute.xlu1 %2349 }
 0x35a   : > { %v12780_v25 = vpop.permute.xlu0 %2344 }
 0x35b   : > { %17828 = vst [vmem:[#allocation90_spill] sm:$0xff] %v12780_v25 }
 0x35c   : > { %v12782_v0 = vpop.permute.xlu1 %2359 }
 0x35d   : > { %17829 = vst [vmem:[#allocation91_spill] sm:$0xff] %v12782_v0 }
 0x35e   : > { %v12784_v15 = vpop.permute.xlu0 %2354 }
 0x360   : > { %v12786_v22 = vpop.permute.xlu1 %2369 }
 0x361   : > { %17830 = vst [vmem:[#allocation92_spill] sm:$0xff] %v12786_v22 }
 0x362   : > { %v12788_v9 = vpop.permute.xlu0 %2364 }
 0x363   : > { %17831 = vst [vmem:[#allocation93_spill] sm:$0xff] %v12788_v9 }
 0x364   : > { %v12790_v2 = vpop.permute.xlu1 %2379 }
 0x365   : > { %17832 = vst [vmem:[#allocation94_spill] sm:$0xff] %v12790_v2 }
 0x366   : > { %v12792_v3 = vpop.permute.xlu0 %2374 }
 0x367   : > { %17833 = vst [vmem:[#allocation95_spill] sm:$0xff] %v12792_v3 }
 0x368   : > { %v2414_v13 = vpop.permute.xlu1 %2413 }
 0x369   : > { %v2436_v27 = vshrl.u32 %v2414_v13, 16 }
 0x36a   : > { %v2412_v44 = vpop.permute.xlu0 %2411 }
 0x36b   : > { %v2426_v21 = vshrl.u32 %v2412_v44, 16 }
 0x36c   : > { %v2418_v7 = vpop.permute.xlu1 %2417 }
 0x36d   : > { %v2437_v4 = vshrl.u32 %v2418_v7, 16 }
 0x36e   : > { %v2416_v29 = vpop.permute.xlu0 %2415 }
 0x36f   : > { %v2427_v40 = vshrl.u32 %v2416_v29, 16  ;;  %v2425_v18 = vpack.i.b16 %v2416_v29, %v2412_v44  ;;  %v2438_v22 = vpack.i.b16 %v2437_v4, %v2436_v27 }
 0x370   : > { %v2422_v28 = vpop.permute.xlu1 %2421 }
 0x371   : > { %v2441_v58 = vshrl.u32 %v2422_v28, 16  ;;  %v2428_v17 = vpack.i.b16 %v2427_v40, %v2426_v21  ;;  %v2450_v2 = vrot.slane %v2425_v18, %v11979_v8  ;;  %v2552_v40 = vrot.slane %v2438_v22, %v11979_v8 }
 0x372   : > { %v2420_v48 = vpop.permute.xlu0 %2419  ;;  %v2440_v21 = vpack.i.b16 %v17776_v30, %v2422_v28 }
 0x373   : > { %v2430_v25 = vpack.i.b16 %v17776_v30, %v2420_v48  ;;  %v2431_v54 = vshrl.u32 %v2420_v48, 16  ;;  %v2442_v34 = vpack.i.b16 %v17776_v30, %v2441_v58  ;;  %v2484_v9 = vrot.slane %v2428_v17, %v11979_v8  ;;  %v12815_v48 = vld [vmem:[%s11977_s17 + $0x24] sm:$0xf]  ;;  %v12818_v58 = vld [vmem:[%s11977_s17 + $0x30] sm:$0xf] }
 0x374   : > { %v12821_v17 = vld [vmem:[%s11977_s17 + $0x3c] sm:$0xf] }
 0x375   : > { %v2432_v3 = vpack.i.b16 %v17776_v30, %v2431_v54  ;;  %v2458_v62 = vrot.slane %v2430_v25, %v11979_v8  ;;  %v2560_v27 = vrot.slane %v2442_v34, %v11979_v8 }
 0x377   : > { %v2459_v0 = vcombine.low %v2450_v2, %v2458_v62  ;;  %v2460_v55 = vcombine.high %v2450_v2, %v2458_v62  ;;  %v2492_v44 = vrot.slane %v2432_v3, %v11979_v8  ;;  %v2435_v2 = vpack.i.b16 %v2418_v7, %v2414_v13 }
 0x378   : > { %v2561_v18 = vcombine.low %v2552_v40, %v2560_v27 }
 0x379   : > { %v2493_v29 = vcombine.low %v2484_v9, %v2492_v44  ;;  %v12804_v54 = vrot.slane %v2459_v0, %v12011_v24  ;;  %v2474_v62 = vrot.slane %v2460_v55, %v12011_v24  ;;  %v2494_v3 = vcombine.high %v2484_v9, %v2492_v44 }
 0x37a   : > { %v2518_v0 = vrot.slane %v2435_v2, %v11979_v8  ;;  %v2526_v55 = vrot.slane %v2440_v21, %v11979_v8  ;;  %v2569_v7 = vrot.slane %v2561_v18, %v12011_v24  ;;  %v17615_v44 = vshrl.u32 %v12815_v48, 16 }
 0x37b   : > { %17834 = vst [vmem:[#allocation96_spill] sm:$0xff] %v12804_v54  ;;  %v11612_v25 = vcombine.high %v12804_v54, %v12804_v54  ;;  %v2501_v4 = vrot.slane %v2493_v29, %v12011_v24  ;;  %v11086_v34 = vcombine.low %v2474_v62, %v2474_v62  ;;  %v2508_v13 = vrot.slane %v2494_v3, %v12011_v24 }
 0x37c   : > { %v11614_v28 = vcombine.high %v2474_v62, %v2474_v62  ;;  %v17613_v29 = vshrl.u32 %v12818_v58, 16  ;;  %v2906_v2 = vpack.i.b16 %v12818_v58, %v12815_v48  ;;  %v2527_v3 = vcombine.low %v2518_v0, %v2526_v55 }
 0x37d   : > { %2587 = vrot.lane.b32.xlu1 %v11612_v25, %s11928_s19  ;;  %v11083_v22 = vcombine.low %v2501_v4, %v2501_v4  ;;  %v11613_v9 = vcombine.high %v2501_v4, %v2501_v4  ;;  %v17614_v25 = vshrl.u32 %v12821_v17, 16  ;;  %v2911_v4 = vpack.i.b16 %v17776_v30, %v12821_v17 }
 0x37e   : > { %v11087_v21 = vcombine.low %v2508_v13, %v2508_v13  ;;  %v11090_v62 = vcombine.low %v2569_v7, %v2569_v7  ;;  %v2562_v18 = vcombine.high %v2552_v40, %v2560_v27  ;;  %v2528_v14 = vcombine.high %v2518_v0, %v2526_v55  ;;  %v12851_v27 = vld [vmem:[%s11977_s17 + $0x28] sm:$0xf] }
 0x37f   : > { %2582 = vrot.lane.b32.xlu0 %v11083_v22, %s11931_s22  ;;  %v2909_v22 = vpack.i.b16 %v17613_v29, %v17615_v44  ;;  %v2939_v54 = vrot.slane %v2911_v4, %v11979_v8  ;;  %v12848_v40 = vrot.slane %v2527_v3, %v12011_v24  ;;  %v12857_v29 = vld [vmem:[%s11977_s17 + $0x40] sm:$0xf] }
 0x381   : > { %2597 = vrot.lane.b32.xlu1 %v11086_v34, %s11927_s18  ;;  %v2913_v34 = vpack.i.b16 %v17776_v30, %v17614_v25  ;;  %17835 = vst [vmem:[#allocation97_spill] sm:$0xff] %v12848_v40  ;;  %v11617_v25 = vcombine.high %v2569_v7, %v2569_v7  ;;  %v2965_v4 = vrot.slane %v2909_v22, %v11979_v8  ;;  %v17617_v7 = vshrl.u32 %v12857_v29, 16 }
 0x382   : > { %v11616_v3 = vcombine.high %v12848_v40, %v12848_v40 }
 0x383   : > { %2592 = vrot.lane.b32.xlu0 %v11613_v9, %s11930_s21  ;;  %v2931_v9 = vrot.slane %v2906_v2, %v11979_v8  ;;  %v2576_v2 = vrot.slane %v2562_v18, %v12011_v24  ;;  %v2973_v0 = vrot.slane %v2913_v34, %v11979_v8  ;;  %v2923_v40 = vpack.i.b16 %v17776_v30, %v17617_v7 }
 0x385   : > { %2607 = vrot.lane.b32.xlu1 %v11614_v28, %s11929_s20  ;;  %v11615_v28 = vcombine.high %v2508_v13, %v2508_v13  ;;  %v2940_v55 = vcombine.low %v2931_v9, %v2939_v54  ;;  %v11094_v18 = vcombine.low %v2576_v2, %v2576_v2  ;;  %v2974_v22 = vcombine.low %v2965_v4, %v2973_v0 }
 0x387   : > { %2602 = vrot.lane.b32.xlu0 %v11087_v21, %s11932_s23  ;;  %v12854_v21 = vld [vmem:[%s11977_s17 + $0x34] sm:$0xf]  ;;  %v12873_v13 = vrot.slane %v2940_v55, %v12011_v24 }
 0x388   : > { %v17618_v44 = vshrl.u32 %v12854_v21, 16 }
 0x389   : > { %2617 = vrot.lane.b32.xlu1 %v11090_v62, %s11931_s22  ;;  %v2542_v62 = vrot.slane %v2528_v14, %v12011_v24  ;;  %17836 = vst [vmem:[#allocation98_spill] sm:$0xff] %v12873_v13 }
 0x38b   : > { %2612 = vrot.lane.b32.xlu0 %v11615_v28, %s11933_s24  ;;  %v2941_v28 = vcombine.high %v2931_v9, %v2939_v54  ;;  %v11093_v34 = vcombine.low %v2542_v62, %v2542_v62  ;;  %v2982_v54 = vrot.slane %v2974_v22, %v12011_v24  ;;  %v11618_v55 = vcombine.high %v2542_v62, %v2542_v62 }
 0x38c   : > { %v2921_v22 = vpack.i.b16 %v17776_v30, %v12857_v29 }
 0x38d   : > { %2627 = vrot.lane.b32.xlu1 %v11617_v25, %s11930_s21  ;;  %v17837_v25 = vshrl.u32 %v12851_v27, 16  ;;  %v2955_v9 = vrot.slane %v2941_v28, %v12011_v24  ;;  %v11110_v7 = vcombine.low %v2982_v54, %v2982_v54 }
 0x38f   : > { %2622 = vrot.lane.b32.xlu0 %v11616_v3, %s11928_s19  ;;  %v2919_v14 = vpack.i.b16 %v17618_v44, %v17837_v25  ;;  %v11619_v3 = vcombine.high %v2576_v2, %v2576_v2  ;;  %v3041_v25 = vrot.slane %v2923_v40, %v11979_v8  ;;  %v2975_v44 = vcombine.high %v2965_v4, %v2973_v0 }
 0x390   : > { %v2916_v2 = vpack.i.b16 %v12854_v21, %v12851_v27  ;;  %v11113_v62 = vcombine.low %v2955_v9, %v2955_v9  ;;  %v11622_v4 = vcombine.high %v2955_v9, %v2955_v9 }
 0x391   : > { %2637 = vrot.lane.b32.xlu1 %v11094_v18, %s11932_s23  ;;  %v11620_v18 = vcombine.high %v12873_v13, %v12873_v13  ;;  %v3033_v60 = vrot.slane %v2919_v14, %v11979_v8  ;;  %v2989_v14 = vrot.slane %v2975_v44, %v12011_v24 }
 0x392   : > { %v2999_v40 = vrot.slane %v2916_v2, %v11979_v8 }
 0x393   : > { %2632 = vrot.lane.b32.xlu0 %v11093_v34, %s11927_s18  ;;  %v3042_v28 = vcombine.low %v3033_v60, %v3041_v25  ;;  %v11621_v34 = vcombine.high %v2982_v54, %v2982_v54  ;;  %v11623_v44 = vcombine.high %v2989_v14, %v2989_v14 }
 0x395   : > { %2647 = vrot.lane.b32.xlu1 %v11619_v3, %s11933_s24  ;;  %v3007_v3 = vrot.slane %v2921_v22, %v11979_v8  ;;  %v3050_v0 = vrot.slane %v3042_v28, %v12011_v24 }
 0x397   : > { %2642 = vrot.lane.b32.xlu0 %v11618_v55, %s11929_s20  ;;  %v11114_v55 = vcombine.low %v2989_v14, %v2989_v14  ;;  %v11117_v13 = vcombine.low %v3050_v0, %v3050_v0  ;;  %v3009_v2 = vcombine.high %v2999_v40, %v3007_v3  ;;  %v11625_v9 = vcombine.high %v3050_v0, %v3050_v0 }
 0x398   : > { %v1311_v14 = vsel %vm424_vm6, %v12172_v51, %v12343_v39  ;;  %v724_v51 = vsel %vm424_vm6, %v12236_v47, %v12385_v56 }
 0x399   : > { %3068 = vrot.lane.b32.xlu1 %v11620_v18, %s11928_s19  ;;  %v3008_v18 = vcombine.low %v2999_v40, %v3007_v3  ;;  %v3023_v28 = vrot.slane %v3009_v2, %v12011_v24  ;;  %v1296_v40 = vsel %vm424_vm6, %v12146_v10, %v12333_v61  ;;  %v1313_v3 = vsel %vm428_vm7, %v1311_v14, %v12349_v31  ;;  %v17850_v14 = vld [vmem:[#allocation10_spill] sm:$0xff] }
 0x39a   : > { %v1315_v0 = vsel %vm17621_vm8, %v1313_v3, %v12347_v59  ;;  %v427_v61 = vsel %vm424_vm6, %v12020_v35, %v12203_v5  ;;  %v709_v59 = vsel %vm424_vm6, %v12230_v49, %v12387_v26  ;;  %v726_v47 = vsel %vm428_vm7, %v724_v51, %v12363_v43  ;;  %v17839_v43 = vld [vmem:[#allocation19_spill] sm:$0xff]  ;;  %v17853_v51 = vld [vmem:[#allocation14_spill] sm:$0xff] }
 0x39b   : > { %3063 = vrot.lane.b32.xlu0 %v11110_v7, %s11931_s22  ;;  %v3043_v7 = vcombine.high %v3033_v60, %v3041_v25  ;;  %v12906_v54 = vrot.slane %v3008_v18, %v12011_v24  ;;  %v11120_v25 = vcombine.low %v3023_v28, %v3023_v28  ;;  %v1317_v10 = vsel %vm17620_vm9, %v1315_v0, %v12353_v57  ;;  %v17851_v3 = vld [vmem:[#allocation31_spill] sm:$0xff]  ;;  %v17852_v0 = vld [vmem:[#allocation33_spill] sm:$0xff] }
 0x39c   : > { %v1319_v31 = vsel %vm17622_vm10, %v1317_v10, %v12351_v32  ;;  %v728_v35 = vsel %vm17621_vm8, %v726_v47, %v12389_v52  ;;  %v17838_v32 = vld [vmem:[#allocation28_spill] sm:$0xff]  ;;  %v17855_v47 = vld [vmem:[#allocation34_spill] sm:$0xff] }
 0x39d   : > { %3078 = vrot.lane.b32.xlu1 %v11113_v62, %s11927_s18  ;;  %v3057_v22 = vrot.slane %v3043_v7, %v12011_v24  ;;  %v11624_v62 = vcombine.high %v12906_v54, %v12906_v54  ;;  %v730_v56 = vsel %vm17620_vm9, %v728_v35, %v17839_v43  ;;  %v17854_v10 = vld [vmem:[#allocation16_spill] sm:$0xff]  ;;  %v17857_v35 = vld [vmem:[#allocation7_spill] sm:$0xff] }
 0x39e   : > { %v17860_v43 = vld [vmem:[#allocation32_spill] sm:$0xff] }
 0x39f   : > { %3073 = vrot.lane.b32.xlu0 %v11621_v34, %s11930_s21  ;;  %v11121_v60 = vcombine.low %v3057_v22, %v3057_v22  ;;  %v11627_v34 = vcombine.high %v3057_v22, %v3057_v22 }
 0x3a1   : > { %3088 = vrot.lane.b32.xlu1 %v11622_v4, %s11929_s20  ;;  %v1298_v4 = vsel %vm428_vm7, %v1296_v40, %v12331_v12  ;;  %v449_v12 = vsel %vm424_vm6, %v12024_v37, %v12205_v6  ;;  %v430_v37 = vsel %vm428_vm7, %v427_v61, %v12193_v63  ;;  %v711_v6 = vsel %vm428_vm7, %v709_v59, %v12361_v38  ;;  %v17840_v63 = vld [vmem:[#allocation8_spill] sm:$0xff] }
 0x3a2   : > { %v1300_v39 = vsel %vm17621_vm8, %v1298_v4, %v12337_v53  ;;  %v451_v5 = vsel %vm428_vm7, %v449_v12, %v12197_v1  ;;  %v713_v57 = vsel %vm17621_vm8, %v711_v6, %v17838_v32  ;;  %v17841_v1 = vld [vmem:[#allocation5_spill] sm:$0xff] }
 0x3a3   : > { %3083 = vrot.lane.b32.xlu0 %v11114_v55, %s11932_s23  ;;  %v1302_v53 = vsel %vm17620_vm9, %v1300_v39, %v12335_v50  ;;  %v1321_v50 = vsel %vm17625_vm11, %v1319_v31, %v12357_v33  ;;  %v453_v26 = vsel %vm17621_vm8, %v451_v5, %v17840_v63  ;;  %v433_v52 = vsel %vm17621_vm8, %v430_v37, %v17841_v1  ;;  %v17842_v55 = vld [vmem:[#allocation29_spill] sm:$0xff]  ;;  %v17858_v5 = vld [vmem:[#allocation11_spill] sm:$0xff] }
 0x3a4   : > { %v1304_v49 = vsel %vm17622_vm10, %v1302_v53, %v12341_v11  ;;  %v732_v38 = vsel %vm17622_vm10, %v730_v56, %v17842_v55  ;;  %v17843_v11 = vld [vmem:[#allocation15_spill] sm:$0xff]  ;;  %v17844_v33 = vld [vmem:[#allocation17_spill] sm:$0xff]  ;;  %v992_v39 = vsel %vm424_vm6, %v17853_v51, %v17852_v0 }
 0x3a5   : > { %3098 = vrot.lane.b32.xlu1 %v11117_v13, %s11931_s22  ;;  %v11626_v13 = vcombine.high %v3023_v28, %v3023_v28  ;;  %v1306_v18 = vsel %vm17625_vm11, %v1304_v49, %v17843_v11  ;;  %v1323_v7 = vsel %vm17623_vm12, %v1321_v50, %v17844_v33  ;;  %v17856_v53 = vld [vmem:[#allocation13_spill] sm:$0xff]  ;;  %v17859_v49 = vld [vmem:[#allocation20_spill] sm:$0xff]  ;;  %v17861_v63 = vld [vmem:[#allocation23_spill] sm:$0xff] }
 0x3a6   : > { %v1308_v61 = vsel %vm17623_vm12, %v1306_v18, %v17854_v10  ;;  %v2706_v12 = vshrl.u32 %v1323_v7, 16  ;;  %v2709_v59 = vshll.u32 %v1323_v7, 16  ;;  %v977_v31 = vsel %vm424_vm6, %v17856_v53, %v17855_v47  ;;  %v17862_v55 = vld [vmem:[#allocation35_spill] sm:$0xff]  ;;  %v17863_v11 = vld [vmem:[#allocation22_spill] sm:$0xff]  ;;  %v17864_v33 = vld [vmem:[#allocation4_spill] sm:$0xff] }
 0x3a7   : > { %3093 = vrot.lane.b32.xlu0 %v11623_v44, %s11933_s24  ;;  %v17845_v44 = vld [vmem:[#allocation18_spill] sm:$0xff]  ;;  %v2699_v1 = vshrl.u32 %v1308_v61, 16  ;;  %v979_v18 = vsel %vm428_vm7, %v977_v31, %v17863_v11  ;;  %v17869_v0 = vld [vmem:[#allocation57_spill] sm:$0xff] }
 0x3a8   : > { %v715_v2 = vsel %vm17620_vm9, %v713_v57, %v17845_v44  ;;  %v13030_v44 = vrot.slane %v2706_v12, 3  ;;  %v1832_v51 = vsel %vm424_vm6, %v17869_v0, %v12658_v45  ;;  %v17881_v11 = vld [vmem:[#allocation41_spill] sm:$0xff]  ;;  %v17888_v0 = vld [vmem:[#allocation63_spill] sm:$0xff] }
 0x3a9   : > { %3108 = vrot.lane.b32.xlu1 %v11625_v9, %s11930_s21  ;;  %v17846_v9 = vld [vmem:[#allocation3_spill] sm:$0xff] }
 0x3aa   : > { %v436_v22 = vsel %vm17620_vm9, %v433_v52, %v17846_v9  ;;  %v2702_v52 = vshll.u32 %v1308_v61, 16  ;;  %v17865_v9 = vld [vmem:[#allocation36_spill] sm:$0xff]  ;;  %v17870_v61 = vld [vmem:[#allocation37_spill] sm:$0xff] }
 0x3ab   : > { %3103 = vrot.lane.b32.xlu0 %v11624_v62, %s11928_s19  ;;  %v17847_v62 = vld [vmem:[#allocation6_spill] sm:$0xff]  ;;  %v439_v37 = vsel %vm17622_vm10, %v436_v22, %v17857_v35  ;;  %v981_v22 = vsel %vm17621_vm8, %v979_v18, %v17865_v9  ;;  %v17883_v9 = vld [vmem:[#allocation85_spill] sm:$0xff] }
 0x3ac   : > { %v455_v28 = vsel %vm17620_vm9, %v453_v26, %v17847_v62  ;;  %v994_v26 = vsel %vm428_vm7, %v992_v39, %v17861_v63  ;;  %v442_v7 = vsel %vm17625_vm11, %v439_v37, %v17864_v33  ;;  %v17866_v62 = vld [vmem:[#allocation9_spill] sm:$0xff]  ;;  %v13047_v39 = vrot.slane %v2699_v1, 3  ;;  %v17872_v35 = vld [vmem:[#allocation38_spill] sm:$0xff] }
 0x3ad   : > { %3118 = vrot.lane.b32.xlu1 %v11121_v60, %s11932_s23  ;;  %v17848_v60 = vld [vmem:[#allocation30_spill] sm:$0xff]  ;;  %v457_v40 = vsel %vm17622_vm10, %v455_v28, %v17850_v14  ;;  %v13038_v28 = vsel %vm17623_vm12, %v442_v7, %v17866_v62  ;;  %v13049_v10 = vrot.slane %v2702_v52, 4  ;;  %v2398_v63 = vsel %vm424_vm6, %v12741_v20, %v12778_v36  ;;  %v17880_v36 = vld [vmem:[#allocation44_spill] sm:$0xff]  ;;  %v17885_v62 = vld [vmem:[#allocation77_spill] sm:$0xff] }
 0x3ae   : > { %v459_v6 = vsel %vm17625_vm11, %v457_v40, %v17858_v5  ;;  %v1847_v52 = vsel %vm424_vm6, %v12575_v46, %v12668_v42  ;;  %v1564_v18 = vsel %vm424_vm6, %v17881_v11, %v17880_v36  ;;  %v17882_v33 = vld [vmem:[#allocation66_spill] sm:$0xff]  ;;  %v17884_v42 = vld [vmem:[#allocation61_spill] sm:$0xff] }
 0x3af   : > { %3113 = vrot.lane.b32.xlu0 %v11120_v25, %s11927_s18  ;;  %v717_v25 = vsel %vm17622_vm10, %v715_v2, %v17848_v60  ;;  %v13032_v2 = vrot.slane %v2709_v59, 4  ;;  %v17867_v60 = vld [vmem:[#allocation12_spill] sm:$0xff]  ;;  %v1849_v7 = vsel %vm428_vm7, %v1847_v52, %v17882_v33  ;;  %v17899_v36 = vld [vmem:[#allocation49_spill] sm:$0xff]  ;;  %v17900_v11 = vld [vmem:[#allocation42_spill] sm:$0xff] }
 0x3b0   : > { %v719_v50 = vsel %vm17625_vm11, %v717_v25, %v17859_v49  ;;  %v461_v25 = vsel %vm17623_vm12, %v459_v6, %v17867_v60  ;;  %v17871_v59 = vld [vmem:[#allocation24_spill] sm:$0xff]  ;;  %v1834_v6 = vsel %vm428_vm7, %v1832_v51, %v12656_v41  ;;  %v2383_v49 = vsel %vm424_vm6, %v12722_v19, %v12768_v16  ;;  %v17877_v41 = vld [vmem:[#allocation39_spill] sm:$0xff]  ;;  %v17878_v19 = vld [vmem:[#allocation26_spill] sm:$0xff] }
 0x3b1   : > { %3128 = vrot.lane.b32.xlu1 %v11627_v34, %s11933_s24  ;;  %v17849_v34 = vld [vmem:[#allocation21_spill] sm:$0xff]  ;;  %v721_v56 = vsel %vm17623_vm12, %v719_v50, %v17860_v43  ;;  %v983_v47 = vsel %vm17620_vm9, %v981_v22, %v17871_v59  ;;  %v2712_v31 = vor.u32 %v13032_v2, %v13030_v44  ;;  %v2385_v22 = vsel %vm428_vm7, %v2383_v49, %v17883_v9  ;;  %v17886_v60 = vld [vmem:[#allocation60_spill] sm:$0xff]  ;;  %v17901_v33 = vld [vmem:[#allocation62_spill] sm:$0xff] }
 0x3b2   : > { %v985_v37 = vsel %vm17622_vm10, %v983_v47, %v17872_v35  ;;  %v17890_v47 = vld [vmem:[#allocation43_spill] sm:$0xff]  ;;  %v17892_v49 = vld [vmem:[#allocation93_spill] sm:$0xff] }
 0x3b3   : > { %3123 = vrot.lane.b32.xlu0 %v11626_v13, %s11929_s20  ;;  %v734_v13 = vsel %vm17625_vm11, %v732_v38, %v17849_v34  ;;  %v996_v38 = vsel %vm17621_vm8, %v994_v26, %v17862_v55  ;;  %v2679_v34 = vshrl.u32 %v721_v56, 16  ;;  %v17874_v26 = vmov 0  ;;  %v17902_v9 = vld [vmem:[#allocation89_spill] sm:$0xff] }
 0x3b4   : > { %v736_v4 = vsel %vm17623_vm12, %v734_v13, %v17851_v3  ;;  %v2682_v13 = vshll.u32 %v721_v56, 16  ;;  %v17868_v3 = vld [vmem:[#allocation25_spill] sm:$0xff]  ;;  %v1836_v56 = vsel %vm17621_vm8, %v1834_v6, %v12662_v23  ;;  %v17875_v26 = vsel %vm13077_vm15, 4294967295, %v17874_v26 }
 0x3b5   : > { %3170 = vrot.lane.b32.xlu1 %v12851_v27, %s11934_s25  ;;  %v2686_v32 = vshrl.u32 %v736_v4, 16  ;;  %v2689_v57 = vshll.u32 %v736_v4, 16  ;;  %v998_v4 = vsel %vm17620_vm9, %v996_v38, %v17868_v3  ;;  %v13061_v45 = vrot.slane %v2679_v34, 6  ;;  %17876 = vst [vmem:[#allocation28_spill] sm:$0xff] %v17875_v26  ;;  %v17879_v38 = vld [vmem:[#allocation40_spill] sm:$0xff] }
 0x3b6   : > { %v1000_v12 = vsel %vm17622_vm10, %v998_v4, %v17870_v61  ;;  %v13063_v5 = vrot.slane %v2682_v13, 7  ;;  %v987_v16 = vsel %vm17625_vm11, %v985_v37, %v17878_v19  ;;  %v2400_v23 = vsel %vm428_vm7, %v2398_v63, %v12784_v15  ;;  %v17887_v13 = vld [vmem:[#allocation87_spill] sm:$0xff]  ;;  %v17891_v37 = vld [vmem:[#allocation65_spill] sm:$0xff] }
 0x3b7   : > { %3168 = vrot.lane.b32.xlu0 %v12815_v48, %s11934_s25  ;;  %v2688_v14 = vrot.slane %v2686_v32, 6  ;;  %v2691_v40 = vrot.slane %v2689_v57, 7  ;;  %v17873_v57 = vld [vmem:[#allocation27_spill] sm:$0xff]  ;;  %v13092_v20 = vsel %vm17623_vm12, %v987_v16, %v17879_v38  ;;  %v1838_v15 = vsel %vm17620_vm9, %v1836_v56, %v17884_v42  ;;  %v17894_v56 = vld [vmem:[#allocation72_spill] sm:$0xff]  ;;  %v17897_v16 = vld [vmem:[#allocation86_spill] sm:$0xff] }
 0x3b8   : > { %v1002_v43 = vsel %vm17625_vm11, %v1000_v12, %v17873_v57  ;;  %v2685_v46 = vor.u32 %v13063_v5, %v13061_v45  ;;  %v2130_v34 = vsel %vm424_vm6, %v17886_v60, %v17885_v62  ;;  %v1840_v51 = vsel %vm17622_vm10, %v1838_v15, %v17888_v0  ;;  %v17889_v61 = vld [vmem:[#allocation91_spill] sm:$0xff]  ;;  %v17903_v15 = vld [vmem:[#allocation52_spill] sm:$0xff] }
 0x3b9   : > { %3174 = vrot.lane.b32.xlu1 %v12854_v21, %s11934_s25  ;;  %v2692_v32 = vor.u32 %v2691_v40, %v2688_v14  ;;  %v1004_v1 = vsel %vm17623_vm12, %v1002_v43, %v17877_v41  ;;  %v2387_v14 = vsel %vm17621_vm8, %v2385_v22, %v17887_v13  ;;  %v2402_v12 = vsel %vm17621_vm8, %v2400_v23, %v17889_v61  ;;  %v17895_v63 = vld [vmem:[#allocation59_spill] sm:$0xff]  ;;  %v17898_v23 = vld [vmem:[#allocation46_spill] sm:$0xff]  ;;  %v17904_v60 = vld [vmem:[#allocation64_spill] sm:$0xff] }
 0x3ba   : > { %v2698_v3 = vrot.slane %v1004_v1, 5  ;;  %v2697_v59 = vrot.slane %v13092_v20, 5  ;;  %v1566_v35 = vsel %vm428_vm7, %v1564_v18, %v17890_v47  ;;  %v1851_v6 = vsel %vm17621_vm8, %v1849_v7, %v17891_v37  ;;  %v17896_v1 = vld [vmem:[#allocation80_spill] sm:$0xff]  ;;  %v17908_v47 = vld [vmem:[#allocation71_spill] sm:$0xff] }
 0x3bb   : > { %3172 = vrot.lane.b32.xlu0 %v12818_v58, %s11934_s25  ;;  %v2761_v4 = vsel %vm13077_vm15, %v461_v25, %v2692_v32  ;;  %v2404_v57 = vsel %vm17620_vm9, %v2402_v12, %v17892_v49  ;;  %v17893_v25 = vld [vmem:[#allocation68_spill] sm:$0xff]  ;;  %v2115_v41 = vsel %vm424_vm6, %v17895_v63, %v17894_v56  ;;  %v2132_v19 = vsel %vm428_vm7, %v2130_v34, %v17896_v1  ;;  %v17907_v12 = vld [vmem:[#allocation67_spill] sm:$0xff]  ;;  %v17911_v63 = vld [vmem:[#allocation70_spill] sm:$0xff] }
 0x3bc   : > { %v1853_v32 = vsel %vm17620_vm9, %v1851_v6, %v17893_v25  ;;  %v2389_v52 = vsel %vm17620_vm9, %v2387_v14, %v17897_v16  ;;  %v1568_v38 = vsel %vm17621_vm8, %v1566_v35, %v17898_v23  ;;  %v1579_v18 = vsel %vm424_vm6, %v17900_v11, %v17899_v36  ;;  %v17905_v13 = vld [vmem:[#allocation92_spill] sm:$0xff]  ;;  %v17909_v37 = vld [vmem:[#allocation79_spill] sm:$0xff]  ;;  %v17916_v11 = vld [vmem:[#allocation90_spill] sm:$0xff] }
 0x3bd   : > { %3178 = vrot.lane.b32.xlu1 %v12857_v29, %s11934_s25  ;;  %v1842_v7 = vsel %vm17625_vm11, %v1840_v51, %v17901_v33  ;;  %v2391_v22 = vsel %vm17622_vm10, %v2389_v52, %v17902_v9  ;;  %v1581_v62 = vsel %vm428_vm7, %v1579_v18, %v17903_v15  ;;  %v2406_v14 = vsel %vm17622_vm10, %v2404_v57, %v17905_v13  ;;  %v17906_v0 = vld [vmem:[#allocation96_spill] sm:$0xff]  ;;  %v17910_v49 = vld [vmem:[#allocation95_spill] sm:$0xff]  ;;  %v17912_v57 = vld [vmem:[#allocation74_spill] sm:$0xff] }
 0x3be   : > { %v13147_v34 = vsel %vm17623_vm12, %v1842_v7, %v17904_v60  ;;  %v1855_v51 = vsel %vm17622_vm10, %v1853_v32, %v17907_v12  ;;  %v2117_v35 = vsel %vm428_vm7, %v2115_v41, %v17908_v47  ;;  %v2134_v6 = vsel %vm17621_vm8, %v2132_v19, %v17909_v37  ;;  %v17914_v32 = vld [vmem:[#allocation88_spill] sm:$0xff]  ;;  %v17915_v19 = vld [vmem:[#allocation51_spill] sm:$0xff]  ;;  %v17917_v9 = vld [vmem:[#allocation45_spill] sm:$0xff] }
 0x3bf   : > { %3176 = vrot.lane.b32.xlu0 %v12821_v17, %s11934_s25  ;;  %v2408_v25 = vsel %vm17625_vm11, %v2406_v14, %v17910_v49  ;;  %v1857_v1 = vsel %vm17625_vm11, %v1855_v51, %v17911_v63  ;;  %v2119_v16 = vsel %vm17621_vm8, %v2117_v35, %v17912_v57  ;;  %v2393_v23 = vsel %vm17625_vm11, %v2391_v22, %v17914_v32  ;;  %v17918_v60 = vld [vmem:[#allocation54_spill] sm:$0xff]  ;;  %v17920_v14 = vld [vmem:[#allocation69_spill] sm:$0xff]  ;;  %v17923_v47 = vld [vmem:[#allocation76_spill] sm:$0xff] }
 0x3c0   : > { %v13170_v41 = vsel %vm17653_vm3, %v2761_v4, %v2698_v3  ;;  %v1583_v36 = vsel %vm17621_vm8, %v1581_v62, %v17915_v19  ;;  %v2395_v18 = vsel %vm17623_vm12, %v2393_v23, %v17916_v11  ;;  %v1570_v15 = vsel %vm17620_vm9, %v1568_v38, %v17917_v9  ;;  %v17919_v22 = vld [vmem:[#allocation94_spill] sm:$0xff]  ;;  %v17921_v12 = vld [vmem:[#allocation73_spill] sm:$0xff]  ;;  %v17924_v37 = vld [vmem:[#allocation84_spill] sm:$0xff] }
 0x3c1   : > { %v1585_v13 = vsel %vm17620_vm9, %v1583_v36, %v17918_v60  ;;  %v2410_v3 = vsel %vm17623_vm12, %v2408_v25, %v17919_v22  ;;  %v2719_v62 = vshll.u32 %v13147_v34, 16  ;;  %v2737_v49 = vshrl.u32 %v2395_v18, 16  ;;  %v17927_v11 = vld [vmem:[#allocation48_spill] sm:$0xff] }
 0x3c2   : > { %v2744_v25 = vshrl.u32 %v2410_v3, 16  ;;  %v2747_v63 = vshll.u32 %v2410_v3, 16  ;;  %v17930_v3 = vld [vmem:[#allocation78_spill] sm:$0xff]  ;;  %v2775_v45 = vsel %vm13245_vm4, %v13170_v41, %v2712_v31  ;;  %v17961_v26 = vshrl.u32 %v12821_v17, 16 }
 0x3c3   : > { %v13207_v9 = vrot.slane %v2719_v62, 1 }
 0x3ef   : > { %v13055_v53 = vpop.permute.xlu1 %2587 }
 0x3f1   : > { %v2583_v50 = vpop.permute.xlu0 %2582 }
 0x3f2   : > { %v2651_v61 = vsel %vm424_vm6, %v17906_v0, %v2583_v50  ;;  %v17913_v50 = vld [vmem:[#allocation82_spill] sm:$0xff]  ;;  %v1859_v0 = vsel %vm17623_vm12, %v1857_v1, %v17920_v14  ;;  %v17925_v1 = vld [vmem:[#allocation97_spill] sm:$0xff]  ;;  %v2739_v14 = vrot.slane %v2737_v49, 5 }
 0x3f3   : > { %v2598_v55 = vpop.permute.xlu1 %2597  ;;  %v2136_v52 = vsel %vm17620_vm9, %v2134_v6, %v17913_v50  ;;  %v2653_v33 = vsel %vm428_vm7, %v2651_v61, %v13055_v53  ;;  %v2121_v53 = vsel %vm17620_vm9, %v2119_v16, %v17921_v12  ;;  %v17922_v61 = vld [vmem:[#allocation81_spill] sm:$0xff]  ;;  %v2722_v23 = vshll.u32 %v1859_v0, 16 }
 0x3f4   : > { %v2138_v51 = vsel %vm17622_vm10, %v2136_v52, %v17922_v61  ;;  %v2123_v35 = vsel %vm17622_vm10, %v2121_v53, %v17923_v47  ;;  %v17926_v52 = vld [vmem:[#allocation53_spill] sm:$0xff]  ;;  %v2746_v53 = vrot.slane %v2744_v25, 5  ;;  %v2749_v61 = vrot.slane %v2747_v63, 6 }
 0x3f5   : > { %v2593_v40 = vpop.permute.xlu0 %2592  ;;  %v2140_v6 = vsel %vm17625_vm11, %v2138_v51, %v17924_v37  ;;  %v1587_v32 = vsel %vm17622_vm10, %v1585_v13, %v17926_v52  ;;  %v2724_v47 = vrot.slane %v2722_v23, 1 }
 0x3f6   : > { %v2655_v4 = vsel %vm17621_vm8, %v2653_v33, %v2593_v40  ;;  %v2740_v40 = vshll.u32 %v2395_v18, 16  ;;  %v1572_v18 = vsel %vm17622_vm10, %v1570_v15, %v17927_v11  ;;  %v17928_v33 = vld [vmem:[#allocation56_spill] sm:$0xff]  ;;  %v2750_v23 = vor.u32 %v2749_v61, %v2746_v53 }
 0x3f7   : > { %v13123_v43 = vpop.permute.xlu1 %2607  ;;  %v2657_v57 = vsel %vm17620_vm9, %v2655_v4, %v2598_v55  ;;  %v1589_v55 = vsel %vm17625_vm11, %v1587_v32, %v17928_v33  ;;  %v17931_v4 = vld [vmem:[#allocation83_spill] sm:$0xff]  ;;  %v2760_v53 = vsel %vm13077_vm15, %v13038_v28, %v2685_v46  ;;  %v2705_v28 = vor.u32 %v13049_v10, %v13047_v39 }
 0x3f8   : > { %v2742_v12 = vrot.slane %v2740_v40, 6  ;;  %v2725_v40 = vshrl.u32 %v13147_v34, 16 }
 0x3f9   : > { %v2603_v42 = vpop.permute.xlu0 %2602 }
 0x3fa   : > { %v2659_v19 = vsel %vm17622_vm10, %v2657_v57, %v2603_v42  ;;  %v2142_v42 = vsel %vm17623_vm12, %v2140_v6, %v17931_v4  ;;  %v17932_v57 = vld [vmem:[#allocation47_spill] sm:$0xff] }
 0x3fb   : > { %v2618_v56 = vpop.permute.xlu1 %2617  ;;  %v2661_v15 = vsel %vm17625_vm11, %v2659_v19, %v13123_v43  ;;  %v17933_v6 = vld [vmem:[#allocation55_spill] sm:$0xff]  ;;  %v2728_v43 = vshrl.u32 %v1859_v0, 16  ;;  %v17934_v19 = vmov 0  ;;  %v17937_v0 = vld [vmem:[#allocation50_spill] sm:$0xff] }
 0x3fc   : > { %v2666_v50 = vsel %vm424_vm6, %v17925_v1, %v2618_v56  ;;  %v17929_v56 = vld [vmem:[#allocation75_spill] sm:$0xff]  ;;  %v1574_v1 = vsel %vm17625_vm11, %v1572_v18, %v17932_v57  ;;  %v1591_v49 = vsel %vm17623_vm12, %v1589_v55, %v17933_v6  ;;  %v17935_v19 = vsel %vm13229_vm14, 4294967295, %v17934_v19 }
 0x3fd   : > { %v2613_v7 = vpop.permute.xlu0 %2612  ;;  %v2125_v60 = vsel %vm17625_vm11, %v2123_v35, %v17929_v56  ;;  %17936 = vst [vmem:[#allocation19_spill] sm:$0xff] %v17935_v19  ;;  %v2730_v34 = vor.u32 %v2728_v43, %v2724_v47  ;;  %v1576_v11 = vsel %vm17623_vm12, %v1574_v1, %v17937_v0  ;;  %v2718_v56 = vrot.slane %v1591_v49, 2 }
 0x3fe   : > { %v2127_v13 = vsel %vm17623_vm12, %v2125_v60, %v17930_v3  ;;  %v2663_v35 = vsel %vm17623_vm12, %v2661_v15, %v2613_v7  ;;  %v2765_v15 = vsel %vm17653_vm3, %v2760_v53, %v2697_v59  ;;  %v17946_v59 = vmov 0 }
 0x3ff   : > { %v2628_v38 = vpop.permute.xlu1 %2627  ;;  %v2735_v25 = vrot.slane %v2127_v13, 7  ;;  %v2755_v7 = vrot.slane %v2663_v35, 4  ;;  %v17939_v13 = vmov 0  ;;  %v2774_v39 = vsel %vm13245_vm4, %v2765_v15, %v2705_v28 }
 0x400   : > { %v17940_v13 = vsel %vm13245_vm4, 4294967295, %v17939_v13  ;;  %v3745_v19 = vrot.slane %v17961_v26, 4 }
 0x401   : > { %v2623_v16 = vpop.permute.xlu0 %2622  ;;  %17941 = vst [vmem:[#allocation5_spill] sm:$0xff] %v17940_v13 }
 0x402   : > { %v2668_v36 = vsel %vm428_vm7, %v2666_v50, %v2623_v16  ;;  %v2736_v50 = vrot.slane %v2142_v42, 7  ;;  %v2743_v16 = vor.u32 %v2742_v12, %v2739_v14  ;;  %v17942_v14 = vmov 0 }
 0x403   : > { %v2638_v22 = vpop.permute.xlu1 %2637  ;;  %v2670_v62 = vsel %vm17621_vm8, %v2668_v36, %v2628_v38  ;;  %v2727_v38 = vor.u32 %v2725_v40, %v13207_v9  ;;  %vm2813_vm8 = vsmask.f32 5376 }
 0x405   : > { %v2633_v51 = vpop.permute.xlu0 %2632  ;;  %v2793_v55 = vsel %vm17624_vm13, %v2727_v38, %v2735_v25 }
 0x406   : > { %v2672_v37 = vsel %vm17620_vm9, %v2670_v62, %v2633_v51  ;;  %vm17654_vm9 = vcmask 1043456   ;;  %v2801_v3 = vsel %vm13229_vm14, %v2793_v55, %v2743_v16  ;;  %v2717_v51 = vrot.slane %v1576_v11, 2 }
 0x407   : > { %v2648_v63 = vpop.permute.xlu1 %2647  ;;  %v2674_v32 = vsel %vm17622_vm10, %v2672_v37, %v2638_v22  ;;  %vm17652_vm10 = vcmask 1045504   ;;  %v2797_v22 = vsel %vm17624_vm13, %v2730_v34, %v2736_v50  ;;  %v2806_v12 = vsel %vm17654_vm9, %v2801_v3, %v2755_v7 }
 0x408   : > { %v2802_v42 = vsel %vm13229_vm14, %v2797_v22, %v2750_v23  ;;  %vm2785_vm13 = vcmask 1047552   ;;  %v2783_v46 = vsel %vm17652_vm10, %v2775_v45, %v2718_v56  ;;  %v2779_v10 = vsel %vm17652_vm10, %v2774_v39, %v2717_v51 }
 0x409   : > { %v2643_v52 = vpop.permute.xlu0 %2642 }
 0x40a   : > { %v2676_v36 = vsel %vm17625_vm11, %v2674_v32, %v2643_v52  ;;  %vm2786_vm11 = vsmask.f32 7424 }
 0x40b   : > { %v2678_v18 = vsel %vm17623_vm12, %v2676_v36, %v2648_v63  ;;  %v13237_v33 = vpop.permute.xlu1 %3068  ;;  %vm13254_vm12 = vmand %vm17652_vm10, %vm2813_vm8  ;;  %vm18055_vm10 = vcmask 654336  }
 0x40c   : > { %17938 = vst [vmem:[#allocation8_spill] sm:$0xff] %v13237_v33  ;;  %v2756_v60 = vrot.slane %v2678_v18, 4  ;;  %v17943_v14 = vsel %vm13254_vm12, 4294967295, %v17942_v14  ;;  %v2815_v20 = vsel %vm13254_vm12, %v2806_v12, 0  ;;  %vm13284_vm8 = vmand %vm2785_vm13, %vm2786_vm11  ;;  %vm18051_vm11 = vcmask 392192  }
 0x40d   : > { %v13249_v4 = vpop.permute.xlu0 %3063  ;;  %17944 = vst [vmem:[#allocation29_spill] sm:$0xff] %v17943_v14  ;;  %v17947_v59 = vsel %vm13284_vm8, 4294967295, %v17946_v59  ;;  %v2789_v2 = vsel %vm13284_vm8, %v2783_v46, %v2724_v47  ;;  %v2788_v41 = vsel %vm13284_vm8, %v2779_v10, %v13207_v9  ;;  %vm18052_vm0 = vmmov %vm18051_vm11 }
 0x40e   : > { %v2810_v61 = vsel %vm17654_vm9, %v2802_v42, %v2756_v60  ;;  %17948 = vst [vmem:[#allocation17_spill] sm:$0xff] %v17947_v59  ;;  %vm18054_vm13 = vmmov %vm18053_vm1  ;;  %vm18093_vm9 = vcmask 785408  }
 0x40f   : > { %v2816_v62 = vsel %vm13254_vm12, %v2810_v61, 0  ;;  %v13277_v5 = vpop.permute.xlu1 %3078  ;;  %vm18056_vm3 = vmmov %vm18055_vm10 }
 0x410   : > { %17945 = vst [vmem:[#allocation15_spill] sm:$0xff] %v13277_v5  ;;  %2845 = vmatprep.subr.bf16.mxu0 %v2816_v62 }
 0x411   : > { %v13288_v44 = vpop.permute.xlu0 %3073  ;;  %2846 = vmatpush1.bf16.msra.mxu0 %v2815_v20 }
 0x412   : > { %17949 = vst [vmem:[#allocation18_spill] sm:$0xff] %v13288_v44  ;;  %2847 = vmatprep.subr.bf16.mxu0 %v2789_v2 }
 0x413   : > { %v13295_v31 = vpop.permute.xlu1 %3088 }
 0x414   : > { %17950 = vst [vmem:[#allocation3_spill] sm:$0xff] %v13295_v31 }
 0x415   : > { %v13300_v35 = vpop.permute.xlu0 %3083  ;;  %2848 = vmatpush1.bf16.msra.mxu0 %v2788_v41 }
 0x416   : > { %17951 = vst [vmem:[#allocation6_spill] sm:$0xff] %v13300_v35 }
 0x417   : > { %v13302_v37 = vpop.permute.xlu1 %3098 }
 0x419   : > { %v13304_v57 = vpop.permute.xlu0 %3093 }
 0x41a   : > { %17952 = vst [vmem:[#allocation30_spill] sm:$0xff] %v13304_v57 }
 0x41b   : > { %v13306_v47 = vpop.permute.xlu1 %3108 }
 0x41c   : > { %17953 = vst [vmem:[#allocation21_spill] sm:$0xff] %v13306_v47 }
 0x41d   : > { %v13308_v1 = vpop.permute.xlu0 %3103 }
 0x41f   : > { %v13310_v6 = vpop.permute.xlu1 %3118 }
 0x420   : > { %17954 = vst [vmem:[#allocation10_spill] sm:$0xff] %v13310_v6 }
 0x421   : > { %v13312_v49 = vpop.permute.xlu0 %3113 }
 0x422   : > { %17955 = vst [vmem:[#allocation31_spill] sm:$0xff] %v13312_v49 }
 0x423   : > { %v13314_v40 = vpop.permute.xlu1 %3128 }
 0x424   : > { %17956 = vst [vmem:[#allocation33_spill] sm:$0xff] %v13314_v40 }
 0x425   : > { %v13316_v25 = vpop.permute.xlu0 %3123 }
 0x426   : > { %17957 = vst [vmem:[#allocation14_spill] sm:$0xff] %v13316_v25 }
 0x427   : > { %v3171_v9 = vpop.permute.xlu1 %3170 }
 0x428   : > { %v3193_v38 = vshrl.u32 %v3171_v9, 16 }
 0x429   : > { %v3169_v63 = vpop.permute.xlu0 %3168 }
 0x42a   : > { %v3183_v32 = vshrl.u32 %v3169_v63, 16 }
 0x42b   : > { %v3175_v43 = vpop.permute.xlu1 %3174 }
 0x42c   : > { %v3194_v7 = vshrl.u32 %v3175_v43, 16  ;;  %v3192_v2 = vpack.i.b16 %v3175_v43, %v3171_v9 }
 0x42d   : > { %v3173_v50 = vpop.permute.xlu0 %3172 }
 0x42e   : > { %v3184_v16 = vshrl.u32 %v3173_v50, 16  ;;  %v3182_v23 = vpack.i.b16 %v3173_v50, %v3169_v63  ;;  %v3195_v55 = vpack.i.b16 %v3194_v7, %v3193_v38 }
 0x42f   : > { %v3179_v52 = vpop.permute.xlu1 %3178 }
 0x430   : > { %v3198_v36 = vshrl.u32 %v3179_v52, 16  ;;  %v3185_v0 = vpack.i.b16 %v3184_v16, %v3183_v32  ;;  %v3207_v56 = vrot.slane %v3182_v23, %v11979_v8  ;;  %v3309_v51 = vrot.slane %v3195_v55, %v11979_v8 }
 0x431   : > { %v3177_v34 = vpop.permute.xlu0 %3176  ;;  %v3197_v10 = vpack.i.b16 %v17776_v30, %v3179_v52  ;;  %v3275_v16 = vrot.slane %v3192_v2, %v11979_v8 }
 0x432   : > { %v3187_v11 = vpack.i.b16 %v17776_v30, %v3177_v34  ;;  %v3188_v18 = vshrl.u32 %v3177_v34, 16  ;;  %v3199_v3 = vpack.i.b16 %v17776_v30, %v3198_v36  ;;  %v3241_v42 = vrot.slane %v3185_v0, %v11979_v8 }
 0x433   : > { %v3283_v38 = vrot.slane %v3197_v10, %v11979_v8 }
 0x434   : > { %v3189_v60 = vpack.i.b16 %v17776_v30, %v3188_v18  ;;  %v3215_v22 = vrot.slane %v3187_v11, %v11979_v8  ;;  %v3317_v62 = vrot.slane %v3199_v3, %v11979_v8 }
 0x435   : > { %v3284_v52 = vcombine.low %v3275_v16, %v3283_v38  ;;  %v3285_v0 = vcombine.high %v3275_v16, %v3283_v38 }
 0x436   : > { %v3216_v12 = vcombine.low %v3207_v56, %v3215_v22  ;;  %v3217_v53 = vcombine.high %v3207_v56, %v3215_v22  ;;  %v3249_v61 = vrot.slane %v3189_v60, %v11979_v8  ;;  %v3318_v41 = vcombine.low %v3309_v51, %v3317_v62 }
 0x437   : > { %v3319_v36 = vcombine.high %v3309_v51, %v3317_v62  ;;  %v13347_v18 = vrot.slane %v3284_v52, %v12011_v24  ;;  %v3299_v22 = vrot.slane %v3285_v0, %v12011_v24 }
 0x438   : > { %v3250_v15 = vcombine.low %v3241_v42, %v3249_v61  ;;  %v13328_v45 = vrot.slane %v3216_v12, %v12011_v24  ;;  %v3231_v46 = vrot.slane %v3217_v53, %v12011_v24  ;;  %v3251_v39 = vcombine.high %v3241_v42, %v3249_v61 }
 0x439   : > { %v3326_v9 = vrot.slane %v3318_v41, %v12011_v24  ;;  %v3333_v56 = vrot.slane %v3319_v36, %v12011_v24  ;;  %v11632_v60 = vcombine.high %v13347_v18, %v13347_v18  ;;  %v11134_v42 = vcombine.low %v3299_v22, %v3299_v22 }
 0x43a   : > { %v11628_v28 = vcombine.high %v13328_v45, %v13328_v45  ;;  %v3258_v20 = vrot.slane %v3250_v15, %v12011_v24  ;;  %v11127_v50 = vcombine.low %v3231_v46, %v3231_v46  ;;  %v3265_v32 = vrot.slane %v3251_v39, %v12011_v24 }
 0x43b   : > { %v11630_v43 = vcombine.high %v3231_v46, %v3231_v46  ;;  %v11131_v34 = vcombine.low %v3326_v9, %v3326_v9  ;;  %v11633_v55 = vcombine.high %v3326_v9, %v3326_v9  ;;  %v11135_v3 = vcombine.low %v3333_v56, %v3333_v56 }
 0x43c   : > { %3344 = vrot.lane.b32.xlu1 %v11628_v28, %s11928_s19  ;;  %v11124_v63 = vcombine.low %v3258_v20, %v3258_v20  ;;  %v11629_v7 = vcombine.high %v3258_v20, %v3258_v20  ;;  %v11128_v23 = vcombine.low %v3265_v32, %v3265_v32  ;;  %v11631_v11 = vcombine.high %v3265_v32, %v3265_v32 }
 0x43d   : > { %v11635_v12 = vcombine.high %v3333_v56, %v3333_v56  ;;  %v11634_v53 = vcombine.high %v3299_v22, %v3299_v22  ;;  %v3706_v9 = vshll.u32 %v12815_v48, 16 }
 0x43e   : > { %3339 = vrot.lane.b32.xlu0 %v11124_v63, %s11931_s22 }
 0x440   : > { %3354 = vrot.lane.b32.xlu1 %v11127_v50, %s11927_s18 }
 0x442   : > { %3349 = vrot.lane.b32.xlu0 %v11629_v7, %s11930_s21 }
 0x444   : > { %3364 = vrot.lane.b32.xlu1 %v11630_v43, %s11929_s20  ;;  %v3726_v43 = vshll.u32 %v12818_v58, 16 }
 0x446   : > { %3359 = vrot.lane.b32.xlu0 %v11128_v23, %s11932_s23 }
 0x448   : > { %3374 = vrot.lane.b32.xlu1 %v11131_v34, %s11931_s22  ;;  %v3746_v34 = vshll.u32 %v12821_v17, 16 }
 0x44a   : > { %3369 = vrot.lane.b32.xlu0 %v11631_v11, %s11933_s24  ;;  %v3748_v40 = vrot.slane %v3746_v34, 5  ;;  %v3731_v34 = vshll.u32 %v12854_v21, 16 }
 0x44c   : > { %3384 = vrot.lane.b32.xlu1 %v11633_v55, %s11930_s21  ;;  %v17959_v55 = vshrl.u32 %v12815_v48, 16  ;;  %v3749_v26 = vor.u32 %v3748_v40, %v3745_v19 }
 0x44e   : > { %3379 = vrot.lane.b32.xlu0 %v11632_v60, %s11928_s19  ;;  %v3705_v56 = vrot.slane %v17959_v55, 4 }
 0x450   : > { %3394 = vrot.lane.b32.xlu1 %v11135_v3, %s11932_s23  ;;  %v3708_v3 = vrot.slane %v3706_v9, 5 }
 0x452   : > { %3389 = vrot.lane.b32.xlu0 %v11134_v42, %s11927_s18  ;;  %v17960_v42 = vshrl.u32 %v12818_v58, 16 }
 0x454   : > { %3404 = vrot.lane.b32.xlu1 %v11635_v12, %s11933_s24  ;;  %v3725_v12 = vrot.slane %v17960_v42, 4 }
 0x456   : > { %3399 = vrot.lane.b32.xlu0 %v11634_v53, %s11929_s20  ;;  %v3728_v53 = vrot.slane %v3726_v43, 5  ;;  %v3709_v43 = vor.u32 %v3708_v3, %v3705_v56 }
 0x458   : > { %3438 = vrot.lane.b32.xlu1 %v12851_v27, %s11935_s26 }
 0x45a   : > { %3436 = vrot.lane.b32.xlu0 %v12815_v48, %s11935_s26 }
 0x45c   : > { %3442 = vrot.lane.b32.xlu1 %v12854_v21, %s11935_s26 }
 0x45e   : > { %3440 = vrot.lane.b32.xlu0 %v12818_v58, %s11935_s26 }
 0x460   : > { %3446 = vrot.lane.b32.xlu1 %v12857_v29, %s11935_s26 }
 0x462   : > { %3444 = vrot.lane.b32.xlu0 %v12821_v17, %s11935_s26 }
 0x4ae   : > { %v13372_v61 = vpop.permute.xlu1 %3344 }
 0x4b0   : > { %v13374_v15 = vpop.permute.xlu0 %3339 }
 0x4b2   : > { %v13376_v51 = vpop.permute.xlu1 %3354 }
 0x4b4   : > { %v13378_v62 = vpop.permute.xlu0 %3349 }
 0x4b6   : > { %v13380_v28 = vpop.permute.xlu1 %3364 }
 0x4b8   : > { %v13382_v20 = vpop.permute.xlu0 %3359 }
 0x4ba   : > { %v13384_v46 = vpop.permute.xlu1 %3374 }
 0x4bc   : > { %v13386_v2 = vpop.permute.xlu0 %3369 }
 0x4be   : > { %v13388_v39 = vpop.permute.xlu1 %3384 }
 0x4c0   : > { %v13390_v10 = vpop.permute.xlu0 %3379 }
 0x4c2   : > { %v13392_v41 = vpop.permute.xlu1 %3394 }
 0x4c4   : > { %v13394_v63 = vpop.permute.xlu0 %3389 }
 0x4c6   : > { %v13396_v50 = vpop.permute.xlu1 %3404 }
 0x4c7   : > { %17958 = vst [vmem:[#allocation16_spill] sm:$0xff] %v13396_v50 }
 0x4c8   : > { %v13398_v16 = vpop.permute.xlu0 %3399 }
 0x4ca   : > { %v13400_v38 = vpop.permute.xlu1 %3438 }
 0x4cb   : > { %v3461_v36 = vshrl.u32 %v13400_v38, 16 }
 0x4cc   : > { %v3437_v7 = vpop.permute.xlu0 %3436 }
 0x4cd   : > { %v3451_v60 = vshrl.u32 %v3437_v7, 16 }
 0x4ce   : > { %v13402_v32 = vpop.permute.xlu1 %3442 }
 0x4cf   : > { %v3462_v0 = vshrl.u32 %v13402_v32, 16 }
 0x4d0   : > { %v3441_v52 = vpop.permute.xlu0 %3440 }
 0x4d1   : > { %v3452_v23 = vshrl.u32 %v3441_v52, 16  ;;  %v3450_v22 = vpack.i.b16 %v3441_v52, %v3437_v7  ;;  %v3463_v35 = vpack.i.b16 %v3462_v0, %v3461_v36  ;;  %v3729_v52 = vor.u32 %v3728_v53, %v3725_v12 }
 0x4d2   : > { %v3447_v11 = vpop.permute.xlu1 %3446  ;;  %v3751_v36 = vshll.u32 %v12857_v29, 16  ;;  %v3750_v12 = vrot.slane %v3749_v26, 4  ;;  %v3733_v53 = vrot.slane %v3731_v34, 5 }
 0x4d3   : > { %v3466_v13 = vshrl.u32 %v3447_v11, 16  ;;  %v3453_v14 = vpack.i.b16 %v3452_v23, %v3451_v60  ;;  %v3475_v48 = vrot.slane %v3450_v22, %v11979_v8  ;;  %v3711_v23 = vshll.u32 %v12851_v27, 16 }
 0x4d4   : > { %v3445_v59 = vpop.permute.xlu0 %3444  ;;  %v3730_v56 = vrot.slane %v3729_v52, 4  ;;  %v17963_v22 = vshrl.u32 %v12851_v27, 16  ;;  %v3465_v27 = vpack.i.b16 %v17776_v30, %v3447_v11  ;;  %v13447_v52 = vld [vmem:[%s11977_s17 + $0x2c] sm:$0x1] }
 0x4d5   : > { %v3455_v57 = vpack.i.b16 %v17776_v30, %v3445_v59  ;;  %v3456_v31 = vshrl.u32 %v3445_v59, 16  ;;  %v3467_v58 = vpack.i.b16 %v17776_v30, %v3466_v13  ;;  %v3509_v55 = vrot.slane %v3453_v14, %v11979_v8 }
 0x4d6   : > { %v3710_v14 = vrot.slane %v3709_v43, 4  ;;  %v3716_v19 = vrot.slane %v17963_v22, 4  ;;  %v3713_v40 = vrot.slane %v3711_v23, 5  ;;  %v17964_v23 = vshrl.u32 %v12854_v21, 16 }
 0x4d7   : > { %v3457_v7 = vpack.i.b16 %v17776_v30, %v3456_v31  ;;  %v3483_v9 = vrot.slane %v3455_v57, %v11979_v8  ;;  %v13426_v57 = vrot.slane %v3463_v35, %v11979_v8  ;;  %v13429_v13 = vrot.slane %v3467_v58, %v11979_v8 }
 0x4d8   : > { %v3717_v34 = vor.u32 %v3716_v19, %v3713_v40  ;;  %v13456_v11 = vsel %vm12063_vm2, %v3710_v14, %v3713_v40  ;;  %v13467_v21 = vsel %vm12063_vm2, %v3730_v56, %v3733_v53  ;;  %v3551_v22 = vrot.slane %v3465_v27, %v11979_v8 }
 0x4d9   : > { %v3484_v59 = vcombine.low %v3475_v48, %v3483_v9  ;;  %v3485_v60 = vcombine.high %v3475_v48, %v3483_v9  ;;  %v3517_v17 = vrot.slane %v3457_v7, %v11979_v8  ;;  %v3753_v48 = vrot.slane %v3751_v36, 5 }
 0x4da   : > { %v3460_v7 = vpack.i.b16 %v13402_v32, %v13400_v38  ;;  %v3586_v58 = vcombine.low %v13426_v57, %v13429_v13  ;;  %v3768_v27 = vshrl.u32 %v13467_v21, 16  ;;  %v3587_v6 = vcombine.high %v13426_v57, %v13429_v13 }
 0x4db   : > { %v3518_v31 = vcombine.low %v3509_v55, %v3517_v17  ;;  %v13432_v0 = vrot.slane %v3484_v59, %v12011_v24  ;;  %v3499_v35 = vrot.slane %v3485_v60, %v12011_v24  ;;  %v3519_v9 = vcombine.high %v3509_v55, %v3517_v17  ;;  %v13459_v55 = vld [vmem:[%s11977_s17 + $0x38] sm:$0x1]  ;;  %v13462_v17 = vld [vmem:[%s11977_s17 + $0x44] sm:$0x1] }
 0x4dc   : > { %v3736_v59 = vrot.slane %v17964_v23, 4  ;;  %v17965_v60 = vshrl.u32 %v12857_v29, 16  ;;  %v3543_v36 = vrot.slane %v3460_v7, %v11979_v8  ;;  %v13471_v29 = vsel %vm12063_vm2, %v3750_v12, %v3753_v48 }
 0x4dd   : > { %17962 = vst [vmem:[#allocation34_spill] sm:$0xff] %v13432_v0  ;;  %v11636_v3 = vcombine.high %v13432_v0, %v13432_v0  ;;  %v3526_v42 = vrot.slane %v3518_v31, %v12011_v24  ;;  %v11141_v38 = vcombine.low %v3499_v35, %v3499_v35  ;;  %v3720_v31 = vshll.u32 %v13447_v52, 16 }
 0x4de   : > { %v3756_v26 = vrot.slane %v17965_v60, 4  ;;  %v3533_v19 = vrot.slane %v3519_v9, %v12011_v24  ;;  %v3594_v40 = vrot.slane %v3586_v58, %v12011_v24  ;;  %v3740_v56 = vshll.u32 %v13459_v55, 16 }
 0x4df   : > { %3612 = vrot.lane.b32.xlu1 %v11636_v3, %s11928_s19  ;;  %v11138_v43 = vcombine.low %v3526_v42, %v3526_v42  ;;  %v11637_v14 = vcombine.high %v3526_v42, %v3526_v42  ;;  %v3737_v3 = vor.u32 %v3736_v59, %v3733_v53  ;;  %v11638_v12 = vcombine.high %v3499_v35, %v3499_v35 }
 0x4e0   : > { %v3757_v7 = vor.u32 %v3756_v26, %v3753_v48  ;;  %v3767_v23 = vshrl.u32 %v13456_v11, 16  ;;  %v3772_v60 = vshrl.u32 %v13471_v29, 16  ;;  %v3718_v42 = vrot.slane %v3717_v34, 4 }
 0x4e1   : > { %3607 = vrot.lane.b32.xlu0 %v11138_v43, %s11931_s22  ;;  %v3760_v43 = vshll.u32 %v13462_v17, 16  ;;  %v3766_v9 = vpack.i.b16 %v13467_v21, %v13456_v11  ;;  %v3771_v53 = vpack.i.b16 %v17776_v30, %v13471_v29  ;;  %v3552_v48 = vcombine.low %v3543_v36, %v3551_v22 }
 0x4e2   : > { %v11142_v58 = vcombine.low %v3533_v19, %v3533_v19  ;;  %v11145_v59 = vcombine.low %v3594_v40, %v3594_v40  ;;  %v3722_v26 = vrot.slane %v3720_v31, 5  ;;  %v3738_v35 = vrot.slane %v3737_v3, 4 }
 0x4e3   : > { %3622 = vrot.lane.b32.xlu1 %v11141_v38, %s11927_s18  ;;  %v3758_v38 = vrot.slane %v3757_v7, 4  ;;  %v3762_v25 = vrot.slane %v3760_v43, 5  ;;  %v3769_v34 = vpack.i.b16 %v3768_v27, %v3767_v23  ;;  %v3773_v5 = vpack.i.b16 %v17776_v30, %v3772_v60 }
 0x4e4   : > { %v3791_v49 = vrot.slane %v3766_v9, %v11979_v8  ;;  %v3799_v0 = vrot.slane %v3771_v53, %v11979_v8  ;;  %v11639_v31 = vcombine.high %v3533_v19, %v3533_v19  ;;  %v13497_v3 = vrot.slane %v3552_v48, %v12011_v24 }
 0x4e5   : > { %3617 = vrot.lane.b32.xlu0 %v11637_v14, %s11930_s21  ;;  %v3742_v14 = vrot.slane %v3740_v56, 5  ;;  %v13501_v7 = vsel %vm12063_vm2, %v3718_v42, %v3722_v26  ;;  %v13509_v13 = vsel %vm12063_vm2, %v3758_v38, %v3762_v25  ;;  %v3825_v19 = vrot.slane %v3769_v34, %v11979_v8 }
 0x4e6   : > { %v3833_v56 = vrot.slane %v3773_v5, %v11979_v8  ;;  %v3800_v43 = vcombine.low %v3791_v49, %v3799_v0  ;;  %v3777_v23 = vshrl.u32 %v13501_v7, 16  ;;  %v11640_v27 = vcombine.high %v13497_v3, %v13497_v3 }
 0x4e7   : > { %3632 = vrot.lane.b32.xlu1 %v11638_v12, %s11929_s20  ;;  %v3553_v12 = vcombine.high %v3543_v36, %v3551_v22  ;;  %v13505_v57 = vsel %vm12063_vm2, %v3738_v35, %v3742_v14  ;;  %v11641_v36 = vcombine.high %v3594_v40, %v3594_v40  ;;  %v3601_v22 = vrot.slane %v3587_v6, %v12011_v24 }
 0x4e8   : > { %v3778_v60 = vshrl.u32 %v13505_v57, 16  ;;  %v3782_v40 = vshrl.u32 %v13509_v13, 16  ;;  %v3834_v42 = vcombine.low %v3825_v19, %v3833_v56  ;;  %v13524_v5 = vrot.slane %v3800_v43, %v12011_v24 }
 0x4e9   : > { %3627 = vrot.lane.b32.xlu0 %v11142_v58, %s11932_s23  ;;  %v3567_v25 = vrot.slane %v3553_v12, %v12011_v24  ;;  %v11149_v6 = vcombine.low %v3601_v22, %v3601_v22  ;;  %v3801_v53 = vcombine.high %v3791_v49, %v3799_v0  ;;  %v3835_v12 = vcombine.high %v3825_v19, %v3833_v56 }
 0x4ea   : > { %v3779_v48 = vpack.i.b16 %v3778_v60, %v3777_v23  ;;  %v3783_v58 = vpack.i.b16 %v17776_v30, %v3782_v40  ;;  %v3842_v26 = vrot.slane %v3834_v42, %v12011_v24  ;;  %v11644_v35 = vcombine.high %v13524_v5, %v13524_v5 }
 0x4eb   : > { %3642 = vrot.lane.b32.xlu1 %v11145_v59, %s11931_s22  ;;  %v11148_v9 = vcombine.low %v3567_v25, %v3567_v25  ;;  %v11643_v59 = vcombine.high %v3601_v22, %v3601_v22  ;;  %v11642_v38 = vcombine.high %v3567_v25, %v3567_v25  ;;  %v3815_v14 = vrot.slane %v3801_v53, %v12011_v24 }
 0x4ec   : > { %v3893_v34 = vrot.slane %v3779_v48, %v11979_v8  ;;  %v3901_v49 = vrot.slane %v3783_v58, %v11979_v8  ;;  %v11152_v0 = vcombine.low %v3842_v26, %v3842_v26  ;;  %v11645_v23 = vcombine.high %v3842_v26, %v3842_v26 }
 0x4ed   : > { %3637 = vrot.lane.b32.xlu0 %v11639_v31, %s11933_s24  ;;  %v3776_v31 = vpack.i.b16 %v13505_v57, %v13501_v7  ;;  %v11155_v22 = vcombine.low %v3815_v14, %v3815_v14  ;;  %v11646_v19 = vcombine.high %v3815_v14, %v3815_v14 }
 0x4ee   : > { %v3902_v43 = vcombine.low %v3893_v34, %v3901_v49 }
 0x4ef   : > { %3652 = vrot.lane.b32.xlu1 %v11641_v36, %s11930_s21  ;;  %v3781_v36 = vpack.i.b16 %v17776_v30, %v13509_v13  ;;  %v3859_v25 = vrot.slane %v3776_v31, %v11979_v8 }
 0x4f0   : > { %v3910_v56 = vrot.slane %v3902_v43, %v12011_v24 }
 0x4f1   : > { %3647 = vrot.lane.b32.xlu0 %v11640_v27, %s11928_s19  ;;  %v3849_v27 = vrot.slane %v3835_v12, %v12011_v24  ;;  %v3867_v60 = vrot.slane %v3781_v36, %v11979_v8 }
 0x4f2   : > { %v11159_v42 = vcombine.low %v3910_v56, %v3910_v56 }
 0x4f3   : > { %3662 = vrot.lane.b32.xlu1 %v11149_v6, %s11932_s23  ;;  %v11156_v40 = vcombine.low %v3849_v27, %v3849_v27  ;;  %v3868_v6 = vcombine.low %v3859_v25, %v3867_v60  ;;  %v11647_v53 = vcombine.high %v3849_v27, %v3849_v27  ;;  %v3869_v58 = vcombine.high %v3859_v25, %v3867_v60 }
 0x4f5   : > { %3657 = vrot.lane.b32.xlu0 %v11148_v9, %s11927_s18  ;;  %v3903_v9 = vcombine.high %v3893_v34, %v3901_v49  ;;  %v13552_v48 = vrot.slane %v3868_v6, %v12011_v24 }
 0x4f7   : > { %3672 = vrot.lane.b32.xlu1 %v11643_v59, %s11933_s24  ;;  %v11649_v59 = vcombine.high %v3910_v56, %v3910_v56  ;;  %v3917_v26 = vrot.slane %v3903_v9, %v12011_v24 }
 0x4f9   : > { %3667 = vrot.lane.b32.xlu0 %v11642_v38, %s11929_s20  ;;  %v3883_v38 = vrot.slane %v3869_v58, %v12011_v24  ;;  %v11163_v14 = vcombine.low %v3917_v26, %v3917_v26  ;;  %v11651_v49 = vcombine.high %v3917_v26, %v3917_v26 }
 0x4fb   : > { %3928 = vrot.lane.b32.xlu1 %v11644_v35, %s11928_s19  ;;  %v11648_v35 = vcombine.high %v13552_v48, %v13552_v48  ;;  %v11162_v34 = vcombine.low %v3883_v38, %v3883_v38 }
 0x4fd   : > { %3923 = vrot.lane.b32.xlu0 %v11152_v0, %s11931_s22  ;;  %v11650_v0 = vcombine.high %v3883_v38, %v3883_v38 }
 0x4ff   : > { %3938 = vrot.lane.b32.xlu1 %v11155_v22, %s11927_s18 }
 0x501   : > { %3933 = vrot.lane.b32.xlu0 %v11645_v23, %s11930_s21 }
 0x503   : > { %3948 = vrot.lane.b32.xlu1 %v11646_v19, %s11929_s20 }
 0x505   : > { %3943 = vrot.lane.b32.xlu0 %v11156_v40, %s11932_s23 }
 0x507   : > { %3958 = vrot.lane.b32.xlu1 %v11159_v42, %s11931_s22 }
 0x509   : > { %3953 = vrot.lane.b32.xlu0 %v11647_v53, %s11933_s24 }
 0x50b   : > { %3968 = vrot.lane.b32.xlu1 %v11649_v59, %s11930_s21 }
 0x50d   : > { %3963 = vrot.lane.b32.xlu0 %v11648_v35, %s11928_s19 }
 0x50f   : > { %3978 = vrot.lane.b32.xlu1 %v11163_v14, %s11932_s23 }
 0x511   : > { %3973 = vrot.lane.b32.xlu0 %v11162_v34, %s11927_s18 }
 0x513   : > { %3988 = vrot.lane.b32.xlu1 %v11651_v49, %s11933_s24 }
 0x515   : > { %3983 = vrot.lane.b32.xlu0 %v11650_v0, %s11929_s20 }
 0x517   : > { %4022 = vrot.lane.b32.xlu1 %v13501_v7, %s11934_s25 }
 0x519   : > { %4020 = vrot.lane.b32.xlu0 %v13456_v11, %s11934_s25 }
 0x51b   : > { %4026 = vrot.lane.b32.xlu1 %v13505_v57, %s11934_s25 }
 0x51d   : > { %4024 = vrot.lane.b32.xlu0 %v13467_v21, %s11934_s25 }
 0x51f   : > { %4030 = vrot.lane.b32.xlu1 %v13509_v13, %s11934_s25 }
 0x521   : > { %4028 = vrot.lane.b32.xlu0 %v13471_v29, %s11934_s25 }
 0x551   : > { %v13578_v12 = vpop.permute.xlu1 %3612 }
 0x552   : > { %17967 = vst [vmem:[#allocation13_spill] sm:$0xff] %v13578_v12 }
 0x553   : > { %v13580_v31 = vpop.permute.xlu0 %3607 }
 0x554   : > { %17968 = vst [vmem:[#allocation7_spill] sm:$0xff] %v13580_v31 }
 0x555   : > { %v13582_v36 = vpop.permute.xlu1 %3622 }
 0x556   : > { %17969 = vst [vmem:[#allocation11_spill] sm:$0xff] %v13582_v36 }
 0x557   : > { %v13584_v22 = vpop.permute.xlu0 %3617 }
 0x558   : > { %17970 = vst [vmem:[#allocation20_spill] sm:$0xff] %v13584_v22 }
 0x559   : > { %v13586_v43 = vpop.permute.xlu1 %3632 }
 0x55a   : > { %17971 = vst [vmem:[#allocation32_spill] sm:$0xff] %v13586_v43 }
 0x55b   : > { %v13588_v23 = vpop.permute.xlu0 %3627 }
 0x55c   : > { %17972 = vst [vmem:[#allocation23_spill] sm:$0xff] %v13588_v23 }
 0x55d   : > { %v13590_v27 = vpop.permute.xlu1 %3642 }
 0x55f   : > { %v13592_v25 = vpop.permute.xlu0 %3637 }
 0x560   : > { %17973 = vst [vmem:[#allocation35_spill] sm:$0xff] %v13592_v25 }
 0x561   : > { %v13594_v60 = vpop.permute.xlu1 %3652 }
 0x562   : > { %17974 = vst [vmem:[#allocation22_spill] sm:$0xff] %v13594_v60 }
 0x563   : > { %v13596_v19 = vpop.permute.xlu0 %3647 }
 0x564   : > { %17975 = vst [vmem:[#allocation4_spill] sm:$0xff] %v13596_v19 }
 0x565   : > { %v13598_v56 = vpop.permute.xlu1 %3662 }
 0x566   : > { %17976 = vst [vmem:[#allocation36_spill] sm:$0xff] %v13598_v56 }
 0x567   : > { %v13600_v40 = vpop.permute.xlu0 %3657 }
 0x568   : > { %17977 = vst [vmem:[#allocation9_spill] sm:$0xff] %v13600_v40 }
 0x569   : > { %v13602_v6 = vpop.permute.xlu1 %3672 }
 0x56a   : > { %17978 = vst [vmem:[#allocation12_spill] sm:$0xff] %v13602_v6 }
 0x56b   : > { %v13604_v42 = vpop.permute.xlu0 %3667 }
 0x56c   : > { %17979 = vst [vmem:[#allocation25_spill] sm:$0xff] %v13604_v42 }
 0x56d   : > { %v13606_v9 = vpop.permute.xlu1 %3928 }
 0x56f   : > { %v13608_v53 = vpop.permute.xlu0 %3923 }
 0x571   : > { %v13610_v58 = vpop.permute.xlu1 %3938 }
 0x572   : > { %17980 = vst [vmem:[#allocation57_spill] sm:$0xff] %v13610_v58 }
 0x573   : > { %v13612_v59 = vpop.permute.xlu0 %3933 }
 0x574   : > { %17981 = vst [vmem:[#allocation37_spill] sm:$0xff] %v13612_v59 }
 0x575   : > { %v13614_v26 = vpop.permute.xlu1 %3948 }
 0x576   : > { %17982 = vst [vmem:[#allocation24_spill] sm:$0xff] %v13614_v26 }
 0x577   : > { %v13616_v35 = vpop.permute.xlu0 %3943 }
 0x578   : > { %17983 = vst [vmem:[#allocation38_spill] sm:$0xff] %v13616_v35 }
 0x579   : > { %v13618_v38 = vpop.permute.xlu1 %3958 }
 0x57b   : > { %v13620_v14 = vpop.permute.xlu0 %3953 }
 0x57c   : > { %17984 = vst [vmem:[#allocation27_spill] sm:$0xff] %v13620_v14 }
 0x57d   : > { %v13622_v34 = vpop.permute.xlu1 %3968 }
 0x57e   : > { %17985 = vst [vmem:[#allocation39_spill] sm:$0xff] %v13622_v34 }
 0x57f   : > { %v13624_v49 = vpop.permute.xlu0 %3963 }
 0x580   : > { %17986 = vst [vmem:[#allocation26_spill] sm:$0xff] %v13624_v49 }
 0x581   : > { %v13626_v0 = vpop.permute.xlu1 %3978 }
 0x582   : > { %17987 = vst [vmem:[#allocation40_spill] sm:$0xff] %v13626_v0 }
 0x583   : > { %v13628_v32 = vpop.permute.xlu0 %3973 }
 0x584   : > { %17988 = vst [vmem:[#allocation44_spill] sm:$0xff] %v13628_v32 }
 0x585   : > { %v13630_v25 = vpop.permute.xlu1 %3988 }
 0x586   : > { %17989 = vst [vmem:[#allocation41_spill] sm:$0xff] %v13630_v25 }
 0x587   : > { %v13632_v43 = vpop.permute.xlu0 %3983 }
 0x588   : > { %17990 = vst [vmem:[#allocation66_spill] sm:$0xff] %v13632_v43 }
 0x589   : > { %v4023_v6 = vpop.permute.xlu1 %4022 }
 0x58a   : > { %v4045_v56 = vshrl.u32 %v4023_v6, 16 }
 0x58b   : > { %v4021_v23 = vpop.permute.xlu0 %4020 }
 0x58c   : > { %v4035_v35 = vshrl.u32 %v4021_v23, 16 }
 0x58d   : > { %v4027_v42 = vpop.permute.xlu1 %4026 }
 0x58e   : > { %v4046_v22 = vshrl.u32 %v4027_v42, 16 }
 0x58f   : > { %v4025_v36 = vpop.permute.xlu0 %4024 }
 0x590   : > { %v4036_v26 = vshrl.u32 %v4025_v36, 16  ;;  %v4034_v34 = vpack.i.b16 %v4025_v36, %v4021_v23  ;;  %v4047_v60 = vpack.i.b16 %v4046_v22, %v4045_v56 }
 0x591   : > { %v4031_v14 = vpop.permute.xlu1 %4030 }
 0x592   : > { %v4050_v12 = vshrl.u32 %v4031_v14, 16  ;;  %v4037_v58 = vpack.i.b16 %v4036_v26, %v4035_v35  ;;  %v4059_v25 = vrot.slane %v4034_v34, %v11979_v8  ;;  %v4161_v26 = vrot.slane %v4047_v60, %v11979_v8 }
 0x593   : > { %v4029_v40 = vpop.permute.xlu0 %4028 }
 0x594   : > { %v4039_v0 = vpack.i.b16 %v17776_v30, %v4029_v40  ;;  %v4040_v32 = vshrl.u32 %v4029_v40, 16  ;;  %v4051_v31 = vpack.i.b16 %v17776_v30, %v4050_v12  ;;  %v4093_v47 = vrot.slane %v4037_v58, %v11979_v8 }
 0x595   : > { %v4044_v58 = vpack.i.b16 %v4027_v42, %v4023_v6 }
 0x596   : > { %v4041_v43 = vpack.i.b16 %v17776_v30, %v4040_v32  ;;  %v4067_v49 = vrot.slane %v4039_v0, %v11979_v8  ;;  %v4169_v40 = vrot.slane %v4051_v31, %v11979_v8 }
 0x598   : > { %v4068_v44 = vcombine.low %v4059_v25, %v4067_v49  ;;  %v4069_v59 = vcombine.high %v4059_v25, %v4067_v49  ;;  %v4101_v36 = vrot.slane %v4041_v43, %v11979_v8  ;;  %v4049_v25 = vpack.i.b16 %v17776_v30, %v4031_v14 }
 0x599   : > { %v4170_v43 = vcombine.low %v4161_v26, %v4169_v40 }
 0x59a   : > { %v4102_v23 = vcombine.low %v4093_v47, %v4101_v36  ;;  %v13644_v22 = vrot.slane %v4068_v44, %v12011_v24  ;;  %v4083_v12 = vrot.slane %v4069_v59, %v12011_v24  ;;  %v4103_v35 = vcombine.high %v4093_v47, %v4101_v36 }
 0x59b   : > { %v4127_v44 = vrot.slane %v4044_v58, %v11979_v8  ;;  %v4135_v34 = vrot.slane %v4049_v25, %v11979_v8  ;;  %v4178_v47 = vrot.slane %v4170_v43, %v12011_v24  ;;  %v4171_v36 = vcombine.high %v4161_v26, %v4169_v40 }
 0x59c   : > { %17991 = vst [vmem:[#allocation85_spill] sm:$0xff] %v13644_v22  ;;  %v11652_v32 = vcombine.high %v13644_v22, %v13644_v22  ;;  %v4110_v56 = vrot.slane %v4102_v23, %v12011_v24  ;;  %v11169_v31 = vcombine.low %v4083_v12, %v4083_v12  ;;  %v4117_v59 = vrot.slane %v4103_v35, %v12011_v24 }
 0x59d   : > { %v11654_v6 = vcombine.high %v4083_v12, %v4083_v12  ;;  %v4136_v42 = vcombine.low %v4127_v44, %v4135_v34  ;;  %v11173_v0 = vcombine.low %v4178_v47, %v4178_v47  ;;  %v4137_v23 = vcombine.high %v4127_v44, %v4135_v34 }
 0x59e   : > { %4196 = vrot.lane.b32.xlu1 %v11652_v32, %s11928_s19  ;;  %v11166_v60 = vcombine.low %v4110_v56, %v4110_v56  ;;  %v11653_v49 = vcombine.high %v4110_v56, %v4110_v56  ;;  %v11170_v14 = vcombine.low %v4117_v59, %v4117_v59  ;;  %v11655_v32 = vcombine.high %v4117_v59, %v4117_v59 }
 0x59f   : > { %v13663_v56 = vrot.slane %v4136_v42, %v12011_v24  ;;  %v11657_v58 = vcombine.high %v4178_v47, %v4178_v47  ;;  %v4185_v12 = vrot.slane %v4171_v36, %v12011_v24  ;;  %v4151_v26 = vrot.slane %v4137_v23, %v12011_v24 }
 0x5a0   : > { %4191 = vrot.lane.b32.xlu0 %v11166_v60, %s11931_s22 }
 0x5a1   : > { %17992 = vst [vmem:[#allocation61_spill] sm:$0xff] %v13663_v56  ;;  %v11656_v35 = vcombine.high %v13663_v56, %v13663_v56  ;;  %v11177_v40 = vcombine.low %v4185_v12, %v4185_v12  ;;  %v11176_v25 = vcombine.low %v4151_v26, %v4151_v26  ;;  %v11659_v43 = vcombine.high %v4185_v12, %v4185_v12 }
 0x5a2   : > { %4206 = vrot.lane.b32.xlu1 %v11169_v31, %s11927_s18  ;;  %v11658_v60 = vcombine.high %v4151_v26, %v4151_v26 }
 0x5a4   : > { %4201 = vrot.lane.b32.xlu0 %v11653_v49, %s11930_s21 }
 0x5a6   : > { %4216 = vrot.lane.b32.xlu1 %v11654_v6, %s11929_s20 }
 0x5a8   : > { %4211 = vrot.lane.b32.xlu0 %v11170_v14, %s11932_s23 }
 0x5aa   : > { %4226 = vrot.lane.b32.xlu1 %v11173_v0, %s11931_s22 }
 0x5ac   : > { %4221 = vrot.lane.b32.xlu0 %v11655_v32, %s11933_s24 }
 0x5ae   : > { %4236 = vrot.lane.b32.xlu1 %v11657_v58, %s11930_s21 }
 0x5b0   : > { %4231 = vrot.lane.b32.xlu0 %v11656_v35, %s11928_s19 }
 0x5b2   : > { %4246 = vrot.lane.b32.xlu1 %v11177_v40, %s11932_s23 }
 0x5b4   : > { %4241 = vrot.lane.b32.xlu0 %v11176_v25, %s11927_s18 }
 0x5b6   : > { %4256 = vrot.lane.b32.xlu1 %v11659_v43, %s11933_s24 }
 0x5b8   : > { %4251 = vrot.lane.b32.xlu0 %v11658_v60, %s11929_s20 }
 0x5ba   : > { %4290 = vrot.lane.b32.xlu1 %v13501_v7, %s11935_s26 }
 0x5bc   : > { %4288 = vrot.lane.b32.xlu0 %v13456_v11, %s11935_s26 }
 0x5be   : > { %4294 = vrot.lane.b32.xlu1 %v13505_v57, %s11935_s26 }
 0x5c0   : > { %4292 = vrot.lane.b32.xlu0 %v13467_v21, %s11935_s26 }
 0x5c2   : > { %4298 = vrot.lane.b32.xlu1 %v13509_v13, %s11935_s26 }
 0x5c4   : > { %4296 = vrot.lane.b32.xlu0 %v13471_v29, %s11935_s26 }
 0x610   : > { %v13688_v31 = vpop.permute.xlu1 %4196 }
 0x611   : > { %17993 = vst [vmem:[#allocation77_spill] sm:$0xff] %v13688_v31 }
 0x612   : > { %v13690_v44 = vpop.permute.xlu0 %4191 }
 0x613   : > { %17994 = vst [vmem:[#allocation60_spill] sm:$0xff] %v13690_v44  ;;  %v4578_v44 = vrot.slane %v13462_v17, 5 }
 0x614   : > { %v13692_v7 = vpop.permute.xlu1 %4206 }
 0x615   : > { %17995 = vst [vmem:[#allocation87_spill] sm:$0xff] %v13692_v7 }
 0x616   : > { %v13694_v34 = vpop.permute.xlu0 %4201 }
 0x617   : > { %17996 = vst [vmem:[#allocation63_spill] sm:$0xff] %v13694_v34 }
 0x618   : > { %v13696_v11 = vpop.permute.xlu1 %4216 }
 0x619   : > { %17997 = vst [vmem:[#allocation91_spill] sm:$0xff] %v13696_v11 }
 0x61a   : > { %v13698_v57 = vpop.permute.xlu0 %4211 }
 0x61b   : > { %17998 = vst [vmem:[#allocation43_spill] sm:$0xff] %v13698_v57 }
 0x61c   : > { %v13700_v49 = vpop.permute.xlu1 %4226 }
 0x61d   : > { %17999 = vst [vmem:[#allocation65_spill] sm:$0xff] %v13700_v49 }
 0x61e   : > { %v13702_v21 = vpop.permute.xlu0 %4221 }
 0x61f   : > { %18000 = vst [vmem:[#allocation93_spill] sm:$0xff] %v13702_v21 }
 0x620   : > { %v13704_v13 = vpop.permute.xlu1 %4236 }
 0x621   : > { %18001 = vst [vmem:[#allocation68_spill] sm:$0xff] %v13704_v13  ;;  %v11885_v13 = vld [vmem:[%s11977_s17 + $0x3c] sm:$0xf] }
 0x622   : > { %v13706_v59 = vpop.permute.xlu0 %4231 }
 0x623   : > { %18002 = vst [vmem:[#allocation72_spill] sm:$0xff] %v13706_v59  ;;  %v11196_v59 = vrot.slane %v11885_v13, 9 }
 0x624   : > { %v13708_v29 = vpop.permute.xlu1 %4246 }
 0x625   : > { %18003 = vst [vmem:[#allocation59_spill] sm:$0xff] %v13708_v29 }
 0x626   : > { %v13710_v47 = vpop.permute.xlu0 %4241 }
 0x627   : > { %18004 = vst [vmem:[#allocation80_spill] sm:$0xff] %v13710_v47 }
 0x628   : > { %v13712_v6 = vpop.permute.xlu1 %4256 }
 0x629   : > { %18005 = vst [vmem:[#allocation86_spill] sm:$0xff] %v13712_v6 }
 0x62a   : > { %v13714_v42 = vpop.permute.xlu0 %4251 }
 0x62b   : > { %18006 = vst [vmem:[#allocation46_spill] sm:$0xff] %v13714_v42 }
 0x62c   : > { %v4291_v14 = vpop.permute.xlu1 %4290 }
 0x62d   : > { %v4313_v58 = vshrl.u32 %v4291_v14, 16 }
 0x62e   : > { %v4289_v0 = vpop.permute.xlu0 %4288 }
 0x62f   : > { %v4303_v26 = vshrl.u32 %v4289_v0, 16 }
 0x630   : > { %v4295_v36 = vpop.permute.xlu1 %4294 }
 0x631   : > { %v4314_v12 = vshrl.u32 %v4295_v36, 16  ;;  %v4312_v47 = vpack.i.b16 %v4295_v36, %v4291_v14 }
 0x632   : > { %v4293_v23 = vpop.permute.xlu0 %4292 }
 0x633   : > { %v4304_v32 = vshrl.u32 %v4293_v23, 16  ;;  %v4302_v40 = vpack.i.b16 %v4293_v23, %v4289_v0  ;;  %v4315_v6 = vpack.i.b16 %v4314_v12, %v4313_v58  ;;  %v4395_v14 = vrot.slane %v4312_v47, %v11979_v8 }
 0x634   : > { %v4299_v35 = vpop.permute.xlu1 %4298 }
 0x635   : > { %v4318_v43 = vshrl.u32 %v4299_v35, 16  ;;  %v4305_v60 = vpack.i.b16 %v4304_v32, %v4303_v26  ;;  %v4327_v57 = vrot.slane %v4302_v40, %v11979_v8  ;;  %v13724_v58 = vrot.slane %v4315_v6, %v11979_v8  ;;  %v11883_v6 = vld [vmem:[%s11977_s17 + $0x30] sm:$0xf] }
 0x636   : > { %v4297_v25 = vpop.permute.xlu0 %4296 }
 0x637   : > { %v4307_v21 = vpack.i.b16 %v17776_v30, %v4297_v25  ;;  %v4308_v11 = vshrl.u32 %v4297_v25, 16  ;;  %v4319_v34 = vpack.i.b16 %v17776_v30, %v4318_v43  ;;  %v4361_v0 = vrot.slane %v4305_v60, %v11979_v8  ;;  %v11882_v25 = vld [vmem:[%s11977_s17 + $0x28] sm:$0xf] }
 0x638   : > { %v4561_v43 = vrot.slane %v11882_v25, 5  ;;  %v11195_v60 = vrot.slane %v11883_v6, 9 }
 0x639   : > { %v4309_v7 = vpack.i.b16 %v17776_v30, %v4308_v11  ;;  %v4335_v42 = vrot.slane %v4307_v21, %v11979_v8  ;;  %v13727_v12 = vrot.slane %v4319_v34, %v11979_v8  ;;  %v11881_v21 = vld [vmem:[%s11977_s17 + $0x24] sm:$0xf]  ;;  %v11884_v34 = vld [vmem:[%s11977_s17 + $0x34] sm:$0xf] }
 0x63a   : > { %v11194_v40 = vrot.slane %v11881_v21, 9  ;;  %v4568_v31 = vrot.slane %v11884_v34, 5  ;;  %v4317_v21 = vpack.i.b16 %v17776_v30, %v4299_v35 }
 0x63b   : > { %v4336_v23 = vcombine.low %v4327_v57, %v4335_v42  ;;  %v4337_v29 = vcombine.high %v4327_v57, %v4335_v42  ;;  %v4369_v32 = vrot.slane %v4309_v7, %v11979_v8  ;;  %v4438_v25 = vcombine.low %v13724_v58, %v13727_v12 }
 0x63c   : > { %v13750_v6 = vsel %vm12529_vm5, %v11194_v40, %v4561_v43  ;;  %v13754_v13 = vsel %vm12529_vm5, %v11195_v60, %v4568_v31 }
 0x63d   : > { %v4370_v26 = vcombine.low %v4361_v0, %v4369_v32  ;;  %v13730_v11 = vrot.slane %v4336_v23, %v12011_v24  ;;  %v4351_v42 = vrot.slane %v4337_v29, %v12011_v24  ;;  %v11886_v23 = vld [vmem:[%s11977_s17 + $0x40] sm:$0xf]  ;;  %v4371_v49 = vcombine.high %v4361_v0, %v4369_v32 }
 0x63e   : > { %v4575_v56 = vrot.slane %v11886_v23, 5  ;;  %v4403_v0 = vrot.slane %v4317_v21, %v11979_v8  ;;  %v4446_v47 = vrot.slane %v4438_v25, %v12011_v24  ;;  %v4583_v34 = vshrl.u32 %v13750_v6, 16 }
 0x63f   : > { %18007 = vst [vmem:[#allocation49_spill] sm:$0xff] %v13730_v11  ;;  %v11660_v57 = vcombine.high %v13730_v11, %v13730_v11  ;;  %v4378_v7 = vrot.slane %v4370_v26, %v12011_v24  ;;  %v11183_v29 = vcombine.low %v4351_v42, %v4351_v42  ;;  %v11662_v40 = vcombine.high %v4351_v42, %v4351_v42 }
 0x640   : > { %v13758_v35 = vsel %vm12529_vm5, %v11196_v59, %v4575_v56  ;;  %v4584_v60 = vshrl.u32 %v13754_v13, 16  ;;  %v4582_v59 = vpack.i.b16 %v13754_v13, %v13750_v6  ;;  %v11187_v25 = vcombine.low %v4446_v47, %v4446_v47 }
 0x641   : > { %4464 = vrot.lane.b32.xlu1 %v11660_v57, %s11928_s19  ;;  %v11180_v26 = vcombine.low %v4378_v7, %v4378_v7  ;;  %v11661_v32 = vcombine.high %v4378_v7, %v4378_v7  ;;  %v4385_v57 = vrot.slane %v4371_v49, %v12011_v24  ;;  %v4588_v23 = vshrl.u32 %v13758_v35, 16 }
 0x642   : > { %v4587_v21 = vpack.i.b16 %v17776_v30, %v13758_v35  ;;  %v4563_v7 = vrot.slane %v4561_v43, 4  ;;  %v4564_v42 = vrot.slane %v13447_v52, 5  ;;  %v4577_v22 = vrot.slane %v4575_v56, 4 }
 0x643   : > { %4459 = vrot.lane.b32.xlu0 %v11180_v26, %s11931_s22  ;;  %v4404_v26 = vcombine.low %v4395_v14, %v4403_v0  ;;  %v11184_v49 = vcombine.low %v4385_v57, %v4385_v57  ;;  %v4439_v11 = vcombine.high %v13724_v58, %v13727_v12  ;;  %v4585_v19 = vpack.i.b16 %v4584_v60, %v4583_v34 }
 0x644   : > { %v4589_v43 = vpack.i.b16 %v17776_v30, %v4588_v23  ;;  %v4615_v50 = vrot.slane %v4587_v21, %v11979_v8  ;;  %v4405_v33 = vcombine.high %v4395_v14, %v4403_v0  ;;  %v11663_v52 = vcombine.high %v4385_v57, %v4385_v57 }
 0x645   : > { %4474 = vrot.lane.b32.xlu1 %v11183_v29, %s11927_s18  ;;  %v4570_v29 = vrot.slane %v4568_v31, 4  ;;  %v13788_v17 = vsel %vm12529_vm5, %v4563_v7, %v4564_v42  ;;  %v13796_v31 = vsel %vm12529_vm5, %v4577_v22, %v4578_v44  ;;  %v11665_v58 = vcombine.high %v4446_v47, %v4446_v47 }
 0x646   : > { %v4453_v12 = vrot.slane %v4439_v11, %v12011_v24  ;;  %v4641_v14 = vrot.slane %v4585_v19, %v11979_v8  ;;  %v4649_v0 = vrot.slane %v4589_v43, %v11979_v8  ;;  %v4593_v34 = vshrl.u32 %v13788_v17, 16 }
 0x647   : > { %4469 = vrot.lane.b32.xlu0 %v11661_v32, %s11930_s21  ;;  %v4571_v32 = vrot.slane %v13459_v55, 5  ;;  %v13784_v55 = vrot.slane %v4404_v26, %v12011_v24  ;;  %v4419_v22 = vrot.slane %v4405_v33, %v12011_v24  ;;  %v4598_v47 = vshrl.u32 %v13796_v31, 16 }
 0x648   : > { %v11191_v11 = vcombine.low %v4453_v12, %v4453_v12  ;;  %v4650_v19 = vcombine.low %v4641_v14, %v4649_v0  ;;  %v11667_v33 = vcombine.high %v4453_v12, %v4453_v12 }
 0x649   : > { %4484 = vrot.lane.b32.xlu1 %v11662_v40, %s11929_s20  ;;  %v4607_v40 = vrot.slane %v4582_v59, %v11979_v8  ;;  %v13792_v56 = vsel %vm12529_vm5, %v4570_v29, %v4571_v32  ;;  %v11664_v60 = vcombine.high %v13784_v55, %v13784_v55  ;;  %v11190_v59 = vcombine.low %v4419_v22, %v4419_v22 }
 0x64a   : > { %v4594_v44 = vshrl.u32 %v13792_v56, 16  ;;  %v4599_v26 = vpack.i.b16 %v17776_v30, %v4598_v47  ;;  %v11666_v42 = vcombine.high %v4419_v22, %v4419_v22 }
 0x64b   : > { %4479 = vrot.lane.b32.xlu0 %v11184_v49, %s11932_s23  ;;  %v4616_v57 = vcombine.low %v4607_v40, %v4615_v50  ;;  %v4617_v21 = vcombine.high %v4607_v40, %v4615_v50  ;;  %v4658_v49 = vrot.slane %v4650_v19, %v12011_v24  ;;  %v4651_v40 = vcombine.high %v4641_v14, %v4649_v0 }
 0x64c   : > { %v4595_v7 = vpack.i.b16 %v4594_v44, %v4593_v34  ;;  %v4717_v50 = vrot.slane %v4599_v26, %v11979_v8 }
 0x64d   : > { %4494 = vrot.lane.b32.xlu1 %v11187_v25, %s11931_s22  ;;  %v13811_v23 = vrot.slane %v4616_v57, %v12011_v24  ;;  %v4631_v29 = vrot.slane %v4617_v21, %v12011_v24  ;;  %v11197_v43 = vcombine.low %v4658_v49, %v4658_v49  ;;  %v11669_v34 = vcombine.high %v4658_v49, %v4658_v49 }
 0x64e   : > { %v4709_v32 = vrot.slane %v4595_v7, %v11979_v8 }
 0x64f   : > { %4489 = vrot.lane.b32.xlu0 %v11663_v52, %s11933_s24  ;;  %18009 = vst [vmem:[#allocation42_spill] sm:$0xff] %v13811_v23  ;;  %v11668_v25 = vcombine.high %v13811_v23, %v13811_v23  ;;  %v4592_v52 = vpack.i.b16 %v13792_v56, %v13788_v17  ;;  %v11200_v12 = vcombine.low %v4631_v29, %v4631_v29 }
 0x650   : > { %v4718_v57 = vcombine.low %v4709_v32, %v4717_v50  ;;  %v11670_v14 = vcombine.high %v4631_v29, %v4631_v29 }
 0x651   : > { %4504 = vrot.lane.b32.xlu1 %v11665_v58, %s11930_s21  ;;  %v4597_v58 = vpack.i.b16 %v17776_v30, %v13796_v31  ;;  %v4675_v22 = vrot.slane %v4592_v52, %v11979_v8 }
 0x652   : > { %v4726_v0 = vrot.slane %v4718_v57, %v12011_v24 }
 0x653   : > { %4499 = vrot.lane.b32.xlu0 %v11664_v60, %s11928_s19  ;;  %v4665_v60 = vrot.slane %v4651_v40, %v12011_v24  ;;  %v4683_v44 = vrot.slane %v4597_v58, %v11979_v8 }
 0x654   : > { %v11204_v19 = vcombine.low %v4726_v0, %v4726_v0 }
 0x655   : > { %4514 = vrot.lane.b32.xlu1 %v11191_v11, %s11932_s23  ;;  %v11201_v47 = vcombine.low %v4665_v60, %v4665_v60  ;;  %v4684_v11 = vcombine.low %v4675_v22, %v4683_v44  ;;  %v11671_v21 = vcombine.high %v4665_v60, %v4665_v60  ;;  %v4685_v26 = vcombine.high %v4675_v22, %v4683_v44 }
 0x657   : > { %4509 = vrot.lane.b32.xlu0 %v11190_v59, %s11927_s18  ;;  %v4719_v59 = vcombine.high %v4709_v32, %v4717_v50  ;;  %v13839_v7 = vrot.slane %v4684_v11, %v12011_v24 }
 0x659   : > { %4524 = vrot.lane.b32.xlu1 %v11667_v33, %s11933_s24  ;;  %18010 = vst [vmem:[#allocation62_spill] sm:$0xff] %v13839_v7  ;;  %v11673_v33 = vcombine.high %v4726_v0, %v4726_v0  ;;  %v4733_v49 = vrot.slane %v4719_v59, %v12011_v24 }
 0x65b   : > { %4519 = vrot.lane.b32.xlu0 %v11666_v42, %s11929_s20  ;;  %v4699_v42 = vrot.slane %v4685_v26, %v12011_v24  ;;  %v11208_v29 = vcombine.low %v4733_v49, %v4733_v49  ;;  %v11675_v50 = vcombine.high %v4733_v49, %v4733_v49 }
 0x65d   : > { %4744 = vrot.lane.b32.xlu1 %v11668_v25, %s11928_s19  ;;  %v11672_v25 = vcombine.high %v13839_v7, %v13839_v7  ;;  %v11207_v32 = vcombine.low %v4699_v42, %v4699_v42 }
 0x65f   : > { %4739 = vrot.lane.b32.xlu0 %v11197_v43, %s11931_s22  ;;  %v11674_v43 = vcombine.high %v4699_v42, %v4699_v42 }
 0x661   : > { %4754 = vrot.lane.b32.xlu1 %v11200_v12, %s11927_s18 }
 0x663   : > { %4749 = vrot.lane.b32.xlu0 %v11669_v34, %s11930_s21 }
 0x665   : > { %4764 = vrot.lane.b32.xlu1 %v11670_v14, %s11929_s20 }
 0x667   : > { %4759 = vrot.lane.b32.xlu0 %v11201_v47, %s11932_s23 }
 0x669   : > { %4774 = vrot.lane.b32.xlu1 %v11204_v19, %s11931_s22 }
 0x66b   : > { %4769 = vrot.lane.b32.xlu0 %v11671_v21, %s11933_s24 }
 0x66d   : > { %4784 = vrot.lane.b32.xlu1 %v11673_v33, %s11930_s21 }
 0x66f   : > { %4779 = vrot.lane.b32.xlu0 %v11672_v25, %s11928_s19 }
 0x671   : > { %4794 = vrot.lane.b32.xlu1 %v11208_v29, %s11932_s23 }
 0x673   : > { %4789 = vrot.lane.b32.xlu0 %v11207_v32, %s11927_s18 }
 0x675   : > { %4804 = vrot.lane.b32.xlu1 %v11675_v50, %s11933_s24 }
 0x677   : > { %4799 = vrot.lane.b32.xlu0 %v11674_v43, %s11929_s20 }
 0x679   : > { %4838 = vrot.lane.b32.xlu1 %v13788_v17, %s11934_s25 }
 0x67b   : > { %4836 = vrot.lane.b32.xlu0 %v13750_v6, %s11934_s25 }
 0x67d   : > { %4842 = vrot.lane.b32.xlu1 %v13792_v56, %s11934_s25 }
 0x67f   : > { %4840 = vrot.lane.b32.xlu0 %v13754_v13, %s11934_s25 }
 0x681   : > { %4846 = vrot.lane.b32.xlu1 %v13796_v31, %s11934_s25 }
 0x683   : > { %4844 = vrot.lane.b32.xlu0 %v13758_v35, %s11934_s25 }
 0x6b3   : > { %v13865_v40 = vpop.permute.xlu1 %4464 }
 0x6b5   : > { %v13867_v52 = vpop.permute.xlu0 %4459 }
 0x6b7   : > { %v13869_v58 = vpop.permute.xlu1 %4474 }
 0x6b8   : > { %18011 = vst [vmem:[#allocation89_spill] sm:$0xff] %v13869_v58 }
 0x6b9   : > { %v13871_v12 = vpop.permute.xlu0 %4469 }
 0x6bb   : > { %v13873_v57 = vpop.permute.xlu1 %4484 }
 0x6bc   : > { %18012 = vst [vmem:[#allocation52_spill] sm:$0xff] %v13873_v57 }
 0x6bd   : > { %v13875_v34 = vpop.permute.xlu0 %4479 }
 0x6be   : > { %18013 = vst [vmem:[#allocation64_spill] sm:$0xff] %v13875_v34 }
 0x6bf   : > { %v13877_v60 = vpop.permute.xlu1 %4494 }
 0x6c1   : > { %v13879_v22 = vpop.permute.xlu0 %4489 }
 0x6c2   : > { %18014 = vst [vmem:[#allocation92_spill] sm:$0xff] %v13879_v22 }
 0x6c3   : > { %v13881_v44 = vpop.permute.xlu1 %4504 }
 0x6c4   : > { %18015 = vst [vmem:[#allocation96_spill] sm:$0xff] %v13881_v44 }
 0x6c5   : > { %v13883_v14 = vpop.permute.xlu0 %4499 }
 0x6c6   : > { %18016 = vst [vmem:[#allocation67_spill] sm:$0xff] %v13883_v14 }
 0x6c7   : > { %v13885_v0 = vpop.permute.xlu1 %4514 }
 0x6c8   : > { %18017 = vst [vmem:[#allocation71_spill] sm:$0xff] %v13885_v0 }
 0x6c9   : > { %v13887_v47 = vpop.permute.xlu0 %4509 }
 0x6ca   : > { %18018 = vst [vmem:[#allocation79_spill] sm:$0xff] %v13887_v47 }
 0x6cb   : > { %v13889_v11 = vpop.permute.xlu1 %4524 }
 0x6cc   : > { %18019 = vst [vmem:[#allocation95_spill] sm:$0xff] %v13889_v11 }
 0x6cd   : > { %v13891_v19 = vpop.permute.xlu0 %4519 }
 0x6ce   : > { %18020 = vst [vmem:[#allocation70_spill] sm:$0xff] %v13891_v19 }
 0x6cf   : > { %v13893_v59 = vpop.permute.xlu1 %4744 }
 0x6d0   : > { %18021 = vst [vmem:[#allocation74_spill] sm:$0xff] %v13893_v59 }
 0x6d1   : > { %v13895_v21 = vpop.permute.xlu0 %4739 }
 0x6d2   : > { %18022 = vst [vmem:[#allocation82_spill] sm:$0xff] %v13895_v21 }
 0x6d3   : > { %v13897_v26 = vpop.permute.xlu1 %4754 }
 0x6d4   : > { %18023 = vst [vmem:[#allocation88_spill] sm:$0xff] %v13897_v26 }
 0x6d5   : > { %v13899_v33 = vpop.permute.xlu0 %4749 }
 0x6d6   : > { %18024 = vst [vmem:[#allocation51_spill] sm:$0xff] %v13899_v33 }
 0x6d7   : > { %v13901_v49 = vpop.permute.xlu1 %4764 }
 0x6d8   : > { %18025 = vst [vmem:[#allocation90_spill] sm:$0xff] %v13901_v49 }
 0x6d9   : > { %v13903_v25 = vpop.permute.xlu0 %4759 }
 0x6da   : > { %18026 = vst [vmem:[#allocation45_spill] sm:$0xff] %v13903_v25 }
 0x6db   : > { %v13905_v42 = vpop.permute.xlu1 %4774 }
 0x6dc   : > { %18027 = vst [vmem:[#allocation54_spill] sm:$0xff] %v13905_v42 }
 0x6dd   : > { %v13907_v29 = vpop.permute.xlu0 %4769 }
 0x6de   : > { %18028 = vst [vmem:[#allocation94_spill] sm:$0xff] %v13907_v29 }
 0x6df   : > { %v13909_v32 = vpop.permute.xlu1 %4784 }
 0x6e0   : > { %18029 = vst [vmem:[#allocation69_spill] sm:$0xff] %v13909_v32 }
 0x6e1   : > { %v13911_v50 = vpop.permute.xlu0 %4779 }
 0x6e2   : > { %18030 = vst [vmem:[#allocation73_spill] sm:$0xff] %v13911_v50 }
 0x6e3   : > { %v13913_v43 = vpop.permute.xlu1 %4794 }
 0x6e4   : > { %18031 = vst [vmem:[#allocation81_spill] sm:$0xff] %v13913_v43 }
 0x6e5   : > { %v13915_v36 = vpop.permute.xlu0 %4789 }
 0x6e6   : > { %18032 = vst [vmem:[#allocation76_spill] sm:$0xff] %v13915_v36 }
 0x6e7   : > { %v13917_v11 = vpop.permute.xlu1 %4804 }
 0x6e8   : > { %18033 = vst [vmem:[#allocation84_spill] sm:$0xff] %v13917_v11 }
 0x6e9   : > { %v13919_v26 = vpop.permute.xlu0 %4799 }
 0x6ea   : > { %18034 = vst [vmem:[#allocation97_spill] sm:$0xff] %v13919_v26 }
 0x6eb   : > { %v4839_v33 = vpop.permute.xlu1 %4838 }
 0x6ec   : > { %v4861_v0 = vshrl.u32 %v4839_v33, 16 }
 0x6ed   : > { %v4837_v49 = vpop.permute.xlu0 %4836 }
 0x6ee   : > { %v4851_v57 = vshrl.u32 %v4837_v49, 16 }
 0x6ef   : > { %v4843_v19 = vpop.permute.xlu1 %4842 }
 0x6f0   : > { %v4862_v22 = vshrl.u32 %v4843_v19, 16 }
 0x6f1   : > { %v4841_v25 = vpop.permute.xlu0 %4840 }
 0x6f2   : > { %v4852_v59 = vshrl.u32 %v4841_v25, 16  ;;  %v4850_v32 = vpack.i.b16 %v4841_v25, %v4837_v49  ;;  %v4863_v47 = vpack.i.b16 %v4862_v22, %v4861_v0 }
 0x6f3   : > { %v4847_v29 = vpop.permute.xlu1 %4846 }
 0x6f4   : > { %v4866_v50 = vshrl.u32 %v4847_v29, 16  ;;  %v4853_v21 = vpack.i.b16 %v4852_v59, %v4851_v57  ;;  %v4875_v11 = vrot.slane %v4850_v32, %v11979_v8  ;;  %v4977_v57 = vrot.slane %v4863_v47, %v11979_v8 }
 0x6f5   : > { %v4845_v23 = vpop.permute.xlu0 %4844 }
 0x6f6   : > { %v4855_v43 = vpack.i.b16 %v17776_v30, %v4845_v23  ;;  %v4856_v36 = vshrl.u32 %v4845_v23, 16  ;;  %v4867_v34 = vpack.i.b16 %v17776_v30, %v4866_v50  ;;  %v4909_v7 = vrot.slane %v4853_v21, %v11979_v8 }
 0x6f7   : > { %v4860_v21 = vpack.i.b16 %v4843_v19, %v4839_v33 }
 0x6f8   : > { %v4857_v26 = vpack.i.b16 %v17776_v30, %v4856_v36  ;;  %v4883_v44 = vrot.slane %v4855_v43, %v11979_v8  ;;  %v4985_v23 = vrot.slane %v4867_v34, %v11979_v8 }
 0x6fa   : > { %v4884_v42 = vcombine.low %v4875_v11, %v4883_v44  ;;  %v4885_v58 = vcombine.high %v4875_v11, %v4883_v44  ;;  %v4917_v49 = vrot.slane %v4857_v26, %v11979_v8  ;;  %v4865_v44 = vpack.i.b16 %v17776_v30, %v4847_v29 }
 0x6fb   : > { %v4986_v11 = vcombine.low %v4977_v57, %v4985_v23  ;;  %v4943_v26 = vrot.slane %v4860_v21, %v11979_v8 }
 0x6fc   : > { %v4918_v25 = vcombine.low %v4909_v7, %v4917_v49  ;;  %v13931_v22 = vrot.slane %v4884_v42, %v12011_v24  ;;  %v4899_v59 = vrot.slane %v4885_v58, %v12011_v24  ;;  %v4919_v32 = vcombine.high %v4909_v7, %v4917_v49 }
 0x6fd   : > { %v4951_v42 = vrot.slane %v4865_v44, %v11979_v8  ;;  %v4994_v7 = vrot.slane %v4986_v11, %v12011_v24  ;;  %v4987_v49 = vcombine.high %v4977_v57, %v4985_v23 }
 0x6fe   : > { %v11676_v36 = vcombine.high %v13931_v22, %v13931_v22  ;;  %v4926_v0 = vrot.slane %v4918_v25, %v12011_v24  ;;  %v11214_v34 = vcombine.low %v4899_v59, %v4899_v59  ;;  %v4933_v58 = vrot.slane %v4919_v32, %v12011_v24 }
 0x6ff   : > { %v11678_v19 = vcombine.high %v4899_v59, %v4899_v59  ;;  %v4952_v33 = vcombine.low %v4943_v26, %v4951_v42  ;;  %v11218_v43 = vcombine.low %v4994_v7, %v4994_v7  ;;  %v4953_v25 = vcombine.high %v4943_v26, %v4951_v42 }
 0x700   : > { %5012 = vrot.lane.b32.xlu1 %v11676_v36, %s11928_s19  ;;  %v11211_v47 = vcombine.low %v4926_v0, %v4926_v0  ;;  %v11677_v50 = vcombine.high %v4926_v0, %v4926_v0  ;;  %v11215_v29 = vcombine.low %v4933_v58, %v4933_v58  ;;  %v11679_v36 = vcombine.high %v4933_v58, %v4933_v58 }
 0x701   : > { %v13950_v0 = vrot.slane %v4952_v33, %v12011_v24  ;;  %v11681_v21 = vcombine.high %v4994_v7, %v4994_v7  ;;  %v5001_v59 = vrot.slane %v4987_v49, %v12011_v24  ;;  %v4967_v57 = vrot.slane %v4953_v25, %v12011_v24 }
 0x702   : > { %5007 = vrot.lane.b32.xlu0 %v11211_v47, %s11931_s22 }
 0x703   : > { %v11680_v32 = vcombine.high %v13950_v0, %v13950_v0  ;;  %v11222_v23 = vcombine.low %v5001_v59, %v5001_v59  ;;  %v11221_v44 = vcombine.low %v4967_v57, %v4967_v57  ;;  %v11683_v11 = vcombine.high %v5001_v59, %v5001_v59 }
 0x704   : > { %5022 = vrot.lane.b32.xlu1 %v11214_v34, %s11927_s18  ;;  %v11682_v47 = vcombine.high %v4967_v57, %v4967_v57 }
 0x706   : > { %5017 = vrot.lane.b32.xlu0 %v11677_v50, %s11930_s21 }
 0x708   : > { %5032 = vrot.lane.b32.xlu1 %v11678_v19, %s11929_s20 }
 0x70a   : > { %5027 = vrot.lane.b32.xlu0 %v11215_v29, %s11932_s23 }
 0x70c   : > { %5042 = vrot.lane.b32.xlu1 %v11218_v43, %s11931_s22 }
 0x70e   : > { %5037 = vrot.lane.b32.xlu0 %v11679_v36, %s11933_s24 }
 0x710   : > { %5052 = vrot.lane.b32.xlu1 %v11681_v21, %s11930_s21 }
 0x712   : > { %5047 = vrot.lane.b32.xlu0 %v11680_v32, %s11928_s19 }
 0x714   : > { %5062 = vrot.lane.b32.xlu1 %v11222_v23, %s11932_s23 }
 0x716   : > { %5057 = vrot.lane.b32.xlu0 %v11221_v44, %s11927_s18 }
 0x718   : > { %5072 = vrot.lane.b32.xlu1 %v11683_v11, %s11933_s24 }
 0x71a   : > { %5067 = vrot.lane.b32.xlu0 %v11682_v47, %s11929_s20 }
 0x71c   : > { %5106 = vrot.lane.b32.xlu1 %v13788_v17, %s11935_s26 }
 0x71e   : > { %5104 = vrot.lane.b32.xlu0 %v13750_v6, %s11935_s26 }
 0x720   : > { %5110 = vrot.lane.b32.xlu1 %v13792_v56, %s11935_s26 }
 0x722   : > { %5108 = vrot.lane.b32.xlu0 %v13754_v13, %s11935_s26 }
 0x724   : > { %5114 = vrot.lane.b32.xlu1 %v13796_v31, %s11935_s26 }
 0x726   : > { %5112 = vrot.lane.b32.xlu0 %v13758_v35, %s11935_s26 }
 0x772   : > { %v13975_v34 = vpop.permute.xlu1 %5012 }
 0x773   : > { %18035 = vst [vmem:[#allocation53_spill] sm:$0xff] %v13975_v34 }
 0x774   : > { %v13977_v26 = vpop.permute.xlu0 %5007 }
 0x776   : > { %v13979_v17 = vpop.permute.xlu1 %5022 }
 0x777   : > { %18036 = vst [vmem:[#allocation48_spill] sm:$0xff] %v13979_v17 }
 0x778   : > { %v13981_v42 = vpop.permute.xlu0 %5017 }
 0x779   : > { %18037 = vst [vmem:[#allocation56_spill] sm:$0xff] %v13981_v42 }
 0x77a   : > { %v13983_v6 = vpop.permute.xlu1 %5032 }
 0x77b   : > { %18038 = vst [vmem:[#allocation75_spill] sm:$0xff] %v13983_v6 }
 0x77c   : > { %v13985_v56 = vpop.permute.xlu0 %5027 }
 0x77d   : > { %18039 = vst [vmem:[#allocation78_spill] sm:$0xff] %v13985_v56 }
 0x77e   : > { %v13987_v50 = vpop.permute.xlu1 %5042 }
 0x780   : > { %v13989_v13 = vpop.permute.xlu0 %5037 }
 0x781   : > { %18040 = vst [vmem:[#allocation83_spill] sm:$0xff] %v13989_v13 }
 0x782   : > { %v13991_v31 = vpop.permute.xlu1 %5052 }
 0x783   : > { %18041 = vst [vmem:[#allocation47_spill] sm:$0xff] %v13991_v31 }
 0x784   : > { %v13993_v58 = vpop.permute.xlu0 %5047 }
 0x786   : > { %v13995_v35 = vpop.permute.xlu1 %5062 }
 0x787   : > { %18042 = vst [vmem:[#allocation55_spill] sm:$0xff] %v13995_v35 }
 0x788   : > { %v13997_v7 = vpop.permute.xlu0 %5057 }
 0x789   : > { %18043 = vst [vmem:[#allocation50_spill] sm:$0xff] %v13997_v7 }
 0x78a   : > { %v13999_v19 = vpop.permute.xlu1 %5072 }
 0x78b   : > { %18044 = vst [vmem:[#allocation99_spill] sm:$0xff] %v13999_v19 }
 0x78c   : > { %v14001_v33 = vpop.permute.xlu0 %5067 }
 0x78d   : > { %18045 = vst [vmem:[#allocation100_spill] sm:$0xff] %v14001_v33 }
 0x78e   : > { %v5107_v29 = vpop.permute.xlu1 %5106 }
 0x78f   : > { %v5129_v21 = vshrl.u32 %v5107_v29, 16 }
 0x790   : > { %v5105_v43 = vpop.permute.xlu0 %5104 }
 0x791   : > { %v5119_v57 = vshrl.u32 %v5105_v43, 16 }
 0x792   : > { %v5111_v49 = vpop.permute.xlu1 %5110 }
 0x793   : > { %v5130_v59 = vshrl.u32 %v5111_v49, 16 }
 0x794   : > { %v5109_v25 = vpop.permute.xlu0 %5108 }
 0x795   : > { %v5120_v36 = vshrl.u32 %v5109_v25, 16  ;;  %v5118_v23 = vpack.i.b16 %v5109_v25, %v5105_v43  ;;  %v5131_v35 = vpack.i.b16 %v5130_v59, %v5129_v21 }
 0x796   : > { %v5115_v32 = vpop.permute.xlu1 %5114 }
 0x797   : > { %v5134_v11 = vshrl.u32 %v5115_v32, 16  ;;  %v5121_v47 = vpack.i.b16 %v5120_v36, %v5119_v57  ;;  %v5143_v19 = vrot.slane %v5118_v23, %v11979_v8  ;;  %v5245_v36 = vrot.slane %v5131_v35, %v11979_v8 }
 0x798   : > { %v5113_v44 = vpop.permute.xlu0 %5112  ;;  %v5133_v57 = vpack.i.b16 %v17776_v30, %v5115_v32 }
 0x799   : > { %v5123_v13 = vpack.i.b16 %v17776_v30, %v5113_v44  ;;  %v5124_v6 = vshrl.u32 %v5113_v44, 16  ;;  %v5135_v17 = vpack.i.b16 %v17776_v30, %v5134_v11  ;;  %v5177_v7 = vrot.slane %v5121_v47, %v11979_v8  ;;  %v14024_v44 = vld [vmem:[%s11977_s17 + $0x48] sm:$0xf]  ;;  %v14027_v11 = vld [vmem:[%s11977_s17 + $0x54] sm:$0xf] }
 0x79a   : > { %v14030_v47 = vld [vmem:[%s11977_s17 + $0x60] sm:$0xf] }
 0x79b   : > { %v5125_v33 = vpack.i.b16 %v17776_v30, %v5124_v6  ;;  %v5151_v56 = vrot.slane %v5123_v13, %v11979_v8  ;;  %v5253_v21 = vrot.slane %v5135_v17, %v11979_v8 }
 0x79d   : > { %v5152_v31 = vcombine.low %v5143_v19, %v5151_v56  ;;  %v5153_v42 = vcombine.high %v5143_v19, %v5151_v56  ;;  %v5185_v43 = vrot.slane %v5125_v33, %v11979_v8  ;;  %v5128_v19 = vpack.i.b16 %v5111_v49, %v5107_v29 }
 0x79e   : > { %v5254_v23 = vcombine.low %v5245_v36, %v5253_v21 }
 0x79f   : > { %v5186_v25 = vcombine.low %v5177_v7, %v5185_v43  ;;  %v14013_v6 = vrot.slane %v5152_v31, %v12011_v24  ;;  %v5167_v56 = vrot.slane %v5153_v42, %v12011_v24  ;;  %v5187_v33 = vcombine.high %v5177_v7, %v5185_v43 }
 0x7a0   : > { %v5211_v31 = vrot.slane %v5128_v19, %v11979_v8  ;;  %v5219_v42 = vrot.slane %v5133_v57, %v11979_v8  ;;  %v5262_v49 = vrot.slane %v5254_v23, %v12011_v24  ;;  %v17647_v43 = vshrl.u32 %v14024_v44, 16 }
 0x7a1   : > { %18046 = vst [vmem:[#allocation101_spill] sm:$0xff] %v14013_v6  ;;  %v11684_v13 = vcombine.high %v14013_v6, %v14013_v6  ;;  %v5194_v59 = vrot.slane %v5186_v25, %v12011_v24  ;;  %v11228_v17 = vcombine.low %v5167_v56, %v5167_v56  ;;  %v5201_v29 = vrot.slane %v5187_v33, %v12011_v24 }
 0x7a2   : > { %v11686_v32 = vcombine.high %v5167_v56, %v5167_v56  ;;  %v17645_v25 = vshrl.u32 %v14027_v11, 16  ;;  %v5566_v19 = vpack.i.b16 %v14027_v11, %v14024_v44  ;;  %v5220_v33 = vcombine.low %v5211_v31, %v5219_v42 }
 0x7a3   : > { %5280 = vrot.lane.b32.xlu1 %v11684_v13, %s11928_s19  ;;  %v11225_v35 = vcombine.low %v5194_v59, %v5194_v59  ;;  %v11685_v7 = vcombine.high %v5194_v59, %v5194_v59  ;;  %v17646_v13 = vshrl.u32 %v14030_v47, 16  ;;  %v5571_v59 = vpack.i.b16 %v17776_v30, %v14030_v47 }
 0x7a4   : > { %v11229_v57 = vcombine.low %v5201_v29, %v5201_v29  ;;  %v11232_v56 = vcombine.low %v5262_v49, %v5262_v49  ;;  %v5255_v23 = vcombine.high %v5245_v36, %v5253_v21  ;;  %v5221_v34 = vcombine.high %v5211_v31, %v5219_v42  ;;  %v14060_v21 = vld [vmem:[%s11977_s17 + $0x4c] sm:$0xf] }
 0x7a5   : > { %5275 = vrot.lane.b32.xlu0 %v11225_v35, %s11931_s22  ;;  %v5569_v35 = vpack.i.b16 %v17645_v25, %v17647_v43  ;;  %v5599_v6 = vrot.slane %v5571_v59, %v11979_v8  ;;  %v14057_v36 = vrot.slane %v5220_v33, %v12011_v24  ;;  %v14066_v25 = vld [vmem:[%s11977_s17 + $0x64] sm:$0xf] }
 0x7a7   : > { %5290 = vrot.lane.b32.xlu1 %v11228_v17, %s11927_s18  ;;  %v5573_v17 = vpack.i.b16 %v17776_v30, %v17646_v13  ;;  %18047 = vst [vmem:[#allocation102_spill] sm:$0xff] %v14057_v36  ;;  %v11689_v13 = vcombine.high %v5262_v49, %v5262_v49  ;;  %v5625_v59 = vrot.slane %v5569_v35, %v11979_v8  ;;  %v17649_v49 = vshrl.u32 %v14066_v25, 16 }
 0x7a8   : > { %v11688_v33 = vcombine.high %v14057_v36, %v14057_v36 }
 0x7a9   : > { %5285 = vrot.lane.b32.xlu0 %v11685_v7, %s11930_s21  ;;  %v5591_v7 = vrot.slane %v5566_v19, %v11979_v8  ;;  %v5269_v19 = vrot.slane %v5255_v23, %v12011_v24  ;;  %v5633_v31 = vrot.slane %v5573_v17, %v11979_v8  ;;  %v5583_v36 = vpack.i.b16 %v17776_v30, %v17649_v49 }
 0x7ab   : > { %5300 = vrot.lane.b32.xlu1 %v11686_v32, %s11929_s20  ;;  %v11687_v32 = vcombine.high %v5201_v29, %v5201_v29  ;;  %v5600_v42 = vcombine.low %v5591_v7, %v5599_v6  ;;  %v11236_v23 = vcombine.low %v5269_v19, %v5269_v19  ;;  %v5634_v35 = vcombine.low %v5625_v59, %v5633_v31 }
 0x7ad   : > { %5295 = vrot.lane.b32.xlu0 %v11229_v57, %s11932_s23  ;;  %v14063_v57 = vld [vmem:[%s11977_s17 + $0x58] sm:$0xf]  ;;  %v14082_v29 = vrot.slane %v5600_v42, %v12011_v24 }
 0x7ae   : > { %v17650_v43 = vshrl.u32 %v14063_v57, 16 }
 0x7af   : > { %5310 = vrot.lane.b32.xlu1 %v11232_v56, %s11931_s22  ;;  %v5235_v56 = vrot.slane %v5221_v34, %v12011_v24  ;;  %18048 = vst [vmem:[#allocation103_spill] sm:$0xff] %v14082_v29 }
 0x7b1   : > { %5305 = vrot.lane.b32.xlu0 %v11687_v32, %s11933_s24  ;;  %v5601_v32 = vcombine.high %v5591_v7, %v5599_v6  ;;  %v11235_v17 = vcombine.low %v5235_v56, %v5235_v56  ;;  %v5642_v6 = vrot.slane %v5634_v35, %v12011_v24  ;;  %v11690_v42 = vcombine.high %v5235_v56, %v5235_v56 }
 0x7b2   : > { %v5581_v35 = vpack.i.b16 %v17776_v30, %v14066_v25 }
 0x7b3   : > { %5320 = vrot.lane.b32.xlu1 %v11689_v13, %s11930_s21  ;;  %v18049_v13 = vshrl.u32 %v14060_v21, 16  ;;  %v5615_v7 = vrot.slane %v5601_v32, %v12011_v24  ;;  %v11258_v49 = vcombine.low %v5642_v6, %v5642_v6 }
 0x7b5   : > { %5315 = vrot.lane.b32.xlu0 %v11688_v33, %s11928_s19  ;;  %v5579_v34 = vpack.i.b16 %v17650_v43, %v18049_v13  ;;  %v11691_v33 = vcombine.high %v5269_v19, %v5269_v19  ;;  %v5701_v13 = vrot.slane %v5583_v36, %v11979_v8  ;;  %v5635_v43 = vcombine.high %v5625_v59, %v5633_v31 }
 0x7b6   : > { %v5576_v19 = vpack.i.b16 %v14063_v57, %v14060_v21  ;;  %v11261_v56 = vcombine.low %v5615_v7, %v5615_v7  ;;  %v11694_v59 = vcombine.high %v5615_v7, %v5615_v7 }
 0x7b7   : > { %5330 = vrot.lane.b32.xlu1 %v11236_v23, %s11932_s23  ;;  %v11692_v23 = vcombine.high %v14082_v29, %v14082_v29  ;;  %v5693_v14 = vrot.slane %v5579_v34, %v11979_v8  ;;  %v5649_v34 = vrot.slane %v5635_v43, %v12011_v24 }
 0x7b8   : > { %v5659_v36 = vrot.slane %v5576_v19, %v11979_v8 }
 0x7b9   : > { %5325 = vrot.lane.b32.xlu0 %v11235_v17, %s11927_s18  ;;  %v5702_v32 = vcombine.low %v5693_v14, %v5701_v13  ;;  %v11693_v17 = vcombine.high %v5642_v6, %v5642_v6  ;;  %v11695_v43 = vcombine.high %v5649_v34, %v5649_v34 }
 0x7bb   : > { %5340 = vrot.lane.b32.xlu1 %v11691_v33, %s11933_s24  ;;  %v5667_v33 = vrot.slane %v5581_v35, %v11979_v8  ;;  %v5710_v31 = vrot.slane %v5702_v32, %v12011_v24 }
 0x7bd   : > { %5335 = vrot.lane.b32.xlu0 %v11690_v42, %s11929_s20  ;;  %v11262_v42 = vcombine.low %v5649_v34, %v5649_v34  ;;  %v11265_v29 = vcombine.low %v5710_v31, %v5710_v31  ;;  %v5669_v19 = vcombine.high %v5659_v36, %v5667_v33  ;;  %v11697_v7 = vcombine.high %v5710_v31, %v5710_v31 }
 0x7be   : > { %v3408_v34 = vsel %vm424_vm6, %v13328_v45, %v13374_v15 }
 0x7bf   : > { %5728 = vrot.lane.b32.xlu1 %v11692_v23, %s11928_s19  ;;  %v5668_v23 = vcombine.low %v5659_v36, %v5667_v33  ;;  %v5683_v32 = vrot.slane %v5669_v19, %v12011_v24  ;;  %v3423_v36 = vsel %vm424_vm6, %v13347_v18, %v13384_v46  ;;  %v3148_v18 = vsel %vm424_vm6, %v12906_v54, %v13302_v37  ;;  %v18057_v46 = vld [vmem:[#allocation98_spill] sm:$0xff]  ;;  %v18071_v19 = vld [vmem:[#allocation7_spill] sm:$0xff] }
 0x7c0   : > { %v3425_v33 = vsel %vm428_vm7, %v3423_v36, %v13390_v10  ;;  %v3150_v54 = vsel %vm428_vm7, %v3148_v18, %v13308_v1  ;;  %v3691_v10 = vsel %vm424_vm6, %v13497_v3, %v13590_v27  ;;  %v18067_v3 = vld [vmem:[#allocation18_spill] sm:$0xff]  ;;  %v18078_v36 = vld [vmem:[#allocation57_spill] sm:$0xff] }
 0x7c1   : > { %5723 = vrot.lane.b32.xlu0 %v11258_v49, %s11931_s22  ;;  %v5703_v49 = vcombine.high %v5693_v14, %v5701_v13  ;;  %v14115_v6 = vrot.slane %v5668_v23, %v12011_v24  ;;  %v11268_v13 = vcombine.low %v5683_v32, %v5683_v32  ;;  %v18083_v18 = vld [vmem:[#allocation38_spill] sm:$0xff] }
 0x7c3   : > { %5738 = vrot.lane.b32.xlu1 %v11261_v56, %s11927_s18  ;;  %18050 = vst [vmem:[#allocation104_spill] sm:$0xff] %v14115_v6  ;;  %v5717_v35 = vrot.slane %v5703_v49, %v12011_v24  ;;  %v11696_v56 = vcombine.high %v14115_v6, %v14115_v6 }
 0x7c5   : > { %5733 = vrot.lane.b32.xlu0 %v11693_v17, %s11930_s21  ;;  %v11269_v14 = vcombine.low %v5717_v35, %v5717_v35  ;;  %v11699_v17 = vcombine.high %v5717_v35, %v5717_v35 }
 0x7c7   : > { %5748 = vrot.lane.b32.xlu1 %v11694_v59, %s11929_s20  ;;  %v3410_v59 = vsel %vm428_vm7, %v3408_v34, %v13372_v61 }
 0x7c8   : > { %v3412_v31 = vsel %vm18051_vm11, %v3410_v59, %v13378_v62  ;;  %v3992_v62 = vsel %vm424_vm6, %v13524_v5, %v13608_v53  ;;  %vm18058_vm11 = vcmask 785408   ;;  %v18064_v5 = vld [vmem:[#allocation4_spill] sm:$0xff]  ;;  %v18065_v53 = vld [vmem:[#allocation37_spill] sm:$0xff] }
 0x7c9   : > { %5743 = vrot.lane.b32.xlu0 %v11262_v42, %s11932_s23  ;;  %v3427_v42 = vsel %vm18052_vm0, %v3425_v33, %v13388_v39  ;;  %v3414_v45 = vsel %vm18054_vm13, %v3412_v31, %v13376_v51  ;;  %v3132_v39 = vsel %vm424_vm6, %v18057_v46, %v13249_v4  ;;  %vm18059_vm0 = vmmov %vm18058_vm11  ;;  %v4007_v4 = vsel %vm424_vm6, %v13552_v48, %v13618_v38  ;;  %v18072_v48 = vld [vmem:[#allocation34_spill] sm:$0xff]  ;;  %v18080_v31 = vld [vmem:[#allocation13_spill] sm:$0xff] }
 0x7ca   : > { %v3429_v23 = vsel %vm18053_vm1, %v3427_v42, %v13394_v63  ;;  %v3416_v15 = vsel %vm18055_vm10, %v3414_v45, %v13382_v20  ;;  %vm18060_vm10 = vcmask 916480   ;;  %v18061_v63 = vld [vmem:[#allocation8_spill] sm:$0xff]  ;;  %vm18066_vm1 = vcmask 392192   ;;  %v18087_v46 = vld [vmem:[#allocation10_spill] sm:$0xff] }
 0x7cb   : > { %5758 = vrot.lane.b32.xlu1 %v11265_v29, %s11931_s22  ;;  %v11698_v29 = vcombine.high %v5683_v32, %v5683_v32  ;;  %v3431_v61 = vsel %vm18056_vm3, %v3429_v23, %v13392_v41  ;;  %v3418_v37 = vsel %vm18059_vm0, %v3416_v15, %v13380_v28  ;;  %v3994_v41 = vsel %vm428_vm7, %v3992_v62, %v13606_v9  ;;  %vm18063_vm3 = vmmov %vm18060_vm10  ;;  %v18069_v9 = vld [vmem:[#allocation21_spill] sm:$0xff] }
 0x7cc   : > { %v3433_v51 = vsel %vm18058_vm11, %v3431_v61, %v13398_v16  ;;  %v3420_v20 = vsel %vm18060_vm10, %v3418_v37, %v13386_v2  ;;  %v3134_v1 = vsel %vm428_vm7, %v3132_v39, %v18061_v63  ;;  %v18062_v16 = vld [vmem:[#allocation16_spill] sm:$0xff]  ;;  %v3693_v2 = vsel %vm428_vm7, %v3691_v10, %v18064_v5  ;;  %vm18068_vm13 = vmmov %vm18066_vm1  ;;  %v18081_v23 = vld [vmem:[#allocation9_spill] sm:$0xff] }
 0x7cd   : > { %5753 = vrot.lane.b32.xlu0 %v11695_v43, %s11933_s24  ;;  %v3435_v28 = vsel %vm18063_vm3, %v3433_v51, %v18062_v16  ;;  %v3996_v49 = vsel %vm18066_vm1, %v3994_v41, %v18065_v53  ;;  %v3136_v27 = vsel %vm18068_vm13, %v3134_v1, %v18067_v3  ;;  %vm18070_vm11 = vmmov %vm18066_vm1  ;;  %v3676_v38 = vsel %vm424_vm6, %v18072_v48, %v18071_v19  ;;  %v18085_v61 = vld [vmem:[#allocation15_spill] sm:$0xff]  ;;  %v18089_v51 = vld [vmem:[#allocation20_spill] sm:$0xff] }
 0x7ce   : > { %v3152_v43 = vsel %vm18070_vm11, %v3150_v54, %v18069_v9  ;;  %vm18074_vm0 = vcmask 523264   ;;  %v5375_v32 = vshll.u32 %v3420_v20, 16  ;;  %vm18077_vm10 = vmmov %vm18066_vm1  ;;  %v5382_v59 = vshll.u32 %v3435_v28, 16  ;;  %v18090_v37 = vld [vmem:[#allocation39_spill] sm:$0xff]  ;;  %v18092_v10 = vld [vmem:[#allocation14_spill] sm:$0xff] }
 0x7cf   : > { %5768 = vrot.lane.b32.xlu1 %v11697_v7, %s11930_s21  ;;  %v18073_v7 = vld [vmem:[#allocation31_spill] sm:$0xff]  ;;  %vm18079_vm3 = vmmov %vm18074_vm0  ;;  %v3678_v42 = vsel %vm428_vm7, %v3676_v38, %v18080_v31  ;;  %vm18084_vm13 = vcmask 654336   ;;  %v18094_v1 = vld [vmem:[#allocation44_spill] sm:$0xff] }
 0x7d0   : > { %v3154_v35 = vsel %vm18074_vm0, %v3152_v43, %v18073_v7  ;;  %v3998_v33 = vsel %vm18079_vm3, %v3996_v49, %v18078_v36  ;;  %vm18082_vm1 = vmmov %vm18074_vm0  ;;  %v3680_v54 = vsel %vm18077_vm10, %v3678_v42, %v18089_v51  ;;  %v14229_v63 = vrot.slane %v5375_v32, 7  ;;  %v18095_v5 = vld [vmem:[#allocation36_spill] sm:$0xff]  ;;  %v18099_v3 = vld [vmem:[#allocation49_spill] sm:$0xff] }
 0x7d1   : > { %5763 = vrot.lane.b32.xlu0 %v11696_v56, %s11928_s19  ;;  %v5372_v56 = vshrl.u32 %v3420_v20, 16  ;;  %v4000_v15 = vsel %vm18084_vm13, %v3998_v33, %v18083_v18  ;;  %vm18086_vm11 = vmmov %vm18074_vm0  ;;  %v18097_v53 = vld [vmem:[#allocation24_spill] sm:$0xff]  ;;  %v14242_v9 = vrot.slane %v5382_v59, 7  ;;  %v18100_v43 = vld [vmem:[#allocation11_spill] sm:$0xff] }
 0x7d2   : > { %v3138_v62 = vsel %vm18086_vm11, %v3136_v27, %v18085_v61  ;;  %vm18088_vm0 = vmmov %vm18084_vm13  ;;  %v4528_v27 = vsel %vm424_vm6, %v18099_v3, %v13867_v52  ;;  %v18102_v48 = vld [vmem:[#allocation25_spill] sm:$0xff]  ;;  %v18104_v7 = vld [vmem:[#allocation27_spill] sm:$0xff] }
 0x7d3   : > { %5778 = vrot.lane.b32.xlu1 %v11269_v14, %s11932_s23  ;;  %v18075_v14 = vld [vmem:[#allocation26_spill] sm:$0xff]  ;;  %v3156_v39 = vsel %vm18088_vm0, %v3154_v35, %v18087_v46  ;;  %vm18091_vm3 = vmmov %vm18077_vm10  ;;  %v4530_v42 = vsel %vm428_vm7, %v4528_v27, %v13865_v40  ;;  %v18116_v18 = vld [vmem:[#allocation12_spill] sm:$0xff]  ;;  %v5091_v46 = vsel %vm424_vm6, %v13950_v0, %v13987_v50 }
 0x7d4   : > { %v3158_v41 = vsel %vm18093_vm9, %v3156_v39, %v18092_v10  ;;  %vm18096_vm13 = vmmov %vm18088_vm0  ;;  %v18106_v32 = vld [vmem:[#allocation6_spill] sm:$0xff]  ;;  %v18119_v39 = vld [vmem:[#allocation32_spill] sm:$0xff]  ;;  %v5093_v51 = vsel %vm428_vm7, %v5091_v46, %v13993_v58 }
 0x7d5   : > { %5773 = vrot.lane.b32.xlu0 %v11268_v13, %s11927_s18  ;;  %v4009_v13 = vsel %vm428_vm7, %v4007_v4, %v18075_v14  ;;  %v14227_v4 = vrot.slane %v5372_v56, 6  ;;  %vm18098_vm11 = vmmov %vm18093_vm9  ;;  %v18114_v59 = vld [vmem:[#allocation66_spill] sm:$0xff]  ;;  %v18125_v50 = vld [vmem:[#allocation67_spill] sm:$0xff] }
 0x7d6   : > { %v4011_v20 = vsel %vm18091_vm3, %v4009_v13, %v18090_v37  ;;  %v4002_v49 = vsel %vm18098_vm11, %v4000_v15, %v18097_v53  ;;  %vm18101_vm9 = vmmov %vm18082_vm1  ;;  %v18108_v13 = vld [vmem:[#allocation33_spill] sm:$0xff]  ;;  %v18121_v37 = vld [vmem:[#allocation35_spill] sm:$0xff] }
 0x7d7   : > { %5788 = vrot.lane.b32.xlu1 %v11699_v17, %s11933_s24  ;;  %v5379_v17 = vshrl.u32 %v3435_v28, 16  ;;  %v4013_v16 = vsel %vm18082_vm1, %v4011_v20, %v18094_v1  ;;  %v3682_v19 = vsel %vm18101_vm9, %v3680_v54, %v18100_v43  ;;  %vm18103_vm0 = vmmov %vm18098_vm11  ;;  %v5378_v33 = vor.u32 %v14229_v63, %v14227_v4  ;;  %v18123_v20 = vld [vmem:[#allocation41_spill] sm:$0xff]  ;;  %v18131_v53 = vld [vmem:[#allocation56_spill] sm:$0xff] }
 0x7d8   : > { %vm18107_vm3 = vmmov %vm18096_vm13 }
 0x7d9   : > { %5783 = vrot.lane.b32.xlu0 %v11698_v29, %s11929_s20  ;;  %v18076_v29 = vld [vmem:[#allocation22_spill] sm:$0xff]  ;;  %v14233_v28 = vrot.slane %v5379_v17, 6  ;;  %v14256_v14 = vsel %vm18107_vm3, %v3138_v62, %v18106_v32  ;;  %v18110_v17 = vld [vmem:[#allocation23_spill] sm:$0xff]  ;;  %vm18113_vm11 = vmmov %vm18107_vm3 }
 0x7da   : > { %v3695_v34 = vsel %vm18077_vm10, %v3693_v2, %v18076_v29  ;;  %vm18105_vm10 = vcmask 916480   ;;  %vm18115_vm9 = vmmov %vm18103_vm0 }
 0x7db   : > { %5830 = vrot.lane.b32.xlu1 %v14060_v21, %s11934_s25  ;;  %v3697_v45 = vsel %vm18082_vm1, %v3695_v34, %v18081_v23  ;;  %v14250_v35 = vsel %vm18105_vm10, %v4002_v49, %v18104_v7  ;;  %vm18109_vm1 = vmmov %vm18105_vm10  ;;  %v18112_v34 = vld [vmem:[#allocation40_spill] sm:$0xff]  ;;  %v5076_v23 = vsel %vm424_vm6, %v13931_v22, %v13977_v26  ;;  %vm18118_vm10 = vcmask 392192  }
 0x7dc   : > { %v3699_v2 = vsel %vm18096_vm13, %v3697_v45, %v18095_v5  ;;  %v14260_v52 = vsel %vm18109_vm1, %v3158_v41, %v18108_v13  ;;  %vm18111_vm13 = vmmov %vm18107_vm3  ;;  %v4015_v36 = vsel %vm18113_vm11, %v4013_v16, %v18112_v34  ;;  %v5392_v61 = vshrl.u32 %v14250_v35, 16  ;;  %v18126_v41 = vld [vmem:[#allocation53_spill] sm:$0xff]  ;;  %v18129_v16 = vld [vmem:[#allocation54_spill] sm:$0xff] }
 0x7dd   : > { %5828 = vrot.lane.b32.xlu0 %v14024_v44, %s11934_s25  ;;  %v3701_v38 = vsel %vm18103_vm0, %v3699_v2, %v18102_v48  ;;  %v3684_v29 = vsel %vm18111_vm13, %v3682_v19, %v18110_v17  ;;  %v4017_v31 = vsel %vm18115_vm9, %v4015_v36, %v18114_v59  ;;  %vm18117_vm0 = vmmov %vm18109_vm1  ;;  %v4532_v62 = vsel %vm18118_vm10, %v4530_v42, %v13871_v12  ;;  %v18130_v5 = vld [vmem:[#allocation62_spill] sm:$0xff]  ;;  %v18133_v19 = vld [vmem:[#allocation64_spill] sm:$0xff] }
 0x7de   : > { %v14277_v15 = vsel %vm18117_vm0, %v3701_v38, %v18116_v18  ;;  %v5385_v40 = vor.u32 %v14242_v9, %v14233_v28  ;;  %vm18120_vm3 = vmmov %vm18115_vm9  ;;  %v4543_v26 = vsel %vm424_vm6, %v13784_v55, %v13877_v60  ;;  %v5078_v1 = vsel %vm428_vm7, %v5076_v23, %v18126_v41  ;;  %v18127_v60 = vld [vmem:[#allocation89_spill] sm:$0xff]  ;;  %v18135_v38 = vld [vmem:[#allocation47_spill] sm:$0xff] }
 0x7df   : > { %5834 = vrot.lane.b32.xlu1 %v14063_v57, %s11934_s25  ;;  %v3686_v22 = vsel %vm18120_vm3, %v3684_v29, %v18119_v39  ;;  %vm18122_vm1 = vmmov %vm18117_vm0  ;;  %v4545_v10 = vsel %vm428_vm7, %v4543_v26, %v18125_v50  ;;  %v5391_v55 = vrot.slane %v14277_v15, 5  ;;  %vm18128_vm11 = vcmask 523264   ;;  %v18137_v17 = vld [vmem:[#allocation96_spill] sm:$0xff]  ;;  %v18139_v34 = vld [vmem:[#allocation50_spill] sm:$0xff] }
 0x7e0   : > { %v14296_v12 = vsel %vm18122_vm1, %v3686_v22, %v18121_v37  ;;  %vm18124_vm13 = vmmov %vm18117_vm0  ;;  %v4534_v58 = vsel %vm18128_vm11, %v4532_v62, %v18127_v60  ;;  %v4823_v2 = vsel %vm424_vm6, %v18130_v5, %v18129_v16  ;;  %v14314_v27 = vrot.slane %v5392_v61, 3  ;;  %v18143_v23 = vld [vmem:[#allocation82_spill] sm:$0xff]  ;;  %v18145_v62 = vld [vmem:[#allocation73_spill] sm:$0xff] }
 0x7e1   : > { %5832 = vrot.lane.b32.xlu0 %v14027_v11, %s11934_s25  ;;  %v14300_v0 = vsel %vm18124_vm13, %v4017_v31, %v18123_v20  ;;  %vm18132_vm9 = vmmov %vm18118_vm10  ;;  %v5395_v43 = vshll.u32 %v14250_v35, 16  ;;  %vm18134_vm0 = vcmask 654336   ;;  %v18141_v31 = vld [vmem:[#allocation79_spill] sm:$0xff]  ;;  %v18144_v18 = vld [vmem:[#allocation42_spill] sm:$0xff]  ;;  %v4825_v46 = vsel %vm428_vm7, %v4823_v2, %v18145_v62 }
 0x7e2   : > { %v5080_v49 = vsel %vm18132_vm9, %v5078_v1, %v18131_v53  ;;  %v4536_v48 = vsel %vm18134_vm0, %v4534_v58, %v18133_v19  ;;  %vm18136_vm10 = vmmov %vm18132_vm9  ;;  %v5399_v32 = vshrl.u32 %v14300_v0, 16  ;;  %v5402_v13 = vshll.u32 %v14300_v0, 16  ;;  %v18146_v39 = vld [vmem:[#allocation48_spill] sm:$0xff]  ;;  %v18150_v20 = vld [vmem:[#allocation65_spill] sm:$0xff] }
 0x7e3   : > { %5838 = vrot.lane.b32.xlu1 %v14066_v25, %s11934_s25  ;;  %v5095_v7 = vsel %vm18136_vm10, %v5093_v51, %v18135_v38  ;;  %vm18138_vm3 = vmmov %vm18132_vm9  ;;  %v4808_v61 = vsel %vm424_vm6, %v18144_v18, %v18143_v23  ;;  %v18148_v26 = vld [vmem:[#allocation60_spill] sm:$0xff]  ;;  %v18149_v51 = vld [vmem:[#allocation85_spill] sm:$0xff]  ;;  %vm18153_vm9 = vcmask 785408   ;;  %vm18157_vm10 = vcmask 916480  }
 0x7e4   : > { %v4547_v29 = vsel %vm18138_vm3, %v4545_v10, %v18137_v17  ;;  %vm18140_vm1 = vmmov %vm18128_vm11  ;;  %v4260_v37 = vsel %vm424_vm6, %v18149_v51, %v18148_v26  ;;  %v18151_v50 = vld [vmem:[#allocation61_spill] sm:$0xff]  ;;  %v18152_v41 = vld [vmem:[#allocation52_spill] sm:$0xff]  ;;  %v18273_v9 = vshrl.u32 %v14030_v47, 16 }
 0x7e5   : > { %5836 = vrot.lane.b32.xlu0 %v14030_v47, %s11934_s25  ;;  %v5097_v36 = vsel %vm18140_vm1, %v5095_v7, %v18139_v34  ;;  %vm18142_vm13 = vmmov %vm18140_vm1  ;;  %v4275_v10 = vsel %vm424_vm6, %v18151_v50, %v18150_v20  ;;  %v4538_v1 = vsel %vm18153_vm9, %v4536_v48, %v18152_v41  ;;  %v18154_v60 = vld [vmem:[#allocation78_spill] sm:$0xff]  ;;  %v18155_v5 = vld [vmem:[#allocation72_spill] sm:$0xff] }
 0x7e6   : > { %v4549_v42 = vsel %vm18142_vm13, %v4547_v29, %v18141_v31  ;;  %vm18147_vm11 = vmmov %vm18140_vm1  ;;  %v4277_v2 = vsel %vm428_vm7, %v4275_v10, %v18155_v5  ;;  %v18156_v53 = vld [vmem:[#allocation92_spill] sm:$0xff]  ;;  %v18158_v19 = vld [vmem:[#allocation55_spill] sm:$0xff]  ;;  %vm18165_vm13 = vcmask 392192  }
 0x7e7   : > { %v5082_v22 = vsel %vm18147_vm11, %v5080_v49, %v18146_v39  ;;  %v14350_v49 = vsel %vm18157_vm10, %v4538_v1, %v18156_v53  ;;  %vm18159_vm3 = vmmov %vm18134_vm0  ;;  %v18160_v7 = vld [vmem:[#allocation101_spill] sm:$0xff]  ;;  %v18161_v29 = vld [vmem:[#allocation71_spill] sm:$0xff]  ;;  %vm18172_vm10 = vcmask 523264  }
 0x7e8   : > { %v5084_v58 = vsel %vm18134_vm0, %v5082_v22, %v18154_v60  ;;  %v5099_v38 = vsel %vm18159_vm3, %v5097_v36, %v18158_v19  ;;  %vm18162_vm1 = vmmov %vm18134_vm0  ;;  %v18163_v34 = vld [vmem:[#allocation74_spill] sm:$0xff]  ;;  %v18164_v23 = vld [vmem:[#allocation69_spill] sm:$0xff] }
 0x7e9   : > { %v4551_v48 = vsel %vm18162_vm1, %v4549_v42, %v18161_v29  ;;  %v4810_v31 = vsel %vm428_vm7, %v4808_v61, %v18163_v34  ;;  %v4827_v18 = vsel %vm18165_vm13, %v4825_v46, %v18164_v23  ;;  %v18166_v62 = vld [vmem:[#allocation100_spill] sm:$0xff]  ;;  %vm18167_vm11 = vmmov %vm18153_vm9  ;;  %v18168_v26 = vld [vmem:[#allocation70_spill] sm:$0xff]  ;;  %v14372_v61 = vrot.slane %v5399_v32, 3 }
 0x7ea   : > { %v5101_v39 = vsel %vm18167_vm11, %v5099_v38, %v18166_v62  ;;  %v4553_v51 = vsel %vm18153_vm9, %v4551_v48, %v18168_v26  ;;  %v18169_v36 = vld [vmem:[#allocation51_spill] sm:$0xff]  ;;  %vm18170_vm0 = vmmov %vm18165_vm13  ;;  %v18175_v41 = vld [vmem:[#allocation68_spill] sm:$0xff]  ;;  %vm18178_vm13 = vcmask 916480  }
 0x7eb   : > { %v4812_v20 = vsel %vm18170_vm0, %v4810_v31, %v18169_v36  ;;  %v18173_v42 = vld [vmem:[#allocation75_spill] sm:$0xff]  ;;  %vm18174_vm3 = vmmov %vm18153_vm9  ;;  %v18179_v19 = vld [vmem:[#allocation77_spill] sm:$0xff] }
 0x7ec   : > { %v5086_v10 = vsel %vm18174_vm3, %v5084_v58, %v18173_v42  ;;  %vm18176_vm1 = vmmov %vm18170_vm0  ;;  %v18177_v1 = vld [vmem:[#allocation83_spill] sm:$0xff]  ;;  %v4262_v38 = vsel %vm428_vm7, %v4260_v37, %v18179_v19  ;;  %v18186_v23 = vld [vmem:[#allocation88_spill] sm:$0xff] }
 0x7ed   : > { %v4279_v46 = vsel %vm18176_vm1, %v4277_v2, %v18175_v41  ;;  %v5088_v60 = vsel %vm18178_vm13, %v5086_v10, %v18177_v1  ;;  %vm18181_vm11 = vmmov %vm18172_vm10  ;;  %v18182_v48 = vld [vmem:[#allocation99_spill] sm:$0xff]  ;;  %v5412_v2 = vshll.u32 %v14350_v49, 16  ;;  %vm18189_vm1 = vcmask 654336   ;;  %v18190_v62 = vld [vmem:[#allocation45_spill] sm:$0xff] }
 0x7ee   : > { %vm18183_vm9 = vmmov %vm18178_vm13  ;;  %v18184_v34 = vld [vmem:[#allocation95_spill] sm:$0xff]  ;;  %v18192_v36 = vld [vmem:[#allocation97_spill] sm:$0xff] }
 0x7ef   : > { %v5103_v32 = vsel %vm18183_vm9, %v5101_v39, %v18182_v48  ;;  %vm18187_vm3 = vmmov %vm18181_vm11  ;;  %v18196_v1 = vld [vmem:[#allocation59_spill] sm:$0xff] }
 0x7f0   : > { %vm18191_vm13 = vmmov %vm18189_vm1  ;;  %v5437_v42 = vshrl.u32 %v5103_v32, 16  ;;  %v5440_v10 = vshll.u32 %v5103_v32, 16  ;;  %v18199_v48 = vld [vmem:[#allocation63_spill] sm:$0xff] }
 0x815   : > { %v14252_v56 = vpop.permute.xlu1 %5280 }
 0x817   : > { %v5276_v45 = vpop.permute.xlu0 %5275 }
 0x818   : > { %v5344_v17 = vsel %vm424_vm6, %v18160_v7, %v5276_v45  ;;  %v18171_v45 = vld [vmem:[#allocation76_spill] sm:$0xff] }
 0x819   : > { %v5291_v54 = vpop.permute.xlu1 %5290  ;;  %v4829_v50 = vsel %vm18172_vm10, %v4827_v18, %v18171_v45  ;;  %v5346_v5 = vsel %vm428_vm7, %v5344_v17, %v14252_v56  ;;  %v18180_v7 = vld [vmem:[#allocation80_spill] sm:$0xff]  ;;  %vm18185_vm10 = vmmov %vm18183_vm9  ;;  %v4814_v56 = vsel %vm18187_vm3, %v4812_v20, %v18186_v23  ;;  %v18188_v17 = vld [vmem:[#allocation81_spill] sm:$0xff]  ;;  %v5430_v45 = vshrl.u32 %v5088_v60, 16 }
 0x81a   : > { %v4281_v29 = vsel %vm18181_vm11, %v4279_v46, %v18180_v7  ;;  %v4555_v31 = vsel %vm18185_vm10, %v4553_v51, %v18184_v34  ;;  %v4831_v18 = vsel %vm18189_vm1, %v4829_v50, %v18188_v17  ;;  %v4816_v26 = vsel %vm18191_vm13, %v4814_v56, %v18190_v62  ;;  %vm18194_vm9 = vmmov %vm18187_vm3  ;;  %v18195_v51 = vld [vmem:[#allocation102_spill] sm:$0xff]  ;;  %v18207_v17 = vld [vmem:[#allocation84_spill] sm:$0xff] }
 0x81b   : > { %v5286_v3 = vpop.permute.xlu0 %5285  ;;  %vm18193_vm11 = vcmask 785408   ;;  %vm18200_vm3 = vcmask 392192   ;;  %v14409_v23 = vrot.slane %v5412_v2, 1  ;;  %v18205_v56 = vld [vmem:[#allocation94_spill] sm:$0xff] }
 0x81c   : > { %v5348_v58 = vsel %vm18170_vm0, %v5346_v5, %v5286_v3  ;;  %v4833_v39 = vsel %vm18193_vm11, %v4831_v18, %v18192_v36  ;;  %v5433_v3 = vshll.u32 %v5088_v60, 16  ;;  %vm18197_vm0 = vmmov %vm18189_vm1  ;;  %v5415_v5 = vshll.u32 %v4555_v31, 16  ;;  %v18201_v60 = vld [vmem:[#allocation46_spill] sm:$0xff] }
 0x81d   : > { %v5301_v59 = vpop.permute.xlu1 %5300  ;;  %v5350_v41 = vsel %vm18194_vm9, %v5348_v58, %v5291_v54  ;;  %v4283_v50 = vsel %vm18197_vm0, %v4281_v29, %v18196_v1  ;;  %vm18198_vm10 = vmmov %vm18197_vm0  ;;  %v4264_v34 = vsel %vm18200_vm3, %v4262_v38, %v18199_v48  ;;  %v18203_v54 = vld [vmem:[#allocation90_spill] sm:$0xff]  ;;  %v5432_v18 = vrot.slane %v5430_v45, 5  ;;  %v18215_v45 = vld [vmem:[#allocation43_spill] sm:$0xff] }
 0x81e   : > { %vm18202_vm1 = vmmov %vm18193_vm11  ;;  %vm18206_vm11 = vcmask 916480   ;;  %v5435_v62 = vrot.slane %v5433_v3, 6  ;;  %v5439_v36 = vrot.slane %v5437_v42, 5  ;;  %v5418_v42 = vshrl.u32 %v14350_v49, 16 }
 0x81f   : > { %v5296_v16 = vpop.permute.xlu0 %5295  ;;  %v4285_v32 = vsel %vm18202_vm1, %v4283_v50, %v18201_v60  ;;  %vm18204_vm13 = vmmov %vm18202_vm1 }
 0x820   : > { %v5352_v19 = vsel %vm18198_vm10, %v5350_v41, %v5296_v16  ;;  %vm18208_vm9 = vmmov %vm18206_vm11  ;;  %v5442_v41 = vrot.slane %v5440_v10, 6 }
 0x821   : > { %v5311_v22 = vpop.permute.xlu1 %5310  ;;  %v4835_v16 = vsel %vm18208_vm9, %v4833_v39, %v18207_v17  ;;  %vm18209_vm0 = vmmov %vm18202_vm1  ;;  %v5404_v39 = vrot.slane %v5402_v13, 4 }
 0x822   : > { %v5359_v46 = vsel %vm424_vm6, %v18195_v51, %v5311_v22  ;;  %v4818_v22 = vsel %vm18204_vm13, %v4816_v26, %v18203_v54  ;;  %v5354_v38 = vsel %vm18209_vm0, %v5352_v19, %v5301_v59  ;;  %vm18210_vm10 = vmmov %vm18200_vm3  ;;  %vm18212_vm3 = vcmask 523264   ;;  %v18217_v19 = vld [vmem:[#allocation86_spill] sm:$0xff] }
 0x823   : > { %v5306_v53 = vpop.permute.xlu0 %5305  ;;  %v4820_v29 = vsel %vm18206_vm11, %v4818_v22, %v18205_v56  ;;  %v5417_v26 = vrot.slane %v5415_v5, 1  ;;  %vm18213_vm1 = vmmov %vm18208_vm9  ;;  %vm18216_vm11 = vcmask 654336   ;;  %v5429_v48 = vrot.slane %v4835_v16, 7  ;;  %v18220_v22 = vld [vmem:[#allocation91_spill] sm:$0xff] }
 0x824   : > { %v5356_v1 = vsel %vm18213_vm1, %v5354_v38, %v5306_v53  ;;  %vm18214_vm13 = vmmov %vm18212_vm3  ;;  %v5428_v59 = vrot.slane %v4820_v29, 7  ;;  %v5436_v5 = vor.u32 %v5435_v62, %v5432_v18  ;;  %v5420_v53 = vor.u32 %v5418_v42, %v14409_v23 }
 0x825   : > { %v5321_v37 = vpop.permute.xlu1 %5320  ;;  %vm18218_vm9 = vmmov %vm18213_vm1  ;;  %v5443_v13 = vor.u32 %v5442_v41, %v5439_v36  ;;  %v5397_v54 = vrot.slane %v5395_v43, 4  ;;  %v5390_v38 = vrot.slane %v14296_v12, 5  ;;  %v6405_v36 = vrot.slane %v18273_v9, 4 }
 0x826   : > { %vm18219_vm0 = vmmov %vm18216_vm11 }
 0x827   : > { %v5316_v20 = vpop.permute.xlu0 %5315  ;;  %v5398_v12 = vor.u32 %v5397_v54, %v14314_v27 }
 0x828   : > { %v5361_v7 = vsel %vm428_vm7, %v5359_v46, %v5316_v20  ;;  %v18211_v46 = vld [vmem:[#allocation87_spill] sm:$0xff] }
 0x829   : > { %v5331_v58 = vpop.permute.xlu1 %5330  ;;  %v5363_v2 = vsel %vm18210_vm10, %v5361_v7, %v5321_v37  ;;  %v4266_v20 = vsel %vm18212_vm3, %v4264_v34, %v18211_v46  ;;  %v4287_v37 = vsel %vm18218_vm9, %v4285_v32, %v18217_v19  ;;  %v5421_v7 = vshrl.u32 %v4555_v31, 16  ;;  %v18223_v32 = vld [vmem:[#allocation93_spill] sm:$0xff] }
 0x82a   : > { %v4268_v3 = vsel %vm18216_vm11, %v4266_v20, %v18215_v45  ;;  %v5448_v34 = vrot.slane %v5356_v1, 4  ;;  %vm18221_vm10 = vcmask 785408   ;;  %v5405_v31 = vor.u32 %v5404_v39, %v14372_v61  ;;  %v18232_v1 = vld [vmem:[#allocation3_spill] sm:$0xff] }
 0x82b   : > { %v5326_v51 = vpop.permute.xlu0 %5325  ;;  %v4270_v49 = vsel %vm18221_vm10, %v4268_v3, %v18220_v22  ;;  %v5423_v56 = vor.u32 %v5421_v7, %v5417_v26  ;;  %vm18222_vm3 = vmmov %vm18221_vm10  ;;  %vm18226_vm11 = vcmask 1040384   ;;  %v5411_v62 = vrot.slane %v4287_v37, 2  ;;  %v18236_v3 = vld [vmem:[#allocation30_spill] sm:$0xff] }
 0x82c   : > { %v5365_v50 = vsel %vm18214_vm13, %v5363_v2, %v5326_v51  ;;  %v4272_v17 = vsel %vm18213_vm1, %v4270_v49, %v18223_v32  ;;  %vm18224_vm13 = vmmov %vm18213_vm1  ;;  %v5451_v20 = vsel %vm13077_vm15, %v14260_v52, %v5385_v40  ;;  %vm18235_vm1 = vcmask 1042432  }
 0x82d   : > { %v5341_v10 = vpop.permute.xlu1 %5340  ;;  %v5367_v0 = vsel %vm18219_vm0, %v5365_v50, %v5331_v58  ;;  %v5474_v58 = vsel %vm18226_vm11, %v5420_v53, %v5428_v59  ;;  %vm18227_vm9 = vmmov %vm18226_vm11  ;;  %vm18230_vm0 = vcmask 1043456   ;;  %v5458_v45 = vsel %vm18235_vm1, %v5451_v20, %v5391_v55 }
 0x82e   : > { %v5478_v43 = vsel %vm18227_vm9, %v5423_v56, %v5429_v48  ;;  %v5480_v41 = vsel %vm13229_vm14, %v5474_v58, %v5436_v5  ;;  %vm18233_vm10 = vmmov %vm18222_vm3  ;;  %v5410_v28 = vrot.slane %v4272_v17, 2  ;;  %v5461_v40 = vsel %vm13245_vm4, %v5458_v45, %v5405_v31 }
 0x82f   : > { %v5336_v60 = vpop.permute.xlu0 %5335  ;;  %v5481_v61 = vsel %vm13229_vm14, %v5478_v43, %v5443_v13  ;;  %v5484_v2 = vsel %vm18230_vm0, %v5480_v41, %v5448_v34  ;;  %v3142_v50 = vsel %vm18233_vm10, %v14256_v14, %v18232_v1  ;;  %vm18240_vm11 = vcmask 1045504   ;;  %vm18241_vm9 = vmmov %vm18235_vm1 }
 0x830   : > { %v5369_v29 = vsel %vm18222_vm3, %v5367_v0, %v5336_v60  ;;  %vm18234_vm3 = vmmov %vm18230_vm0  ;;  %v3144_v42 = vsel %vm18224_vm13, %v3142_v50, %v18236_v3  ;;  %v5490_v15 = vsel %vm13254_vm12, %v5484_v2, 0  ;;  %v5468_v55 = vsel %vm18240_vm11, %v5461_v40, %v5411_v62 }
 0x831   : > { %v5371_v16 = vsel %vm18224_vm13, %v5369_v29, %v5341_v10  ;;  %v14441_v18 = vpop.permute.xlu1 %5728  ;;  %v5450_v14 = vsel %vm13077_vm15, %v3144_v42, %v5378_v33  ;;  %v5471_v7 = vsel %vm13284_vm8, %v5468_v55, %v5417_v26  ;;  %vm18244_vm0 = vmmov %vm18240_vm11  ;;  %vm18515_vm10 = vcmask 523264  }
 0x832   : > { %18225 = vst [vmem:[#allocation98_spill] sm:$0xff] %v14441_v18  ;;  %v5449_v35 = vrot.slane %v5371_v16, 4  ;;  %v5454_v27 = vsel %vm18241_vm9, %v5450_v14, %v5390_v38  ;;  %vm18519_vm13 = vmmov %vm18515_vm10  ;;  %vm18521_vm9 = vcmask 654336  }
 0x833   : > { %v14448_v51 = vpop.permute.xlu0 %5723  ;;  %v5460_v4 = vsel %vm13245_vm4, %v5454_v27, %v5398_v12  ;;  %vm18520_vm11 = vmmov %vm18515_vm10 }
 0x834   : > { %18229 = vst [vmem:[#allocation8_spill] sm:$0xff] %v14448_v51  ;;  %v5488_v39 = vsel %vm18234_vm3, %v5481_v61, %v5449_v35  ;;  %v5464_v63 = vsel %vm18244_vm0, %v5460_v4, %v5410_v28  ;;  %vm18522_vm0 = vmmov %vm18521_vm9 }
 0x835   : > { %v5491_v59 = vsel %vm13254_vm12, %v5488_v39, 0  ;;  %v14473_v10 = vpop.permute.xlu1 %5738  ;;  %v5470_v48 = vsel %vm13284_vm8, %v5464_v63, %v14409_v23 }
 0x836   : > { %18239 = vst [vmem:[#allocation16_spill] sm:$0xff] %v14473_v10  ;;  %5504 = vmatprep.subr.bf16.mxu1 %v5491_v59 }
 0x837   : > { %v14484_v19 = vpop.permute.xlu0 %5733  ;;  %5505 = vmatpush1.bf16.msra.mxu1 %v5490_v15 }
 0x838   : > { %18242 = vst [vmem:[#allocation4_spill] sm:$0xff] %v14484_v19  ;;  %5506 = vmatprep.subr.bf16.mxu1 %v5471_v7 }
 0x839   : > { %v14491_v33 = vpop.permute.xlu1 %5748 }
 0x83a   : > { %18245 = vst [vmem:[#allocation37_spill] sm:$0xff] %v14491_v33 }
 0x83b   : > { %v14496_v5 = vpop.permute.xlu0 %5743  ;;  %5507 = vmatpush1.bf16.msra.mxu1 %v5470_v48 }
 0x83c   : > { %18246 = vst [vmem:[#allocation18_spill] sm:$0xff] %v14496_v5 }
 0x83d   : > { %v14498_v53 = vpop.permute.xlu1 %5758 }
 0x83e   : > { %18247 = vst [vmem:[#allocation21_spill] sm:$0xff] %v14498_v53 }
 0x83f   : > { %v14500_v34 = vpop.permute.xlu0 %5753 }
 0x840   : > { %18248 = vst [vmem:[#allocation7_spill] sm:$0xff] %v14500_v34 }
 0x841   : > { %v14502_v26 = vpop.permute.xlu1 %5768 }
 0x842   : > { %18249 = vst [vmem:[#allocation34_spill] sm:$0xff] %v14502_v26 }
 0x843   : > { %v14504_v60 = vpop.permute.xlu0 %5763 }
 0x844   : > { %18250 = vst [vmem:[#allocation31_spill] sm:$0xff] %v14504_v60 }
 0x845   : > { %v14506_v0 = vpop.permute.xlu1 %5778 }
 0x846   : > { %18251 = vst [vmem:[#allocation26_spill] sm:$0xff] %v14506_v0 }
 0x847   : > { %v14508_v13 = vpop.permute.xlu0 %5773 }
 0x848   : > { %18252 = vst [vmem:[#allocation22_spill] sm:$0xff] %v14508_v13 }
 0x849   : > { %v14510_v54 = vpop.permute.xlu1 %5788 }
 0x84a   : > { %18253 = vst [vmem:[#allocation57_spill] sm:$0xff] %v14510_v54 }
 0x84b   : > { %v14512_v22 = vpop.permute.xlu0 %5783 }
 0x84c   : > { %18254 = vst [vmem:[#allocation13_spill] sm:$0xff] %v14512_v22 }
 0x84d   : > { %v5831_v23 = vpop.permute.xlu1 %5830 }
 0x84e   : > { %v5853_v32 = vshrl.u32 %v5831_v23, 16 }
 0x84f   : > { %v5829_v49 = vpop.permute.xlu0 %5828 }
 0x850   : > { %v5843_v58 = vshrl.u32 %v5829_v49, 16 }
 0x851   : > { %v5835_v56 = vpop.permute.xlu1 %5834 }
 0x852   : > { %v5854_v17 = vshrl.u32 %v5835_v56, 16  ;;  %v5852_v7 = vpack.i.b16 %v5835_v56, %v5831_v23 }
 0x853   : > { %v5833_v29 = vpop.permute.xlu0 %5832 }
 0x854   : > { %v5844_v31 = vshrl.u32 %v5833_v29, 16  ;;  %v5842_v62 = vpack.i.b16 %v5833_v29, %v5829_v49  ;;  %v5855_v2 = vpack.i.b16 %v5854_v17, %v5853_v32 }
 0x855   : > { %v5839_v16 = vpop.permute.xlu1 %5838 }
 0x856   : > { %v5858_v43 = vshrl.u32 %v5839_v16, 16  ;;  %v5845_v41 = vpack.i.b16 %v5844_v31, %v5843_v58  ;;  %v5867_v20 = vrot.slane %v5842_v62, %v11979_v8  ;;  %v5969_v59 = vrot.slane %v5855_v2, %v11979_v8 }
 0x857   : > { %v5837_v35 = vpop.permute.xlu0 %5836  ;;  %v5857_v63 = vpack.i.b16 %v17776_v30, %v5839_v16  ;;  %v5935_v31 = vrot.slane %v5852_v7, %v11979_v8 }
 0x858   : > { %v5847_v38 = vpack.i.b16 %v17776_v30, %v5837_v35  ;;  %v5848_v61 = vshrl.u32 %v5837_v35, 16  ;;  %v5859_v12 = vpack.i.b16 %v17776_v30, %v5858_v43  ;;  %v5901_v39 = vrot.slane %v5845_v41, %v11979_v8 }
 0x859   : > { %v5943_v32 = vrot.slane %v5857_v63, %v11979_v8 }
 0x85a   : > { %v5849_v1 = vpack.i.b16 %v17776_v30, %v5848_v61  ;;  %v5875_v50 = vrot.slane %v5847_v38, %v11979_v8  ;;  %v5977_v40 = vrot.slane %v5859_v12, %v11979_v8 }
 0x85b   : > { %v5944_v16 = vcombine.low %v5935_v31, %v5943_v32  ;;  %v5945_v41 = vcombine.high %v5935_v31, %v5943_v32 }
 0x85c   : > { %v5876_v45 = vcombine.low %v5867_v20, %v5875_v50  ;;  %v5877_v3 = vcombine.high %v5867_v20, %v5875_v50  ;;  %v5909_v42 = vrot.slane %v5849_v1, %v11979_v8  ;;  %v5978_v48 = vcombine.low %v5969_v59, %v5977_v40 }
 0x85d   : > { %v5979_v43 = vcombine.high %v5969_v59, %v5977_v40  ;;  %v14543_v61 = vrot.slane %v5944_v16, %v12011_v24  ;;  %v5959_v50 = vrot.slane %v5945_v41, %v12011_v24 }
 0x85e   : > { %v5910_v28 = vcombine.low %v5901_v39, %v5909_v42  ;;  %v14524_v14 = vrot.slane %v5876_v45, %v12011_v24  ;;  %v5891_v27 = vrot.slane %v5877_v3, %v12011_v24  ;;  %v5911_v4 = vcombine.high %v5901_v39, %v5909_v42 }
 0x85f   : > { %v5986_v23 = vrot.slane %v5978_v48, %v12011_v24  ;;  %18256 = vst [vmem:[#allocation38_spill] sm:$0xff] %v14543_v61  ;;  %v5993_v20 = vrot.slane %v5979_v43, %v12011_v24  ;;  %v11704_v1 = vcombine.high %v14543_v61, %v14543_v61  ;;  %v11282_v39 = vcombine.low %v5959_v50, %v5959_v50 }
 0x860   : > { %18255 = vst [vmem:[#allocation9_spill] sm:$0xff] %v14524_v14  ;;  %v11700_v15 = vcombine.high %v14524_v14, %v14524_v14  ;;  %v5918_v55 = vrot.slane %v5910_v28, %v12011_v24  ;;  %v11275_v29 = vcombine.low %v5891_v27, %v5891_v27  ;;  %v5925_v58 = vrot.slane %v5911_v4, %v12011_v24 }
 0x861   : > { %v11702_v56 = vcombine.high %v5891_v27, %v5891_v27  ;;  %v11279_v35 = vcombine.low %v5986_v23, %v5986_v23  ;;  %v11705_v2 = vcombine.high %v5986_v23, %v5986_v23  ;;  %v11283_v12 = vcombine.low %v5993_v20, %v5993_v20 }
 0x862   : > { %6004 = vrot.lane.b32.xlu1 %v11700_v15, %s11928_s19  ;;  %v11272_v49 = vcombine.low %v5918_v55, %v5918_v55  ;;  %v11701_v17 = vcombine.high %v5918_v55, %v5918_v55  ;;  %v11276_v62 = vcombine.low %v5925_v58, %v5925_v58  ;;  %v11703_v38 = vcombine.high %v5925_v58, %v5925_v58 }
 0x863   : > { %v11707_v45 = vcombine.high %v5993_v20, %v5993_v20  ;;  %v11706_v3 = vcombine.high %v5959_v50, %v5959_v50  ;;  %v6366_v23 = vshll.u32 %v14024_v44, 16 }
 0x864   : > { %5999 = vrot.lane.b32.xlu0 %v11272_v49, %s11931_s22 }
 0x866   : > { %6014 = vrot.lane.b32.xlu1 %v11275_v29, %s11927_s18 }
 0x868   : > { %6009 = vrot.lane.b32.xlu0 %v11701_v17, %s11930_s21 }
 0x86a   : > { %6024 = vrot.lane.b32.xlu1 %v11702_v56, %s11929_s20  ;;  %v6386_v56 = vshll.u32 %v14027_v11, 16 }
 0x86c   : > { %6019 = vrot.lane.b32.xlu0 %v11276_v62, %s11932_s23 }
 0x86e   : > { %6034 = vrot.lane.b32.xlu1 %v11279_v35, %s11931_s22  ;;  %v6406_v35 = vshll.u32 %v14030_v47, 16 }
 0x870   : > { %6029 = vrot.lane.b32.xlu0 %v11703_v38, %s11933_s24  ;;  %v6408_v54 = vrot.slane %v6406_v35, 5  ;;  %v6391_v35 = vshll.u32 %v14063_v57, 16 }
 0x872   : > { %6044 = vrot.lane.b32.xlu1 %v11705_v2, %s11930_s21  ;;  %v18271_v2 = vshrl.u32 %v14024_v44, 16  ;;  %v6409_v9 = vor.u32 %v6408_v54, %v6405_v36 }
 0x874   : > { %6039 = vrot.lane.b32.xlu0 %v11704_v1, %s11928_s19  ;;  %v6365_v20 = vrot.slane %v18271_v2, 4 }
 0x876   : > { %6054 = vrot.lane.b32.xlu1 %v11283_v12, %s11932_s23  ;;  %v6368_v12 = vrot.slane %v6366_v23, 5 }
 0x878   : > { %6049 = vrot.lane.b32.xlu0 %v11282_v39, %s11927_s18  ;;  %v18272_v39 = vshrl.u32 %v14027_v11, 16 }
 0x87a   : > { %6064 = vrot.lane.b32.xlu1 %v11707_v45, %s11933_s24  ;;  %v6385_v45 = vrot.slane %v18272_v39, 4 }
 0x87c   : > { %6059 = vrot.lane.b32.xlu0 %v11706_v3, %s11929_s20  ;;  %v6388_v3 = vrot.slane %v6386_v56, 5  ;;  %v6369_v56 = vor.u32 %v6368_v12, %v6365_v20 }
 0x87e   : > { %6098 = vrot.lane.b32.xlu1 %v14060_v21, %s11935_s26 }
 0x880   : > { %6096 = vrot.lane.b32.xlu0 %v14024_v44, %s11935_s26 }
 0x882   : > { %6102 = vrot.lane.b32.xlu1 %v14063_v57, %s11935_s26 }
 0x884   : > { %6100 = vrot.lane.b32.xlu0 %v14027_v11, %s11935_s26 }
 0x886   : > { %6106 = vrot.lane.b32.xlu1 %v14066_v25, %s11935_s26 }
 0x888   : > { %6104 = vrot.lane.b32.xlu0 %v14030_v47, %s11935_s26 }
 0x8d4   : > { %v14568_v42 = vpop.permute.xlu1 %6004 }
 0x8d5   : > { %18257 = vst [vmem:[#allocation15_spill] sm:$0xff] %v14568_v42 }
 0x8d6   : > { %v14570_v28 = vpop.permute.xlu0 %5999 }
 0x8d7   : > { %18258 = vst [vmem:[#allocation10_spill] sm:$0xff] %v14570_v28 }
 0x8d8   : > { %v14572_v59 = vpop.permute.xlu1 %6014 }
 0x8d9   : > { %18259 = vst [vmem:[#allocation20_spill] sm:$0xff] %v14572_v59 }
 0x8da   : > { %v14574_v40 = vpop.permute.xlu0 %6009 }
 0x8db   : > { %18260 = vst [vmem:[#allocation39_spill] sm:$0xff] %v14574_v40 }
 0x8dc   : > { %v14576_v15 = vpop.permute.xlu1 %6024 }
 0x8dd   : > { %18261 = vst [vmem:[#allocation14_spill] sm:$0xff] %v14576_v15 }
 0x8de   : > { %v14578_v55 = vpop.permute.xlu0 %6019 }
 0x8df   : > { %18262 = vst [vmem:[#allocation44_spill] sm:$0xff] %v14578_v55 }
 0x8e0   : > { %v14580_v27 = vpop.permute.xlu1 %6034 }
 0x8e1   : > { %18263 = vst [vmem:[#allocation36_spill] sm:$0xff] %v14580_v27 }
 0x8e2   : > { %v14582_v7 = vpop.permute.xlu0 %6029 }
 0x8e3   : > { %18264 = vst [vmem:[#allocation24_spill] sm:$0xff] %v14582_v7 }
 0x8e4   : > { %v14584_v4 = vpop.permute.xlu1 %6044 }
 0x8e5   : > { %18265 = vst [vmem:[#allocation49_spill] sm:$0xff] %v14584_v4 }
 0x8e6   : > { %v14586_v63 = vpop.permute.xlu0 %6039 }
 0x8e7   : > { %18266 = vst [vmem:[#allocation11_spill] sm:$0xff] %v14586_v63 }
 0x8e8   : > { %v14588_v48 = vpop.permute.xlu1 %6054 }
 0x8e9   : > { %18267 = vst [vmem:[#allocation25_spill] sm:$0xff] %v14588_v48 }
 0x8ea   : > { %v14590_v49 = vpop.permute.xlu0 %6049 }
 0x8eb   : > { %18268 = vst [vmem:[#allocation27_spill] sm:$0xff] %v14590_v49 }
 0x8ec   : > { %v14592_v29 = vpop.permute.xlu1 %6064 }
 0x8ed   : > { %18269 = vst [vmem:[#allocation6_spill] sm:$0xff] %v14592_v29 }
 0x8ee   : > { %v14594_v31 = vpop.permute.xlu0 %6059 }
 0x8ef   : > { %18270 = vst [vmem:[#allocation33_spill] sm:$0xff] %v14594_v31 }
 0x8f0   : > { %v14596_v32 = vpop.permute.xlu1 %6098 }
 0x8f1   : > { %v6121_v43 = vshrl.u32 %v14596_v32, 16 }
 0x8f2   : > { %v6097_v17 = vpop.permute.xlu0 %6096 }
 0x8f3   : > { %v6111_v1 = vshrl.u32 %v6097_v17, 16 }
 0x8f4   : > { %v14598_v58 = vpop.permute.xlu1 %6102 }
 0x8f5   : > { %v6122_v41 = vshrl.u32 %v14598_v58, 16 }
 0x8f6   : > { %v6101_v16 = vpop.permute.xlu0 %6100 }
 0x8f7   : > { %v6112_v62 = vshrl.u32 %v6101_v16, 16  ;;  %v6110_v50 = vpack.i.b16 %v6101_v16, %v6097_v17  ;;  %v6123_v29 = vpack.i.b16 %v6122_v41, %v6121_v43  ;;  %v6389_v16 = vor.u32 %v6388_v3, %v6385_v45 }
 0x8f8   : > { %v6107_v38 = vpop.permute.xlu1 %6106  ;;  %v6411_v43 = vshll.u32 %v14066_v25, 16  ;;  %v6410_v45 = vrot.slane %v6409_v9, 4  ;;  %v6393_v3 = vrot.slane %v6391_v35, 5 }
 0x8f9   : > { %v6126_v52 = vshrl.u32 %v6107_v38, 16  ;;  %v6113_v34 = vpack.i.b16 %v6112_v62, %v6111_v1  ;;  %v6135_v44 = vrot.slane %v6110_v50, %v11979_v8  ;;  %v6371_v62 = vshll.u32 %v14060_v21, 16 }
 0x8fa   : > { %v6105_v37 = vpop.permute.xlu0 %6104  ;;  %v6390_v20 = vrot.slane %v6389_v16, 4  ;;  %v18275_v50 = vshrl.u32 %v14060_v21, 16  ;;  %v6125_v21 = vpack.i.b16 %v17776_v30, %v6107_v38  ;;  %v14643_v16 = vld [vmem:[%s11977_s17 + $0x50] sm:$0x1] }
 0x8fb   : > { %v6115_v33 = vpack.i.b16 %v17776_v30, %v6105_v37  ;;  %v6116_v46 = vshrl.u32 %v6105_v37, 16  ;;  %v6127_v11 = vpack.i.b16 %v17776_v30, %v6126_v52  ;;  %v6169_v2 = vrot.slane %v6113_v34, %v11979_v8 }
 0x8fc   : > { %v6370_v34 = vrot.slane %v6369_v56, 4  ;;  %v6376_v36 = vrot.slane %v18275_v50, 4  ;;  %v6373_v54 = vrot.slane %v6371_v62, 5  ;;  %v18276_v62 = vshrl.u32 %v14063_v57, 16 }
 0x8fd   : > { %v6117_v17 = vpack.i.b16 %v17776_v30, %v6116_v46  ;;  %v6143_v23 = vrot.slane %v6115_v33, %v11979_v8  ;;  %v14622_v33 = vrot.slane %v6123_v29, %v11979_v8  ;;  %v14625_v52 = vrot.slane %v6127_v11, %v11979_v8 }
 0x8fe   : > { %v6377_v35 = vor.u32 %v6376_v36, %v6373_v54  ;;  %v14652_v38 = vsel %vm12063_vm2, %v6370_v34, %v6373_v54  ;;  %v14663_v57 = vsel %vm12063_vm2, %v6390_v20, %v6393_v3  ;;  %v6211_v50 = vrot.slane %v6125_v21, %v11979_v8 }
 0x8ff   : > { %v6144_v37 = vcombine.low %v6135_v44, %v6143_v23  ;;  %v6145_v1 = vcombine.high %v6135_v44, %v6143_v23  ;;  %v6177_v47 = vrot.slane %v6117_v17, %v11979_v8  ;;  %v6413_v44 = vrot.slane %v6411_v43, 5 }
 0x900   : > { %v6120_v17 = vpack.i.b16 %v14598_v58, %v14596_v32  ;;  %v6246_v11 = vcombine.low %v14622_v33, %v14625_v52  ;;  %v6428_v21 = vshrl.u32 %v14663_v57, 16  ;;  %v6247_v7 = vcombine.high %v14622_v33, %v14625_v52 }
 0x901   : > { %v6178_v46 = vcombine.low %v6169_v2, %v6177_v47  ;;  %v14628_v41 = vrot.slane %v6144_v37, %v12011_v24  ;;  %v6159_v29 = vrot.slane %v6145_v1, %v12011_v24  ;;  %v6179_v23 = vcombine.high %v6169_v2, %v6177_v47  ;;  %v14655_v2 = vld [vmem:[%s11977_s17 + $0x5c] sm:$0x1]  ;;  %v14658_v47 = vld [vmem:[%s11977_s17 + $0x68] sm:$0x1] }
 0x902   : > { %v6396_v37 = vrot.slane %v18276_v62, 4  ;;  %v18277_v1 = vshrl.u32 %v14066_v25, 16  ;;  %v6203_v43 = vrot.slane %v6120_v17, %v11979_v8  ;;  %v14667_v25 = vsel %vm12063_vm2, %v6410_v45, %v6413_v44 }
 0x903   : > { %18274 = vst [vmem:[#allocation23_spill] sm:$0xff] %v14628_v41  ;;  %v11708_v12 = vcombine.high %v14628_v41, %v14628_v41  ;;  %v6186_v39 = vrot.slane %v6178_v46, %v12011_v24  ;;  %v11289_v32 = vcombine.low %v6159_v29, %v6159_v29  ;;  %v6380_v46 = vshll.u32 %v14643_v16, 16 }
 0x904   : > { %v6416_v9 = vrot.slane %v18277_v1, 4  ;;  %v6193_v36 = vrot.slane %v6179_v23, %v12011_v24  ;;  %v6254_v54 = vrot.slane %v6246_v11, %v12011_v24  ;;  %v6400_v20 = vshll.u32 %v14655_v2, 16 }
 0x905   : > { %6272 = vrot.lane.b32.xlu1 %v11708_v12, %s11928_s19  ;;  %v11286_v56 = vcombine.low %v6186_v39, %v6186_v39  ;;  %v11709_v34 = vcombine.high %v6186_v39, %v6186_v39  ;;  %v6397_v12 = vor.u32 %v6396_v37, %v6393_v3  ;;  %v11710_v45 = vcombine.high %v6159_v29, %v6159_v29 }
 0x906   : > { %v6417_v17 = vor.u32 %v6416_v9, %v6413_v44  ;;  %v6427_v62 = vshrl.u32 %v14652_v38, 16  ;;  %v6432_v1 = vshrl.u32 %v14667_v25, 16  ;;  %v6378_v39 = vrot.slane %v6377_v35, 4 }
 0x907   : > { %6267 = vrot.lane.b32.xlu0 %v11286_v56, %s11931_s22  ;;  %v6420_v56 = vshll.u32 %v14658_v47, 16  ;;  %v6426_v23 = vpack.i.b16 %v14663_v57, %v14652_v38  ;;  %v6431_v3 = vpack.i.b16 %v17776_v30, %v14667_v25  ;;  %v6212_v44 = vcombine.low %v6203_v43, %v6211_v50 }
 0x908   : > { %v11290_v11 = vcombine.low %v6193_v36, %v6193_v36  ;;  %v11293_v37 = vcombine.low %v6254_v54, %v6254_v54  ;;  %v6382_v9 = vrot.slane %v6380_v46, 5  ;;  %v6398_v29 = vrot.slane %v6397_v12, 4 }
 0x909   : > { %6282 = vrot.lane.b32.xlu1 %v11289_v32, %s11927_s18  ;;  %v6418_v32 = vrot.slane %v6417_v17, 4  ;;  %v6422_v41 = vrot.slane %v6420_v56, 5  ;;  %v6429_v35 = vpack.i.b16 %v6428_v21, %v6427_v62  ;;  %v6433_v22 = vpack.i.b16 %v17776_v30, %v6432_v1 }
 0x90a   : > { %v6451_v15 = vrot.slane %v6426_v23, %v11979_v8  ;;  %v6459_v0 = vrot.slane %v6431_v3, %v11979_v8  ;;  %v11711_v46 = vcombine.high %v6193_v36, %v6193_v36  ;;  %v14693_v12 = vrot.slane %v6212_v44, %v12011_v24 }
 0x90b   : > { %6277 = vrot.lane.b32.xlu0 %v11709_v34, %s11930_s21  ;;  %v6402_v34 = vrot.slane %v6400_v20, 5  ;;  %v14697_v17 = vsel %vm12063_vm2, %v6378_v39, %v6382_v9  ;;  %v14705_v52 = vsel %vm12063_vm2, %v6418_v32, %v6422_v41  ;;  %v6485_v36 = vrot.slane %v6429_v35, %v11979_v8 }
 0x90c   : > { %18279 = vst [vmem:[#allocation40_spill] sm:$0xff] %v14693_v12  ;;  %v6493_v20 = vrot.slane %v6433_v22, %v11979_v8  ;;  %v6460_v56 = vcombine.low %v6451_v15, %v6459_v0  ;;  %v6437_v62 = vshrl.u32 %v14697_v17, 16  ;;  %v11712_v21 = vcombine.high %v14693_v12, %v14693_v12 }
 0x90d   : > { %6292 = vrot.lane.b32.xlu1 %v11710_v45, %s11929_s20  ;;  %v6213_v45 = vcombine.high %v6203_v43, %v6211_v50  ;;  %v14701_v33 = vsel %vm12063_vm2, %v6398_v29, %v6402_v34  ;;  %v11713_v43 = vcombine.high %v6254_v54, %v6254_v54  ;;  %v6261_v50 = vrot.slane %v6247_v7, %v12011_v24 }
 0x90e   : > { %v6438_v1 = vshrl.u32 %v14701_v33, 16  ;;  %v6442_v54 = vshrl.u32 %v14705_v52, 16  ;;  %v6494_v39 = vcombine.low %v6485_v36, %v6493_v20  ;;  %v14720_v22 = vrot.slane %v6460_v56, %v12011_v24 }
 0x90f   : > { %6287 = vrot.lane.b32.xlu0 %v11290_v11, %s11932_s23  ;;  %v6227_v41 = vrot.slane %v6213_v45, %v12011_v24  ;;  %v11297_v7 = vcombine.low %v6261_v50, %v6261_v50  ;;  %v6461_v3 = vcombine.high %v6451_v15, %v6459_v0  ;;  %v6495_v45 = vcombine.high %v6485_v36, %v6493_v20 }
 0x910   : > { %18280 = vst [vmem:[#allocation66_spill] sm:$0xff] %v14720_v22  ;;  %v6439_v44 = vpack.i.b16 %v6438_v1, %v6437_v62  ;;  %v6443_v11 = vpack.i.b16 %v17776_v30, %v6442_v54  ;;  %v6502_v9 = vrot.slane %v6494_v39, %v12011_v24  ;;  %v11716_v29 = vcombine.high %v14720_v22, %v14720_v22 }
 0x911   : > { %6302 = vrot.lane.b32.xlu1 %v11293_v37, %s11931_s22  ;;  %v11296_v23 = vcombine.low %v6227_v41, %v6227_v41  ;;  %v11715_v37 = vcombine.high %v6261_v50, %v6261_v50  ;;  %v11714_v32 = vcombine.high %v6227_v41, %v6227_v41  ;;  %v6475_v34 = vrot.slane %v6461_v3, %v12011_v24 }
 0x912   : > { %v6553_v35 = vrot.slane %v6439_v44, %v11979_v8  ;;  %v6561_v0 = vrot.slane %v6443_v11, %v11979_v8  ;;  %v11300_v15 = vcombine.low %v6502_v9, %v6502_v9  ;;  %v11717_v62 = vcombine.high %v6502_v9, %v6502_v9 }
 0x913   : > { %6297 = vrot.lane.b32.xlu0 %v11711_v46, %s11933_s24  ;;  %v6436_v46 = vpack.i.b16 %v14701_v33, %v14697_v17  ;;  %v11303_v50 = vcombine.low %v6475_v34, %v6475_v34  ;;  %v11718_v36 = vcombine.high %v6475_v34, %v6475_v34 }
 0x914   : > { %v6562_v56 = vcombine.low %v6553_v35, %v6561_v0 }
 0x915   : > { %6312 = vrot.lane.b32.xlu1 %v11713_v43, %s11930_s21  ;;  %v6441_v43 = vpack.i.b16 %v17776_v30, %v14705_v52  ;;  %v6519_v41 = vrot.slane %v6436_v46, %v11979_v8 }
 0x916   : > { %v6570_v20 = vrot.slane %v6562_v56, %v12011_v24 }
 0x917   : > { %6307 = vrot.lane.b32.xlu0 %v11712_v21, %s11928_s19  ;;  %v6509_v21 = vrot.slane %v6495_v45, %v12011_v24  ;;  %v6527_v1 = vrot.slane %v6441_v43, %v11979_v8 }
 0x918   : > { %v11307_v39 = vcombine.low %v6570_v20, %v6570_v20 }
 0x919   : > { %6322 = vrot.lane.b32.xlu1 %v11297_v7, %s11932_s23  ;;  %v11304_v54 = vcombine.low %v6509_v21, %v6509_v21  ;;  %v6528_v7 = vcombine.low %v6519_v41, %v6527_v1  ;;  %v11719_v3 = vcombine.high %v6509_v21, %v6509_v21  ;;  %v6529_v11 = vcombine.high %v6519_v41, %v6527_v1 }
 0x91b   : > { %6317 = vrot.lane.b32.xlu0 %v11296_v23, %s11927_s18  ;;  %v6563_v23 = vcombine.high %v6553_v35, %v6561_v0  ;;  %v14748_v44 = vrot.slane %v6528_v7, %v12011_v24 }
 0x91d   : > { %6332 = vrot.lane.b32.xlu1 %v11715_v37, %s11933_s24  ;;  %18281 = vst [vmem:[#allocation12_spill] sm:$0xff] %v14748_v44  ;;  %v11721_v37 = vcombine.high %v6570_v20, %v6570_v20  ;;  %v6577_v9 = vrot.slane %v6563_v23, %v12011_v24 }
 0x91f   : > { %6327 = vrot.lane.b32.xlu0 %v11714_v32, %s11929_s20  ;;  %v6543_v32 = vrot.slane %v6529_v11, %v12011_v24  ;;  %v11311_v34 = vcombine.low %v6577_v9, %v6577_v9  ;;  %v11723_v0 = vcombine.high %v6577_v9, %v6577_v9 }
 0x921   : > { %6588 = vrot.lane.b32.xlu1 %v11716_v29, %s11928_s19  ;;  %v11720_v29 = vcombine.high %v14748_v44, %v14748_v44  ;;  %v11310_v35 = vcombine.low %v6543_v32, %v6543_v32 }
 0x923   : > { %6583 = vrot.lane.b32.xlu0 %v11300_v15, %s11931_s22  ;;  %v11722_v15 = vcombine.high %v6543_v32, %v6543_v32 }
 0x925   : > { %6598 = vrot.lane.b32.xlu1 %v11303_v50, %s11927_s18 }
 0x927   : > { %6593 = vrot.lane.b32.xlu0 %v11717_v62, %s11930_s21 }
 0x929   : > { %6608 = vrot.lane.b32.xlu1 %v11718_v36, %s11929_s20 }
 0x92b   : > { %6603 = vrot.lane.b32.xlu0 %v11304_v54, %s11932_s23 }
 0x92d   : > { %6618 = vrot.lane.b32.xlu1 %v11307_v39, %s11931_s22 }
 0x92f   : > { %6613 = vrot.lane.b32.xlu0 %v11719_v3, %s11933_s24 }
 0x931   : > { %6628 = vrot.lane.b32.xlu1 %v11721_v37, %s11930_s21 }
 0x933   : > { %6623 = vrot.lane.b32.xlu0 %v11720_v29, %s11928_s19 }
 0x935   : > { %6638 = vrot.lane.b32.xlu1 %v11311_v34, %s11932_s23 }
 0x937   : > { %6633 = vrot.lane.b32.xlu0 %v11310_v35, %s11927_s18 }
 0x939   : > { %6648 = vrot.lane.b32.xlu1 %v11723_v0, %s11933_s24 }
 0x93b   : > { %6643 = vrot.lane.b32.xlu0 %v11722_v15, %s11929_s20 }
 0x93d   : > { %6682 = vrot.lane.b32.xlu1 %v14697_v17, %s11934_s25 }
 0x93f   : > { %6680 = vrot.lane.b32.xlu0 %v14652_v38, %s11934_s25 }
 0x941   : > { %6686 = vrot.lane.b32.xlu1 %v14701_v33, %s11934_s25 }
 0x943   : > { %6684 = vrot.lane.b32.xlu0 %v14663_v57, %s11934_s25 }
 0x945   : > { %6690 = vrot.lane.b32.xlu1 %v14705_v52, %s11934_s25 }
 0x947   : > { %6688 = vrot.lane.b32.xlu0 %v14667_v25, %s11934_s25 }
 0x977   : > { %v14774_v45 = vpop.permute.xlu1 %6272 }
 0x978   : > { %18282 = vst [vmem:[#allocation32_spill] sm:$0xff] %v14774_v45 }
 0x979   : > { %v14776_v46 = vpop.permute.xlu0 %6267 }
 0x97a   : > { %18283 = vst [vmem:[#allocation35_spill] sm:$0xff] %v14776_v46 }
 0x97b   : > { %v14778_v43 = vpop.permute.xlu1 %6282 }
 0x97c   : > { %18284 = vst [vmem:[#allocation41_spill] sm:$0xff] %v14778_v43 }
 0x97d   : > { %v14780_v50 = vpop.permute.xlu0 %6277 }
 0x97e   : > { %18285 = vst [vmem:[#allocation67_spill] sm:$0xff] %v14780_v50 }
 0x97f   : > { %v14782_v56 = vpop.permute.xlu1 %6292 }
 0x980   : > { %18286 = vst [vmem:[#allocation53_spill] sm:$0xff] %v14782_v56 }
 0x981   : > { %v14784_v62 = vpop.permute.xlu0 %6287 }
 0x982   : > { %18287 = vst [vmem:[#allocation89_spill] sm:$0xff] %v14784_v62 }
 0x983   : > { %v14786_v21 = vpop.permute.xlu1 %6302 }
 0x984   : > { %18288 = vst [vmem:[#allocation54_spill] sm:$0xff] %v14786_v21 }
 0x985   : > { %v14788_v41 = vpop.permute.xlu0 %6297 }
 0x986   : > { %18289 = vst [vmem:[#allocation62_spill] sm:$0xff] %v14788_v41 }
 0x987   : > { %v14790_v1 = vpop.permute.xlu1 %6312 }
 0x988   : > { %18290 = vst [vmem:[#allocation56_spill] sm:$0xff] %v14790_v1 }
 0x989   : > { %v14792_v36 = vpop.permute.xlu0 %6307 }
 0x98a   : > { %18291 = vst [vmem:[#allocation64_spill] sm:$0xff] %v14792_v36 }
 0x98b   : > { %v14794_v20 = vpop.permute.xlu1 %6322 }
 0x98c   : > { %18292 = vst [vmem:[#allocation47_spill] sm:$0xff] %v14794_v20 }
 0x98d   : > { %v14796_v54 = vpop.permute.xlu0 %6317 }
 0x98e   : > { %18293 = vst [vmem:[#allocation96_spill] sm:$0xff] %v14796_v54 }
 0x98f   : > { %v14798_v7 = vpop.permute.xlu1 %6332 }
 0x990   : > { %18294 = vst [vmem:[#allocation50_spill] sm:$0xff] %v14798_v7 }
 0x991   : > { %v14800_v39 = vpop.permute.xlu0 %6327 }
 0x992   : > { %18295 = vst [vmem:[#allocation79_spill] sm:$0xff] %v14800_v39 }
 0x993   : > { %v14802_v23 = vpop.permute.xlu1 %6588 }
 0x994   : > { %18296 = vst [vmem:[#allocation82_spill] sm:$0xff] %v14802_v23 }
 0x995   : > { %v14804_v3 = vpop.permute.xlu0 %6583 }
 0x996   : > { %18297 = vst [vmem:[#allocation42_spill] sm:$0xff] %v14804_v3 }
 0x997   : > { %v14806_v11 = vpop.permute.xlu1 %6598 }
 0x998   : > { %18298 = vst [vmem:[#allocation73_spill] sm:$0xff] %v14806_v11 }
 0x999   : > { %v14808_v37 = vpop.permute.xlu0 %6593 }
 0x99a   : > { %18299 = vst [vmem:[#allocation48_spill] sm:$0xff] %v14808_v37 }
 0x99b   : > { %v14810_v9 = vpop.permute.xlu1 %6608 }
 0x99c   : > { %18300 = vst [vmem:[#allocation60_spill] sm:$0xff] %v14810_v9 }
 0x99d   : > { %v14812_v29 = vpop.permute.xlu0 %6603 }
 0x99e   : > { %18301 = vst [vmem:[#allocation85_spill] sm:$0xff] %v14812_v29 }
 0x99f   : > { %v14814_v32 = vpop.permute.xlu1 %6618 }
 0x9a0   : > { %18302 = vst [vmem:[#allocation65_spill] sm:$0xff] %v14814_v32 }
 0x9a1   : > { %v14816_v34 = vpop.permute.xlu0 %6613 }
 0x9a2   : > { %18303 = vst [vmem:[#allocation61_spill] sm:$0xff] %v14816_v34 }
 0x9a3   : > { %v14818_v35 = vpop.permute.xlu1 %6628 }
 0x9a4   : > { %18304 = vst [vmem:[#allocation52_spill] sm:$0xff] %v14818_v35 }
 0x9a5   : > { %v14820_v0 = vpop.permute.xlu0 %6623 }
 0x9a6   : > { %18305 = vst [vmem:[#allocation78_spill] sm:$0xff] %v14820_v0 }
 0x9a7   : > { %v14822_v15 = vpop.permute.xlu1 %6638 }
 0x9a8   : > { %18306 = vst [vmem:[#allocation72_spill] sm:$0xff] %v14822_v15 }
 0x9a9   : > { %v14824_v41 = vpop.permute.xlu0 %6633 }
 0x9aa   : > { %18307 = vst [vmem:[#allocation92_spill] sm:$0xff] %v14824_v41 }
 0x9ab   : > { %v14826_v7 = vpop.permute.xlu1 %6648 }
 0x9ac   : > { %18308 = vst [vmem:[#allocation55_spill] sm:$0xff] %v14826_v7 }
 0x9ad   : > { %v14828_v39 = vpop.permute.xlu0 %6643 }
 0x9ae   : > { %18309 = vst [vmem:[#allocation101_spill] sm:$0xff] %v14828_v39 }
 0x9af   : > { %v6683_v20 = vpop.permute.xlu1 %6682 }
 0x9b0   : > { %v6705_v56 = vshrl.u32 %v6683_v20, 16 }
 0x9b1   : > { %v6681_v9 = vpop.permute.xlu0 %6680 }
 0x9b2   : > { %v6695_v37 = vshrl.u32 %v6681_v9, 16 }
 0x9b3   : > { %v6687_v11 = vpop.permute.xlu1 %6686 }
 0x9b4   : > { %v6706_v1 = vshrl.u32 %v6687_v11, 16 }
 0x9b5   : > { %v6685_v29 = vpop.permute.xlu0 %6684 }
 0x9b6   : > { %v6696_v54 = vshrl.u32 %v6685_v29, 16  ;;  %v6694_v35 = vpack.i.b16 %v6685_v29, %v6681_v9  ;;  %v6707_v62 = vpack.i.b16 %v6706_v1, %v6705_v56 }
 0x9b7   : > { %v6691_v34 = vpop.permute.xlu1 %6690 }
 0x9b8   : > { %v6710_v0 = vshrl.u32 %v6691_v34, 16  ;;  %v6697_v36 = vpack.i.b16 %v6696_v54, %v6695_v37  ;;  %v6719_v7 = vrot.slane %v6694_v35, %v11979_v8  ;;  %v6821_v54 = vrot.slane %v6707_v62, %v11979_v8 }
 0x9b9   : > { %v6689_v23 = vpop.permute.xlu0 %6688 }
 0x9ba   : > { %v6699_v15 = vpack.i.b16 %v17776_v30, %v6689_v23  ;;  %v6700_v41 = vshrl.u32 %v6689_v23, 16  ;;  %v6711_v21 = vpack.i.b16 %v17776_v30, %v6710_v0  ;;  %v6753_v44 = vrot.slane %v6697_v36, %v11979_v8 }
 0x9bb   : > { %v6704_v36 = vpack.i.b16 %v6687_v11, %v6683_v20 }
 0x9bc   : > { %v6701_v39 = vpack.i.b16 %v17776_v30, %v6700_v41  ;;  %v6727_v12 = vrot.slane %v6699_v15, %v11979_v8  ;;  %v6829_v23 = vrot.slane %v6711_v21, %v11979_v8 }
 0x9be   : > { %v6728_v32 = vcombine.low %v6719_v7, %v6727_v12  ;;  %v6729_v22 = vcombine.high %v6719_v7, %v6727_v12  ;;  %v6761_v9 = vrot.slane %v6701_v39, %v11979_v8  ;;  %v6709_v12 = vpack.i.b16 %v17776_v30, %v6691_v34 }
 0x9bf   : > { %v6830_v7 = vcombine.low %v6821_v54, %v6829_v23  ;;  %v6787_v39 = vrot.slane %v6704_v36, %v11979_v8 }
 0x9c0   : > { %v6762_v29 = vcombine.low %v6753_v44, %v6761_v9  ;;  %v14840_v56 = vrot.slane %v6728_v32, %v12011_v24  ;;  %v6743_v37 = vrot.slane %v6729_v22, %v12011_v24  ;;  %v6763_v35 = vcombine.high %v6753_v44, %v6761_v9 }
 0x9c1   : > { %v6795_v32 = vrot.slane %v6709_v12, %v11979_v8  ;;  %v6838_v44 = vrot.slane %v6830_v7, %v12011_v24  ;;  %v6831_v9 = vcombine.high %v6821_v54, %v6829_v23 }
 0x9c2   : > { %18310 = vst [vmem:[#allocation71_spill] sm:$0xff] %v14840_v56  ;;  %v11724_v41 = vcombine.high %v14840_v56, %v14840_v56  ;;  %v6770_v1 = vrot.slane %v6762_v29, %v12011_v24  ;;  %v11317_v21 = vcombine.low %v6743_v37, %v6743_v37  ;;  %v6777_v22 = vrot.slane %v6763_v35, %v12011_v24 }
 0x9c3   : > { %v11726_v20 = vcombine.high %v6743_v37, %v6743_v37  ;;  %v6796_v11 = vcombine.low %v6787_v39, %v6795_v32  ;;  %v11321_v15 = vcombine.low %v6838_v44, %v6838_v44  ;;  %v6797_v29 = vcombine.high %v6787_v39, %v6795_v32 }
 0x9c4   : > { %6856 = vrot.lane.b32.xlu1 %v11724_v41, %s11928_s19  ;;  %v11314_v62 = vcombine.low %v6770_v1, %v6770_v1  ;;  %v11725_v0 = vcombine.high %v6770_v1, %v6770_v1  ;;  %v11318_v34 = vcombine.low %v6777_v22, %v6777_v22  ;;  %v11727_v41 = vcombine.high %v6777_v22, %v6777_v22 }
 0x9c5   : > { %v14859_v1 = vrot.slane %v6796_v11, %v12011_v24  ;;  %v11729_v36 = vcombine.high %v6838_v44, %v6838_v44  ;;  %v6845_v37 = vrot.slane %v6831_v9, %v12011_v24  ;;  %v6811_v54 = vrot.slane %v6797_v29, %v12011_v24 }
 0x9c6   : > { %6851 = vrot.lane.b32.xlu0 %v11314_v62, %s11931_s22 }
 0x9c7   : > { %18311 = vst [vmem:[#allocation74_spill] sm:$0xff] %v14859_v1  ;;  %v11728_v35 = vcombine.high %v14859_v1, %v14859_v1  ;;  %v11325_v23 = vcombine.low %v6845_v37, %v6845_v37  ;;  %v11324_v12 = vcombine.low %v6811_v54, %v6811_v54  ;;  %v11731_v7 = vcombine.high %v6845_v37, %v6845_v37 }
 0x9c8   : > { %6866 = vrot.lane.b32.xlu1 %v11317_v21, %s11927_s18  ;;  %v11730_v62 = vcombine.high %v6811_v54, %v6811_v54 }
 0x9ca   : > { %6861 = vrot.lane.b32.xlu0 %v11725_v0, %s11930_s21 }
 0x9cc   : > { %6876 = vrot.lane.b32.xlu1 %v11726_v20, %s11929_s20 }
 0x9ce   : > { %6871 = vrot.lane.b32.xlu0 %v11318_v34, %s11932_s23 }
 0x9d0   : > { %6886 = vrot.lane.b32.xlu1 %v11321_v15, %s11931_s22 }
 0x9d2   : > { %6881 = vrot.lane.b32.xlu0 %v11727_v41, %s11933_s24 }
 0x9d4   : > { %6896 = vrot.lane.b32.xlu1 %v11729_v36, %s11930_s21 }
 0x9d6   : > { %6891 = vrot.lane.b32.xlu0 %v11728_v35, %s11928_s19 }
 0x9d8   : > { %6906 = vrot.lane.b32.xlu1 %v11325_v23, %s11932_s23 }
 0x9da   : > { %6901 = vrot.lane.b32.xlu0 %v11324_v12, %s11927_s18 }
 0x9dc   : > { %6916 = vrot.lane.b32.xlu1 %v11731_v7, %s11933_s24 }
 0x9de   : > { %6911 = vrot.lane.b32.xlu0 %v11730_v62, %s11929_s20 }
 0x9e0   : > { %6950 = vrot.lane.b32.xlu1 %v14697_v17, %s11935_s26 }
 0x9e2   : > { %6948 = vrot.lane.b32.xlu0 %v14652_v38, %s11935_s26 }
 0x9e4   : > { %6954 = vrot.lane.b32.xlu1 %v14701_v33, %s11935_s26 }
 0x9e6   : > { %6952 = vrot.lane.b32.xlu0 %v14663_v57, %s11935_s26 }
 0x9e8   : > { %6958 = vrot.lane.b32.xlu1 %v14705_v52, %s11935_s26 }
 0x9ea   : > { %6956 = vrot.lane.b32.xlu0 %v14667_v25, %s11935_s26 }
 0xa36   : > { %v14884_v21 = vpop.permute.xlu1 %6856 }
 0xa37   : > { %18312 = vst [vmem:[#allocation69_spill] sm:$0xff] %v14884_v21 }
 0xa38   : > { %v14886_v39 = vpop.permute.xlu0 %6851 }
 0xa39   : > { %18313 = vst [vmem:[#allocation100_spill] sm:$0xff] %v14886_v39 }
 0xa3a   : > { %v14888_v17 = vpop.permute.xlu1 %6866 }
 0xa3b   : > { %18314 = vst [vmem:[#allocation70_spill] sm:$0xff] %v14888_v17 }
 0xa3c   : > { %v14890_v32 = vpop.permute.xlu0 %6861 }
 0xa3d   : > { %18315 = vst [vmem:[#allocation51_spill] sm:$0xff] %v14890_v32 }
 0xa3e   : > { %v14892_v38 = vpop.permute.xlu1 %6876 }
 0xa3f   : > { %18316 = vst [vmem:[#allocation76_spill] sm:$0xff] %v14892_v38 }
 0xa40   : > { %v14894_v33 = vpop.permute.xlu0 %6871 }
 0xa41   : > { %18317 = vst [vmem:[#allocation75_spill] sm:$0xff] %v14894_v33 }
 0xa42   : > { %v14896_v0 = vpop.permute.xlu1 %6886 }
 0xa43   : > { %18318 = vst [vmem:[#allocation68_spill] sm:$0xff] %v14896_v0  ;;  %v7238_v0 = vrot.slane %v14658_v47, 5 }
 0xa44   : > { %v14898_v57 = vpop.permute.xlu0 %6881 }
 0xa45   : > { %18319 = vst [vmem:[#allocation83_spill] sm:$0xff] %v14898_v57 }
 0xa46   : > { %v14900_v52 = vpop.permute.xlu1 %6896 }
 0xa47   : > { %18320 = vst [vmem:[#allocation77_spill] sm:$0xff] %v14900_v52  ;;  %v11891_v52 = vld [vmem:[%s11977_s17 + $0x60] sm:$0xf] }
 0xa48   : > { %v14902_v22 = vpop.permute.xlu0 %6891  ;;  %v11344_v56 = vrot.slane %v11891_v52, 9 }
 0xa49   : > { %18321 = vst [vmem:[#allocation80_spill] sm:$0xff] %v14902_v22 }
 0xa4a   : > { %v14904_v25 = vpop.permute.xlu1 %6906 }
 0xa4b   : > { %18322 = vst [vmem:[#allocation99_spill] sm:$0xff] %v14904_v25 }
 0xa4c   : > { %v14906_v44 = vpop.permute.xlu0 %6901 }
 0xa4d   : > { %18323 = vst [vmem:[#allocation95_spill] sm:$0xff] %v14906_v44 }
 0xa4e   : > { %v14908_v20 = vpop.permute.xlu1 %6916 }
 0xa4f   : > { %18324 = vst [vmem:[#allocation88_spill] sm:$0xff] %v14908_v20 }
 0xa50   : > { %v14910_v11 = vpop.permute.xlu0 %6911 }
 0xa51   : > { %18325 = vst [vmem:[#allocation81_spill] sm:$0xff] %v14910_v11 }
 0xa52   : > { %v6951_v34 = vpop.permute.xlu1 %6950 }
 0xa53   : > { %v6973_v36 = vshrl.u32 %v6951_v34, 16 }
 0xa54   : > { %v6949_v15 = vpop.permute.xlu0 %6948 }
 0xa55   : > { %v6963_v54 = vshrl.u32 %v6949_v15, 16 }
 0xa56   : > { %v6955_v9 = vpop.permute.xlu1 %6954 }
 0xa57   : > { %v6974_v37 = vshrl.u32 %v6955_v9, 16  ;;  %v6972_v21 = vpack.i.b16 %v6955_v9, %v6951_v34 }
 0xa58   : > { %v6953_v29 = vpop.permute.xlu0 %6952 }
 0xa59   : > { %v6964_v41 = vshrl.u32 %v6953_v29, 16  ;;  %v6962_v23 = vpack.i.b16 %v6953_v29, %v6949_v15  ;;  %v6975_v20 = vpack.i.b16 %v6974_v37, %v6973_v36  ;;  %v7055_v34 = vrot.slane %v6972_v21, %v11979_v8 }
 0xa5a   : > { %v6959_v35 = vpop.permute.xlu1 %6958 }
 0xa5b   : > { %v6978_v7 = vshrl.u32 %v6959_v35, 16  ;;  %v6965_v62 = vpack.i.b16 %v6964_v41, %v6963_v54  ;;  %v6987_v33 = vrot.slane %v6962_v23, %v11979_v8  ;;  %v14920_v36 = vrot.slane %v6975_v20, %v11979_v8  ;;  %v11889_v20 = vld [vmem:[%s11977_s17 + $0x54] sm:$0xf] }
 0xa5c   : > { %v6957_v12 = vpop.permute.xlu0 %6956 }
 0xa5d   : > { %v6967_v57 = vpack.i.b16 %v17776_v30, %v6957_v12  ;;  %v6968_v38 = vshrl.u32 %v6957_v12, 16  ;;  %v6979_v25 = vpack.i.b16 %v17776_v30, %v6978_v7  ;;  %v7021_v15 = vrot.slane %v6965_v62, %v11979_v8  ;;  %v11888_v12 = vld [vmem:[%s11977_s17 + $0x4c] sm:$0xf] }
 0xa5e   : > { %v7221_v7 = vrot.slane %v11888_v12, 5  ;;  %v11343_v62 = vrot.slane %v11889_v20, 9 }
 0xa5f   : > { %v6969_v17 = vpack.i.b16 %v17776_v30, %v6968_v38  ;;  %v6995_v11 = vrot.slane %v6967_v57, %v11979_v8  ;;  %v14923_v37 = vrot.slane %v6979_v25, %v11979_v8  ;;  %v11887_v57 = vld [vmem:[%s11977_s17 + $0x48] sm:$0xf]  ;;  %v11890_v25 = vld [vmem:[%s11977_s17 + $0x58] sm:$0xf] }
 0xa60   : > { %v11342_v23 = vrot.slane %v11887_v57, 9  ;;  %v7228_v44 = vrot.slane %v11890_v25, 5  ;;  %v6977_v57 = vpack.i.b16 %v17776_v30, %v6959_v35 }
 0xa61   : > { %v6996_v29 = vcombine.low %v6987_v33, %v6995_v11  ;;  %v6997_v32 = vcombine.high %v6987_v33, %v6995_v11  ;;  %v7029_v41 = vrot.slane %v6969_v17, %v11979_v8  ;;  %v7098_v12 = vcombine.low %v14920_v36, %v14923_v37 }
 0xa62   : > { %v14946_v20 = vsel %vm12529_vm5, %v11342_v23, %v7221_v7  ;;  %v14950_v52 = vsel %vm12529_vm5, %v11343_v62, %v7228_v44 }
 0xa63   : > { %v7030_v54 = vcombine.low %v7021_v15, %v7029_v41  ;;  %v14926_v38 = vrot.slane %v6996_v29, %v12011_v24  ;;  %v7011_v11 = vrot.slane %v6997_v32, %v12011_v24  ;;  %v11892_v29 = vld [vmem:[%s11977_s17 + $0x64] sm:$0xf]  ;;  %v7031_v22 = vcombine.high %v7021_v15, %v7029_v41 }
 0xa64   : > { %v7235_v39 = vrot.slane %v11892_v29, 5  ;;  %v7063_v15 = vrot.slane %v6977_v57, %v11979_v8  ;;  %v7106_v21 = vrot.slane %v7098_v12, %v12011_v24  ;;  %v7243_v25 = vshrl.u32 %v14946_v20, 16 }
 0xa65   : > { %18326 = vst [vmem:[#allocation45_spill] sm:$0xff] %v14926_v38  ;;  %v11732_v33 = vcombine.high %v14926_v38, %v14926_v38  ;;  %v7038_v17 = vrot.slane %v7030_v54, %v12011_v24  ;;  %v11331_v32 = vcombine.low %v7011_v11, %v7011_v11  ;;  %v11734_v23 = vcombine.high %v7011_v11, %v7011_v11 }
 0xa66   : > { %v14954_v35 = vsel %vm12529_vm5, %v11344_v56, %v7235_v39  ;;  %v7244_v62 = vshrl.u32 %v14950_v52, 16  ;;  %v7242_v56 = vpack.i.b16 %v14950_v52, %v14946_v20  ;;  %v11335_v12 = vcombine.low %v7106_v21, %v7106_v21 }
 0xa67   : > { %7124 = vrot.lane.b32.xlu1 %v11732_v33, %s11928_s19  ;;  %v11328_v54 = vcombine.low %v7038_v17, %v7038_v17  ;;  %v11733_v41 = vcombine.high %v7038_v17, %v7038_v17  ;;  %v7045_v33 = vrot.slane %v7031_v22, %v12011_v24  ;;  %v7248_v29 = vshrl.u32 %v14954_v35, 16 }
 0xa68   : > { %v7247_v57 = vpack.i.b16 %v17776_v30, %v14954_v35  ;;  %v7223_v17 = vrot.slane %v7221_v7, 4  ;;  %v7224_v11 = vrot.slane %v14643_v16, 5  ;;  %v7237_v1 = vrot.slane %v7235_v39, 4 }
 0xa69   : > { %7119 = vrot.lane.b32.xlu0 %v11328_v54, %s11931_s22  ;;  %v7064_v54 = vcombine.low %v7055_v34, %v7063_v15  ;;  %v11332_v22 = vcombine.low %v7045_v33, %v7045_v33  ;;  %v7099_v38 = vcombine.high %v14920_v36, %v14923_v37  ;;  %v7245_v3 = vpack.i.b16 %v7244_v62, %v7243_v25 }
 0xa6a   : > { %v7249_v7 = vpack.i.b16 %v17776_v30, %v7248_v29  ;;  %v7275_v43 = vrot.slane %v7247_v57, %v11979_v8  ;;  %v7065_v50 = vcombine.high %v7055_v34, %v7063_v15  ;;  %v11735_v16 = vcombine.high %v7045_v33, %v7045_v33 }
 0xa6b   : > { %7134 = vrot.lane.b32.xlu1 %v11331_v32, %s11927_s18  ;;  %v7230_v32 = vrot.slane %v7228_v44, 4  ;;  %v14984_v47 = vsel %vm12529_vm5, %v7223_v17, %v7224_v11  ;;  %v14992_v44 = vsel %vm12529_vm5, %v7237_v1, %v7238_v0  ;;  %v11737_v36 = vcombine.high %v7106_v21, %v7106_v21 }
 0xa6c   : > { %v7113_v37 = vrot.slane %v7099_v38, %v12011_v24  ;;  %v7301_v34 = vrot.slane %v7245_v3, %v11979_v8  ;;  %v7309_v15 = vrot.slane %v7249_v7, %v11979_v8  ;;  %v7253_v25 = vshrl.u32 %v14984_v47, 16 }
 0xa6d   : > { %7129 = vrot.lane.b32.xlu0 %v11733_v41, %s11930_s21  ;;  %v7231_v41 = vrot.slane %v14655_v2, 5  ;;  %v14980_v2 = vrot.slane %v7064_v54, %v12011_v24  ;;  %v7079_v1 = vrot.slane %v7065_v50, %v12011_v24  ;;  %v7258_v21 = vshrl.u32 %v14992_v44, 16 }
 0xa6e   : > { %v11339_v38 = vcombine.low %v7113_v37, %v7113_v37  ;;  %v7310_v3 = vcombine.low %v7301_v34, %v7309_v15  ;;  %v11739_v50 = vcombine.high %v7113_v37, %v7113_v37 }
 0xa6f   : > { %7144 = vrot.lane.b32.xlu1 %v11734_v23, %s11929_s20  ;;  %v7267_v23 = vrot.slane %v7242_v56, %v11979_v8  ;;  %18328 = vst [vmem:[#allocation97_spill] sm:$0xff] %v14980_v2  ;;  %v14988_v39 = vsel %vm12529_vm5, %v7230_v32, %v7231_v41  ;;  %v11736_v62 = vcombine.high %v14980_v2, %v14980_v2 }
 0xa70   : > { %v7254_v0 = vshrl.u32 %v14988_v39, 16  ;;  %v11338_v56 = vcombine.low %v7079_v1, %v7079_v1  ;;  %v7259_v54 = vpack.i.b16 %v17776_v30, %v7258_v21  ;;  %v11738_v11 = vcombine.high %v7079_v1, %v7079_v1 }
 0xa71   : > { %7139 = vrot.lane.b32.xlu0 %v11332_v22, %s11932_s23  ;;  %v7276_v33 = vcombine.low %v7267_v23, %v7275_v43  ;;  %v7277_v57 = vcombine.high %v7267_v23, %v7275_v43  ;;  %v7318_v22 = vrot.slane %v7310_v3, %v12011_v24  ;;  %v7311_v23 = vcombine.high %v7301_v34, %v7309_v15 }
 0xa72   : > { %v7255_v17 = vpack.i.b16 %v7254_v0, %v7253_v25  ;;  %v7377_v43 = vrot.slane %v7259_v54, %v11979_v8 }
 0xa73   : > { %7154 = vrot.lane.b32.xlu1 %v11335_v12, %s11931_s22  ;;  %v15007_v29 = vrot.slane %v7276_v33, %v12011_v24  ;;  %v7291_v32 = vrot.slane %v7277_v57, %v12011_v24  ;;  %v11345_v7 = vcombine.low %v7318_v22, %v7318_v22  ;;  %v11741_v25 = vcombine.high %v7318_v22, %v7318_v22 }
 0xa74   : > { %v7369_v41 = vrot.slane %v7255_v17, %v11979_v8 }
 0xa75   : > { %7149 = vrot.lane.b32.xlu0 %v11735_v16, %s11933_s24  ;;  %18329 = vst [vmem:[#allocation102_spill] sm:$0xff] %v15007_v29  ;;  %v11740_v12 = vcombine.high %v15007_v29, %v15007_v29  ;;  %v7252_v16 = vpack.i.b16 %v14988_v39, %v14984_v47  ;;  %v11348_v37 = vcombine.low %v7291_v32, %v7291_v32 }
 0xa76   : > { %v7378_v33 = vcombine.low %v7369_v41, %v7377_v43  ;;  %v11742_v34 = vcombine.high %v7291_v32, %v7291_v32 }
 0xa77   : > { %7164 = vrot.lane.b32.xlu1 %v11737_v36, %s11930_s21  ;;  %v7257_v36 = vpack.i.b16 %v17776_v30, %v14992_v44  ;;  %v7335_v1 = vrot.slane %v7252_v16, %v11979_v8  ;;  %v15065_v16 = vld [vmem:[%s11977_s17 + $0x70] sm:$0xf] }
 0xa78   : > { %v7386_v15 = vrot.slane %v7378_v33, %v12011_v24 }
 0xa79   : > { %7159 = vrot.lane.b32.xlu0 %v11736_v62, %s11928_s19  ;;  %v7325_v62 = vrot.slane %v7311_v23, %v12011_v24  ;;  %v7343_v0 = vrot.slane %v7257_v36, %v11979_v8  ;;  %v15062_v23 = vld [vmem:[%s11977_s17 + $0x7c] sm:$0xf] }
 0xa7a   : > { %v11352_v3 = vcombine.low %v7386_v15, %v7386_v15  ;;  %v17670_v36 = vshrl.u32 %v15062_v23, 16 }
 0xa7b   : > { %7174 = vrot.lane.b32.xlu1 %v11339_v38, %s11932_s23  ;;  %v11349_v21 = vcombine.low %v7325_v62, %v7325_v62  ;;  %v7344_v38 = vcombine.low %v7335_v1, %v7343_v0  ;;  %v11743_v57 = vcombine.high %v7325_v62, %v7325_v62  ;;  %v7345_v54 = vcombine.high %v7335_v1, %v7343_v0  ;;  %v15079_v62 = vld [vmem:[%s11977_s17 + $0x78] sm:$0xf] }
 0xa7c   : > { %v17667_v0 = vshrl.u32 %v15079_v62, 16  ;;  %v9046_v48 = vshll.u32 %v15079_v62, 16 }
 0xa7d   : > { %7169 = vrot.lane.b32.xlu0 %v11338_v56, %s11927_s18  ;;  %v7379_v56 = vcombine.high %v7369_v41, %v7377_v43  ;;  %v15035_v17 = vrot.slane %v7344_v38, %v12011_v24 }
 0xa7e   : > { %v9048_v49 = vrot.slane %v9046_v48, 5 }
 0xa7f   : > { %7184 = vrot.lane.b32.xlu1 %v11739_v50, %s11933_s24  ;;  %18330 = vst [vmem:[#allocation59_spill] sm:$0xff] %v15035_v17  ;;  %v11745_v50 = vcombine.high %v7386_v15, %v7386_v15  ;;  %v7393_v22 = vrot.slane %v7379_v56, %v12011_v24 }
 0xa81   : > { %7179 = vrot.lane.b32.xlu0 %v11738_v11, %s11929_s20  ;;  %v7359_v11 = vrot.slane %v7345_v54, %v12011_v24  ;;  %v11356_v32 = vcombine.low %v7393_v22, %v7393_v22  ;;  %v11747_v43 = vcombine.high %v7393_v22, %v7393_v22 }
 0xa83   : > { %7404 = vrot.lane.b32.xlu1 %v11740_v12, %s11928_s19  ;;  %v11744_v12 = vcombine.high %v15035_v17, %v15035_v17  ;;  %v11355_v41 = vcombine.low %v7359_v11, %v7359_v11 }
 0xa85   : > { %7399 = vrot.lane.b32.xlu0 %v11345_v7, %s11931_s22  ;;  %v11746_v7 = vcombine.high %v7359_v11, %v7359_v11 }
 0xa87   : > { %7414 = vrot.lane.b32.xlu1 %v11348_v37, %s11927_s18  ;;  %v17669_v37 = vshrl.u32 %v15065_v16, 16 }
 0xa89   : > { %7409 = vrot.lane.b32.xlu0 %v11741_v25, %s11930_s21  ;;  %v15073_v33 = vpack.i.b16 %v17670_v36, %v17669_v37  ;;  %v15076_v25 = vld [vmem:[%s11977_s17 + $0x6c] sm:$0xf] }
 0xa8a   : > { %v17668_v1 = vshrl.u32 %v15076_v25, 16 }
 0xa8b   : > { %7424 = vrot.lane.b32.xlu1 %v11742_v34, %s11929_s20 }
 0xa8c   : > { %v15087_v34 = vpack.i.b16 %v17667_v0, %v17668_v1 }
 0xa8d   : > { %7419 = vrot.lane.b32.xlu0 %v11349_v21, %s11932_s23 }
 0xa8e   : > { %18331 = vst [vmem:[#allocation63_spill] sm:$0xff] %v15087_v34 }
 0xa8f   : > { %7434 = vrot.lane.b32.xlu1 %v11352_v3, %s11931_s22 }
 0xa91   : > { %7429 = vrot.lane.b32.xlu0 %v11743_v57, %s11933_s24 }
 0xa93   : > { %7444 = vrot.lane.b32.xlu1 %v11745_v50, %s11930_s21 }
 0xa95   : > { %7439 = vrot.lane.b32.xlu0 %v11744_v12, %s11928_s19 }
 0xa97   : > { %7454 = vrot.lane.b32.xlu1 %v11356_v32, %s11932_s23 }
 0xa99   : > { %7449 = vrot.lane.b32.xlu0 %v11355_v41, %s11927_s18 }
 0xa9b   : > { %7464 = vrot.lane.b32.xlu1 %v11747_v43, %s11933_s24 }
 0xa9d   : > { %7459 = vrot.lane.b32.xlu0 %v11746_v7, %s11929_s20 }
 0xa9f   : > { %7498 = vrot.lane.b32.xlu1 %v14984_v47, %s11934_s25 }
 0xaa1   : > { %7496 = vrot.lane.b32.xlu0 %v14946_v20, %s11934_s25 }
 0xaa3   : > { %7502 = vrot.lane.b32.xlu1 %v14988_v39, %s11934_s25 }
 0xaa5   : > { %7500 = vrot.lane.b32.xlu0 %v14950_v52, %s11934_s25 }
 0xaa7   : > { %7506 = vrot.lane.b32.xlu1 %v14992_v44, %s11934_s25 }
 0xaa9   : > { %7504 = vrot.lane.b32.xlu0 %v14954_v35, %s11934_s25 }
 0xad9   : > { %v15089_v15 = vpop.permute.xlu1 %7124 }
 0xada   : > { %18332 = vst [vmem:[#allocation46_spill] sm:$0xff] %v15089_v15 }
 0xadb   : > { %v15091_v21 = vpop.permute.xlu0 %7119 }
 0xadc   : > { %18333 = vst [vmem:[#allocation90_spill] sm:$0xff] %v15091_v21 }
 0xadd   : > { %v15093_v38 = vpop.permute.xlu1 %7134 }
 0xade   : > { %18334 = vst [vmem:[#allocation94_spill] sm:$0xff] %v15093_v38 }
 0xadf   : > { %v15095_v3 = vpop.permute.xlu0 %7129 }
 0xae0   : > { %18335 = vst [vmem:[#allocation84_spill] sm:$0xff] %v15095_v3 }
 0xae1   : > { %v15097_v56 = vpop.permute.xlu1 %7144 }
 0xae2   : > { %18336 = vst [vmem:[#allocation87_spill] sm:$0xff] %v15097_v56 }
 0xae3   : > { %v15099_v57 = vpop.permute.xlu0 %7139 }
 0xae4   : > { %18337 = vst [vmem:[#allocation43_spill] sm:$0xff] %v15099_v57 }
 0xae5   : > { %v15101_v54 = vpop.permute.xlu1 %7154 }
 0xae6   : > { %18338 = vst [vmem:[#allocation86_spill] sm:$0xff] %v15101_v54 }
 0xae7   : > { %v15103_v50 = vpop.permute.xlu0 %7149 }
 0xae8   : > { %18339 = vst [vmem:[#allocation91_spill] sm:$0xff] %v15103_v50 }
 0xae9   : > { %v15105_v22 = vpop.permute.xlu1 %7164 }
 0xaea   : > { %18340 = vst [vmem:[#allocation93_spill] sm:$0xff] %v15105_v22 }
 0xaeb   : > { %v15107_v12 = vpop.permute.xlu0 %7159 }
 0xaec   : > { %18341 = vst [vmem:[#allocation3_spill] sm:$0xff] %v15107_v12 }
 0xaed   : > { %v15109_v11 = vpop.permute.xlu1 %7174 }
 0xaee   : > { %18342 = vst [vmem:[#allocation30_spill] sm:$0xff] %v15109_v11 }
 0xaef   : > { %v15111_v32 = vpop.permute.xlu0 %7169 }
 0xaf0   : > { %18343 = vst [vmem:[#allocation2_spill] sm:$0xff] %v15111_v32 }
 0xaf1   : > { %v15113_v41 = vpop.permute.xlu1 %7184 }
 0xaf2   : > { %18344 = vst [vmem:[#allocation58_spill] sm:$0xff] %v15113_v41 }
 0xaf3   : > { %v15115_v43 = vpop.permute.xlu0 %7179 }
 0xaf4   : > { %18345 = vst [vmem:[#allocation105_spill] sm:$0xff] %v15115_v43 }
 0xaf5   : > { %v15117_v7 = vpop.permute.xlu1 %7404 }
 0xaf6   : > { %18346 = vst [vmem:[#allocation106_spill] sm:$0xff] %v15117_v7 }
 0xaf7   : > { %v15119_v0 = vpop.permute.xlu0 %7399 }
 0xaf8   : > { %18347 = vst [vmem:[#allocation107_spill] sm:$0xff] %v15119_v0 }
 0xaf9   : > { %v15121_v1 = vpop.permute.xlu1 %7414 }
 0xafa   : > { %18348 = vst [vmem:[#allocation108_spill] sm:$0xff] %v15121_v1 }
 0xafb   : > { %v15123_v37 = vpop.permute.xlu0 %7409 }
 0xafc   : > { %18349 = vst [vmem:[#allocation109_spill] sm:$0xff] %v15123_v37 }
 0xafd   : > { %v15125_v36 = vpop.permute.xlu1 %7424 }
 0xafe   : > { %18350 = vst [vmem:[#allocation110_spill] sm:$0xff] %v15125_v36 }
 0xaff   : > { %v15127_v50 = vpop.permute.xlu0 %7419 }
 0xb00   : > { %18351 = vst [vmem:[#allocation111_spill] sm:$0xff] %v15127_v50 }
 0xb01   : > { %v15129_v56 = vpop.permute.xlu1 %7434 }
 0xb02   : > { %18352 = vst [vmem:[#allocation112_spill] sm:$0xff] %v15129_v56 }
 0xb03   : > { %v15131_v57 = vpop.permute.xlu0 %7429 }
 0xb04   : > { %18353 = vst [vmem:[#allocation113_spill] sm:$0xff] %v15131_v57 }
 0xb05   : > { %v15133_v38 = vpop.permute.xlu1 %7444 }
 0xb06   : > { %18354 = vst [vmem:[#allocation114_spill] sm:$0xff] %v15133_v38 }
 0xb07   : > { %v15135_v29 = vpop.permute.xlu0 %7439 }
 0xb08   : > { %18355 = vst [vmem:[#allocation115_spill] sm:$0xff] %v15135_v29 }
 0xb09   : > { %v15137_v3 = vpop.permute.xlu1 %7454 }
 0xb0a   : > { %18356 = vst [vmem:[#allocation116_spill] sm:$0xff] %v15137_v3 }
 0xb0b   : > { %v15139_v7 = vpop.permute.xlu0 %7449 }
 0xb0c   : > { %18357 = vst [vmem:[#allocation117_spill] sm:$0xff] %v15139_v7 }
 0xb0d   : > { %v15141_v0 = vpop.permute.xlu1 %7464 }
 0xb0e   : > { %18358 = vst [vmem:[#allocation118_spill] sm:$0xff] %v15141_v0 }
 0xb0f   : > { %v15143_v1 = vpop.permute.xlu0 %7459 }
 0xb10   : > { %18359 = vst [vmem:[#allocation119_spill] sm:$0xff] %v15143_v1 }
 0xb11   : > { %v7499_v37 = vpop.permute.xlu1 %7498 }
 0xb12   : > { %v7521_v45 = vshrl.u32 %v7499_v37, 16 }
 0xb13   : > { %v7497_v36 = vpop.permute.xlu0 %7496 }
 0xb14   : > { %v7511_v41 = vshrl.u32 %v7497_v36, 16 }
 0xb15   : > { %v7503_v15 = vpop.permute.xlu1 %7502 }
 0xb16   : > { %v7522_v29 = vshrl.u32 %v7503_v15, 16 }
 0xb17   : > { %v7501_v50 = vpop.permute.xlu0 %7500 }
 0xb18   : > { %v7512_v21 = vshrl.u32 %v7501_v50, 16  ;;  %v7510_v57 = vpack.i.b16 %v7501_v50, %v7497_v36  ;;  %v7523_v22 = vpack.i.b16 %v7522_v29, %v7521_v45 }
 0xb19   : > { %v7507_v43 = vpop.permute.xlu1 %7506 }
 0xb1a   : > { %v7513_v11 = vpack.i.b16 %v7512_v21, %v7511_v41  ;;  %v7526_v7 = vshrl.u32 %v7507_v43, 16  ;;  %v7535_v0 = vrot.slane %v7510_v57, %v11979_v8 }
 0xb1b   : > { %v7505_v38 = vpop.permute.xlu0 %7504 }
 0xb1c   : > { %v7515_v3 = vpack.i.b16 %v17776_v30, %v7505_v38  ;;  %v7516_v32 = vshrl.u32 %v7505_v38, 16  ;;  %v7569_v56 = vrot.slane %v7513_v11, %v11979_v8  ;;  %v7527_v21 = vpack.i.b16 %v17776_v30, %v7526_v7 }
 0xb1d   : > { %v7637_v38 = vrot.slane %v7523_v22, %v11979_v8 }
 0xb1e   : > { %v7517_v1 = vpack.i.b16 %v17776_v30, %v7516_v32  ;;  %v7543_v17 = vrot.slane %v7515_v3, %v11979_v8  ;;  %v7645_v57 = vrot.slane %v7527_v21, %v11979_v8 }
 0xb20   : > { %v7544_v46 = vcombine.low %v7535_v0, %v7543_v17  ;;  %v7545_v12 = vcombine.high %v7535_v0, %v7543_v17  ;;  %v7577_v36 = vrot.slane %v7517_v1, %v11979_v8  ;;  %v7520_v17 = vpack.i.b16 %v7503_v15, %v7499_v37 }
 0xb21   : > { %v7525_v1 = vpack.i.b16 %v17776_v30, %v7507_v43 }
 0xb22   : > { %v7578_v50 = vcombine.low %v7569_v56, %v7577_v36  ;;  %v15153_v41 = vrot.slane %v7544_v46, %v12011_v24  ;;  %v7559_v45 = vrot.slane %v7545_v12, %v12011_v24  ;;  %v7579_v29 = vcombine.high %v7569_v56, %v7577_v36 }
 0xb23   : > { %v7646_v46 = vcombine.low %v7637_v38, %v7645_v57  ;;  %v7603_v32 = vrot.slane %v7520_v17, %v11979_v8  ;;  %v7611_v7 = vrot.slane %v7525_v1, %v11979_v8  ;;  %v7647_v36 = vcombine.high %v7637_v38, %v7645_v57 }
 0xb24   : > { %18360 = vst [vmem:[#allocation120_spill] sm:$0xff] %v15153_v41  ;;  %v11748_v3 = vcombine.high %v15153_v41, %v15153_v41  ;;  %v7586_v11 = vrot.slane %v7578_v50, %v12011_v24  ;;  %v11362_v22 = vcombine.low %v7559_v45, %v7559_v45  ;;  %v7593_v12 = vrot.slane %v7579_v29, %v12011_v24 }
 0xb25   : > { %v11750_v37 = vcombine.high %v7559_v45, %v7559_v45  ;;  %v7654_v15 = vrot.slane %v7646_v46, %v12011_v24  ;;  %v7612_v56 = vcombine.low %v7603_v32, %v7611_v7  ;;  %v9051_v45 = vshll.u32 %v15062_v23, 16 }
 0xb26   : > { %7672 = vrot.lane.b32.xlu1 %v11748_v3, %s11928_s19  ;;  %v11359_v0 = vcombine.low %v7586_v11, %v7586_v11  ;;  %v11749_v21 = vcombine.high %v7586_v11, %v7586_v11  ;;  %v11363_v43 = vcombine.low %v7593_v12, %v7593_v12  ;;  %v7613_v3 = vcombine.high %v7603_v32, %v7611_v7  ;;  %v15189_v7 = vld [vmem:[%s11977_s17 + $0x88] sm:$0xf] }
 0xb27   : > { %v11366_v50 = vcombine.low %v7654_v15, %v7654_v15  ;;  %v11751_v11 = vcombine.high %v7593_v12, %v7593_v12  ;;  %v15174_v29 = vrot.slane %v7612_v56, %v12011_v24  ;;  %v11753_v17 = vcombine.high %v7654_v15, %v7654_v15  ;;  %v15197_v15 = vld [vmem:[%s11977_s17 + $0x84] sm:$0xf]  ;;  %v15200_v56 = vld [vmem:[%s11977_s17 + $0x74] sm:$0x1] }
 0xb28   : > { %7667 = vrot.lane.b32.xlu0 %v11359_v0, %s11931_s22  ;;  %v7661_v38 = vrot.slane %v7647_v36, %v12011_v24  ;;  %v9031_v57 = vshll.u32 %v15065_v16, 16  ;;  %v7627_v0 = vrot.slane %v7613_v3, %v12011_v24  ;;  %v15184_v46 = vrot.slane %v9051_v45, 5 }
 0xb29   : > { %18361 = vst [vmem:[#allocation121_spill] sm:$0xff] %v15174_v29  ;;  %v11752_v1 = vcombine.high %v15174_v29, %v15174_v29  ;;  %v9026_v12 = vshll.u32 %v15076_v25, 16  ;;  %v18363_v36 = vshrl.u32 %v15065_v16, 16  ;;  %v9066_v2 = vshll.u32 %v15197_v15, 16 }
 0xb2a   : > { %7682 = vrot.lane.b32.xlu1 %v11362_v22, %s11927_s18  ;;  %v18362_v22 = vshrl.u32 %v15062_v23, 16  ;;  %v11369_v45 = vcombine.low %v7627_v0, %v7627_v0  ;;  %v9040_v3 = vshll.u32 %v15200_v56, 16  ;;  %v18366_v55 = vshrl.u32 %v15197_v15, 16 }
 0xb2b   : > { %v9028_v29 = vrot.slane %v9026_v12, 5  ;;  %v11754_v12 = vcombine.high %v7627_v0, %v7627_v0 }
 0xb2c   : > { %7677 = vrot.lane.b32.xlu0 %v11749_v21, %s11930_s21  ;;  %v9056_v32 = vrot.slane %v18362_v22, 4  ;;  %v15192_v21 = vld [vmem:[%s11977_s17 + $0x80] sm:$0x1]  ;;  %v18364_v22 = vshrl.u32 %v15076_v25, 16 }
 0xb2e   : > { %7692 = vrot.lane.b32.xlu1 %v11750_v37, %s11929_s20  ;;  %v11370_v37 = vcombine.low %v7661_v38, %v7661_v38  ;;  %v9025_v41 = vrot.slane %v18364_v22, 4 }
 0xb30   : > { %7687 = vrot.lane.b32.xlu0 %v11363_v43, %s11932_s23  ;;  %v9033_v43 = vrot.slane %v9031_v57, 5  ;;  %v9029_v10 = vor.u32 %v9028_v29, %v9025_v41 }
 0xb32   : > { %7702 = vrot.lane.b32.xlu1 %v11366_v50, %s11931_s22  ;;  %v9036_v50 = vrot.slane %v18363_v36, 4  ;;  %v11755_v36 = vcombine.high %v7661_v38, %v7661_v38  ;;  %v9068_v38 = vrot.slane %v9066_v2, 5  ;;  %v9030_v29 = vrot.slane %v9029_v10, 4 }
 0xb33   : > { %v9888_v10 = vrot.slane %v15062_v23, 5 }
 0xb34   : > { %7697 = vrot.lane.b32.xlu0 %v11751_v11, %s11933_s24  ;;  %v9071_v11 = vshll.u32 %v15189_v7, 16  ;;  %v9037_v54 = vor.u32 %v9036_v50, %v9033_v43  ;;  %v9042_v50 = vrot.slane %v9040_v3, 5  ;;  %v15241_v48 = vsel %vm12063_vm2, %v9030_v29, %v9033_v43 }
 0xb35   : > { %v9891_v43 = vrot.slane %v15192_v21, 5 }
 0xb36   : > { %7712 = vrot.lane.b32.xlu1 %v11753_v17, %s11930_s21  ;;  %v9057_v17 = vor.u32 %v9056_v32, %v15184_v46  ;;  %v9073_v31 = vrot.slane %v9071_v11, 5  ;;  %v18365_v32 = vshrl.u32 %v15189_v7, 16  ;;  %v9038_v11 = vrot.slane %v9037_v54, 4 }
 0xb38   : > { %7707 = vrot.lane.b32.xlu0 %v11752_v1, %s11928_s19  ;;  %v9060_v1 = vshll.u32 %v15192_v21, 16  ;;  %v9076_v5 = vrot.slane %v18365_v32, 4  ;;  %v9058_v57 = vrot.slane %v9057_v17, 4  ;;  %v18367_v32 = vshrl.u32 %v15079_v62, 16 }
 0xb39   : > { %v15235_v2 = vsel %vm12063_vm2, %v9038_v11, %v9042_v50  ;;  %v11490_v21 = vrot.slane %v15076_v25, 9 }
 0xb3a   : > { %7722 = vrot.lane.b32.xlu1 %v11370_v37, %s11932_s23  ;;  %v11405_v37 = vld [vmem:[%s11977_s17 + $0x8c] sm:$0x1]  ;;  %v9062_v22 = vrot.slane %v9060_v1, 5  ;;  %v9077_v59 = vor.u32 %v9076_v5, %v9073_v31  ;;  %v9045_v26 = vrot.slane %v18367_v32, 4  ;;  %v9884_v1 = vrot.slane %v15200_v56, 5 }
 0xb3b   : > { %v9080_v13 = vshll.u32 %v11405_v37, 16  ;;  %v9898_v56 = vrot.slane %v11405_v37, 5 }
 0xb3c   : > { %7717 = vrot.lane.b32.xlu0 %v11369_v45, %s11927_s18  ;;  %v9065_v45 = vrot.slane %v18366_v55, 4  ;;  %v15229_v41 = vsel %vm12063_vm2, %v9058_v57, %v9062_v22  ;;  %v9078_v5 = vrot.slane %v9077_v59, 4  ;;  %v9049_v0 = vor.u32 %v9048_v49, %v9045_v26 }
 0xb3d   : > { %v9082_v54 = vrot.slane %v9080_v13, 5  ;;  %v9881_v26 = vrot.slane %v15065_v16, 5  ;;  %v9890_v49 = vrot.slane %v9888_v10, 4  ;;  %v9895_v57 = vrot.slane %v15189_v7, 5 }
 0xb3e   : > { %7732 = vrot.lane.b32.xlu1 %v11755_v36, %s11933_s24  ;;  %v9069_v55 = vor.u32 %v9068_v38, %v9065_v45  ;;  %v9050_v59 = vrot.slane %v9049_v0, 4  ;;  %v11491_v45 = vrot.slane %v15079_v62, 9 }
 0xb3f   : > { %v9883_v17 = vrot.slane %v9881_v26, 4  ;;  %v15284_v36 = vsel %vm12529_vm5, %v11490_v21, %v9881_v26 }
 0xb40   : > { %7727 = vrot.lane.b32.xlu0 %v11754_v12, %s11929_s20  ;;  %v15263_v3 = vsel %vm12063_vm2, %v9050_v59, %v15184_v46  ;;  %v9897_v46 = vrot.slane %v9895_v57, 4  ;;  %v11492_v12 = vrot.slane %v15197_v15, 9  ;;  %v15304_v38 = vsel %vm12529_vm5, %v11491_v45, %v9888_v10 }
 0xb41   : > { %v15278_v58 = vsel %vm12529_vm5, %v9883_v17, %v9884_v1 }
 0xb42   : > { %7766 = vrot.lane.b32.xlu1 %v14984_v47, %s11935_s26  ;;  %v9070_v47 = vrot.slane %v9069_v55, 4  ;;  %v15291_v22 = vsel %vm12529_vm5, %v9897_v46, %v9898_v56  ;;  %v15298_v37 = vsel %vm12529_vm5, %v11492_v12, %v9895_v57 }
 0xb44   : > { %7764 = vrot.lane.b32.xlu0 %v14946_v20, %s11935_s26  ;;  %v15248_v20 = vsel %vm12063_vm2, %v9078_v5, %v9082_v54  ;;  %v15255_v13 = vsel %vm12063_vm2, %v9070_v47, %v9073_v31  ;;  %v15271_v31 = vsel %vm12529_vm5, %v9890_v49, %v9891_v43  ;;  %vm18512_vm2 = vcmask 392192  }
 0xb45   : > { %vm18514_vm5 = vmmov %vm18512_vm2 }
 0xb46   : > { %9614 = vrot.lane.b32.xlu1 %v15229_v41, %s11935_s26  ;;  %vm18516_vm3 = vmmov %vm18512_vm2 }
 0xb47   : > { %vm18518_vm1 = vmmov %vm18512_vm2 }
 0xb48   : > { %9610 = vrot.lane.b32.xlu0 %v15235_v2, %s11935_s26 }
 0xb4a   : > { %9608 = vrot.lane.b32.xlu1 %v15241_v48, %s11935_s26 }
 0xb4c   : > { %9618 = vrot.lane.b32.xlu0 %v15248_v20, %s11935_s26 }
 0xb4e   : > { %9616 = vrot.lane.b32.xlu1 %v15255_v13, %s11935_s26 }
 0xb50   : > { %9612 = vrot.lane.b32.xlu0 %v15263_v3, %s11935_s26 }
 0xb52   : > { %10162 = vrot.lane.b32.xlu1 %v15271_v31, %s11934_s25 }
 0xb54   : > { %10158 = vrot.lane.b32.xlu0 %v15278_v58, %s11934_s25 }
 0xb56   : > { %10156 = vrot.lane.b32.xlu1 %v15284_v36, %s11934_s25 }
 0xb58   : > { %10166 = vrot.lane.b32.xlu0 %v15291_v22, %s11934_s25 }
 0xb5a   : > { %10164 = vrot.lane.b32.xlu1 %v15298_v37, %s11934_s25 }
 0xb5c   : > { %10160 = vrot.lane.b32.xlu0 %v15304_v38, %s11934_s25 }
 0xb5e   : > { %8494 = vrot.lane.b32.xlu1 %v15062_v23, %s11934_s25 }
 0xb60   : > { %8490 = vrot.lane.b32.xlu0 %v15065_v16, %s11934_s25 }
 0xb62   : > { %8488 = vrot.lane.b32.xlu1 %v15076_v25, %s11934_s25 }
 0xb64   : > { %8498 = vrot.lane.b32.xlu0 %v15189_v7, %s11934_s25 }
 0xb66   : > { %8496 = vrot.lane.b32.xlu1 %v15197_v15, %s11934_s25 }
 0xb68   : > { %8492 = vrot.lane.b32.xlu0 %v15079_v62, %s11934_s25 }
 0xb6a   : > { %7774 = vrot.lane.b32.xlu1 %v14992_v44, %s11935_s26 }
 0xb6c   : > { %7770 = vrot.lane.b32.xlu0 %v14988_v39, %s11935_s26 }
 0xb6e   : > { %7772 = vrot.lane.b32.xlu1 %v14954_v35, %s11935_s26 }
 0xb70   : > { %7768 = vrot.lane.b32.xlu0 %v14950_v52, %s11935_s26 }
 0xb72   : > { %10430 = vrot.lane.b32.xlu1 %v15271_v31, %s11935_s26 }
 0xb74   : > { %10426 = vrot.lane.b32.xlu0 %v15278_v58, %s11935_s26 }
 0xb76   : > { %10424 = vrot.lane.b32.xlu1 %v15284_v36, %s11935_s26 }
 0xb78   : > { %10434 = vrot.lane.b32.xlu0 %v15291_v22, %s11935_s26 }
 0xb7a   : > { %10432 = vrot.lane.b32.xlu1 %v15298_v37, %s11935_s26 }
 0xb7c   : > { %10428 = vrot.lane.b32.xlu0 %v15304_v38, %s11935_s26 }
 0xb7e   : > { %8762 = vrot.lane.b32.xlu1 %v15062_v23, %s11935_s26 }
 0xb80   : > { %8758 = vrot.lane.b32.xlu0 %v15065_v16, %s11935_s26 }
 0xb82   : > { %8756 = vrot.lane.b32.xlu1 %v15076_v25, %s11935_s26 }
 0xb84   : > { %8766 = vrot.lane.b32.xlu0 %v15189_v7, %s11935_s26 }
 0xb86   : > { %8764 = vrot.lane.b32.xlu1 %v15197_v15, %s11935_s26 }
 0xb88   : > { %8760 = vrot.lane.b32.xlu0 %v15079_v62, %s11935_s26 }
 0xb8a   : > { %9346 = vrot.lane.b32.xlu1 %v15229_v41, %s11934_s25 }
 0xb8c   : > { %9342 = vrot.lane.b32.xlu0 %v15235_v2, %s11934_s25 }
 0xb8e   : > { %9340 = vrot.lane.b32.xlu1 %v15241_v48, %s11934_s25 }
 0xb90   : > { %9350 = vrot.lane.b32.xlu0 %v15248_v20, %s11934_s25 }
 0xb92   : > { %9348 = vrot.lane.b32.xlu1 %v15255_v13, %s11934_s25 }
 0xb94   : > { %9344 = vrot.lane.b32.xlu0 %v15263_v3, %s11934_s25 }
 0xb98   : > { %v15366_v9 = vpop.permute.xlu1 %7672 }
 0xb99   : > { %18368 = vst [vmem:[#allocation122_spill] sm:$0xff] %v15366_v9 }
 0xb9a   : > { %v15368_v52 = vpop.permute.xlu0 %7667 }
 0xb9b   : > { %18369 = vst [vmem:[#allocation123_spill] sm:$0xff] %v15368_v52 }
 0xb9c   : > { %v15370_v35 = vpop.permute.xlu1 %7682 }
 0xb9d   : > { %18370 = vst [vmem:[#allocation124_spill] sm:$0xff] %v15370_v35 }
 0xb9e   : > { %v15372_v39 = vpop.permute.xlu0 %7677 }
 0xb9f   : > { %18371 = vst [vmem:[#allocation125_spill] sm:$0xff] %v15372_v39 }
 0xba0   : > { %v15374_v44 = vpop.permute.xlu1 %7692 }
 0xba1   : > { %18372 = vst [vmem:[#allocation126_spill] sm:$0xff] %v15374_v44 }
 0xba2   : > { %v15376_v23 = vpop.permute.xlu0 %7687 }
 0xba3   : > { %18373 = vst [vmem:[#allocation127_spill] sm:$0xff] %v15376_v23 }
 0xba4   : > { %v15378_v16 = vpop.permute.xlu1 %7702 }
 0xba5   : > { %18374 = vst [vmem:[#allocation128_spill] sm:$0xff] %v15378_v16 }
 0xba6   : > { %v15380_v25 = vpop.permute.xlu0 %7697 }
 0xba7   : > { %18375 = vst [vmem:[#allocation129_spill] sm:$0xff] %v15380_v25 }
 0xba8   : > { %v15382_v62 = vpop.permute.xlu1 %7712 }
 0xba9   : > { %18376 = vst [vmem:[#allocation130_spill] sm:$0xff] %v15382_v62 }
 0xbaa   : > { %v15384_v50 = vpop.permute.xlu0 %7707 }
 0xbab   : > { %18377 = vst [vmem:[#allocation131_spill] sm:$0xff] %v15384_v50 }
 0xbac   : > { %v15386_v11 = vpop.permute.xlu1 %7722 }
 0xbad   : > { %18378 = vst [vmem:[#allocation132_spill] sm:$0xff] %v15386_v11 }
 0xbae   : > { %v15388_v32 = vpop.permute.xlu0 %7717 }
 0xbaf   : > { %18379 = vst [vmem:[#allocation133_spill] sm:$0xff] %v15388_v32 }
 0xbb0   : > { %v15390_v29 = vpop.permute.xlu1 %7732 }
 0xbb1   : > { %18380 = vst [vmem:[#allocation134_spill] sm:$0xff] %v15390_v29 }
 0xbb2   : > { %v15392_v55 = vpop.permute.xlu0 %7727 }
 0xbb3   : > { %18381 = vst [vmem:[#allocation135_spill] sm:$0xff] %v15392_v55 }
 0xbb4   : > { %v15394_v5 = vpop.permute.xlu1 %7766 }
 0xbb6   : > { %v15396_v54 = vpop.permute.xlu0 %7764 }
 0xbb8   : > { %v9615_v0 = vpop.permute.xlu1 %9614 }
 0xbb9   : > { %v9634_v59 = vshrl.u32 %v9615_v0, 16 }
 0xbba   : > { %v9611_v47 = vpop.permute.xlu0 %9610 }
 0xbbb   : > { %v9633_v10 = vshrl.u32 %v9611_v47, 16  ;;  %v9632_v43 = vpack.i.b16 %v9615_v0, %v9611_v47 }
 0xbbc   : > { %v9609_v26 = vpop.permute.xlu1 %9608 }
 0xbbd   : > { %v9635_v17 = vpack.i.b16 %v9634_v59, %v9633_v10  ;;  %v9623_v45 = vshrl.u32 %v9609_v26, 16  ;;  %v15405_v23 = vrot.slane %v9632_v43, %v11979_v8 }
 0xbbe   : > { %v9619_v49 = vpop.permute.xlu0 %9618 }
 0xbbf   : > { %v9637_v1 = vpack.i.b16 %v17776_v30, %v9619_v49  ;;  %v9638_v57 = vshrl.u32 %v9619_v49, 16  ;;  %v15408_v0 = vrot.slane %v9635_v17, %v11979_v8 }
 0xbc0   : > { %v9617_v21 = vpop.permute.xlu1 %9616 }
 0xbc1   : > { %v9639_v46 = vpack.i.b16 %v17776_v30, %v9638_v57  ;;  %v15401_v56 = vrot.slane %v9637_v1, %v11979_v8  ;;  %v9628_v12 = vshrl.u32 %v9617_v21, 16  ;;  %v9627_v44 = vpack.i.b16 %v17776_v30, %v9617_v21 }
 0xbc2   : > { %v9613_v25 = vpop.permute.xlu0 %9612 }
 0xbc3   : > { %v15411_v47 = vrot.slane %v9639_v46, %v11979_v8  ;;  %v9622_v10 = vpack.i.b16 %v9613_v25, %v9609_v26  ;;  %v9624_v59 = vshrl.u32 %v9613_v25, 16  ;;  %v9629_v49 = vpack.i.b16 %v17776_v30, %v9628_v12 }
 0xbc4   : > { %v10163_v1 = vpop.permute.xlu1 %10162  ;;  %v9724_v57 = vcombine.low %v15405_v23, %v15401_v56  ;;  %v15422_v17 = vrot.slane %v9627_v44, %v11979_v8 }
 0xbc5   : > { %v9758_v21 = vcombine.low %v15408_v0, %v15411_v47  ;;  %v9625_v35 = vpack.i.b16 %v9624_v59, %v9623_v45  ;;  %v15419_v43 = vrot.slane %v9622_v10, %v11979_v8  ;;  %v15425_v46 = vrot.slane %v9629_v49, %v11979_v8 }
 0xbc6   : > { %v10159_v25 = vpop.permute.xlu0 %10158  ;;  %v10182_v12 = vshrl.u32 %v10163_v1, 16  ;;  %v15434_v45 = vrot.slane %v9724_v57, %v12011_v24 }
 0xbc7   : > { %v10181_v26 = vshrl.u32 %v10159_v25, 16  ;;  %v15428_v39 = vrot.slane %v9625_v35, %v11979_v8  ;;  %v15431_v52 = vrot.slane %v9758_v21, %v12011_v24  ;;  %v9656_v44 = vcombine.low %v15419_v43, %v15422_v17 }
 0xbc8   : > { %v10157_v9 = vpop.permute.xlu1 %10156  ;;  %18382 = vst [vmem:[#allocation136_spill] sm:$0xff] %v15434_v45  ;;  %v11808_v32 = vcombine.high %v15434_v45, %v15434_v45 }
 0xbc9   : > { %v9690_v10 = vcombine.low %v15428_v39, %v15425_v46  ;;  %v11483_v49 = vcombine.low %v15431_v52, %v15431_v52  ;;  %v10183_v29 = vpack.i.b16 %v10182_v12, %v10181_v26  ;;  %v10171_v50 = vshrl.u32 %v10157_v9, 16 }
 0xbca   : > { %v10167_v59 = vpop.permute.xlu0 %10166  ;;  %v15453_v12 = vrot.slane %v9656_v44, %v12011_v24 }
 0xbcb   : > { %v10186_v35 = vshrl.u32 %v10167_v59, 16  ;;  %9814 = vrot.lane.b32.xlu0 %v11483_v49, %s11931_s22  ;;  %v15444_v21 = vrot.slane %v9690_v10, %v12011_v24  ;;  %v10185_v62 = vpack.i.b16 %v17776_v30, %v10167_v59  ;;  %v15456_v49 = vrot.slane %v10183_v29, %v11979_v8 }
 0xbcc   : > { %v10165_v55 = vpop.permute.xlu1 %10164  ;;  %18383 = vst [vmem:[#allocation137_spill] sm:$0xff] %v15453_v12 }
 0xbcd   : > { %v10187_v57 = vpack.i.b16 %v17776_v30, %v10186_v35  ;;  %v10176_v11 = vshrl.u32 %v10165_v55, 16  ;;  %v11476_v26 = vcombine.low %v15444_v21, %v15444_v21  ;;  %v10180_v35 = vpack.i.b16 %v10163_v1, %v10159_v25 }
 0xbce   : > { %v10161_v16 = vpop.permute.xlu0 %10160  ;;  %v15469_v4 = vrot.slane %v10185_v62, %v11979_v8 }
 0xbcf   : > { %v15459_v10 = vrot.slane %v10187_v57, %v11979_v8  ;;  %v10172_v19 = vshrl.u32 %v10161_v16, 16  ;;  %v10177_v45 = vpack.i.b16 %v17776_v30, %v10176_v11  ;;  %9819 = vrot.lane.b32.xlu0 %v11808_v32, %s11928_s19  ;;  %9779 = vrot.lane.b32.xlu1 %v11476_v26, %s11931_s22  ;;  %v11804_v11 = vcombine.high %v15453_v12, %v15453_v12 }
 0xbd0   : > { %v15464_v59 = vpop.permute.xlu1 %8494  ;;  %v15481_v26 = vrot.slane %v10180_v35, %v11979_v8 }
 0xbd1   : > { %v10306_v44 = vcombine.low %v15456_v49, %v15459_v10  ;;  %v10173_v29 = vpack.i.b16 %v10172_v19, %v10171_v50  ;;  %v15472_v57 = vrot.slane %v10177_v45, %v11979_v8  ;;  %v8514_v25 = vshrl.u32 %v15464_v59, 16 }
 0xbd2   : > { %v15474_v1 = vpop.permute.xlu0 %8490  ;;  %v10170_v50 = vpack.i.b16 %v10161_v16, %v10157_v9  ;;  %v10175_v45 = vpack.i.b16 %v17776_v30, %v10165_v55  ;;  %v10272_v12 = vcombine.low %v15481_v26, %v15469_v4  ;;  %v9914_v9 = vshrl.u32 %v15271_v31, 16 }
 0xbd3   : > { %18384 = vst [vmem:[#allocation138_spill] sm:$0xff] %v15472_v57  ;;  %v8513_v32 = vshrl.u32 %v15474_v1, 16  ;;  %v15484_v18 = vrot.slane %v10173_v29, %v11979_v8  ;;  %9784 = vrot.lane.b32.xlu0 %v11804_v11, %s11928_s19  ;;  %v15490_v62 = vrot.slane %v10306_v44, %v12011_v24  ;;  %v9913_v16 = vshrl.u32 %v15278_v58, 16 }
 0xbd4   : > { %v15487_v19 = vpop.permute.xlu1 %8488  ;;  %v9918_v55 = vshrl.u32 %v15291_v22, 16  ;;  %v15512_v51 = vrot.slane %v10170_v50, %v11979_v8  ;;  %v15515_v60 = vrot.slane %v10175_v45, %v11979_v8  ;;  %v15527_v50 = vrot.slane %v10272_v12, %v12011_v24 }
 0xbd5   : > { %18385 = vst [vmem:[#allocation139_spill] sm:$0xff] %v15484_v18  ;;  %v10238_v35 = vcombine.low %v15484_v18, %v15472_v57  ;;  %v11514_v11 = vcombine.low %v15490_v62, %v15490_v62  ;;  %v8515_v44 = vpack.i.b16 %v8514_v25, %v8513_v32  ;;  %v8503_v61 = vshrl.u32 %v15487_v19, 16 }
 0xbd6   : > { %v8499_v40 = vpop.permute.xlu0 %8498  ;;  %18386 = vst [vmem:[#allocation140_spill] sm:$0xff] %v15527_v50  ;;  %v9097_v45 = vshrl.u32 %v15235_v2, 16  ;;  %v9915_v14 = vpack.i.b16 %v9914_v9, %v9913_v16  ;;  %v11805_v18 = vcombine.high %v15444_v21, %v15444_v21 }
 0xbd7   : > { %v8518_v42 = vshrl.u32 %v8499_v40, 16  ;;  %10362 = vrot.lane.b32.xlu1 %v11514_v11, %s11931_s22  ;;  %v15509_v29 = vrot.slane %v10238_v35, %v12011_v24  ;;  %v11809_v11 = vcombine.high %v15431_v52, %v15431_v52  ;;  %v15533_v6 = vrot.slane %v8515_v44, %v11979_v8 }
 0xbd8   : > { %v15506_v63 = vpop.permute.xlu1 %8496  ;;  %v9919_v52 = vpack.i.b16 %v17776_v30, %v9918_v55 }
 0xbd9   : > { %v8519_v32 = vpack.i.b16 %v17776_v30, %v8518_v42  ;;  %v8508_v25 = vshrl.u32 %v15506_v63, 16  ;;  %v11507_v35 = vcombine.low %v15509_v29, %v15509_v29  ;;  %v9725_v42 = vcombine.high %v15405_v23, %v15401_v56  ;;  %18387 = vst [vmem:[#allocation141_spill] sm:$0xff] %v15533_v6 }
 0xbda   : > { %v15520_v27 = vpop.permute.xlu0 %8492  ;;  %v10204_v23 = vcombine.low %v15512_v51, %v15515_v60  ;;  %v8517_v56 = vpack.i.b16 %v17776_v30, %v8499_v40 }
 0xbdb   : > { %v15536_v53 = vrot.slane %v8519_v32, %v11979_v8  ;;  %v8504_v28 = vshrl.u32 %v15520_v27, 16  ;;  %v8509_v57 = vpack.i.b16 %v17776_v30, %v8508_v25  ;;  %9824 = vrot.lane.b32.xlu1 %v11809_v11, %s11930_s21  ;;  %10327 = vrot.lane.b32.xlu0 %v11507_v35, %s11931_s22  ;;  %v11824_v11 = vcombine.high %v15527_v50, %v15527_v50 }
 0xbdc   : > { %v15543_v12 = vpop.permute.xlu1 %7774  ;;  %v7789_v35 = vshrl.u32 %v15394_v5, 16  ;;  %v15565_v9 = vrot.slane %v9725_v42, %v12011_v24  ;;  %v15580_v21 = vrot.slane %v8517_v56, %v11979_v8 }
 0xbdd   : > { %18388 = vst [vmem:[#allocation142_spill] sm:$0xff] %v15536_v53  ;;  %v8638_v44 = vcombine.low %v15533_v6, %v15536_v53  ;;  %v8505_v16 = vpack.i.b16 %v8504_v28, %v8503_v61  ;;  %v15553_v55 = vrot.slane %v8509_v57, %v11979_v8  ;;  %v7794_v25 = vshrl.u32 %v15543_v12, 16 }
 0xbde   : > { %v15555_v32 = vpop.permute.xlu0 %7770  ;;  %v8512_v61 = vpack.i.b16 %v15464_v59, %v15474_v1  ;;  %v15584_v59 = vrot.slane %v10204_v23, %v12011_v24  ;;  %v15601_v23 = vrot.slane %v9919_v52, %v11979_v8  ;;  %v18400_v52 = vshrl.u32 %v15229_v41, 16 }
 0xbdf   : > { %18389 = vst [vmem:[#allocation143_spill] sm:$0xff] %v15553_v55  ;;  %v7790_v40 = vshrl.u32 %v15555_v32, 16  ;;  %v15570_v28 = vrot.slane %v8505_v16, %v11979_v8  ;;  %v7795_v57 = vpack.i.b16 %v17776_v30, %v7794_v25  ;;  %10367 = vrot.lane.b32.xlu1 %v11824_v11, %s11928_s19  ;;  %v15577_v53 = vrot.slane %v8638_v44, %v12011_v24 }
 0xbe0   : > { %v15574_v50 = vpop.permute.xlu1 %7772  ;;  %18392 = vst [vmem:[#allocation146_spill] sm:$0xff] %v15584_v59  ;;  %v15598_v11 = vrot.slane %v9915_v14, %v11979_v8  ;;  %18396 = vst [vmem:[#allocation150_spill] sm:$0xff] %v15601_v23  ;;  %v15610_v16 = vrot.slane %v8512_v61, %v11979_v8  ;;  %v9099_v34 = vpack.i.b16 %v18400_v52, %v9097_v45 }
 0xbe1   : > { %18390 = vst [vmem:[#allocation144_spill] sm:$0xff] %v15570_v28  ;;  %18391 = vst [vmem:[#allocation145_spill] sm:$0xff] %v15574_v50  ;;  %v7791_v42 = vpack.i.b16 %v7790_v40, %v7789_v35  ;;  %v7784_v6 = vshrl.u32 %v15574_v50, 16  ;;  %v8570_v1 = vcombine.low %v15570_v28, %v15553_v55  ;;  %v15591_v25 = vrot.slane %v7795_v57, %v11979_v8 }
 0xbe2   : > { %v15593_v44 = vpop.permute.xlu0 %7768  ;;  %v11427_v56 = vcombine.low %v15577_v53, %v15577_v53  ;;  %18395 = vst [vmem:[#allocation149_spill] sm:$0xff] %v15598_v11  ;;  %v7779_v35 = vshrl.u32 %v15396_v54, 16  ;;  %v9657_v57 = vcombine.high %v15419_v43, %v15422_v17  ;;  %v11486_v43 = vcombine.low %v15565_v9, %v15565_v9 }
 0xbe3   : > { %18393 = vst [vmem:[#allocation147_spill] sm:$0xff] %v15591_v25  ;;  %18394 = vst [vmem:[#allocation148_spill] sm:$0xff] %v15593_v44  ;;  %v15605_v40 = vrot.slane %v7791_v42, %v11979_v8  ;;  %v7780_v55 = vshrl.u32 %v15593_v44, 16  ;;  %v7785_v28 = vpack.i.b16 %v17776_v30, %v7784_v6  ;;  %9789 = vrot.lane.b32.xlu1 %v11805_v18, %s11930_s21 }
 0xbe4   : > { %8694 = vrot.lane.b32.xlu0 %v11427_v56, %s11931_s22  ;;  %v15616_v14 = vpop.permute.xlu1 %10430  ;;  %v11820_v42 = vcombine.high %v15584_v59, %v15584_v59  ;;  %v8604_v17 = vcombine.low %v15610_v16, %v15580_v21  ;;  %v15630_v18 = vrot.slane %v8570_v1, %v12011_v24  ;;  %v9102_v59 = vshrl.u32 %v15248_v20, 16 }
 0xbe5   : > { %18397 = vst [vmem:[#allocation151_spill] sm:$0xff] %v15605_v40  ;;  %18398 = vst [vmem:[#allocation152_spill] sm:$0xff] %v15616_v14  ;;  %v7781_v61 = vpack.i.b16 %v7780_v55, %v7779_v35  ;;  %v15627_v6 = vrot.slane %v7785_v28, %v11979_v8  ;;  %v10038_v50 = vcombine.low %v15598_v11, %v15601_v23 }
 0xbe6   : > { %v15632_v56 = vpop.permute.xlu0 %10426  ;;  %v9759_v44 = vcombine.high %v15408_v0, %v15411_v47  ;;  %v15647_v28 = vrot.slane %v9657_v57, %v12011_v24  ;;  %v8502_v35 = vpack.i.b16 %v15520_v27, %v15487_v19  ;;  %v8507_v0 = vpack.i.b16 %v17776_v30, %v15506_v63 }
 0xbe7   : > { %18399 = vst [vmem:[#allocation153_spill] sm:$0xff] %v15632_v56  ;;  %v15642_v55 = vrot.slane %v7781_v61, %v11979_v8  ;;  %10332 = vrot.lane.b32.xlu1 %v11820_v42, %s11928_s19  ;;  %v10449_v45 = vshrl.u32 %v15632_v56, 16  ;;  %v11825_v47 = vcombine.high %v15490_v62, %v15490_v62  ;;  %v11420_v57 = vcombine.low %v15630_v18, %v15630_v18 }
 0xbe8   : > { %9829 = vrot.lane.b32.xlu0 %v11486_v43, %s11927_s18  ;;  %v15650_v1 = vpop.permute.xlu1 %10424  ;;  %v15663_v42 = vrot.slane %v8604_v17, %v12011_v24  ;;  %v10450_v61 = vshrl.u32 %v15616_v14, 16  ;;  %v15669_v27 = vrot.slane %v9099_v34, %v11979_v8  ;;  %v9103_v63 = vpack.i.b16 %v17776_v30, %v9102_v59 }
 0xbe9   : > { %18401 = vst [vmem:[#allocation154_spill] sm:$0xff] %v15650_v1  ;;  %v15673_v19 = vrot.slane %v10038_v50, %v12011_v24  ;;  %v11479_v17 = vcombine.low %v15647_v28, %v15647_v28  ;;  %v15681_v52 = vrot.slane %v9759_v44, %v12011_v24  ;;  %v10273_v59 = vcombine.high %v15481_v26, %v15469_v4 }
 0xbea   : > { %18402 = vst [vmem:[#allocation155_spill] sm:$0xff] %v15663_v42  ;;  %v15665_v43 = vpop.permute.xlu0 %10434  ;;  %18404 = vst [vmem:[#allocation157_spill] sm:$0xff] %v15669_v27  ;;  %v10451_v11 = vpack.i.b16 %v10450_v61, %v10449_v45  ;;  %v15688_v50 = vrot.slane %v8507_v0, %v11979_v8  ;;  %v11776_v44 = vcombine.high %v15663_v42, %v15663_v42  ;;  %v9903_v0 = vshrl.u32 %v15284_v36, 16 }
 0xbeb   : > { %18403 = vst [vmem:[#allocation156_spill] sm:$0xff] %v15665_v43  ;;  %18405 = vst [vmem:[#allocation158_spill] sm:$0xff] %v15673_v19  ;;  %v10454_v62 = vshrl.u32 %v15665_v43, 16  ;;  %8659 = vrot.lane.b32.xlu1 %v11420_v57, %s11931_s22  ;;  %v15693_v57 = vrot.slane %v8502_v35, %v11979_v8  ;;  %v15704_v26 = vrot.slane %v9103_v63, %v11979_v8  ;;  %v9904_v42 = vshrl.u32 %v15304_v38, 16 }
 0xbec   : > { %10372 = vrot.lane.b32.xlu0 %v11825_v47, %s11930_s21  ;;  %v15683_v34 = vpop.permute.xlu1 %10432  ;;  %v10439_v47 = vshrl.u32 %v15650_v1, 16  ;;  %v15698_v45 = vrot.slane %v10451_v11, %v11979_v8  ;;  %v9908_v1 = vshrl.u32 %v15298_v37, 16  ;;  %v11500_v11 = vcombine.low %v15673_v19, %v15673_v19 }
 0xbed   : > { %18406 = vst [vmem:[#allocation159_spill] sm:$0xff] %v15683_v34  ;;  %v10455_v23 = vpack.i.b16 %v17776_v30, %v10454_v62  ;;  %v10444_v4 = vshrl.u32 %v15683_v34, 16  ;;  %18408 = vst [vmem:[#allocation161_spill] sm:$0xff] %v15704_v26  ;;  %v9917_v14 = vpack.i.b16 %v17776_v30, %v15291_v22  ;;  %v11821_v22 = vcombine.high %v15509_v29, %v15509_v29 }
 0xbee   : > { %v15700_v61 = vpop.permute.xlu0 %10428 }
 0xbef   : > { %18407 = vst [vmem:[#allocation160_spill] sm:$0xff] %v15700_v61  ;;  %v15708_v62 = vrot.slane %v10455_v23, %v11979_v8  ;;  %v10440_v35 = vshrl.u32 %v15700_v61, 16  ;;  %9794 = vrot.lane.b32.xlu1 %v11479_v17, %s11927_s18  ;;  %v10445_v63 = vpack.i.b16 %v17776_v30, %v10444_v4  ;;  %v11487_v23 = vcombine.low %v15681_v52, %v15681_v52 }
 0xbf0   : > { %8699 = vrot.lane.b32.xlu0 %v11776_v44, %s11928_s19  ;;  %v15718_v34 = vpop.permute.xlu1 %8762  ;;  %v15723_v61 = vrot.slane %v10273_v59, %v12011_v24  ;;  %v8536_v17 = vcombine.low %v15693_v57, %v15688_v50  ;;  %v7914_v44 = vcombine.low %v15605_v40, %v15591_v25  ;;  %v9912_v59 = vpack.i.b16 %v15271_v31, %v15278_v58 }
 0xbf1   : > { %18409 = vst [vmem:[#allocation162_spill] sm:$0xff] %v15718_v34  ;;  %v10441_v56 = vpack.i.b16 %v10440_v35, %v10439_v47  ;;  %v15734_v4 = vrot.slane %v10445_v63, %v11979_v8  ;;  %v8782_v19 = vshrl.u32 %v15718_v34, 16  ;;  %v9909_v25 = vpack.i.b16 %v17776_v30, %v9908_v1 }
 0xbf2   : > { %v15731_v43 = vpop.permute.xlu0 %8758  ;;  %v9905_v40 = vpack.i.b16 %v9904_v42, %v9903_v0  ;;  %v9222_v63 = vcombine.low %v15669_v27, %v15704_v26  ;;  %v15759_v1 = vrot.slane %v8536_v17, %v12011_v24  ;;  %v15762_v42 = vrot.slane %v7914_v44, %v12011_v24 }
 0xbf3   : > { %18410 = vst [vmem:[#allocation163_spill] sm:$0xff] %v15731_v43  ;;  %v15742_v47 = vrot.slane %v10441_v56, %v11979_v8  ;;  %v8781_v35 = vshrl.u32 %v15731_v43, 16  ;;  %10094 = vrot.lane.b32.xlu1 %v11500_v11, %s11931_s22  ;;  %v11517_v56 = vcombine.low %v15723_v61, %v15723_v61  ;;  %v15767_v11 = vrot.slane %v9912_v59, %v11979_v8 }
 0xbf4   : > { %9834 = vrot.lane.b32.xlu0 %v11487_v23, %s11932_s23  ;;  %v15750_v34 = vpop.permute.xlu1 %8756  ;;  %18412 = vst [vmem:[#allocation165_spill] sm:$0xff] %v15759_v1  ;;  %v15770_v23 = vrot.slane %v9917_v14, %v11979_v8  ;;  %v15774_v29 = vrot.slane %v9909_v25, %v11979_v8  ;;  %v15782_v17 = vrot.slane %v9222_v63, %v12011_v24  ;;  %v9087_v27 = vshrl.u32 %v15241_v48, 16 }
 0xbf5   : > { %18411 = vst [vmem:[#allocation164_spill] sm:$0xff] %v15750_v34  ;;  %v8783_v58 = vpack.i.b16 %v8782_v19, %v8781_v35  ;;  %v15777_v35 = vrot.slane %v9905_v40, %v11979_v8  ;;  %v9691_v14 = vcombine.high %v15428_v39, %v15425_v46  ;;  %v8771_v40 = vshrl.u32 %v15750_v34, 16 }
 0xbf6   : > { %v15764_v0 = vpop.permute.xlu0 %8766  ;;  %18414 = vst [vmem:[#allocation167_spill] sm:$0xff] %v15774_v29  ;;  %v10004_v39 = vcombine.low %v15767_v11, %v15770_v23 }
 0xbf7   : > { %18413 = vst [vmem:[#allocation166_spill] sm:$0xff] %v15764_v0  ;;  %v8786_v19 = vshrl.u32 %v15764_v0, 16  ;;  %18415 = vst [vmem:[#allocation168_spill] sm:$0xff] %v15777_v35  ;;  %10377 = vrot.lane.b32.xlu1 %v11517_v56, %s11927_s18  ;;  %v15790_v25 = vrot.slane %v8783_v58, %v11979_v8  ;;  %v11380_v56 = vcombine.low %v15762_v42, %v15762_v42 }
 0xbf8   : > { %10337 = vrot.lane.b32.xlu0 %v11821_v22, %s11930_s21  ;;  %v15784_v44 = vpop.permute.xlu1 %8764  ;;  %v11772_v22 = vcombine.high %v15759_v1, %v15759_v1  ;;  %v11455_v1 = vcombine.low %v15782_v17, %v15782_v17  ;;  %v9970_v34 = vcombine.low %v15777_v35, %v15774_v29  ;;  %v7793_v0 = vpack.i.b16 %v17776_v30, %v15543_v12 }
 0xbf9   : > { %18416 = vst [vmem:[#allocation169_spill] sm:$0xff] %v15784_v44  ;;  %v8787_v59 = vpack.i.b16 %v17776_v30, %v8786_v19  ;;  %v8776_v31 = vshrl.u32 %v15784_v44, 16  ;;  %v9092_v19 = vshrl.u32 %v15255_v13, 16  ;;  %v9088_v29 = vshrl.u32 %v15263_v3, 16 }
 0xbfa   : > { %v15797_v63 = vpop.permute.xlu0 %8760  ;;  %v10307_v12 = vcombine.high %v15456_v49, %v15459_v10 }
 0xbfb   : > { %18417 = vst [vmem:[#allocation170_spill] sm:$0xff] %v15797_v63  ;;  %v15804_v46 = vrot.slane %v8787_v59, %v11979_v8  ;;  %v8772_v58 = vshrl.u32 %v15797_v63, 16  ;;  %8664 = vrot.lane.b32.xlu1 %v11772_v22, %s11928_s19  ;;  %v8777_v44 = vpack.i.b16 %v17776_v30, %v8776_v31  ;;  %v15818_v59 = vrot.slane %v9691_v14, %v12011_v24 }
 0xbfc   : > { %7970 = vrot.lane.b32.xlu0 %v11380_v56, %s11931_s22  ;;  %v15815_v26 = vpop.permute.xlu1 %9346  ;;  %v7788_v56 = vpack.i.b16 %v15555_v32, %v15394_v5  ;;  %v11777_v31 = vcombine.high %v15577_v53, %v15577_v53  ;;  %v10205_v53 = vcombine.high %v15512_v51, %v15515_v60  ;;  %v15849_v32 = vrot.slane %v9970_v34, %v12011_v24 }
 0xbfd   : > { %v8773_v43 = vpack.i.b16 %v8772_v58, %v8771_v40  ;;  %v9366_v22 = vshrl.u32 %v15815_v26, 16  ;;  %v15832_v14 = vrot.slane %v8777_v44, %v11979_v8  ;;  %v15836_v40 = vrot.slane %v10004_v39, %v12011_v24 }
 0xbfe   : > { %v15829_v35 = vpop.permute.xlu0 %9342  ;;  %v9101_v39 = vpack.i.b16 %v17776_v30, %v15248_v20  ;;  %v15860_v51 = vrot.slane %v7788_v56, %v11979_v8  ;;  %v15863_v60 = vrot.slane %v7793_v0, %v11979_v8  ;;  %v11810_v34 = vcombine.high %v15565_v9, %v15565_v9 }
 0xbff   : > { %18418 = vst [vmem:[#allocation171_spill] sm:$0xff] %v15832_v14  ;;  %18419 = vst [vmem:[#allocation172_spill] sm:$0xff] %v15836_v40  ;;  %v15839_v58 = vrot.slane %v8773_v43, %v11979_v8  ;;  %v9365_v5 = vshrl.u32 %v15829_v35, 16  ;;  %9278 = vrot.lane.b32.xlu1 %v11455_v1, %s11931_s22  ;;  %v9096_v43 = vpack.i.b16 %v15229_v41, %v15235_v2 }
 0xc00   : > { %8704 = vrot.lane.b32.xlu0 %v11777_v31, %s11930_s21  ;;  %v15851_v44 = vpop.permute.xlu1 %9340  ;;  %v11480_v1 = vcombine.low %v15818_v59, %v15818_v59  ;;  %v9093_v2 = vpack.i.b16 %v17776_v30, %v9092_v19  ;;  %v9089_v20 = vpack.i.b16 %v9088_v29, %v9087_v27  ;;  %v11493_v9 = vcombine.low %v15849_v32, %v15849_v32 }
 0xc01   : > { %18420 = vst [vmem:[#allocation173_spill] sm:$0xff] %v15851_v44  ;;  %v9367_v10 = vpack.i.b16 %v9366_v22, %v9365_v5  ;;  %v11816_v22 = vcombine.high %v15836_v40, %v15836_v40  ;;  %v15880_v0 = vrot.slane %v10307_v12, %v12011_v24  ;;  %v15883_v31 = vrot.slane %v10205_v53, %v12011_v24 }
 0xc02   : > { %v15869_v41 = vpop.permute.xlu0 %9350  ;;  %v9355_v5 = vshrl.u32 %v15851_v44, 16  ;;  %v7846_v12 = vcombine.low %v15642_v55, %v15627_v6  ;;  %v15900_v53 = vrot.slane %v9096_v43, %v11979_v8  ;;  %v15910_v40 = vrot.slane %v9093_v2, %v11979_v8 }
 0xc03   : > { %18421 = vst [vmem:[#allocation174_spill] sm:$0xff] %v15869_v41  ;;  %v9370_v56 = vshrl.u32 %v15869_v41, 16  ;;  %9839 = vrot.lane.b32.xlu1 %v11810_v34, %s11929_s20  ;;  %v15889_v29 = vrot.slane %v9367_v10, %v11979_v8 }
 0xc04   : > { %9799 = vrot.lane.b32.xlu0 %v11480_v1, %s11932_s23  ;;  %v15885_v19 = vpop.permute.xlu1 %9348  ;;  %v7880_v1 = vcombine.low %v15860_v51, %v15863_v60 }
 0xc05   : > { %18422 = vst [vmem:[#allocation175_spill] sm:$0xff] %v15885_v19  ;;  %v9371_v27 = vpack.i.b16 %v17776_v30, %v9370_v56  ;;  %18423 = vst [vmem:[#allocation176_spill] sm:$0xff] %v15889_v29  ;;  %v9360_v34 = vshrl.u32 %v15885_v19, 16  ;;  %v15903_v56 = vrot.slane %v9101_v39, %v11979_v8  ;;  %v15913_v19 = vrot.slane %v9089_v20, %v11979_v8 }
 0xc06   : > { %v15897_v49 = vpop.permute.xlu0 %9344  ;;  %v11518_v39 = vcombine.low %v15880_v0, %v15880_v0  ;;  %v8605_v20 = vcombine.high %v15610_v16, %v15580_v21  ;;  %v15927_v44 = vrot.slane %v7880_v1, %v12011_v24  ;;  %v9902_v21 = vpack.i.b16 %v15304_v38, %v15284_v36 }
 0xc07   : > { %18424 = vst [vmem:[#allocation177_spill] sm:$0xff] %v15897_v49  ;;  %v15906_v10 = vrot.slane %v9371_v27, %v11979_v8  ;;  %v9356_v63 = vshrl.u32 %v15897_v49, 16  ;;  %10099 = vrot.lane.b32.xlu1 %v11816_v22, %s11928_s19  ;;  %v9361_v43 = vpack.i.b16 %v17776_v30, %v9360_v34  ;;  %v11510_v27 = vcombine.low %v15883_v31, %v15883_v31 }
 0xc08   : > { %10059 = vrot.lane.b32.xlu0 %v11493_v9, %s11931_s22  ;;  %v15930_v22 = vrot.slane %v7846_v12, %v12011_v24  ;;  %v18427_v34 = vshrl.u32 %v15189_v7, 16  ;;  %v9907_v49 = vpack.i.b16 %v17776_v30, %v15298_v37  ;;  %v9188_v16 = vcombine.low %v15900_v53, %v15903_v56 }
 0xc09   : > { %18425 = vst [vmem:[#allocation178_spill] sm:$0xff] %v15906_v10  ;;  %v9357_v2 = vpack.i.b16 %v9356_v63, %v9355_v5  ;;  %v15933_v9 = vrot.slane %v9361_v43, %v11979_v8  ;;  %v9154_v7 = vcombine.low %v15913_v19, %v15910_v40  ;;  %v11760_v37 = vcombine.high %v15927_v44, %v15927_v44 }
 0xc0a   : > { %v8243_v41 = vpack.i.b16 %v17776_v30, %v18427_v34  ;;  %v11373_v1 = vcombine.low %v15930_v22, %v15930_v22  ;;  %v15958_v36 = vrot.slane %v8605_v20, %v12011_v24  ;;  %v15962_v38 = vrot.slane %v15073_v33, %v11979_v8 }
 0xc0b   : > { %18426 = vst [vmem:[#allocation179_spill] sm:$0xff] %v15933_v9  ;;  %v15941_v63 = vrot.slane %v9357_v2, %v11979_v8  ;;  %10382 = vrot.lane.b32.xlu1 %v11518_v39, %s11932_s23  ;;  %v15965_v12 = vrot.slane %v9907_v49, %v11979_v8  ;;  %v15971_v39 = vrot.slane %v9902_v21, %v11979_v8  ;;  %v18429_v49 = vshrl.u32 %v15197_v15, 16 }
 0xc0c   : > { %10342 = vrot.lane.b32.xlu0 %v11510_v27, %s11927_s18  ;;  %v15968_v43 = vrot.slane %v8243_v41, %v11979_v8  ;;  %v15976_v27 = vrot.slane %v9188_v16, %v12011_v24  ;;  %v15979_v2 = vrot.slane %v9154_v7, %v12011_v24  ;;  %v11430_v20 = vcombine.low %v15958_v36, %v15958_v36  ;;  %v18430_v7 = vld [vmem:[#allocation148_spill] sm:$0xff] }
 0xc0d   : > { %v8233_v41 = vpack.i.b16 %v17776_v30, %v18429_v49  ;;  %v11773_v34 = vcombine.high %v15630_v18, %v15630_v18  ;;  %v9936_v15 = vcombine.low %v15971_v39, %v15965_v12  ;;  %v18432_v18 = vld [vmem:[#allocation63_spill] sm:$0xff]  ;;  %v11826_v33 = vcombine.high %v15723_v61, %v15723_v61 }
 0xc0e   : > { %18428 = vst [vmem:[#allocation180_spill] sm:$0xff] %v15976_v27  ;;  %v11792_v21 = vcombine.high %v15976_v27, %v15976_v27  ;;  %v11448_v16 = vcombine.low %v15979_v2, %v15979_v2 }
 0xc0f   : > { %7975 = vrot.lane.b32.xlu1 %v11760_v37, %s11928_s19  ;;  %v7778_v37 = vpack.i.b16 %v18430_v7, %v15396_v54  ;;  %v16012_v5 = vrot.slane %v9936_v15, %v12011_v24  ;;  %v9086_v15 = vpack.i.b16 %v15263_v3, %v15241_v48  ;;  %v18438_v54 = vld [vmem:[#allocation138_spill] sm:$0xff] }
 0xc10   : > { %7935 = vrot.lane.b32.xlu0 %v11373_v1, %s11931_s22  ;;  %v18431_v1 = vld [vmem:[#allocation145_spill] sm:$0xff] }
 0xc11   : > { %v7783_v49 = vpack.i.b16 %v17776_v30, %v18431_v1  ;;  %18435 = vst [vmem:[#allocation63_spill] sm:$0xff] %v16012_v5  ;;  %v16017_v7 = vrot.slane %v7778_v37, %v11979_v8  ;;  %v18436_v37 = vld [vmem:[#allocation158_spill] sm:$0xff] }
 0xc13   : > { %8709 = vrot.lane.b32.xlu1 %v11430_v20, %s11927_s18  ;;  %v16004_v20 = vrot.slane %v18432_v18, %v11979_v8  ;;  %v16020_v1 = vrot.slane %v7783_v49, %v11979_v8  ;;  %v11817_v49 = vcombine.high %v18436_v37, %v18436_v37  ;;  %v11812_v18 = vcombine.high %v16012_v5, %v16012_v5  ;;  %v18445_v5 = vld [vmem:[#allocation152_spill] sm:$0xff] }
 0xc14   : > { %8669 = vrot.lane.b32.xlu0 %v11773_v34, %s11930_s21  ;;  %v16007_v34 = vrot.slane %v8233_v41, %v11979_v8  ;;  %v11811_v41 = vcombine.high %v15681_v52, %v15681_v52  ;;  %v8537_v37 = vcombine.high %v15693_v57, %v15688_v50 }
 0xc15   : > { %18433 = vst [vmem:[#allocation148_spill] sm:$0xff] %v16004_v20  ;;  %v7812_v52 = vcombine.low %v16017_v7, %v16020_v1 }
 0xc16   : > { %18434 = vst [vmem:[#allocation145_spill] sm:$0xff] %v16007_v34  ;;  %v16075_v61 = vrot.slane %v8537_v37, %v12011_v24 }
 0xc17   : > { %9283 = vrot.lane.b32.xlu1 %v11792_v21, %s11928_s19  ;;  %v11806_v21 = vcombine.high %v15647_v28, %v15647_v28  ;;  %v10574_v28 = vcombine.low %v15698_v45, %v15708_v62 }
 0xc18   : > { %9243 = vrot.lane.b32.xlu0 %v11448_v16, %s11931_s22  ;;  %v9091_v16 = vpack.i.b16 %v17776_v30, %v15255_v13  ;;  %v18437_v13 = vld [vmem:[#allocation139_spill] sm:$0xff] }
 0xc19   : > { %v18439_v48 = vcombine.high %v18437_v13, %v18438_v54  ;;  %v16061_v13 = vrot.slane %v7812_v52, %v12011_v24  ;;  %v18440_v52 = vld [vmem:[#allocation141_spill] sm:$0xff] }
 0xc1b   : > { %9844 = vrot.lane.b32.xlu1 %v11811_v41, %s11933_s24  ;;  %v16044_v3 = vrot.slane %v18439_v48, %v12011_v24  ;;  %v16047_v41 = vrot.slane %v9091_v16, %v11979_v8  ;;  %v16064_v16 = vrot.slane %v10574_v28, %v12011_v24  ;;  %v11756_v50 = vcombine.high %v16061_v13, %v16061_v13  ;;  %v18441_v28 = vld [vmem:[#allocation142_spill] sm:$0xff] }
 0xc1c   : > { %9804 = vrot.lane.b32.xlu0 %v11806_v21, %s11929_s20  ;;  %v16050_v21 = vrot.slane %v9086_v15, %v11979_v8  ;;  %v18442_v48 = vcombine.high %v18440_v52, %v18441_v28 }
 0xc1d   : > { %v11511_v54 = vcombine.low %v16044_v3, %v16044_v3  ;;  %v11528_v57 = vcombine.low %v16064_v16, %v16064_v16 }
 0xc1e   : > { %v9120_v15 = vcombine.low %v16050_v21, %v16047_v41 }
 0xc1f   : > { %10104 = vrot.lane.b32.xlu1 %v11817_v49, %s11930_s21  ;;  %v11423_v49 = vcombine.low %v16075_v61, %v16075_v61 }
 0xc20   : > { %10064 = vrot.lane.b32.xlu0 %v11812_v18, %s11928_s19  ;;  %v11761_v18 = vcombine.high %v15762_v42, %v15762_v42  ;;  %v18444_v42 = vld [vmem:[#allocation153_spill] sm:$0xff] }
 0xc21   : > { %v10448_v27 = vpack.i.b16 %v18445_v5, %v18444_v42  ;;  %v11807_v5 = vcombine.high %v15818_v59, %v15818_v59  ;;  %v7881_v59 = vcombine.high %v15860_v51, %v15863_v60 }
 0xc23   : > { %10387 = vrot.lane.b32.xlu1 %v11826_v33, %s11929_s20  ;;  %v16080_v33 = vrot.slane %v9120_v15, %v12011_v24  ;;  %v10005_v15 = vcombine.high %v15767_v11, %v15770_v23  ;;  %v16115_v23 = vrot.slane %v10448_v27, %v11979_v8  ;;  %v10506_v27 = vcombine.low %v15742_v47, %v15734_v4 }
 0xc24   : > { %10347 = vrot.lane.b32.xlu0 %v11511_v54, %s11932_s23  ;;  %v16090_v54 = vrot.slane %v18442_v48, %v12011_v24  ;;  %v16150_v60 = vrot.slane %v7881_v59, %v12011_v24  ;;  %v9189_v59 = vcombine.high %v15900_v53, %v15903_v56  ;;  %v11789_v56 = vcombine.high %v15979_v2, %v15979_v2 }
 0xc25   : > { %v11788_v37 = vcombine.high %v16080_v33, %v16080_v33 }
 0xc26   : > { %v11431_v52 = vcombine.low %v16090_v54, %v16090_v54 }
 0xc27   : > { %7940 = vrot.lane.b32.xlu1 %v11756_v50, %s11928_s19  ;;  %v18443_v50 = vld [vmem:[#allocation156_spill] sm:$0xff] }
 0xc28   : > { %10630 = vrot.lane.b32.xlu0 %v11528_v57, %s11931_s22  ;;  %v10453_v57 = vpack.i.b16 %v17776_v30, %v18443_v50  ;;  %v16141_v50 = vrot.slane %v10506_v27, %v12011_v24  ;;  %v9937_v27 = vcombine.high %v15971_v39, %v15965_v12 }
 0xc2a   : > { %v16112_v11 = vrot.slane %v10453_v57, %v11979_v8  ;;  %v11521_v51 = vcombine.low %v16141_v50, %v16141_v50 }
 0xc2b   : > { %8674 = vrot.lane.b32.xlu1 %v11423_v49, %s11927_s18  ;;  %v11793_v49 = vcombine.high %v15782_v17, %v15782_v17  ;;  %v11813_v17 = vcombine.high %v15849_v32, %v15849_v32 }
 0xc2c   : > { %7980 = vrot.lane.b32.xlu0 %v11761_v18, %s11930_s21  ;;  %v16109_v18 = vrot.slane %v10005_v15, %v12011_v24  ;;  %v10540_v48 = vcombine.low %v16115_v23, %v16112_v11  ;;  %v11822_v15 = vcombine.high %v15883_v31, %v15883_v31  ;;  %v8906_v31 = vcombine.low %v15790_v25, %v15804_v46 }
 0xc2e   : > { %v11503_v28 = vcombine.low %v16109_v18, %v16109_v18  ;;  %v16138_v32 = vrot.slane %v10540_v48, %v12011_v24  ;;  %v16187_v39 = vrot.slane %v8906_v31, %v12011_v24 }
 0xc2f   : > { %9248 = vrot.lane.b32.xlu1 %v11788_v37, %s11928_s19  ;;  %v11827_v37 = vcombine.high %v15880_v0, %v15880_v0 }
 0xc30   : > { %8714 = vrot.lane.b32.xlu0 %v11431_v52, %s11932_s23  ;;  %v11832_v57 = vcombine.high %v16138_v32, %v16138_v32  ;;  %v11383_v52 = vcombine.low %v16150_v60, %v16150_v60 }
 0xc33   : > { %9809 = vrot.lane.b32.xlu1 %v11807_v5, %s11933_s24  ;;  %v18447_v5 = vld [vmem:[#allocation144_spill] sm:$0xff] }
 0xc34   : > { %9288 = vrot.lane.b32.xlu0 %v11793_v49, %s11930_s21  ;;  %v11757_v49 = vcombine.high %v15930_v22, %v15930_v22  ;;  %v18451_v22 = vld [vmem:[#allocation154_spill] sm:$0xff] }
 0xc37   : > { %10109 = vrot.lane.b32.xlu1 %v11503_v28, %s11927_s18  ;;  %v18448_v28 = vld [vmem:[#allocation143_spill] sm:$0xff] }
 0xc38   : > { %10069 = vrot.lane.b32.xlu0 %v11813_v17, %s11930_s21  ;;  %v18449_v17 = vcombine.high %v18447_v5, %v18448_v28  ;;  %v11778_v5 = vcombine.high %v15958_v36, %v15958_v36  ;;  %v16199_v36 = vrot.slane %v9189_v59, %v12011_v24  ;;  %v18456_v28 = vld [vmem:[#allocation149_spill] sm:$0xff] }
 0xc3a   : > { %v16168_v48 = vrot.slane %v18449_v17, %v12011_v24  ;;  %v11458_v59 = vcombine.low %v16199_v36, %v16199_v36 }
 0xc3b   : > { %10392 = vrot.lane.b32.xlu1 %v11827_v37, %s11933_s24  ;;  %v18450_v37 = vld [vmem:[#allocation159_spill] sm:$0xff] }
 0xc3c   : > { %10352 = vrot.lane.b32.xlu0 %v11822_v15, %s11929_s20  ;;  %v10443_v15 = vpack.i.b16 %v17776_v30, %v18450_v37  ;;  %v11424_v12 = vcombine.low %v16168_v48, %v16168_v48 }
 0xc3d   : > { %v16158_v42 = vpop.permute.xlu0 %9814 }
 0xc3e   : > { %18446 = vst [vmem:[#allocation158_spill] sm:$0xff] %v16158_v42  ;;  %v18475_v42 = vld [vmem:[#allocation157_spill] sm:$0xff] }
 0xc3f   : > { %10635 = vrot.lane.b32.xlu1 %v11832_v57, %s11928_s19  ;;  %v18452_v57 = vld [vmem:[#allocation160_spill] sm:$0xff] }
 0xc40   : > { %10595 = vrot.lane.b32.xlu0 %v11521_v51, %s11931_s22  ;;  %v10438_v51 = vpack.i.b16 %v18452_v57, %v18451_v22  ;;  %v11441_v22 = vcombine.low %v16187_v39, %v16187_v39 }
 0xc41   : > { %v16180_v0 = vpop.permute.xlu1 %9779  ;;  %v16192_v53 = vpop.permute.xlu0 %9819 }
 0xc42   : > { %18453 = vst [vmem:[#allocation139_spill] sm:$0xff] %v16180_v0  ;;  %18454 = vst [vmem:[#allocation138_spill] sm:$0xff] %v16192_v53  ;;  %v16204_v31 = vrot.slane %v10438_v51, %v11979_v8  ;;  %v18465_v0 = vld [vmem:[#allocation162_spill] sm:$0xff]  ;;  %v11774_v53 = vcombine.high %v16075_v61, %v16075_v61  ;;  %v11779_v61 = vcombine.high %v16090_v54, %v16090_v54 }
 0xc43   : > { %7985 = vrot.lane.b32.xlu1 %v11383_v52, %s11927_s18  ;;  %v16190_v52 = vrot.slane %v9937_v27, %v12011_v24  ;;  %v16207_v27 = vrot.slane %v10443_v15, %v11979_v8 }
 0xc44   : > { %7945 = vrot.lane.b32.xlu0 %v11757_v49, %s11930_s21  ;;  %v18455_v49 = vld [vmem:[#allocation150_spill] sm:$0xff] }
 0xc45   : > { %v10039_v17 = vcombine.high %v18456_v28, %v18455_v49  ;;  %v11496_v2 = vcombine.low %v16190_v52, %v16190_v52  ;;  %v10472_v51 = vcombine.low %v16204_v31, %v16207_v27  ;;  %v7813_v49 = vcombine.high %v16017_v7, %v16020_v1 }
 0xc47   : > { %8719 = vrot.lane.b32.xlu1 %v11778_v5, %s11929_s20  ;;  %v16220_v57 = vrot.slane %v10039_v17, %v12011_v24  ;;  %v16226_v5 = vpop.permute.xlu0 %9784  ;;  %v16243_v15 = vrot.slane %v10472_v51, %v12011_v24 }
 0xc48   : > { %8679 = vrot.lane.b32.xlu0 %v11424_v12, %s11932_s23  ;;  %18458 = vst [vmem:[#allocation142_spill] sm:$0xff] %v16226_v5  ;;  %v18464_v5 = vld [vmem:[#allocation163_spill] sm:$0xff] }
 0xc49   : > { %v16209_v37 = vpop.permute.xlu1 %10362  ;;  %18462 = vst [vmem:[#allocation144_spill] sm:$0xff] %v16243_v15  ;;  %v8780_v7 = vpack.i.b16 %v18465_v0, %v18464_v5  ;;  %v11828_v51 = vcombine.high %v16243_v15, %v16243_v15 }
 0xc4a   : > { %18457 = vst [vmem:[#allocation141_spill] sm:$0xff] %v16209_v37 }
 0xc4b   : > { %9253 = vrot.lane.b32.xlu1 %v11789_v56, %s11930_s21  ;;  %v11504_v56 = vcombine.low %v16220_v57, %v16220_v57  ;;  %v16277_v5 = vrot.slane %v8780_v7, %v11979_v8  ;;  %v9121_v7 = vcombine.high %v16050_v21, %v16047_v41  ;;  %v18476_v21 = vld [vmem:[#allocation167_spill] sm:$0xff] }
 0xc4c   : > { %8962 = vrot.lane.b32.xlu0 %v11441_v22, %s11931_s22  ;;  %v11823_v22 = vcombine.high %v16044_v3, %v16044_v3  ;;  %v11833_v3 = vcombine.high %v16064_v16, %v16064_v16  ;;  %v18470_v16 = vcombine.low %v15962_v38, %v15968_v43 }
 0xc4d   : > { %v16228_v12 = vpop.permute.xlu1 %9824  ;;  %v16236_v28 = vpop.permute.xlu0 %10327  ;;  %v16314_v41 = vrot.slane %v9121_v7, %v12011_v24 }
 0xc4e   : > { %18459 = vst [vmem:[#allocation156_spill] sm:$0xff] %v16228_v12  ;;  %18460 = vst [vmem:[#allocation153_spill] sm:$0xff] %v16236_v28  ;;  %v16274_v0 = vrot.slane %v18470_v16, %v12011_v24 }
 0xc4f   : > { %10074 = vrot.lane.b32.xlu1 %v11496_v2, %s11927_s18  ;;  %v18463_v2 = vld [vmem:[#allocation166_spill] sm:$0xff] }
 0xc50   : > { %9293 = vrot.lane.b32.xlu0 %v11458_v59, %s11927_s18  ;;  %v8785_v59 = vpack.i.b16 %v17776_v30, %v18463_v2  ;;  %v16266_v2 = vrot.slane %v7813_v49, %v12011_v24  ;;  %v8838_v49 = vcombine.low %v15839_v58, %v15832_v14 }
 0xc51   : > { %v16238_v17 = vpop.permute.xlu1 %10367 }
 0xc52   : > { %18461 = vst [vmem:[#allocation152_spill] sm:$0xff] %v16238_v17  ;;  %v18468_v17 = vld [vmem:[#allocation147_spill] sm:$0xff] }
 0xc53   : > { %10357 = vrot.lane.b32.xlu1 %v11823_v22, %s11933_s24  ;;  %v18467_v22 = vld [vmem:[#allocation151_spill] sm:$0xff] }
 0xc54   : > { %10114 = vrot.lane.b32.xlu0 %v11504_v56, %s11932_s23  ;;  %v18469_v56 = vcombine.high %v18467_v22, %v18468_v17  ;;  %v16280_v17 = vrot.slane %v8785_v59, %v11979_v8  ;;  %v11413_v59 = vcombine.low %v16274_v0, %v16274_v0 }
 0xc55   : > { %v16253_v12 = vpop.permute.xlu1 %9789 }
 0xc56   : > { %v16251_v1 = vpop.permute.xlu0 %8694  ;;  %18466 = vst [vmem:[#allocation143_spill] sm:$0xff] %v16253_v12  ;;  %v16263_v37 = vrot.slane %v18469_v56, %v12011_v24  ;;  %v11376_v56 = vcombine.low %v16266_v2, %v16266_v2  ;;  %v8872_v16 = vcombine.low %v16277_v5, %v16280_v17 }
 0xc57   : > { %10640 = vrot.lane.b32.xlu1 %v11833_v3, %s11930_s21 }
 0xc58   : > { %10600 = vrot.lane.b32.xlu0 %v11828_v51, %s11928_s19  ;;  %v11384_v51 = vcombine.low %v16263_v37, %v16263_v37 }
 0xc59   : > { %v16286_v3 = vpop.permute.xlu1 %10332 }
 0xc5a   : > { %v16284_v22 = vpop.permute.xlu0 %9829  ;;  %18472 = vst [vmem:[#allocation154_spill] sm:$0xff] %v16286_v3 }
 0xc5b   : > { %18471 = vst [vmem:[#allocation159_spill] sm:$0xff] %v16284_v22  ;;  %7990 = vrot.lane.b32.xlu1 %v11384_v51, %s11932_s23  ;;  %v16307_v51 = vrot.slane %v8838_v49, %v12011_v24 }
 0xc5c   : > { %7950 = vrot.lane.b32.xlu0 %v11376_v56, %s11927_s18  ;;  %v18474_v56 = vld [vmem:[#allocation161_spill] sm:$0xff] }
 0xc5d   : > { %v16302_v22 = vpop.permute.xlu1 %8659  ;;  %v9223_v15 = vcombine.high %v18475_v42, %v18474_v56  ;;  %v11434_v42 = vcombine.low %v16307_v51, %v16307_v51 }
 0xc5e   : > { %v16300_v12 = vpop.permute.xlu0 %10372 }
 0xc5f   : > { %18473 = vst [vmem:[#allocation160_spill] sm:$0xff] %v16300_v12  ;;  %8684 = vrot.lane.b32.xlu1 %v11774_v53, %s11929_s20  ;;  %v18477_v12 = vld [vmem:[#allocation168_spill] sm:$0xff]  ;;  %v16327_v53 = vrot.slane %v8872_v16, %v12011_v24  ;;  %v16330_v49 = vrot.slane %v9223_v15, %v12011_v24 }
 0xc60   : > { %8418 = vrot.lane.b32.xlu0 %v11413_v59, %s11931_s22  ;;  %v9971_v3 = vcombine.high %v18477_v12, %v18476_v21  ;;  %v11451_v12 = vcombine.low %v16314_v41, %v16314_v41  ;;  %v11893_v21 = vld [vmem:[%s11977_s17 + $0x7c] sm:$0xf] }
 0xc61   : > { %v16320_v14 = vpop.permute.xlu1 %9794  ;;  %18479 = vst [vmem:[#allocation149_spill] sm:$0xff] %v16327_v53  ;;  %v11784_v16 = vcombine.high %v16327_v53, %v16327_v53  ;;  %v11459_v15 = vcombine.low %v16330_v49, %v16330_v49 }
 0xc62   : > { %v16318_v28 = vpop.permute.xlu0 %8699  ;;  %18478 = vst [vmem:[#allocation150_spill] sm:$0xff] %v16320_v14  ;;  %v16337_v54 = vrot.slane %v9971_v3, %v12011_v24  ;;  %v11894_v3 = vld [vmem:[%s11977_s17 + $0x70] sm:$0xf] }
 0xc63   : > { %8927 = vrot.lane.b32.xlu1 %v11434_v42, %s11931_s22  ;;  %v11895_v42 = vld [vmem:[%s11977_s17 + $0x88] sm:$0xf] }
 0xc64   : > { %8724 = vrot.lane.b32.xlu0 %v11779_v61, %s11933_s24  ;;  %v11497_v56 = vcombine.low %v16337_v54, %v16337_v54  ;;  %v8236_v61 = vpack.i.b16 %v11893_v21, %v11894_v3  ;;  %v8241_v14 = vpack.i.b16 %v17776_v30, %v11895_v42  ;;  %v18484_v3 = vld [vmem:[#allocation169_spill] sm:$0xff]  ;;  %v18486_v42 = vld [vmem:[#allocation170_spill] sm:$0xff] }
 0xc65   : > { %v16341_v7 = vpop.permute.xlu1 %10094 }
 0xc66   : > { %v16339_v59 = vpop.permute.xlu0 %9834  ;;  %18481 = vst [vmem:[#allocation163_spill] sm:$0xff] %v16341_v7  ;;  %v16369_v21 = vrot.slane %v8241_v14, %v11979_v8  ;;  %v18487_v14 = vcombine.high %v15642_v55, %v15627_v6 }
 0xc67   : > { %18480 = vst [vmem:[#allocation166_spill] sm:$0xff] %v16339_v59  ;;  %9258 = vrot.lane.b32.xlu1 %v11451_v12, %s11927_s18  ;;  %v10541_v59 = vcombine.high %v16115_v23, %v16112_v11  ;;  %v11818_v12 = vcombine.high %v16109_v18, %v16109_v18  ;;  %v8775_v11 = vpack.i.b16 %v17776_v30, %v18484_v3  ;;  %v18485_v23 = vld [vmem:[#allocation164_spill] sm:$0xff] }
 0xc68   : > { %8967 = vrot.lane.b32.xlu0 %v11784_v16, %s11928_s19  ;;  %v16366_v16 = vrot.slane %v8236_v61, %v11979_v8  ;;  %v16388_v61 = vrot.slane %v18487_v14, %v12011_v24  ;;  %v18488_v3 = vcombine.low %v16004_v20, %v16007_v34  ;;  %v11762_v20 = vcombine.high %v16150_v60, %v16150_v60 }
 0xc69   : > { %v16359_v7 = vpop.permute.xlu1 %10377  ;;  %v16382_v18 = vrot.slane %v10541_v59, %v12011_v24  ;;  %v16404_v6 = vrot.slane %v8775_v11, %v11979_v8 }
 0xc6a   : > { %v16357_v53 = vpop.permute.xlu0 %10337  ;;  %18483 = vst [vmem:[#allocation151_spill] sm:$0xff] %v16359_v7 }
 0xc6b   : > { %18482 = vst [vmem:[#allocation162_spill] sm:$0xff] %v16357_v53  ;;  %10079 = vrot.lane.b32.xlu1 %v11497_v56, %s11932_s23  ;;  %v8770_v53 = vpack.i.b16 %v18486_v42, %v18485_v23  ;;  %v11829_v56 = vcombine.high %v16141_v50, %v16141_v50  ;;  %v16396_v23 = vrot.slane %v18488_v3, %v12011_v24 }
 0xc6c   : > { %9298 = vrot.lane.b32.xlu0 %v11459_v15, %s11932_s23  ;;  %v8328_v50 = vcombine.low %v16366_v16, %v16369_v21  ;;  %v11531_v42 = vcombine.low %v16382_v18, %v16382_v18 }
 0xc6d   : > { %v16377_v15 = vpop.permute.xlu1 %8664  ;;  %v16401_v59 = vrot.slane %v8770_v53, %v11979_v8  ;;  %v11406_v53 = vcombine.low %v16396_v23, %v16396_v23 }
 0xc6e   : > { %v16375_v7 = vpop.permute.xlu0 %7970  ;;  %v16419_v11 = vrot.slane %v8328_v50, %v12011_v24  ;;  %v9155_v50 = vcombine.high %v15913_v19, %v15910_v40  ;;  %v9490_v40 = vcombine.low %v15889_v29, %v15906_v10 }
 0xc6f   : > { %10605 = vrot.lane.b32.xlu1 %v11829_v56, %s11930_s21  ;;  %v11377_v56 = vcombine.low %v16388_v61, %v16388_v61  ;;  %v8804_v14 = vcombine.low %v16401_v59, %v16404_v6 }
 0xc70   : > { %10119 = vrot.lane.b32.xlu0 %v11818_v12, %s11929_s20  ;;  %18490 = vst [vmem:[#allocation161_spill] sm:$0xff] %v16419_v11 }
 0xc71   : > { %v16408_v12 = vpop.permute.xlu1 %9278  ;;  %v16442_v60 = vrot.slane %v8804_v14, %v12011_v24 }
 0xc72   : > { %v16406_v55 = vpop.permute.xlu0 %8704  ;;  %18489 = vst [vmem:[#allocation147_spill] sm:$0xff] %v16408_v12 }
 0xc73   : > { %7955 = vrot.lane.b32.xlu1 %v11377_v56, %s11932_s23  ;;  %18494 = vst [vmem:[#allocation169_spill] sm:$0xff] %v16442_v60  ;;  %v11780_v14 = vcombine.high %v16442_v60, %v16442_v60 }
 0xc74   : > { %10645 = vrot.lane.b32.xlu0 %v11531_v42, %s11927_s18  ;;  %v11768_v42 = vcombine.high %v16419_v11, %v16419_v11 }
 0xc75   : > { %v16425_v34 = vpop.permute.xlu1 %9839 }
 0xc76   : > { %v16423_v3 = vpop.permute.xlu0 %9799  ;;  %18492 = vst [vmem:[#allocation167_spill] sm:$0xff] %v16425_v34  ;;  %v11897_v34 = vld [vmem:[%s11977_s17 + $0x78] sm:$0xf] }
 0xc77   : > { %18491 = vst [vmem:[#allocation157_spill] sm:$0xff] %v16423_v3  ;;  %8383 = vrot.lane.b32.xlu1 %v11406_v53, %s11931_s22  ;;  %v11775_v3 = vcombine.high %v16168_v48, %v16168_v48  ;;  %v11785_v48 = vcombine.high %v16187_v39, %v16187_v39  ;;  %v10473_v39 = vcombine.high %v16204_v31, %v16207_v27 }
 0xc78   : > { %7995 = vrot.lane.b32.xlu0 %v11762_v20, %s11929_s20  ;;  %v16447_v20 = vrot.slane %v9155_v50, %v12011_v24  ;;  %v11896_v50 = vld [vmem:[%s11977_s17 + $0x6c] sm:$0xf] }
 0xc79   : > { %v16437_v12 = vpop.permute.xlu1 %10099  ;;  %v8226_v11 = vpack.i.b16 %v11897_v34, %v11896_v50  ;;  %v11814_v34 = vcombine.high %v16190_v52, %v16190_v52  ;;  %v11819_v52 = vcombine.high %v16220_v57, %v16220_v57  ;;  %v18497_v50 = vcombine.high %v15698_v45, %v15708_v62 }
 0xc7a   : > { %v16435_v56 = vpop.permute.xlu0 %10059  ;;  %18493 = vst [vmem:[#allocation168_spill] sm:$0xff] %v16437_v12  ;;  %v11758_v12 = vcombine.high %v16266_v2, %v16266_v2  ;;  %v9364_v62 = vpack.i.b16 %v15815_v26, %v15829_v35  ;;  %v11763_v2 = vcombine.high %v16263_v37, %v16263_v37  ;;  %v11769_v26 = vcombine.high %v16274_v0, %v16274_v0 }
 0xc7b   : > { %8689 = vrot.lane.b32.xlu1 %v11775_v3, %s11933_s24  ;;  %v11452_v3 = vcombine.low %v16447_v20, %v16447_v20  ;;  %v11781_v37 = vcombine.high %v16307_v51, %v16307_v51  ;;  %v11790_v0 = vcombine.high %v16314_v41, %v16314_v41 }
 0xc7c   : > { %8423 = vrot.lane.b32.xlu0 %v11768_v42, %s11928_s19  ;;  %v11794_v42 = vcombine.high %v16199_v36, %v16199_v36  ;;  %v16476_v36 = vrot.slane %v9490_v40, %v12011_v24  ;;  %v16549_v35 = vrot.slane %v9364_v62, %v11979_v8 }
 0xc7d   : > { %v16453_v53 = vpop.permute.xlu1 %10382 }
 0xc7e   : > { %v16451_v19 = vpop.permute.xlu0 %10342  ;;  %18496 = vst [vmem:[#allocation170_spill] sm:$0xff] %v16453_v53  ;;  %v11898_v53 = vld [vmem:[%s11977_s17 + $0x84] sm:$0xf]  ;;  %v11469_v40 = vcombine.low %v16476_v36, %v16476_v36 }
 0xc7f   : > { %18495 = vst [vmem:[#allocation164_spill] sm:$0xff] %v16451_v19  ;;  %8972 = vrot.lane.b32.xlu1 %v11785_v48, %s11930_s21  ;;  %v8231_v10 = vpack.i.b16 %v17776_v30, %v11898_v53  ;;  %v16483_v48 = vrot.slane %v8226_v11, %v11979_v8 }
 0xc80   : > { %8932 = vrot.lane.b32.xlu0 %v11780_v14, %s11928_s19  ;;  %v16495_v14 = vrot.slane %v10473_v39, %v12011_v24  ;;  %v16513_v39 = vrot.slane %v18497_v50, %v12011_v24 }
 0xc81   : > { %v16473_v29 = vpop.permute.xlu1 %7975  ;;  %v16486_v53 = vrot.slane %v8231_v10, %v11979_v8 }
 0xc82   : > { %v16471_v60 = vpop.permute.xlu0 %7935  ;;  %v11532_v19 = vcombine.low %v16513_v39, %v16513_v39 }
 0xc83   : > { %9303 = vrot.lane.b32.xlu1 %v11794_v42, %s11929_s20  ;;  %v8260_v10 = vcombine.low %v16483_v48, %v16486_v53 }
 0xc84   : > { %9263 = vrot.lane.b32.xlu0 %v11452_v3, %s11932_s23  ;;  %v11524_v3 = vcombine.low %v16495_v14, %v16495_v14 }
 0xc85   : > { %v16490_v27 = vpop.permute.xlu1 %8709  ;;  %v16518_v57 = vrot.slane %v8260_v10, %v12011_v24  ;;  %v18501_v10 = vld [vmem:[#allocation174_spill] sm:$0xff] }
 0xc86   : > { %v16488_v31 = vpop.permute.xlu0 %8669 }
 0xc87   : > { %10084 = vrot.lane.b32.xlu1 %v11814_v34, %s11929_s20  ;;  %18498 = vst [vmem:[#allocation181_spill] sm:$0xff] %v16518_v57  ;;  %v11764_v45 = vcombine.high %v16518_v57, %v16518_v57 }
 0xc88   : > { %9546 = vrot.lane.b32.xlu0 %v11469_v40, %s11931_s22 }
 0xc89   : > { %v16505_v42 = vpop.permute.xlu1 %9283 }
 0xc8a   : > { %v16503_v11 = vpop.permute.xlu0 %9243 }
 0xc8b   : > { %10610 = vrot.lane.b32.xlu1 %v11524_v3, %s11927_s18  ;;  %v9369_v3 = vpack.i.b16 %v17776_v30, %v18501_v10 }
 0xc8c   : > { %10124 = vrot.lane.b32.xlu0 %v11819_v52, %s11933_s24  ;;  %v8873_v52 = vcombine.high %v16277_v5, %v16280_v17  ;;  %v9422_v17 = vcombine.low %v15941_v63, %v15933_v9  ;;  %v18508_v9 = vld [vmem:[#allocation175_spill] sm:$0xff] }
 0xc8d   : > { %v16522_v40 = vpop.permute.xlu1 %9844  ;;  %v16552_v5 = vrot.slane %v9369_v3, %v11979_v8 }
 0xc8e   : > { %v16520_v34 = vpop.permute.xlu0 %9804  ;;  %18500 = vst [vmem:[#allocation183_spill] sm:$0xff] %v16522_v40  ;;  %v16576_v51 = vrot.slane %v9422_v17, %v12011_v24  ;;  %v11815_v17 = vcombine.high %v16337_v54, %v16337_v54  ;;  %v8329_v54 = vcombine.high %v16366_v16, %v16369_v21  ;;  %v11834_v21 = vcombine.high %v16382_v18, %v16382_v18 }
 0xc8f   : > { %18499 = vst [vmem:[#allocation182_spill] sm:$0xff] %v16520_v34  ;;  %7960 = vrot.lane.b32.xlu1 %v11758_v12, %s11929_s20  ;;  %v9456_v62 = vcombine.low %v16549_v35, %v16552_v5 }
 0xc90   : > { %10650 = vrot.lane.b32.xlu0 %v11532_v19, %s11932_s23 }
 0xc91   : > { %v16540_v34 = vpop.permute.xlu1 %10104  ;;  %v16589_v57 = vrot.slane %v9456_v62, %v12011_v24 }
 0xc92   : > { %v16538_v50 = vpop.permute.xlu0 %10064 }
 0xc93   : > { %8388 = vrot.lane.b32.xlu1 %v11764_v45, %s11928_s19  ;;  %v16563_v45 = vrot.slane %v8873_v52, %v12011_v24  ;;  %v11795_v52 = vcombine.high %v16330_v49, %v16330_v49  ;;  %18503 = vst [vmem:[#allocation184_spill] sm:$0xff] %v16589_v57 }
 0xc94   : > { %8000 = vrot.lane.b32.xlu0 %v11763_v2, %s11933_s24 }
 0xc95   : > { %v16558_v19 = vpop.permute.xlu1 %10387  ;;  %v11444_v2 = vcombine.low %v16563_v45, %v16563_v45 }
 0xc96   : > { %v16556_v12 = vpop.permute.xlu0 %10347  ;;  %18502 = vst [vmem:[#allocation174_spill] sm:$0xff] %v16558_v19  ;;  %v18504_v19 = vcombine.high %v15742_v47, %v15734_v4  ;;  %v9359_v4 = vpack.i.b16 %v17776_v30, %v18508_v9  ;;  %v8805_v47 = vcombine.high %v16401_v59, %v16404_v6  ;;  %v11765_v9 = vcombine.high %v16396_v23, %v16396_v23 }
 0xc97   : > { %8937 = vrot.lane.b32.xlu1 %v11781_v37, %s11930_s21  ;;  %v11462_v37 = vcombine.low %v16576_v51, %v16576_v51  ;;  %v16641_v59 = vrot.slane %v8329_v54, %v12011_v24 }
 0xc98   : > { %8428 = vrot.lane.b32.xlu0 %v11769_v26, %s11930_s21  ;;  %v16605_v62 = vrot.slane %v18504_v19, %v12011_v24 }
 0xc99   : > { %v16571_v3 = vpop.permute.xlu1 %7940  ;;  %v11416_v23 = vcombine.low %v16641_v59, %v16641_v59 }
 0xc9a   : > { %v10631_v10 = vpop.permute.xlu0 %10630  ;;  %v11525_v16 = vcombine.low %v16605_v62, %v16605_v62 }
 0xc9b   : > { %9268 = vrot.lane.b32.xlu1 %v11790_v0, %s11929_s20 }
 0xc9c   : > { %8977 = vrot.lane.b32.xlu0 %v11444_v2, %s11927_s18  ;;  %v11800_v2 = vcombine.high %v16589_v57, %v16589_v57  ;;  %v18507_v57 = vld [vmem:[#allocation177_spill] sm:$0xff] }
 0xc9d   : > { %v16584_v26 = vpop.permute.xlu1 %8674 }
 0xc9e   : > { %v16582_v41 = vpop.permute.xlu0 %7980 }
 0xc9f   : > { %9511 = vrot.lane.b32.xlu1 %v11462_v37, %s11931_s22  ;;  %v18506_v37 = vld [vmem:[#allocation173_spill] sm:$0xff] }
 0xca0   : > { %9308 = vrot.lane.b32.xlu0 %v11795_v52, %s11933_s24  ;;  %v16610_v52 = vld [vmem:[%s17597_s1] sm:$0xff]   ;;  %v9354_v40 = vpack.i.b16 %v18507_v57, %v18506_v37  ;;  %v16647_v57 = vrot.slane %v9359_v4, %v11979_v8  ;;  %v11759_v37 = vcombine.high %v16388_v61, %v16388_v61  ;;  %v18510_v4 = vcombine.high %v15790_v25, %v15804_v46 }
 0xca1   : > { %v16597_v49 = vpop.permute.xlu1 %9248  ;;  %18505 = vst [vmem:[#allocation185_spill] sm:$0xff] %v16610_v52  ;;  %11099 = vmatmul.mubr.msk.bf16.vlgmr.msra.gmra.mxu0 %vm428_vm7, %v16610_v52  ;;  %11239 = vmatmul.mubr.msk.bf16.vlgmr.msra.gmra.mxu1 %vm428_vm7, %v16610_v52  ;;  %v8261_v46 = vcombine.high %v16483_v48, %v16486_v53  ;;  %v11801_v53 = vcombine.high %v16476_v36, %v16476_v36 }
 0xca2   : > { %v16595_v0 = vpop.permute.xlu0 %8714  ;;  %2875 = vmatprep.mubr.bf16.mxu0 %v17776_v30  ;;  %5534 = vmatprep.mubr.bf16.mxu1 %v17776_v30  ;;  %v16644_v6 = vrot.slane %v9354_v40, %v11979_v8 }
 0xca3   : > { %10089 = vrot.lane.b32.xlu1 %v11815_v17, %s11933_s24 }
 0xca4   : > { %9551 = vrot.lane.b32.xlu0 %v11800_v2, %s11928_s19  ;;  %v9388_v8 = vcombine.low %v16644_v6, %v16647_v57 }
 0xca5   : > { %v16628_v17 = vpop.permute.xlu1 %9809 }
 0xca6   : > { %v16626_v19 = vpop.permute.xlu0 %9288  ;;  %18509 = vst [vmem:[#allocation173_spill] sm:$0xff] %v16628_v17 }
 0xca7   : > { %10655 = vrot.lane.b32.xlu1 %v11834_v21, %s11929_s20  ;;  %v11791_v21 = vcombine.high %v16447_v20, %v16447_v20  ;;  %v8019_v20 = vsel %vm424_vm6, %v15927_v44, %v16375_v7 }
 0xca8   : > { %10615 = vrot.lane.b32.xlu0 %v11525_v16, %s11932_s23  ;;  %v16656_v16 = vrot.slane %v8805_v47, %v12011_v24  ;;  %v16674_v47 = vrot.slane %v18510_v4, %v12011_v24 }
 0xca9   : > { %v16651_v2 = vpop.permute.xlu1 %10109 }
 0xcaa   : > { %v16649_v18 = vpop.permute.xlu0 %10069  ;;  %v11437_v61 = vcombine.low %v16656_v16, %v16656_v16  ;;  %v11445_v25 = vcombine.low %v16674_v47, %v16674_v47 }
 0xcab   : > { %8393 = vrot.lane.b32.xlu1 %v11765_v9, %s11930_s21  ;;  %v16681_v9 = vrot.slane %v9388_v8, %v12011_v24 }
 0xcac   : > { %7965 = vrot.lane.b32.xlu0 %v11759_v37, %s11933_s24  ;;  %v10679_v37 = vsel %vm424_vm6, %v16138_v32, %v10631_v10  ;;  %v8004_v32 = vsel %vm424_vm6, %v16061_v13, %v16471_v60  ;;  %v8021_v10 = vsel %vm428_vm7, %v8019_v20, %v16473_v29  ;;  %v16716_v29 = vrot.slane %v8261_v46, %v12011_v24 }
 0xcad   : > { %v16666_v54 = vpop.permute.xlu1 %10392  ;;  %v11796_v48 = vcombine.high %v16681_v9, %v16681_v9  ;;  %v8006_v7 = vsel %vm428_vm7, %v8004_v32, %v16571_v3  ;;  %v8023_v8 = vsel %vm18512_vm2, %v8021_v10, %v16582_v41  ;;  %v11830_v32 = vcombine.high %v16495_v14, %v16495_v14 }
 0xcae   : > { %v16664_v40 = vpop.permute.xlu0 %10352  ;;  %vm18523_vm2 = vcmask 785408   ;;  %v9457_v14 = vcombine.high %v16549_v35, %v16552_v5  ;;  %v18527_v35 = vld [vmem:[#allocation147_spill] sm:$0xff]  ;;  %v18528_v5 = vld [vmem:[#allocation180_spill] sm:$0xff] }
 0xcaf   : > { %8942 = vrot.lane.b32.xlu1 %v11437_v61, %s11927_s18  ;;  %v18513_v61 = vld [vmem:[#allocation165_spill] sm:$0xff] }
 0xcb0   : > { %8433 = vrot.lane.b32.xlu0 %v11416_v23, %s11927_s18  ;;  %v8728_v4 = vsel %vm424_vm6, %v18513_v61, %v16302_v22 }
 0xcb1   : > { %v10636_v17 = vpop.permute.xlu1 %10635  ;;  %v8730_v41 = vsel %vm428_vm7, %v8728_v4, %v16377_v15 }
 0xcb2   : > { %v16685_v52 = vpop.permute.xlu0 %10595  ;;  %v16692_v23 = vsel %vm428_vm7, %v10679_v37, %v10636_v17  ;;  %v18511_v17 = vld [vmem:[#allocation155_spill] sm:$0xff]  ;;  %v8732_v37 = vsel %vm18518_vm1, %v8730_v41, %v16488_v31 }
 0xcb3   : > { %9273 = vrot.lane.b32.xlu1 %v11791_v21, %s11933_s24  ;;  %v8743_v44 = vsel %vm424_vm6, %v18511_v17, %v16251_v1  ;;  %v8734_v15 = vsel %vm18520_vm11, %v8732_v37, %v16584_v26 }
 0xcb4   : > { %8982 = vrot.lane.b32.xlu0 %v11445_v25, %s11932_s23  ;;  %v8745_v36 = vsel %vm428_vm7, %v8743_v44, %v16318_v28  ;;  %v18517_v28 = vcombine.high %v15962_v38, %v15968_v43  ;;  %v11835_v38 = vcombine.high %v16513_v39, %v16513_v39  ;;  %v9312_v39 = vsel %vm424_vm6, %v16080_v33, %v16503_v11  ;;  %v18529_v33 = vld [vmem:[#allocation63_spill] sm:$0xff] }
 0xcb5   : > { %v7986_v60 = vpop.permute.xlu1 %7985  ;;  %v8747_v21 = vsel %vm18516_vm3, %v8745_v36, %v16406_v55  ;;  %v10128_v11 = vsel %vm424_vm6, %v18529_v33, %v16435_v56  ;;  %v16801_v36 = vrot.slane %v9457_v14, %v12011_v24  ;;  %v18532_v56 = vld [vmem:[#allocation154_spill] sm:$0xff]  ;;  %vm18534_vm3 = vmmov %vm18518_vm1  ;;  %v18543_v14 = vld [vmem:[#allocation145_spill] sm:$0xff]  ;;  %v11797_v33 = vcombine.high %v16576_v51, %v16576_v51 }
 0xcb6   : > { %v7946_v13 = vpop.permute.xlu0 %7945  ;;  %v16727_v3 = vsel %vm18515_vm10, %v8023_v8, %v7986_v60  ;;  %v16739_v22 = vrot.slane %v18517_v28, %v12011_v24  ;;  %v8749_v25 = vsel %vm18519_vm13, %v8747_v21, %v16490_v27  ;;  %v11409_v27 = vcombine.low %v16716_v29, %v16716_v29  ;;  %vm18533_vm10 = vmmov %vm18518_vm1  ;;  %v18551_v51 = vld [vmem:[#allocation144_spill] sm:$0xff] }
 0xcb7   : > { %v16724_v1 = vsel %vm18514_vm5, %v8006_v7, %v7946_v13  ;;  %9556 = vrot.lane.b32.xlu1 %v11801_v53, %s11930_s21  ;;  %v8751_v55 = vsel %vm18521_vm9, %v8749_v25, %v16595_v0  ;;  %v9314_v0 = vsel %vm428_vm7, %v9312_v39, %v16597_v49  ;;  %v18524_v53 = vld [vmem:[#allocation171_spill] sm:$0xff]  ;;  %vm18526_vm5 = vmmov %vm18518_vm1  ;;  %v9327_v8 = vsel %vm424_vm6, %v18528_v5, %v18527_v35  ;;  %v18530_v49 = vld [vmem:[#allocation153_spill] sm:$0xff] }
 0xcb8   : > { %9516 = vrot.lane.b32.xlu0 %v11796_v48, %s11928_s19  ;;  %v11417_v26 = vcombine.low %v16739_v22, %v16739_v22  ;;  %v18525_v17 = vcombine.high %v15839_v58, %v18524_v53  ;;  %v11786_v58 = vcombine.high %v16563_v45, %v16563_v45  ;;  %v18531_v13 = vld [vmem:[#allocation146_spill] sm:$0xff]  ;;  %v9329_v61 = vsel %vm428_vm7, %v9327_v8, %v16505_v42  ;;  %v18535_v25 = vld [vmem:[#allocation163_spill] sm:$0xff]  ;;  %vm18538_vm13 = vmmov %vm18520_vm11 }
 0xcb9   : > { %v8720_v20 = vpop.permute.xlu1 %8719  ;;  %v10396_v60 = vsel %vm424_vm6, %v18531_v13, %v18530_v49  ;;  %v10130_v4 = vsel %vm428_vm7, %v10128_v11, %v16538_v50  ;;  %v9331_v21 = vsel %vm18533_vm10, %v9329_v61, %v16626_v19  ;;  %vm18541_vm9 = vmmov %vm18520_vm11  ;;  %vm18548_vm10 = vcmask 785408  }
 0xcba   : > { %v8680_v46 = vpop.permute.xlu0 %8679  ;;  %v16757_v31 = vsel %vm18523_vm2, %v8751_v55, %v8720_v20  ;;  %v16778_v44 = vrot.slane %v18525_v17, %v12011_v24  ;;  %v10398_v41 = vsel %vm428_vm7, %v10396_v60, %v18532_v56  ;;  %v10132_v45 = vsel %vm18534_vm3, %v10130_v4, %v16649_v18  ;;  %v18537_v55 = vld [vmem:[#allocation162_spill] sm:$0xff] }
 0xcbb   : > { %v16754_v43 = vsel %vm18522_vm0, %v8734_v15, %v8680_v46  ;;  %10660 = vrot.lane.b32.xlu1 %v11835_v38, %s11933_s24  ;;  %v18536_v15 = vld [vmem:[#allocation172_spill] sm:$0xff]  ;;  %v10400_v46 = vsel %vm18518_vm1, %v10398_v41, %v18537_v55  ;;  %vm18545_vm0 = vmmov %vm18518_vm1  ;;  %vm18546_vm2 = vcmask 654336   ;;  %v11472_v11 = vcombine.low %v16801_v36, %v16801_v36 }
 0xcbc   : > { %10620 = vrot.lane.b32.xlu0 %v11830_v32, %s11929_s20  ;;  %v11438_v42 = vcombine.low %v16778_v44, %v16778_v44  ;;  %v10143_v50 = vsel %vm424_vm6, %v18536_v15, %v18535_v25  ;;  %v18539_v32 = vld [vmem:[#allocation168_spill] sm:$0xff]  ;;  %vm18549_vm3 = vmmov %vm18546_vm2  ;;  %vm18550_vm1 = vcmask 916480   ;;  %v11831_v60 = vcombine.high %v16605_v62, %v16605_v62 }
 0xcbd   : > { %v9254_v48 = vpop.permute.xlu1 %9253  ;;  %v10145_v18 = vsel %vm428_vm7, %v10143_v50, %v18539_v32  ;;  %v18540_v38 = vld [vmem:[#allocation164_spill] sm:$0xff]  ;;  %v11782_v56 = vcombine.high %v16656_v16, %v16656_v16  ;;  %v18555_v16 = vld [vmem:[#allocation178_spill] sm:$0xff]  ;;  %v11766_v25 = vcombine.high %v16716_v29, %v16716_v29  ;;  %v18559_v29 = vld [vmem:[#allocation149_spill] sm:$0xff] }
 0xcbe   : > { %v16772_v10 = vpop.permute.xlu0 %8962  ;;  %v16781_v7 = vsel %vm18526_vm5, %v9314_v0, %v9254_v48  ;;  %v10147_v48 = vsel %vm18545_vm0, %v10145_v18, %v16540_v34  ;;  %vm18547_vm5 = vmmov %vm18541_vm9 }
 0xcbf   : > { %8438 = vrot.lane.b32.xlu1 %v11417_v26, %s11932_s23  ;;  %v18542_v26 = vld [vmem:[#allocation148_spill] sm:$0xff]  ;;  %v10149_v17 = vsel %vm18547_vm5, %v10147_v48, %v16651_v2  ;;  %v9389_v2 = vcombine.high %v16644_v6, %v16647_v57  ;;  %v11770_v6 = vcombine.high %v16641_v59, %v16641_v59  ;;  %v11787_v59 = vcombine.high %v16674_v47, %v16674_v47 }
 0xcc0   : > { %8398 = vrot.lane.b32.xlu0 %v11409_v27, %s11927_s18  ;;  %v10402_v27 = vsel %vm18541_vm9, %v10400_v46, %v18540_v38  ;;  %v18544_v39 = vcombine.high %v18542_v26, %v18543_v14  ;;  %vm18557_vm9 = vmmov %vm18548_vm10  ;;  %v16912_v46 = vld [vmem:[%s17597_s1 + $0x8] sm:$0xff]   ;;  %v9011_v32 = vsel %vm424_vm6, %v18559_v29, %v16772_v10 }
 0xcc1   : > { %v10075_v37 = vpop.permute.xlu1 %10074  ;;  %v10404_v53 = vsel %vm18546_vm2, %v10402_v27, %v16556_v12  ;;  %v9403_v62 = vrot.slane %v9389_v2, %v12011_v24  ;;  %v18560_v27 = vld [vmem:[#allocation179_spill] sm:$0xff]  ;;  %vm18562_vm2 = vmmov %vm18547_vm5  ;;  %11100 = vmatmul.mubr.msk.bf16.gmra.mxu0 %vm428_vm7, %v16912_v46  ;;  %11240 = vmatmul.mubr.msk.bf16.gmra.mxu1 %vm428_vm7, %v16912_v46  ;;  %v18570_v2 = vld [vmem:[#allocation38_spill] sm:$0xff] }
 0xcc2   : > { %v9294_v28 = vpop.permute.xlu0 %9293  ;;  %v16820_v19 = vsel %vm18520_vm11, %v10132_v45, %v10075_v37  ;;  %v16832_v0 = vrot.slane %v18544_v39, %v12011_v24  ;;  %v10406_v35 = vsel %vm18548_vm10, %v10404_v53, %v16664_v40  ;;  %v10664_v40 = vsel %vm424_vm6, %v18551_v51, %v16685_v52  ;;  %vm18553_vm11 = vmmov %vm18547_vm5  ;;  %8184 = vmatprep.mubr.bf16.mxu0 %v17776_v30 }
 0xcc3   : > { %v16817_v20 = vsel %vm18538_vm13, %v9331_v21, %v9294_v28  ;;  %8987 = vrot.lane.b32.xlu1 %v11786_v58, %s11929_s20  ;;  %vm18552_vm13 = vmmov %vm18545_vm0  ;;  %v11465_v45 = vcombine.low %v9403_v62, %v9403_v62  ;;  %v18554_v28 = vld [vmem:[#allocation176_spill] sm:$0xff]  ;;  %v18561_v26 = vcombine.high %v15941_v63, %v18560_v27  ;;  %10844 = vmatprep.mubr.bf16.mxu1 %v17776_v30 }
 0xcc4   : > { %8947 = vrot.lane.b32.xlu0 %v11438_v42, %s11932_s23  ;;  %v11410_v12 = vcombine.low %v16832_v0, %v16832_v0  ;;  %v18556_v37 = vcombine.high %v18554_v28, %v18555_v16  ;;  %vm18558_vm0 = vmmov %vm18550_vm1  ;;  %v11767_v53 = vcombine.high %v16832_v0, %v16832_v0 }
 0xcc5   : > { %v10358_v8 = vpop.permute.xlu1 %10357  ;;  %v9437_v14 = vrot.slane %v18561_v26, %v12011_v24  ;;  %vm18563_vm5 = vmmov %vm18549_vm3  ;;  %v18589_v26 = vld [vmem:[#allocation20_spill] sm:$0xff] }
 0xcc6   : > { %v10115_v5 = vpop.permute.xlu0 %10114  ;;  %v16850_v34 = vsel %vm18550_vm1, %v10406_v35, %v10358_v8  ;;  %v9505_v42 = vrot.slane %v18556_v37, %v12011_v24  ;;  %vm18564_vm10 = vmmov %vm18549_vm3  ;;  %v18566_v35 = vld [vmem:[#allocation9_spill] sm:$0xff] }
 0xcc7   : > { %v16847_v58 = vsel %vm18549_vm3, %v10149_v17, %v10115_v5  ;;  %9561 = vrot.lane.b32.xlu1 %v11472_v11, %s11927_s18  ;;  %v11466_v10 = vcombine.low %v9437_v14, %v9437_v14  ;;  %v18565_v17 = vld [vmem:[#allocation10_spill] sm:$0xff]  ;;  %v18568_v11 = vld [vmem:[#allocation104_spill] sm:$0xff]  ;;  %vm18571_vm3 = vmmov %vm18557_vm9  ;;  %v11799_v37 = vcombine.high %v9437_v14, %v9437_v14 }
 0xcc8   : > { %9521 = vrot.lane.b32.xlu0 %v11797_v33, %s11930_s21  ;;  %v11473_v47 = vcombine.low %v9505_v42, %v9505_v42  ;;  %v6068_v5 = vsel %vm424_vm6, %v18566_v35, %v18565_v17  ;;  %v11798_v33 = vcombine.high %v9403_v62, %v9403_v62  ;;  %vm18572_vm1 = vmmov %vm18552_vm13  ;;  %v11803_v16 = vcombine.high %v9505_v42, %v9505_v42  ;;  %v18587_v42 = vld [vmem:[#allocation34_spill] sm:$0xff]  ;;  %v18595_v17 = vld [vmem:[#allocation16_spill] sm:$0xff] }
 0xcc9   : > { %v10641_v13 = vpop.permute.xlu1 %10640 }
 0xcca   : > { %v10601_v49 = vpop.permute.xlu0 %10600  ;;  %v16866_v4 = vsel %vm18552_vm13, %v16692_v23, %v10641_v13  ;;  %v18574_v13 = vld [vmem:[#allocation103_spill] sm:$0xff]  ;;  %vm18579_vm13 = vmmov %vm18572_vm1 }
 0xccb   : > { %v10666_v61 = vsel %vm428_vm7, %v10664_v40, %v10601_v49  ;;  %8403 = vrot.lane.b32.xlu1 %v11410_v12, %s11932_s23  ;;  %v18573_v49 = vld [vmem:[#allocation8_spill] sm:$0xff] }
 0xccc   : > { %10625 = vrot.lane.b32.xlu0 %v11831_v60, %s11933_s24  ;;  %v5792_v60 = vsel %vm424_vm6, %v18574_v13, %v18573_v49  ;;  %v18607_v13 = vld [vmem:[#allocation14_spill] sm:$0xff] }
 0xccd   : > { %v16872_v52 = vpop.permute.xlu1 %7990 }
 0xcce   : > { %v7951_v57 = vpop.permute.xlu0 %7950 }
 0xccf   : > { %v16879_v41 = vsel %vm18553_vm11, %v16724_v1, %v7951_v57  ;;  %8952 = vrot.lane.b32.xlu1 %v11782_v56, %s11929_s20  ;;  %v18576_v56 = vld [vmem:[#allocation15_spill] sm:$0xff]  ;;  %vm18582_vm11 = vmmov %vm18572_vm1 }
 0xcd0   : > { %8443 = vrot.lane.b32.xlu0 %v11770_v6, %s11929_s20  ;;  %v18575_v6 = vld [vmem:[#allocation11_spill] sm:$0xff]  ;;  %v6070_v62 = vsel %vm428_vm7, %v6068_v5, %v18576_v56  ;;  %v18597_v5 = vld [vmem:[#allocation25_spill] sm:$0xff]  ;;  %v18610_v56 = vld [vmem:[#allocation128_spill] sm:$0xff] }
 0xcd1   : > { %v8685_v21 = vpop.permute.xlu1 %8684 }
 0xcd2   : > { %v16883_v23 = vpop.permute.xlu0 %8418  ;;  %v16893_v1 = vsel %vm18557_vm9, %v16754_v43, %v8685_v21  ;;  %v11771_v43 = vcombine.high %v16739_v22, %v16739_v22  ;;  %v18577_v21 = vld [vmem:[#allocation31_spill] sm:$0xff]  ;;  %vm18583_vm9 = vmmov %vm18562_vm2 }
 0xcd3   : > { %9526 = vrot.lane.b32.xlu1 %v11465_v45, %s11927_s18 }
 0xcd4   : > { %8992 = vrot.lane.b32.xlu0 %v11787_v59, %s11933_s24  ;;  %v18578_v59 = vld [vmem:[#allocation39_spill] sm:$0xff] }
 0xcd5   : > { %v16899_v50 = vpop.permute.xlu1 %8927 }
 0xcd6   : > { %v8725_v15 = vpop.permute.xlu0 %8724 }
 0xcd7   : > { %v16903_v55 = vsel %vm18558_vm0, %v16757_v31, %v8725_v15  ;;  %8408 = vrot.lane.b32.xlu1 %v11766_v25, %s11929_s20  ;;  %v11783_v31 = vcombine.high %v16778_v44, %v16778_v44  ;;  %v11802_v44 = vcombine.high %v16801_v36, %v16801_v36  ;;  %v18580_v25 = vld [vmem:[#allocation98_spill] sm:$0xff]  ;;  %vm18585_vm0 = vmmov %vm18572_vm1 }
 0xcd8   : > { %9566 = vrot.lane.b32.xlu0 %v11473_v47, %s11932_s23  ;;  %v5794_v15 = vsel %vm428_vm7, %v5792_v60, %v18580_v25  ;;  %v18581_v47 = vld [vmem:[#allocation49_spill] sm:$0xff] }
 0xcd9   : > { %v9259_v38 = vpop.permute.xlu1 %9258  ;;  %v18617_v25 = vld [vmem:[#allocation161_spill] sm:$0xff] }
 0xcda   : > { %v8968_v18 = vpop.permute.xlu0 %8967  ;;  %v16928_v39 = vsel %vm18562_vm2, %v16781_v7, %v9259_v38  ;;  %v18586_v38 = vld [vmem:[#allocation27_spill] sm:$0xff] }
 0xcdb   : > { %v16924_v22 = vsel %vm428_vm7, %v9011_v32, %v8968_v18  ;;  %8957 = vrot.lane.b32.xlu1 %v11783_v31, %s11933_s24  ;;  %v18584_v32 = vld [vmem:[#allocation4_spill] sm:$0xff] }
 0xcdc   : > { %8448 = vrot.lane.b32.xlu0 %v11771_v43, %s11933_s24  ;;  %v5796_v18 = vsel %vm18585_vm0, %v5794_v15, %v18584_v32  ;;  %v8468_v15 = vsel %vm424_vm6, %v18617_v25, %v16883_v23  ;;  %v18618_v32 = vld [vmem:[#allocation6_spill] sm:$0xff] }
 0xcdd   : > { %v10080_v63 = vpop.permute.xlu1 %10079 }
 0xcde   : > { %v9299_v24 = vpop.permute.xlu0 %9298  ;;  %v16946_v48 = vsel %vm18564_vm10, %v16820_v19, %v10080_v63  ;;  %v18569_v19 = vld [vmem:[#allocation36_spill] sm:$0xff]  ;;  %vm18590_vm10 = vmmov %vm18562_vm2 }
 0xcdf   : > { %v16942_v7 = vsel %vm18563_vm5, %v16817_v20, %v9299_v24  ;;  %9571 = vrot.lane.b32.xlu1 %v11802_v44, %s11929_s20  ;;  %v18567_v20 = vld [vmem:[#allocation21_spill] sm:$0xff]  ;;  %v6083_v51 = vsel %vm424_vm6, %v18570_v2, %v18569_v19  ;;  %vm18588_vm5 = vmmov %vm18585_vm0  ;;  %v18591_v24 = vld [vmem:[#allocation22_spill] sm:$0xff]  ;;  %vm18602_vm0 = vcmask 785408  }
 0xce0   : > { %9531 = vrot.lane.b32.xlu0 %v11466_v10, %s11932_s23  ;;  %v5808_v12 = vsel %vm424_vm6, %v18568_v11, %v18567_v20  ;;  %v6085_v57 = vsel %vm428_vm7, %v6083_v51, %v18575_v6  ;;  %v18593_v63 = vld [vmem:[#allocation44_spill] sm:$0xff]  ;;  %v18601_v20 = vld [vmem:[#allocation33_spill] sm:$0xff]  ;;  %v18605_v51 = vld [vmem:[#allocation26_spill] sm:$0xff] }
 0xce1   : > { %v10606_v8 = vpop.permute.xlu1 %10605  ;;  %v6087_v43 = vsel %vm18582_vm11, %v6085_v57, %v18581_v47  ;;  %v18604_v19 = vld [vmem:[#allocation97_spill] sm:$0xff]  ;;  %v18609_v6 = vld [vmem:[#allocation3_spill] sm:$0xff] }
 0xce2   : > { %v10120_v36 = vpop.permute.xlu0 %10119  ;;  %v16966_v0 = vsel %vm18572_vm1, %v10666_v61, %v10606_v8  ;;  %v6072_v61 = vsel %vm18579_vm13, %v6070_v62, %v18578_v59  ;;  %v6089_v31 = vsel %vm18562_vm2, %v6087_v43, %v18586_v38  ;;  %vm18594_vm1 = vcmask 654336   ;;  %vm18596_vm13 = vmmov %vm18562_vm2  ;;  %v18599_v8 = vld [vmem:[#allocation18_spill] sm:$0xff]  ;;  %v18611_v62 = vld [vmem:[#allocation121_spill] sm:$0xff] }
 0xce3   : > { %v16963_v40 = vsel %vm18571_vm3, %v16847_v58, %v10120_v36  ;;  %9536 = vrot.lane.b32.xlu1 %v11798_v33, %s11929_s20  ;;  %v5810_v58 = vsel %vm428_vm7, %v5808_v12, %v18577_v21  ;;  %v6074_v14 = vsel %vm18590_vm10, %v6072_v61, %v18589_v26  ;;  %vm18592_vm3 = vmmov %vm18562_vm2  ;;  %v5798_v35 = vsel %vm18596_vm13, %v5796_v18, %v18595_v17  ;;  %v18603_v12 = vld [vmem:[#allocation86_spill] sm:$0xff]  ;;  %v18614_v61 = vld [vmem:[#allocation24_spill] sm:$0xff] }
 0xce4   : > { %8413 = vrot.lane.b32.xlu0 %v11767_v53, %s11933_s24  ;;  %v5812_v27 = vsel %vm18588_vm5, %v5810_v58, %v18587_v42  ;;  %v6076_v10 = vsel %vm18594_vm1, %v6074_v14, %v18593_v63  ;;  %vm18598_vm11 = vmmov %vm18594_vm1  ;;  %v7203_v2 = vsel %vm424_vm6, %v18604_v19, %v18603_v12  ;;  %v7751_v21 = vsel %vm424_vm6, %v18611_v62, %v18610_v56  ;;  %v18612_v58 = vld [vmem:[#allocation13_spill] sm:$0xff]  ;;  %v18620_v38 = vld [vmem:[#allocation158_spill] sm:$0xff] }
 0xce5   : > { %v16981_v28 = vpop.permute.xlu1 %7955  ;;  %v6091_v36 = vsel %vm18598_vm11, %v6089_v31, %v18597_v5  ;;  %vm18606_vm2 = vmmov %vm18594_vm1  ;;  %v7205_v57 = vsel %vm428_vm7, %v7203_v2, %v18609_v6  ;;  %v18621_v31 = vld [vmem:[#allocation136_spill] sm:$0xff]  ;;  %v18623_v14 = vld [vmem:[#allocation35_spill] sm:$0xff]  ;;  %vm18626_vm11 = vcmask 392192  }
 0xce6   : > { %v10646_v45 = vpop.permute.xlu0 %10645  ;;  %v6093_v11 = vsel %vm18602_vm0, %v6091_v36, %v18601_v20  ;;  %vm18608_vm5 = vmmov %vm18602_vm0  ;;  %v9863_v42 = vsel %vm424_vm6, %v18621_v31, %v18620_v38  ;;  %v18629_v5 = vld [vmem:[#allocation140_spill] sm:$0xff]  ;;  %v18631_v20 = vld [vmem:[#allocation59_spill] sm:$0xff] }
 0xce7   : > { %v16989_v29 = vsel %vm18583_vm9, %v16866_v4, %v10646_v45  ;;  %9541 = vrot.lane.b32.xlu1 %v11799_v37, %s11933_s24  ;;  %v5814_v4 = vsel %vm18592_vm3, %v5812_v27, %v18591_v24  ;;  %vm18600_vm9 = vmmov %vm18594_vm1  ;;  %v6078_v60 = vsel %vm18608_vm5, %v6076_v10, %v18607_v13  ;;  %vm18615_vm3 = vcmask 916480   ;;  %v18624_v24 = vld [vmem:[#allocation23_spill] sm:$0xff]  ;;  %v18627_v10 = vld [vmem:[#allocation138_spill] sm:$0xff] }
 0xce8   : > { %9576 = vrot.lane.b32.xlu0 %v11803_v16, %s11933_s24  ;;  %v17015_v33 = vsel %vm18600_vm9, %v5798_v35, %v18599_v8  ;;  %v5816_v49 = vsel %vm18606_vm2, %v5814_v4, %v18605_v51  ;;  %vm18613_vm10 = vmmov %vm18602_vm0  ;;  %v6080_v45 = vsel %vm18615_vm3, %v6078_v60, %v18614_v61  ;;  %v18616_v16 = vld [vmem:[#allocation131_spill] sm:$0xff]  ;;  %v6336_v23 = vsel %vm424_vm6, %v18624_v24, %v18623_v14  ;;  %v18625_v4 = vld [vmem:[#allocation93_spill] sm:$0xff] }
 0xce9   : > { %v17007_v53 = vpop.permute.xlu1 %8383  ;;  %v5818_v59 = vsel %vm18613_vm10, %v5816_v49, %v18612_v58  ;;  %v7753_v37 = vsel %vm428_vm7, %v7751_v21, %v18616_v16  ;;  %vm18619_vm1 = vmmov %vm18615_vm3  ;;  %v7207_v63 = vsel %vm18626_vm11, %v7205_v57, %v18625_v4  ;;  %v9865_v17 = vsel %vm428_vm7, %v9863_v42, %v18627_v10  ;;  %v18628_v35 = vld [vmem:[#allocation141_spill] sm:$0xff]  ;;  %v18630_v8 = vld [vmem:[#allocation112_spill] sm:$0xff] }
 0xcea   : > { %v17005_v44 = vpop.permute.xlu0 %7995  ;;  %v17042_v18 = vsel %vm18619_vm1, %v6093_v11, %v18618_v32  ;;  %vm18622_vm13 = vmmov %vm18619_vm1  ;;  %v10411_v36 = vsel %vm424_vm6, %v18629_v5, %v18628_v35  ;;  %v7483_v11 = vsel %vm424_vm6, %v18631_v20, %v18630_v8  ;;  %v18634_v19 = vld [vmem:[#allocation156_spill] sm:$0xff]  ;;  %v18637_v13 = vld [vmem:[#allocation133_spill] sm:$0xff]  ;;  %vm18638_vm2 = vcmask 523264  }
 0xceb   : > { %vm18633_vm9 = vmmov %vm18626_vm11  ;;  %v18636_v51 = vld [vmem:[#allocation152_spill] sm:$0xff]  ;;  %v18639_v6 = vld [vmem:[#allocation159_spill] sm:$0xff]  ;;  %vm18645_vm3 = vcmask 654336   ;;  %v8032_v38 = vshrl.u32 %v6080_v45, 16  ;;  %v8035_v10 = vshll.u32 %v6080_v45, 16  ;;  %v8039_v20 = vshrl.u32 %v17042_v18, 16 }
 0xcec   : > { %vm18635_vm0 = vmmov %vm18633_vm9  ;;  %v10413_v49 = vsel %vm428_vm7, %v10411_v36, %v18636_v51  ;;  %v18641_v56 = vld [vmem:[#allocation160_spill] sm:$0xff]  ;;  %v18643_v21 = vld [vmem:[#allocation169_spill] sm:$0xff] }
 0xced   : > { %v8690_v43 = vpop.permute.xlu1 %8689  ;;  %v9867_v2 = vsel %vm18635_vm0, %v9865_v17, %v18634_v19  ;;  %vm18640_vm5 = vmmov %vm18638_vm2  ;;  %v8996_v58 = vsel %vm424_vm6, %v18643_v21, %v16899_v50  ;;  %v18649_v31 = vld [vmem:[#allocation2_spill] sm:$0xff]  ;;  %v18651_v50 = vld [vmem:[#allocation167_spill] sm:$0xff] }
 0xcee   : > { %v8424_v47 = vpop.permute.xlu0 %8423  ;;  %v17052_v26 = vsel %vm18622_vm13, %v16893_v1, %v8690_v43  ;;  %v18632_v1 = vld [vmem:[#allocation130_spill] sm:$0xff]  ;;  %v9869_v57 = vsel %vm18640_vm5, %v9867_v2, %v18639_v6  ;;  %vm18642_vm10 = vmmov %vm18635_vm0  ;;  %v18655_v17 = vld [vmem:[#allocation115_spill] sm:$0xff] }
 0xcef   : > { %v17048_v27 = vsel %vm428_vm7, %v8468_v15, %v8424_v47  ;;  %v7755_v12 = vsel %vm18633_vm9, %v7753_v37, %v18632_v1  ;;  %v10415_v62 = vsel %vm18642_vm10, %v10413_v49, %v18641_v56  ;;  %v18644_v37 = vld [vmem:[#allocation166_spill] sm:$0xff]  ;;  %v18646_v15 = vld [vmem:[#allocation151_spill] sm:$0xff]  ;;  %vm18647_vm1 = vmmov %vm18638_vm2  ;;  %vm18652_vm9 = vcmask 785408  }
 0xcf0   : > { %v7757_v60 = vsel %vm18638_vm2, %v7755_v12, %v18637_v13  ;;  %v9871_v25 = vsel %vm18645_vm3, %v9869_v57, %v18644_v37  ;;  %v10417_v47 = vsel %vm18647_vm1, %v10415_v62, %v18646_v15  ;;  %vm18648_vm13 = vmmov %vm18635_vm0  ;;  %v18653_v24 = vld [vmem:[#allocation170_spill] sm:$0xff]  ;;  %v7485_v35 = vsel %vm428_vm7, %v7483_v11, %v18655_v17  ;;  %v18656_v5 = vld [vmem:[#allocation183_spill] sm:$0xff] }
 0xcf1   : > { %v8973_v16 = vpop.permute.xlu1 %8972  ;;  %vm18650_vm11 = vmmov %vm18647_vm1  ;;  %v9873_v14 = vsel %vm18652_vm9, %v9871_v25, %v18651_v50  ;;  %vm18657_vm2 = vcmask 916480   ;;  %v18658_v8 = vld [vmem:[#allocation174_spill] sm:$0xff]  ;;  %v18660_v1 = vld [vmem:[#allocation32_spill] sm:$0xff]  ;;  %v17145_v17 = vrot.slane %v8039_v20, 6 }
 0xcf2   : > { %v8933_v61 = vpop.permute.xlu0 %8932  ;;  %v17091_v32 = vsel %vm18648_vm13, %v16924_v22, %v8973_v16  ;;  %v7209_v42 = vsel %vm18650_vm11, %v7207_v63, %v18649_v31  ;;  %vm18654_vm0 = vmmov %vm18645_vm3  ;;  %v9875_v36 = vsel %vm18657_vm2, %v9873_v14, %v18656_v5  ;;  %v6338_v63 = vsel %vm428_vm7, %v6336_v23, %v18660_v1  ;;  %v18661_v12 = vld [vmem:[#allocation132_spill] sm:$0xff]  ;;  %v18664_v11 = vld [vmem:[#allocation30_spill] sm:$0xff] }
 0xcf3   : > { %v17087_v43 = vsel %vm428_vm7, %v8996_v58, %v8933_v61  ;;  %v10419_v4 = vsel %vm18654_vm0, %v10417_v47, %v18653_v24  ;;  %vm18659_vm5 = vmmov %vm18652_vm9  ;;  %v18666_v13 = vld [vmem:[#allocation135_spill] sm:$0xff]  ;;  %v18674_v21 = vld [vmem:[#allocation114_spill] sm:$0xff]  ;;  %v10735_v61 = vshll.u32 %v9875_v36, 16  ;;  %v17136_v47 = vrot.slane %v8032_v38, 6 }
 0xcf4   : > { %v10421_v22 = vsel %vm18659_vm5, %v10419_v4, %v18658_v8  ;;  %vm18662_vm10 = vmmov %vm18654_vm0  ;;  %v18676_v16 = vld [vmem:[#allocation57_spill] sm:$0xff]  ;;  %v17138_v31 = vrot.slane %v8035_v10, 7  ;;  %v18680_v50 = vld [vmem:[#allocation134_spill] sm:$0xff] }
 0xcf5   : > { %v7759_v19 = vsel %vm18662_vm10, %v7757_v60, %v18661_v12  ;;  %vm18663_vm3 = vmmov %vm18657_vm2  ;;  %v9304_v51 = vpop.permute.xlu1 %9303  ;;  %v18670_v60 = vld [vmem:[#allocation67_spill] sm:$0xff]  ;;  %v18684_v5 = vld [vmem:[#allocation58_spill] sm:$0xff] }
 0xcf6   : > { %v10423_v45 = vsel %vm18663_vm3, %v10421_v22, %v16666_v54  ;;  %v9264_v2 = vpop.permute.xlu0 %9263  ;;  %vm18665_vm1 = vmmov %vm18654_vm0  ;;  %v18672_v54 = vld [vmem:[#allocation105_spill] sm:$0xff]  ;;  %v18687_v10 = vld [vmem:[#allocation42_spill] sm:$0xff] }
 0xcf7   : > { %v7211_v49 = vsel %vm18665_vm1, %v7209_v42, %v18664_v11  ;;  %vm18667_vm13 = vmmov %vm18659_vm5  ;;  %v10757_v15 = vshrl.u32 %v10423_v45, 16  ;;  %v8042_v42 = vshll.u32 %v17042_v18, 16  ;;  %v18688_v18 = vld [vmem:[#allocation66_spill] sm:$0xff]  ;;  %v18689_v1 = vld [vmem:[#allocation65_spill] sm:$0xff] }
 0xcf8   : > { %v7761_v6 = vsel %vm18667_vm13, %v7759_v19, %v18666_v13  ;;  %vm18668_vm11 = vmmov %vm18654_vm0  ;;  %vm18671_vm0 = vcmask 392192   ;;  %v6652_v22 = vsel %vm424_vm6, %v18688_v18, %v18687_v10  ;;  %v18691_v20 = vld [vmem:[#allocation116_spill] sm:$0xff]  ;;  %v18694_v13 = vld [vmem:[#allocation54_spill] sm:$0xff] }
 0xcf9   : > { %v17118_v57 = vsel %vm18668_vm11, %v16928_v39, %v9264_v2  ;;  %vm18669_vm9 = vmmov %vm18659_vm5  ;;  %v6340_v56 = vsel %vm18671_vm0, %v6338_v63, %v18670_v60  ;;  %v18678_v39 = vld [vmem:[#allocation117_spill] sm:$0xff]  ;;  %v10085_v4 = vpop.permute.xlu1 %10084  ;;  %v18690_v63 = vld [vmem:[#allocation12_spill] sm:$0xff]  ;;  %v10759_v11 = vrot.slane %v10757_v15, 5 }
 0xcfa   : > { %v17122_v23 = vsel %vm18669_vm9, %v16942_v7, %v9304_v51  ;;  %vm18673_vm2 = vmmov %vm18659_vm5  ;;  %v10760_v7 = vshll.u32 %v10423_v45, 16  ;;  %v17143_v24 = vpop.permute.xlu0 %9546  ;;  %v6667_v12 = vsel %vm424_vm6, %v18690_v63, %v18689_v1  ;;  %v17163_v45 = vrot.slane %v10735_v61, 1  ;;  %v18700_v15 = vld [vmem:[#allocation82_spill] sm:$0xff] }
 0xcfb   : > { %v7213_v62 = vsel %vm18673_vm2, %v7211_v49, %v18672_v54  ;;  %vm18675_vm5 = vmmov %vm18671_vm0  ;;  %vm18692_vm0 = vcmask 654336   ;;  %v18705_v18 = vld [vmem:[#allocation118_spill] sm:$0xff] }
 0xcfc   : > { %v7487_v58 = vsel %vm18675_vm5, %v7485_v35, %v18674_v21  ;;  %vm18677_vm10 = vmmov %vm18663_vm3  ;;  %vm18679_vm3 = vcmask 523264   ;;  %18693 = vst [vmem:[#allocation177_spill] sm:$0xff] %v17163_v45  ;;  %v10762_v49 = vrot.slane %v10760_v7, 6  ;;  %v6654_v7 = vsel %vm428_vm7, %v6652_v22, %v18700_v15  ;;  %v18706_v22 = vld [vmem:[#allocation56_spill] sm:$0xff] }
 0xcfd   : > { %v17132_v37 = vsel %vm18677_vm10, %v5818_v59, %v18676_v16  ;;  %v7489_v25 = vsel %vm18679_vm3, %v7487_v58, %v18678_v39  ;;  %vm18681_vm1 = vmmov %vm18677_vm10  ;;  %v18682_v59 = vld [vmem:[#allocation41_spill] sm:$0xff]  ;;  %v17170_v58 = vpop.permute.xlu1 %10610  ;;  %v18699_v39 = vld [vmem:[#allocation64_spill] sm:$0xff] }
 0xcfe   : > { %v7763_v14 = vsel %vm18681_vm1, %v7761_v6, %v18680_v50  ;;  %vm18683_vm13 = vmmov %vm18679_vm3  ;;  %v7491_v19 = vsel %vm18692_vm0, %v7489_v25, %v18691_v20  ;;  %v10125_v21 = vpop.permute.xlu0 %10124  ;;  %v18697_v16 = vld [vmem:[#allocation89_spill] sm:$0xff]  ;;  %vm18703_vm3 = vcmask 392192   ;;  %v10763_v20 = vor.u32 %v10762_v49, %v10759_v11 }
 0xcff   : > { %v6342_v35 = vsel %vm18683_vm13, %v6340_v56, %v18682_v59  ;;  %vm18685_vm11 = vmmov %vm18681_vm1  ;;  %v8097_v2 = vshrl.u32 %v7763_v14, 16  ;;  %v8100_v51 = vshll.u32 %v7763_v14, 16  ;;  %v18696_v56 = vld [vmem:[#allocation119_spill] sm:$0xff]  ;;  %v18702_v14 = vld [vmem:[#allocation48_spill] sm:$0xff] }
 0xd00   : > { %v7215_v8 = vsel %vm18685_vm11, %v7213_v62, %v18684_v5  ;;  %vm18686_vm9 = vmmov %vm18673_vm2  ;;  %v7493_v54 = vsel %vm18673_vm2, %v7491_v19, %v18696_v56  ;;  %v10741_v62 = vshrl.u32 %v9875_v36, 16  ;;  %v18704_v59 = vld [vmem:[#allocation78_spill] sm:$0xff]  ;;  %v17187_v19 = vrot.slane %v8042_v42, 7  ;;  %v18709_v56 = vld [vmem:[#allocation53_spill] sm:$0xff] }
 0xd01   : > { %v17153_v38 = vsel %vm18686_vm9, %v16946_v48, %v10085_v4  ;;  %v18695_v48 = vld [vmem:[#allocation40_spill] sm:$0xff]  ;;  %v8075_v60 = vshll.u32 %v7215_v8, 16  ;;  %vm18698_vm5 = vmmov %vm18692_vm0  ;;  %v6656_v4 = vsel %vm18703_vm3, %v6654_v7, %v18702_v14  ;;  %v6669_v36 = vsel %vm428_vm7, %v6667_v12, %v18704_v59  ;;  %v17196_v12 = vpop.permute.xlu1 %7960  ;;  %v18723_v14 = vld [vmem:[#allocation45_spill] sm:$0xff] }
 0xd02   : > { %v6351_v6 = vsel %vm424_vm6, %v18695_v48, %v18694_v13  ;;  %v6344_v61 = vsel %vm18698_vm5, %v6342_v35, %v18697_v16  ;;  %vm18701_vm10 = vmmov %vm18681_vm1  ;;  %v10743_v5 = vor.u32 %v10741_v62, %v17163_v45  ;;  %v7495_v35 = vsel %vm18681_vm1, %v7493_v54, %v18705_v18  ;;  %v18713_v42 = vld [vmem:[#allocation52_spill] sm:$0xff]  ;;  %v18716_v54 = vld [vmem:[#allocation73_spill] sm:$0xff] }
 0xd03   : > { %v6353_v25 = vsel %vm428_vm7, %v6351_v6, %v18699_v39  ;;  %v10155_v50 = vsel %vm18701_vm10, %v16963_v40, %v10125_v21  ;;  %v8099_v1 = vrot.slane %v8097_v2, 5  ;;  %v8102_v63 = vrot.slane %v8100_v51, 6  ;;  %vm18707_vm13 = vmmov %vm18703_vm3  ;;  %v17194_v6 = vpop.permute.xlu0 %10650  ;;  %v18711_v2 = vld [vmem:[#allocation96_spill] sm:$0xff] }
 0xd04   : > { %v10749_v10 = vrot.slane %v10155_v50, 7  ;;  %v6355_v40 = vsel %vm18707_vm13, %v6353_v25, %v18706_v22  ;;  %v17191_v13 = vrot.slane %v8075_v60, 1  ;;  %vm18708_vm11 = vcmask 1040384   ;;  %vm18710_vm9 = vmmov %vm18673_vm2  ;;  %v18718_v16 = vld [vmem:[#allocation92_spill] sm:$0xff]  ;;  %v18722_v50 = vld [vmem:[#allocation90_spill] sm:$0xff] }
 0xd05   : > { %v17200_v62 = vsel %vm18710_vm9, %v6344_v61, %v18709_v56  ;;  %vm18712_vm0 = vcmask 523264   ;;  %vm18714_vm2 = vmmov %vm18703_vm3  ;;  %v8081_v25 = vshrl.u32 %v7215_v8, 16  ;;  %v8089_v15 = vrot.slane %v7495_v35, 7  ;;  %v18720_v61 = vld [vmem:[#allocation85_spill] sm:$0xff]  ;;  %v18726_v18 = vld [vmem:[#allocation120_spill] sm:$0xff] }
 0xd06   : > { %v10798_v48 = vsel %vm18708_vm11, %v10743_v5, %v10749_v10  ;;  %v6357_v51 = vsel %vm18712_vm0, %v6355_v40, %v18711_v2  ;;  %v6671_v11 = vsel %vm18714_vm2, %v6669_v36, %v18713_v42  ;;  %vm18717_vm5 = vmmov %vm18712_vm0  ;;  %vm18721_vm3 = vcmask 654336   ;;  %v18728_v35 = vld [vmem:[#allocation181_spill] sm:$0xff]  ;;  %v18731_v56 = vld [vmem:[#allocation139_spill] sm:$0xff] }
 0xd07   : > { %v17208_v60 = vsel %vm13229_vm14, %v10798_v48, %v10763_v20  ;;  %v6658_v21 = vsel %vm18717_vm5, %v6656_v4, %v18716_v54  ;;  %vm18719_vm10 = vmmov %vm18712_vm0  ;;  %v7188_v59 = vsel %vm424_vm6, %v18723_v14, %v18722_v50  ;;  %v8103_v36 = vor.u32 %v8102_v63, %v8099_v1  ;;  %v18725_v4 = vld [vmem:[#allocation123_spill] sm:$0xff]  ;;  %v8001_v40 = vpop.permute.xlu0 %8000  ;;  %v8389_v48 = vpop.permute.xlu1 %8388  ;;  %v18729_v1 = vld [vmem:[#allocation72_spill] sm:$0xff] }
 0xd08   : > { %v6673_v39 = vsel %vm18719_vm10, %v6671_v11, %v18718_v16  ;;  %v6660_v7 = vsel %vm18721_vm3, %v6658_v21, %v18720_v61  ;;  %vm18724_vm1 = vmmov %vm18721_vm3  ;;  %v8083_v10 = vor.u32 %v8081_v25, %v17191_v13  ;;  %v7736_v20 = vsel %vm424_vm6, %v18726_v18, %v18725_v4  ;;  %v18734_v11 = vld [vmem:[#allocation101_spill] sm:$0xff]  ;;  %v18738_v25 = vld [vmem:[#allocation46_spill] sm:$0xff] }
 0xd09   : > { %v8027_v5 = vsel %vm18724_vm1, %v16727_v3, %v16872_v52  ;;  %vm18727_vm13 = vmmov %vm18710_vm9  ;;  %v8452_v22 = vsel %vm424_vm6, %v18728_v35, %v17007_v53  ;;  %v18732_v3 = vld [vmem:[#allocation137_spill] sm:$0xff]  ;;  %vm18733_vm9 = vcmask 916480   ;;  %vm18736_vm2 = vcmask 1040384   ;;  %v18737_v53 = vld [vmem:[#allocation142_spill] sm:$0xff] }
 0xd0a   : > { %v8029_v8 = vsel %vm18727_vm13, %v8027_v5, %v17005_v44  ;;  %vm18730_vm11 = vmmov %vm18724_vm1  ;;  %v9848_v52 = vsel %vm424_vm6, %v18732_v3, %v18731_v56  ;;  %v17238_v42 = vsel %vm428_vm7, %v8452_v22, %v8389_v48  ;;  %v8138_v54 = vsel %vm18736_vm2, %v8083_v10, %v8089_v15  ;;  %v18739_v61 = vld [vmem:[#allocation122_spill] sm:$0xff]  ;;  %v18740_v14 = vld [vmem:[#allocation143_spill] sm:$0xff] }
 0xd0b   : > { %v6675_v63 = vsel %vm18730_vm11, %v6673_v39, %v18729_v1  ;;  %v8031_v2 = vsel %vm18733_vm9, %v8029_v8, %v8001_v40  ;;  %vm18735_vm0 = vmmov %vm18727_vm13  ;;  %v9850_v21 = vsel %vm428_vm7, %v9848_v52, %v18737_v53  ;;  %v7190_v39 = vsel %vm428_vm7, %v7188_v59, %v18738_v25  ;;  %v18742_v18 = vld [vmem:[#allocation84_spill] sm:$0xff]  ;;  %v18744_v15 = vld [vmem:[#allocation125_spill] sm:$0xff]  ;;  %v8429_v40 = vpop.permute.xlu0 %8428  ;;  %v8938_v59 = vpop.permute.xlu1 %8937 }
 0xd0c   : > { %v6677_v44 = vsel %vm18735_vm0, %v6675_v63, %v18734_v11  ;;  %v8109_v16 = vrot.slane %v8031_v2, 4  ;;  %v7738_v50 = vsel %vm428_vm7, %v7736_v20, %v18739_v61  ;;  %vm18741_vm5 = vcmask 392192   ;;  %v18746_v35 = vld [vmem:[#allocation150_spill] sm:$0xff]  ;;  %v18749_v20 = vld [vmem:[#allocation157_spill] sm:$0xff]  ;;  %v18753_v52 = vld [vmem:[#allocation47_spill] sm:$0xff] }
 0xd0d   : > { %v9852_v5 = vsel %vm18741_vm5, %v9850_v21, %v18740_v14  ;;  %v8141_v4 = vsel %vm13229_vm14, %v8138_v54, %v8103_v36  ;;  %vm18743_vm10 = vmmov %vm18741_vm5  ;;  %vm18747_vm1 = vcmask 523264   ;;  %vm18748_vm13 = vcmask 1043456   ;;  %v18755_v11 = vld [vmem:[#allocation60_spill] sm:$0xff]  ;;  %v18757_v53 = vld [vmem:[#allocation107_spill] sm:$0xff] }
 0xd0e   : > { %v7192_v8 = vsel %vm18743_vm10, %v7190_v39, %v18742_v18  ;;  %vm18745_vm3 = vmmov %vm18741_vm5  ;;  %v9854_v22 = vsel %vm18747_vm1, %v9852_v5, %v18746_v35  ;;  %v8148_v48 = vsel %vm18748_vm13, %v8141_v4, %v8109_v16  ;;  %vm18756_vm5 = vcmask 785408   ;;  %v18758_v21 = vld [vmem:[#allocation102_spill] sm:$0xff]  ;;  %v18761_v39 = vld [vmem:[#allocation79_spill] sm:$0xff] }
 0xd0f   : > { %v7740_v10 = vsel %vm18745_vm3, %v7738_v50, %v18744_v15  ;;  %v9856_v1 = vsel %vm18730_vm11, %v9854_v22, %v18749_v20  ;;  %vm18750_vm9 = vmmov %vm18745_vm3  ;;  %v8151_v3 = vsel %vm13254_vm12, %v8148_v48, 0  ;;  %v6662_v54 = vsel %vm18756_vm5, %v6660_v7, %v18755_v11  ;;  %v18759_v25 = vld [vmem:[#allocation182_spill] sm:$0xff]  ;;  %v18763_v61 = vld [vmem:[#allocation61_spill] sm:$0xff] }
 0xd10   : > { %v17264_v63 = vsel %vm18750_vm9, %v17048_v27, %v8429_v40  ;;  %vm18751_vm0 = vmmov %vm18745_vm3  ;;  %v7468_v16 = vsel %vm424_vm6, %v18758_v21, %v18757_v53  ;;  %8164 = vmatprep.subr.bf16.mxu0 %v8151_v3  ;;  %vm18764_vm1 = vcmask 916480   ;;  %v18765_v14 = vld [vmem:[#allocation124_spill] sm:$0xff]  ;;  %vm18766_vm13 = vcmask 523264   ;;  %v18767_v5 = vld [vmem:[#allocation173_spill] sm:$0xff]  ;;  %v9269_v3 = vpop.permute.xlu1 %9268 }
 0xd11   : > { %v17268_v36 = vsel %vm18751_vm0, %v17087_v43, %v8938_v59  ;;  %vm18754_vm2 = vmmov %vm18730_vm11  ;;  %v17285_v50 = vsel %vm18764_vm1, %v6662_v54, %v18763_v61  ;;  %v18769_v4 = vld [vmem:[#allocation55_spill] sm:$0xff]  ;;  %v18771_v15 = vld [vmem:[#allocation68_spill] sm:$0xff] }
 0xd12   : > { %v6359_v2 = vsel %vm18754_vm2, %v6357_v51, %v18753_v52  ;;  %vm18760_vm10 = vmmov %vm18756_vm5  ;;  %v7742_v51 = vsel %vm18766_vm13, %v7740_v10, %v18765_v14  ;;  %v18772_v35 = vld [vmem:[#allocation74_spill] sm:$0xff]  ;;  %v18775_v48 = vld [vmem:[#allocation127_spill] sm:$0xff] }
 0xd13   : > { %v9858_v27 = vsel %vm18760_vm10, %v9856_v1, %v18759_v25  ;;  %vm18762_vm3 = vmmov %vm18756_vm5  ;;  %v6935_v22 = vsel %vm424_vm6, %v18772_v35, %v18771_v15  ;;  %v18773_v40 = vld [vmem:[#allocation94_spill] sm:$0xff]  ;;  %v7744_v20 = vsel %vm18754_vm2, %v7742_v51, %v18775_v48  ;;  %v8978_v1 = vpop.permute.xlu0 %8977  ;;  %v18776_v52 = vld [vmem:[#allocation43_spill] sm:$0xff]  ;;  %v10750_v51 = vshrl.u32 %v16850_v34, 16 }
 0xd14   : > { %v6361_v43 = vsel %vm18762_vm3, %v6359_v2, %v18761_v39  ;;  %vm18768_vm11 = vmmov %vm18764_vm1  ;;  %v18778_v2 = vld [vmem:[#allocation106_spill] sm:$0xff]  ;;  %v17310_v54 = vsel %vm18762_vm3, %v17118_v57, %v9269_v3  ;;  %v18781_v21 = vld [vmem:[#allocation80_spill] sm:$0xff]  ;;  %v10753_v57 = vshll.u32 %v16850_v34, 16 }
 0xd15   : > { %v9860_v7 = vsel %vm18768_vm11, %v9858_v27, %v18767_v5  ;;  %vm18770_vm9 = vmmov %vm18764_vm1  ;;  %v7470_v11 = vsel %vm428_vm7, %v7468_v16, %v18778_v2  ;;  %v6937_v25 = vsel %vm428_vm7, %v6935_v22, %v18781_v21  ;;  %v18782_v27 = vld [vmem:[#allocation109_spill] sm:$0xff]  ;;  %v8052_v16 = vshrl.u32 %v17285_v50, 16  ;;  %v18784_v14 = vld [vmem:[#allocation126_spill] sm:$0xff] }
 0xd16   : > { %v6679_v18 = vsel %vm18770_vm9, %v6677_v44, %v18769_v4  ;;  %vm18774_vm0 = vmmov %vm18766_vm13  ;;  %vm18783_vm13 = vcmask 392192   ;;  %v10732_v61 = vshll.u32 %v9860_v7, 16  ;;  %v18786_v4 = vld [vmem:[#allocation100_spill] sm:$0xff]  ;;  %v18788_v35 = vld [vmem:[#allocation87_spill] sm:$0xff] }
 0xd17   : > { %v7194_v59 = vsel %vm18774_vm0, %v7192_v8, %v18773_v40  ;;  %vm18777_vm5 = vmmov %vm18754_vm2  ;;  %v18780_v8 = vld [vmem:[#allocation50_spill] sm:$0xff]  ;;  %v7472_v39 = vsel %vm18783_vm13, %v7470_v11, %v18782_v27  ;;  %v8059_v5 = vshrl.u32 %v6679_v18, 16  ;;  %v18790_v40 = vld [vmem:[#allocation129_spill] sm:$0xff]  ;;  %v9309_v48 = vpop.permute.xlu0 %9308 }
 0xd18   : > { %v7196_v10 = vsel %vm18777_vm5, %v7194_v59, %v18776_v52  ;;  %vm18779_vm10 = vmmov %vm18774_vm0  ;;  %v17314_v53 = vsel %vm18764_vm1, %v6361_v43, %v18780_v8  ;;  %v18787_v43 = vld [vmem:[#allocation71_spill] sm:$0xff]  ;;  %v18792_v3 = vld [vmem:[#allocation77_spill] sm:$0xff] }
 0xd19   : > { %v17306_v44 = vsel %vm18779_vm10, %v17091_v32, %v8978_v1  ;;  %vm18785_vm11 = vmmov %vm18762_vm3  ;;  %v6920_v15 = vsel %vm424_vm6, %v18787_v43, %v18786_v4  ;;  %v17332_v1 = vpop.permute.xlu1 %9511  ;;  %v18794_v52 = vld [vmem:[#allocation91_spill] sm:$0xff]  ;;  %v18796_v2 = vld [vmem:[#allocation108_spill] sm:$0xff]  ;;  %v17349_v4 = vrot.slane %v10732_v61, 1 }
 0xd1a   : > { %v7746_v32 = vsel %vm18785_vm11, %v7744_v20, %v18784_v14  ;;  %vm18789_vm9 = vmmov %vm18762_vm3  ;;  %v7474_v11 = vsel %vm18779_vm10, %v7472_v39, %v18796_v2  ;;  %v18798_v21 = vld [vmem:[#allocation95_spill] sm:$0xff]  ;;  %v18802_v39 = vld [vmem:[#allocation69_spill] sm:$0xff]  ;;  %v8061_v2 = vrot.slane %v8059_v5, 3 }
 0xd1b   : > { %v7198_v22 = vsel %vm18789_vm9, %v7196_v10, %v18788_v35  ;;  %vm18791_vm0 = vmmov %vm18764_vm1  ;;  %v8055_v10 = vshll.u32 %v17285_v50, 16  ;;  %v18800_v14 = vld [vmem:[#allocation111_spill] sm:$0xff]  ;;  %v10752_v35 = vrot.slane %v10750_v51, 5 }
 0xd1c   : > { %v7748_v59 = vsel %vm18791_vm0, %v7746_v32, %v18790_v40  ;;  %vm18793_vm2 = vmmov %vm18783_vm13  ;;  %vm18801_vm13 = vcmask 654336   ;;  %v8062_v40 = vshll.u32 %v6679_v18, 16 }
 0xd1d   : > { %v6939_v20 = vsel %vm18793_vm2, %v6937_v25, %v18792_v3  ;;  %vm18795_vm5 = vmmov %vm18791_vm0  ;;  %v7476_v32 = vsel %vm18801_vm13, %v7474_v11, %v18800_v14  ;;  %v8090_v25 = vshrl.u32 %v7748_v59, 16  ;;  %v8093_v43 = vshll.u32 %v7748_v59, 16  ;;  %v10090_v50 = vpop.permute.xlu1 %10089  ;;  %v18806_v11 = vld [vmem:[#allocation99_spill] sm:$0xff]  ;;  %v18810_v59 = vld [vmem:[#allocation110_spill] sm:$0xff] }
 0xd1e   : > { %v7200_v34 = vsel %vm18795_vm5, %v7198_v22, %v18794_v52  ;;  %vm18797_vm3 = vmmov %vm18791_vm0  ;;  %v10755_v22 = vrot.slane %v10753_v57, 6  ;;  %v6922_v3 = vsel %vm428_vm7, %v6920_v15, %v18802_v39  ;;  %v17353_v52 = vpop.permute.xlu0 %9551  ;;  %v10140_v51 = vsel %vm18791_vm0, %v17153_v38, %v10090_v50  ;;  %v18808_v57 = vld [vmem:[#allocation81_spill] sm:$0xff] }
 0xd1f   : > { %v17342_v8 = vsel %vm18797_vm3, %v17122_v23, %v9309_v48  ;;  %vm18799_vm1 = vmmov %vm18779_vm10  ;;  %v8072_v23 = vshll.u32 %v7200_v34, 16  ;;  %v10738_v48 = vshrl.u32 %v9860_v7, 16  ;;  %18803 = vst [vmem:[#allocation175_spill] sm:$0xff] %v17353_v52  ;;  %v10748_v14 = vrot.slane %v10140_v51, 7  ;;  %v18812_v39 = vld [vmem:[#allocation113_spill] sm:$0xff] }
 0xd20   : > { %v6941_v27 = vsel %vm18799_vm1, %v6939_v20, %v18798_v21  ;;  %v18804_v20 = vld [vmem:[#allocation51_spill] sm:$0xff]  ;;  %vm18805_vm11 = vmmov %vm18793_vm2  ;;  %vm18809_vm2 = vcmask 785408   ;;  %v8092_v45 = vrot.slane %v8090_v25, 5  ;;  %v8064_v52 = vrot.slane %v8062_v40, 4  ;;  %v18821_v40 = vld [vmem:[#allocation88_spill] sm:$0xff] }
 0xd21   : > { %v6924_v21 = vsel %vm18805_vm11, %v6922_v3, %v18804_v20  ;;  %vm18807_vm9 = vmmov %vm18801_vm13  ;;  %v10740_v7 = vor.u32 %v10738_v48, %v17349_v4  ;;  %v8095_v3 = vrot.slane %v8093_v43, 6  ;;  %v10756_v20 = vor.u32 %v10755_v22, %v10752_v35  ;;  %v18817_v48 = vld [vmem:[#allocation62_spill] sm:$0xff]  ;;  %v18819_v25 = vld [vmem:[#allocation75_spill] sm:$0xff] }
 0xd22   : > { %v6943_v61 = vsel %vm18807_vm9, %v6941_v27, %v18806_v11  ;;  %vm18811_vm5 = vmmov %vm18809_vm2  ;;  %v18814_v27 = vld [vmem:[#allocation70_spill] sm:$0xff]  ;;  %v8074_v38 = vrot.slane %v8072_v23, 1  ;;  %v8051_v22 = vrot.slane %v17314_v53, 5 }
 0xd23   : > { %v6945_v18 = vsel %vm18809_vm2, %v6943_v61, %v18808_v57  ;;  %v7478_v15 = vsel %vm18811_vm5, %v7476_v32, %v18810_v59  ;;  %vm18813_vm10 = vmmov %vm18791_vm0  ;;  %v17371_v61 = vpop.permute.xlu0 %10615  ;;  %v10656_v57 = vpop.permute.xlu1 %10655  ;;  %v8045_v32 = vor.u32 %v17187_v19, %v17145_v17  ;;  %v8057_v17 = vrot.slane %v8055_v10, 4 }
 0xd24   : > { %v7480_v5 = vsel %vm18813_vm10, %v7478_v15, %v18812_v39  ;;  %vm18815_vm3 = vmmov %vm18799_vm1  ;;  %vm18816_vm1 = vcmask 1040384   ;;  %v8054_v15 = vrot.slane %v8052_v16, 3  ;;  %v8096_v19 = vor.u32 %v8095_v3, %v8092_v45 }
 0xd25   : > { %v6926_v11 = vsel %vm18815_vm3, %v6924_v21, %v18814_v27  ;;  %v10794_v50 = vsel %vm18816_vm1, %v10740_v7, %v10748_v14  ;;  %vm18818_vm13 = vmmov %vm18791_vm0  ;;  %v8078_v21 = vshrl.u32 %v7200_v34, 16  ;;  %v8088_v59 = vrot.slane %v7480_v5, 7  ;;  %v18824_v14 = vld [vmem:[#allocation76_spill] sm:$0xff]  ;;  %v18826_v34 = vld [vmem:[#allocation83_spill] sm:$0xff] }
 0xd26   : > { %v6348_v51 = vsel %vm18818_vm13, %v17200_v62, %v18817_v48  ;;  %vm18820_vm11 = vmmov %vm18807_vm9  ;;  %v17382_v35 = vsel %vm13229_vm14, %v10794_v50, %v10756_v20  ;;  %v8065_v7 = vor.u32 %v8064_v52, %v8061_v2  ;;  %v8038_v16 = vor.u32 %v17138_v31, %v17136_v47  ;;  %v18830_v5 = vld [vmem:[#allocation37_spill] sm:$0xff]  ;;  %v18833_v48 = vld [vmem:[#allocation7_spill] sm:$0xff] }
 0xd27   : > { %v6928_v43 = vsel %vm18820_vm11, %v6926_v11, %v18819_v25  ;;  %vm18822_vm9 = vmmov %vm18791_vm0  ;;  %v8080_v20 = vor.u32 %v8078_v21, %v8074_v38  ;;  %v7966_v27 = vpop.permute.xlu0 %7965  ;;  %v17394_v11 = vpop.permute.xlu1 %8393  ;;  %v8058_v50 = vor.u32 %v8057_v17, %v8054_v15 }
 0xd28   : > { %v6947_v23 = vsel %vm18822_vm9, %v6945_v18, %v18821_v40  ;;  %vm18823_vm0 = vmmov %vm18820_vm11  ;;  %v6930_v39 = vsel %vm18809_vm2, %v6928_v43, %v18824_v14  ;;  %vm18832_vm11 = vcmask 1042432  }
 0xd29   : > { %v8012_v62 = vsel %vm18823_vm0, %v16879_v41, %v16981_v28  ;;  %vm18825_vm5 = vmmov %vm18809_vm2  ;;  %v8071_v10 = vrot.slane %v6947_v23, 2  ;;  %v8050_v28 = vrot.slane %v6348_v51, 5  ;;  %v8134_v52 = vsel %vm18816_vm1, %v8080_v20, %v8088_v59 }
 0xd2a   : > { %v8014_v53 = vsel %vm18825_vm5, %v8012_v62, %v17196_v12  ;;  %vm18827_vm10 = vmmov %vm18822_vm9  ;;  %v8111_v12 = vsel %vm13077_vm15, %v17132_v37, %v8045_v32  ;;  %v8140_v47 = vsel %vm13229_vm14, %v8134_v52, %v8096_v19  ;;  %vm18835_vm0 = vcmask 1043456   ;;  %v11899_v32 = vld [vmem:[%s17597_s1] sm:$0xff]  }
 0xd2b   : > { %v6932_v45 = vsel %vm18827_vm10, %v6930_v39, %v18826_v34  ;;  %vm18828_vm3 = vmmov %vm18822_vm9  ;;  %v8118_v31 = vsel %vm18832_vm11, %v8111_v12, %v8051_v22  ;;  %v17413_v43 = vpop.permute.xlu0 %8433  ;;  %v17415_v40 = vpop.permute.xlu1 %8942  ;;  %vm18837_vm14 = vcmask 1045504   ;;  %vm18842_vm10 = vcmask 654336  }
 0xd2c   : > { %v8016_v41 = vsel %vm18828_vm3, %v8014_v53, %v7966_v27  ;;  %vm18831_vm13 = vmmov %vm18809_vm2  ;;  %v8070_v25 = vrot.slane %v6932_v45, 2  ;;  %v8121_v23 = vsel %vm13245_vm4, %v8118_v31, %v8065_v7  ;;  %v18841_v53 = vld [vmem:[#allocation185_spill] sm:$0xff] }
 0xd2d   : > { %v8108_v2 = vrot.slane %v8016_v41, 4  ;;  %v5802_v3 = vsel %vm18831_vm13, %v17015_v33, %v18830_v5  ;;  %vm18834_vm9 = vmmov %vm18828_vm3  ;;  %v8128_v22 = vsel %vm18837_vm14, %v8121_v23, %v8071_v10 }
 0xd2e   : > { %v5804_v51 = vsel %vm18834_vm9, %v5802_v3, %v18833_v48  ;;  %vm18838_vm2 = vmmov %vm18832_vm11  ;;  %v8131_v15 = vsel %vm13284_vm8, %v8128_v22, %v17191_v13  ;;  %v10687_v13 = vsel %vm18842_vm10, %v16989_v29, %v17194_v6  ;;  %vm18846_vm11 = vcmask 523264  }
 0xd2f   : > { %v8144_v37 = vsel %vm18835_vm0, %v8140_v47, %v8108_v2  ;;  %v8110_v33 = vsel %vm13077_vm15, %v5804_v51, %v8038_v16  ;;  %v8983_v19 = vpop.permute.xlu0 %8982  ;;  %v9274_v62 = vpop.permute.xlu1 %9273  ;;  %vm18840_vm5 = vmmov %vm18837_vm14  ;;  %v10670_v12 = vsel %vm18846_vm11, %v16966_v0, %v17170_v58  ;;  %v10699_v0 = vshrl.u32 %v16903_v55, 16 }
 0xd30   : > { %v8150_v49 = vsel %vm13254_vm12, %v8144_v37, 0  ;;  %v8114_v21 = vsel %vm18838_vm2, %v8110_v33, %v8050_v28  ;;  %vm18843_vm3 = vmmov %vm18831_vm13  ;;  %v10702_v58 = vshll.u32 %v16903_v55, 16  ;;  %v10719_v33 = vshrl.u32 %v17342_v8, 16 }
 0xd31   : > { %8165 = vmatpush1.bf16.msra.mxu0 %v8150_v49  ;;  %v8120_v17 = vsel %vm13245_vm4, %v8114_v21, %v8058_v50  ;;  %v10689_v27 = vsel %vm18843_vm3, %v10687_v13, %v10656_v57  ;;  %vm18844_vm1 = vmmov %vm18834_vm9  ;;  %v10722_v49 = vshll.u32 %v17342_v8, 16  ;;  %v10701_v22 = vrot.slane %v10699_v0, 6 }
 0xd32   : > { %8166 = vmatprep.subr.bf16.mxu0 %v8131_v15  ;;  %v8124_v7 = vsel %vm18840_vm5, %v8120_v17, %v8070_v25  ;;  %vm18845_vm13 = vmmov %vm18835_vm0  ;;  %v10704_v21 = vrot.slane %v10702_v58, 7  ;;  %v9324_v8 = vsel %vm18844_vm1, %v17310_v54, %v9274_v62  ;;  %v9580_v0 = vsel %vm424_vm6, %v16681_v9, %v17332_v1 }
 0xd33   : > { %v8130_v14 = vsel %vm13284_vm8, %v8124_v7, %v8074_v38  ;;  %v17434_v39 = vpop.permute.xlu0 %9516  ;;  %v17436_v20 = vpop.permute.xlu1 %9556  ;;  %vm18847_vm9 = vmmov %vm18842_vm10  ;;  %v10721_v7 = vrot.slane %v10719_v33, 3 }
 0xd34   : > { %vm18848_vm0 = vmmov %vm18843_vm3 }
 0xd35   : > { %8167 = vmatpush1.bf16.msra.mxu0 %v8130_v14  ;;  %vm18849_vm14 = vmmov %vm18844_vm1  ;;  %v10724_v14 = vrot.slane %v10722_v49, 4 }
 0xd36   : > { %vm18850_vm2 = vmmov %vm18845_vm13 }
 0xd37   : > { %v10621_v16 = vpop.permute.xlu0 %10620  ;;  %v10661_v34 = vpop.permute.xlu1 %10660  ;;  %vm18851_vm5 = vmmov %vm18847_vm9 }
 0xd38   : > { %11387 = vmatmul.mubr.msk.bf16.vlgmr.msra.gmra.mxu0 %vm428_vm7, %v18841_v53  ;;  %v10691_v38 = vsel %vm18844_vm1, %v10689_v27, %v10661_v34  ;;  %v9019_v15 = vsel %vm18851_vm5, %v17306_v44, %v8983_v19  ;;  %vm18852_vm10 = vmmov %vm18848_vm0  ;;  %v10705_v27 = vor.u32 %v10704_v21, %v10701_v22  ;;  %v10692_v44 = vshrl.u32 %v17052_v26, 16 }
 0xd39   : > { %8194 = vmatprep.mubr.bf16.mxu0 %v17776_v30  ;;  %v10769_v45 = vrot.slane %v10691_v38, 4  ;;  %vm18854_vm3 = vmmov %vm18844_vm1  ;;  %v10695_v19 = vshll.u32 %v17052_v26, 16 }
 0xd3a   : > { %v10694_v26 = vrot.slane %v10692_v44, 6 }
 0xd3b   : > { %v17446_v10 = vpop.permute.xlu0 %8398  ;;  %v8439_v41 = vpop.permute.xlu1 %8438  ;;  %v10808_v28 = vsel %vm18845_vm13, %v17208_v60, %v10769_v45  ;;  %v10672_v60 = vsel %vm18847_vm9, %v10670_v12, %v17371_v61  ;;  %vm18855_vm13 = vmmov %vm18851_vm5 }
 0xd3c   : > { %v10811_v52 = vsel %vm13254_vm12, %v10808_v28, 0  ;;  %v10674_v5 = vsel %vm18848_vm0, %v10672_v60, %v10621_v16  ;;  %vm18857_vm9 = vmmov %vm18844_vm1 }
 0xd3d   : > { %10824 = vmatprep.subr.bf16.mxu1 %v10811_v52  ;;  %v10715_v52 = vshll.u32 %v9324_v8, 16 }
 0xd3f   : > { %v8948_v29 = vpop.permute.xlu0 %8947  ;;  %v8988_v6 = vpop.permute.xlu1 %8987 }
 0xd40   : > { %11388 = vmatmul.mubr.msk.bf16.gmra.mxu0 %vm428_vm7, %v16912_v46  ;;  %v9021_v56 = vsel %vm18852_vm10, %v9019_v15, %v8988_v6  ;;  %v10697_v6 = vrot.slane %v10695_v19, 7 }
 0xd43   : > { %v17454_v57 = vpop.permute.xlu0 %9521  ;;  %v17456_v2 = vpop.permute.xlu1 %9561 }
 0xd47   : > { %v10626_v3 = vpop.permute.xlu0 %10625  ;;  %v8404_v50 = vpop.permute.xlu1 %8403 }
 0xd48   : > { %v10676_v47 = vsel %vm18849_vm14, %v10674_v5, %v10626_v3  ;;  %vm18859_vm14 = vcmask 1042432  }
 0xd49   : > { %v10768_v31 = vrot.slane %v10676_v47, 4 }
 0xd4b   : > { %v8444_v48 = vpop.permute.xlu0 %8443  ;;  %v8953_v51 = vpop.permute.xlu1 %8952  ;;  %v10804_v25 = vsel %vm18850_vm2, %v17382_v35, %v10768_v31  ;;  %vm18860_vm2 = vmmov %vm18851_vm5  ;;  %vm18861_vm5 = vcmask 392192  }
 0xd4c   : > { %v10810_v37 = vsel %vm13254_vm12, %v10804_v25, 0  ;;  %vm18853_vm12 = vmmov %vm18846_vm11  ;;  %v8456_v47 = vsel %vm18861_vm5, %v17238_v42, %v17394_v11  ;;  %v10717_v25 = vrot.slane %v10715_v52, 4  ;;  %v10698_v42 = vor.u32 %v10697_v6, %v10694_v26  ;;  %v18866_v11 = vld [vmem:[#allocation175_spill] sm:$0xff] }
 0xd4d   : > { %10825 = vmatpush1.bf16.msra.mxu1 %v10810_v37  ;;  %v8474_v55 = vsel %vm18853_vm12, %v17264_v63, %v17413_v43  ;;  %vm18856_vm11 = vmmov %vm18848_vm0  ;;  %v10725_v63 = vor.u32 %v10724_v14, %v10721_v7  ;;  %v10712_v43 = vshrl.u32 %v9324_v8, 16 }
 0xd4e   : > { %v8476_v13 = vsel %vm18855_vm13, %v8474_v55, %v8439_v41  ;;  %vm18858_vm0 = vmmov %vm18853_vm12 }
 0xd4f   : > { %v8993_v61 = vpop.permute.xlu0 %8992  ;;  %v9527_v23 = vpop.permute.xlu1 %9526  ;;  %v8478_v16 = vsel %vm18856_vm11, %v8476_v13, %v8444_v48  ;;  %v9002_v62 = vsel %vm18858_vm0, %v17268_v36, %v17415_v40  ;;  %v10714_v48 = vrot.slane %v10712_v43, 3  ;;  %vm18862_vm12 = vmmov %vm18858_vm0 }
 0xd50   : > { %v9023_v53 = vsel %vm18854_vm3, %v9021_v56, %v8993_v61  ;;  %v9004_v12 = vsel %vm18860_vm2, %v9002_v62, %v8948_v29  ;;  %v8458_v36 = vsel %vm18862_vm12, %v8456_v47, %v17446_v10  ;;  %vm18863_vm3 = vmmov %vm18844_vm1  ;;  %v18864_v29 = vld [vmem:[#allocation184_spill] sm:$0xff]  ;;  %v9582_v61 = vsel %vm428_vm7, %v9580_v0, %v17434_v39 }
 0xd51   : > { %v10711_v45 = vrot.slane %v9023_v53, 5  ;;  %v9006_v31 = vsel %vm18852_vm10, %v9004_v12, %v8953_v51  ;;  %v9595_v37 = vsel %vm424_vm6, %v18864_v29, %v17143_v24  ;;  %vm18865_vm1 = vmmov %vm18860_vm2 }
 0xd52   : > { %v8460_v58 = vsel %vm18865_vm1, %v8458_v36, %v8404_v50  ;;  %v9597_v51 = vsel %vm428_vm7, %v9595_v37, %v18866_v11  ;;  %vm18867_vm13 = vmmov %vm18852_vm10  ;;  %v10718_v50 = vor.u32 %v10717_v25, %v10714_v48  ;;  %vm18874_vm10 = vcmask 1042432  }
 0xd53   : > { %v9567_v35 = vpop.permute.xlu0 %9566  ;;  %v8409_v17 = vpop.permute.xlu1 %8408  ;;  %vm18868_vm11 = vmmov %vm18861_vm5 }
 0xd54   : > { %v8462_v10 = vsel %vm18867_vm13, %v8460_v58, %v8409_v17  ;;  %v9599_v24 = vsel %vm18868_vm11, %v9597_v51, %v17436_v20  ;;  %vm18870_vm6 = vmmov %vm18863_vm3 }
 0xd55   : > { %v9601_v21 = vsel %vm18858_vm0, %v9599_v24, %v17456_v2  ;;  %vm18872_vm2 = vmmov %vm18865_vm1 }
 0xd56   : > { %v9603_v17 = vsel %vm18872_vm2, %v9601_v21, %v9567_v35  ;;  %vm18875_vm12 = vmmov %vm18867_vm13 }
 0xd57   : > { %v8449_v34 = vpop.permute.xlu0 %8448  ;;  %v8958_v38 = vpop.permute.xlu1 %8957 }
 0xd58   : > { %v8480_v28 = vsel %vm18857_vm9, %v8478_v16, %v8449_v34  ;;  %v9008_v40 = vsel %vm18863_vm3, %v9006_v31, %v8958_v38  ;;  %vm18869_vm9 = vmmov %vm18861_vm5 }
 0xd59   : > { %v10771_v54 = vsel %vm13077_vm15, %v8480_v28, %v10705_v27  ;;  %v9584_v22 = vsel %vm18869_vm9, %v9582_v61, %v17454_v57  ;;  %v10710_v9 = vrot.slane %v9008_v40, 5  ;;  %vm18873_vm5 = vmmov %vm18865_vm1  ;;  %v18881_v27 = vld [vmem:[#allocation177_spill] sm:$0xff] }
 0xd5a   : > { %v10778_v41 = vsel %vm18859_vm14, %v10771_v54, %v10711_v45  ;;  %vm18871_vm14 = vmmov %vm18858_vm0 }
 0xd5b   : > { %v9532_v60 = vpop.permute.xlu0 %9531  ;;  %v9572_v5 = vpop.permute.xlu1 %9571  ;;  %v10781_v3 = vsel %vm13245_vm4, %v10778_v41, %v10725_v63  ;;  %v9586_v15 = vsel %vm18871_vm14, %v9584_v22, %v9527_v23  ;;  %vm18876_vm3 = vmmov %vm18875_vm12 }
 0xd5c   : > { %v9588_v56 = vsel %vm18873_vm5, %v9586_v15, %v9532_v60  ;;  %v9605_v57 = vsel %vm18875_vm12, %v9603_v17, %v9572_v5  ;;  %vm18877_vm1 = vmmov %vm18870_vm6 }
 0xd5d   : > { %vm18878_vm13 = vmmov %vm18877_vm1 }
 0xd5f   : > { %v8414_v33 = vpop.permute.xlu0 %8413  ;;  %v9537_v49 = vpop.permute.xlu1 %9536 }
 0xd60   : > { %v8464_v1 = vsel %vm18870_vm6, %v8462_v10, %v8414_v33  ;;  %v9590_v7 = vsel %vm18876_vm3, %v9588_v56, %v9537_v49 }
 0xd61   : > { %v10770_v39 = vsel %vm13077_vm15, %v8464_v1, %v10698_v42  ;;  %vm18879_vm15 = vcmask 1045504   ;;  %v5526_v59 = vpop.f32.mrf.mxu1 }
 0xd62   : > { %v10774_v20 = vsel %vm18874_vm10, %v10770_v39, %v10710_v9  ;;  %vm18880_vm11 = vmmov %vm18879_vm15  ;;  %11241 = vst [vmem:[%s17546_s6 + $0x40] sm:$0xff] %v5526_v59 }
 0xd63   : > { %v9577_v14 = vpop.permute.xlu0 %9576  ;;  %v9542_v55 = vpop.permute.xlu1 %9541  ;;  %v10780_v2 = vsel %vm13245_vm4, %v10774_v20, %v10718_v50 }
 0xd64   : > { %v9607_v23 = vsel %vm18877_vm1, %v9605_v57, %v9577_v14  ;;  %v9592_v18 = vsel %vm18878_vm13, %v9590_v7, %v9542_v55  ;;  %v5528_v34 = vpop.f32.mrf.mxu1 }
 0xd65   : > { %v10731_v53 = vrot.slane %v9607_v23, 2  ;;  %v10730_v35 = vrot.slane %v9592_v18, 2  ;;  %11242 = vst [vmem:[%s17546_s6 + $0x48] sm:$0xff] %v5528_v34 }
 0xd66   : > { %v5530_v45 = vpop.f32.mrf.mxu1 }
 0xd67   : > { %v10788_v8 = vsel %vm18879_vm15, %v10781_v3, %v10731_v53  ;;  %v10784_v13 = vsel %vm18880_vm11, %v10780_v2, %v10730_v35  ;;  %11243 = vst [vmem:[%s17546_s6 + $0x50] sm:$0xff] %v5530_v45 }
 0xd68   : > { %v10791_v44 = vsel %vm13284_vm8, %v10788_v8, %v18881_v27  ;;  %v10790_v19 = vsel %vm13284_vm8, %v10784_v13, %v17349_v4  ;;  %v2867_v4 = vpop.f32.mrf.mxu0  ;;  %v5532_v28 = vpop.f32.mrf.mxu1 }
 0xd69   : > { %10826 = vmatprep.subr.bf16.mxu1 %v10791_v44  ;;  %2886 = vst [vmem:[%s17546_s6] sm:$0xff] %v2867_v4  ;;  %11244 = vst [vmem:[%s17546_s6 + $0x58] sm:$0xff] %v5532_v28 }
 0xd6a   : > { %10827 = vmatpush1.bf16.msra.mxu1 %v10790_v19  ;;  %v2869_v16 = vpop.f32.mrf.mxu0 }
 0xd6b   : > { %2887 = vst [vmem:[%s17546_s6 + $0x8] sm:$0xff] %v2869_v16 }
 0xd6c   : > { %v2871_v38 = vpop.f32.mrf.mxu0 }
 0xd6d   : > { %11535 = vmatmul.mubr.msk.bf16.vlgmr.msra.gmra.mxu1 %vm428_vm7, %v11899_v32  ;;  %2888 = vst [vmem:[%s17546_s6 + $0x10] sm:$0xff] %v2871_v38 }
 0xd6e   : > { %10854 = vmatprep.mubr.bf16.mxu1 %v17776_v30  ;;  %v2873_v30 = vpop.f32.mrf.mxu0 }
 0xd6f   : > { %2889 = vst [vmem:[%s17546_s6 + $0x18] sm:$0xff] %v2873_v30 }
 0xd75   : > { %11536 = vmatmul.mubr.msk.bf16.gmra.mxu1 %vm428_vm7, %v16912_v46 }
 0xd81   : > { %v2877_v63 = vpop.f32.mrf.mxu0  ;;  %v5536_v43 = vpop.f32.mrf.mxu1 }
 0xd82   : > { %2890 = vst [vmem:[%s17546_s6 + $0x20] sm:$0xff] %v2877_v63  ;;  %11245 = vst [vmem:[%s17546_s6 + $0x60] sm:$0xff] %v5536_v43 }
 0xd83   : > { %v2879_v52 = vpop.f32.mrf.mxu0  ;;  %v5538_v54 = vpop.f32.mrf.mxu1 }
 0xd84   : > { %2891 = vst [vmem:[%s17546_s6 + $0x28] sm:$0xff] %v2879_v52  ;;  %11246 = vst [vmem:[%s17546_s6 + $0x68] sm:$0xff] %v5538_v54 }
 0xd85   : > { %v2881_v62 = vpop.f32.mrf.mxu0  ;;  %v5540_v41 = vpop.f32.mrf.mxu1 }
 0xd86   : > { %2892 = vst [vmem:[%s17546_s6 + $0x30] sm:$0xff] %v2881_v62  ;;  %11247 = vst [vmem:[%s17546_s6 + $0x70] sm:$0xff] %v5540_v41 }
 0xd87   : > { %v2883_v46 = vpop.f32.mrf.mxu0  ;;  %v5542_v26 = vpop.f32.mrf.mxu1 }
 0xd88   : > { %2893 = vst [vmem:[%s17546_s6 + $0x38] sm:$0xff] %v2883_v46  ;;  %11248 = vst [vmem:[%s17546_s6 + $0x78] sm:$0xff] %v5542_v26 }
 0xdf8   : > { %v8186_v6 = vpop.f32.mrf.mxu0 }
 0xdf9   : > { %11389 = vst [vmem:[%s17546_s6 + $0x80] sm:$0xff] %v8186_v6 }
 0xdfa   : > { %v8188_v12 = vpop.f32.mrf.mxu0 }
 0xdfb   : > { %11390 = vst [vmem:[%s17546_s6 + $0x88] sm:$0xff] %v8188_v12 }
 0xdfc   : > { %v8190_v60 = vpop.f32.mrf.mxu0 }
 0xdfd   : > { %11391 = vst [vmem:[%s17546_s6 + $0x90] sm:$0xff] %v8190_v60 }
 0xdfe   : > { %v8192_v5 = vpop.f32.mrf.mxu0 }
 0xdff   : > { %11392 = vst [vmem:[%s17546_s6 + $0x98] sm:$0xff] %v8192_v5 }
 0xe00   : > { %v8196_v3 = vpop.f32.mrf.mxu0 }
 0xe01   : > { %11393 = vst [vmem:[%s17546_s6 + $0xa0] sm:$0xff] %v8196_v3 }
 0xe02   : > { %v8198_v47 = vpop.f32.mrf.mxu0 }
 0xe03   : > { %11394 = vst [vmem:[%s17546_s6 + $0xa8] sm:$0xff] %v8198_v47 }
 0xe04   : > { %v8200_v31 = vpop.f32.mrf.mxu0 }
 0xe05   : > { %11395 = vst [vmem:[%s17546_s6 + $0xb0] sm:$0xff] %v8200_v31 }
 0xe06   : > { %v8202_v48 = vpop.f32.mrf.mxu0 }
 0xe07   : > { %11396 = vst [vmem:[%s17546_s6 + $0xb8] sm:$0xff] %v8202_v48 }
 0xe2d   : > { %v10846_v25 = vpop.f32.mrf.mxu1 }
 0xe2e   : > { %11537 = vst [vmem:[%s17546_s6 + $0xc0] sm:$0xff] %v10846_v25 }
 0xe2f   : > { %v10848_v36 = vpop.f32.mrf.mxu1 }
 0xe30   : > { %11538 = vst [vmem:[%s17546_s6 + $0xc8] sm:$0xff] %v10848_v36 }
 0xe31   : > { %v10850_v40 = vpop.f32.mrf.mxu1 }
 0xe32   : > { %11539 = vst [vmem:[%s17546_s6 + $0xd0] sm:$0xff] %v10850_v40 }
 0xe33   : > { %v10852_v29 = vpop.f32.mrf.mxu1 }
 0xe34   : > { %11540 = vst [vmem:[%s17546_s6 + $0xd8] sm:$0xff] %v10852_v29 }
 0xe35   : > { %v10856_v37 = vpop.f32.mrf.mxu1 }
 0xe36   : > { %11541 = vst [vmem:[%s17546_s6 + $0xe0] sm:$0xff] %v10856_v37 }
 0xe37   : > { %v10858_v0 = vpop.f32.mrf.mxu1 }
 0xe38   : > { %11542 = vst [vmem:[%s17546_s6 + $0xe8] sm:$0xff] %v10858_v0 }
 0xe39   : > { %v10860_v58 = vpop.f32.mrf.mxu1 }
 0xe3a   : > { %11543 = vst [vmem:[%s17546_s6 + $0xf0] sm:$0xff] %v10860_v58 }
 0xe3b   : > { %v10862_v42 = vpop.f32.mrf.mxu1 }
 0xe3c   : > { %11544 = vst [vmem:[%s17546_s6 + $0xf8] sm:$0xff] %v10862_v42 }
 0xe3d PF: > { %s12_s11 = sadd.s32 1, %s11922_s11   ;;  %s18882_s9 = smov %s11918_s10 }
 0xe3e   : > { %p9_p5 = scmp.ge.s32.totalorder %s12_s11, 4   ;;  %s18883_s10 = smov %s18885_s12 }
 0xe40   :  { %11 = sbr.rel (!%p9_p5) target bundleno = 2 (0x2), region = 64 }

</bundles_post_ra>
